<compile_context>
chip_gen: v7x
topology: tpu7x:2x2x1
jax: 0.10.0
libtpu: 0.0.40
codegen_flags: <defaults>
</compile_context>

<pallas_src>
import functools

import jax
import jax.numpy as jnp
from jax.experimental import pallas as pl
from jax.experimental.pallas import tpu as pltpu


# ----------------------------- fused Pallas kernel -------------------------- #

def _policy_fused_kernel(x_ref, w1_ref, b1_ref, w2_ref, b2_ref,
                         wf1_ref, bf1_ref, wf2_ref, bf2_ref,
                         o_ref, h1pad_ref, *, bp, board):
    Hp = board + 2                       # spatially padded board edge (zero border)
    rows_p = Hp * Hp * bp                # padded-grid rows, ordered (p', b)
    guard = (Hp + 1) * bp                # max |row shift| of a 3x3 tap on that grid
    chunk = board * bp                   # one interior board row worth of rows
    c1 = w1_ref.shape[1]                 # 32
    c2 = w2_ref.shape[1]                 # 64
    nfc1 = wf1_ref.shape[1]              # 128
    bf16 = jnp.bfloat16

    # 3x3 tap row shifts on the padded grid.  Every shift is a multiple of bp
    # (sublane aligned) and, because border rows are zero, no masks are needed.
    shifts = [(dh * Hp + dw) * bp for dh in (-1, 0, 1) for dw in (-1, 0, 1)]

    # Interior-row chunks of the h1 scratch (valid conv1 outputs); everything else
    # (guard bands + spatial border rows) must be zero and is zeroed band-by-band.
    interior_starts = [guard + ((h + 1) * Hp + 1) * bp for h in range(board)]
    total = rows_p + 2 * guard
    zero_bands, prev = [], 0
    for s in interior_starts:
        if s > prev:
            zero_bands.append((prev, s - prev))
        prev = s + chunk
    if total > prev:
        zero_bands.append((prev, total - prev))
    for s, n in zero_bands:
        h1pad_ref[s:s + n, :] = jnp.zeros((n, c1), jnp.float32)

    # conv1 (C_in = 1): 9 shifted copies of the padded input scaled by one weight row
    # each (VPU), accumulated in registers over the whole padded grid.
    acc1 = jnp.zeros((rows_p, c1), jnp.float32)
    for t in range(9):
        xs = x_ref[guard + shifts[t]:guard + shifts[t] + rows_p, :]      # (rows_p, 1)
        acc1 = acc1 + xs * w1_ref[t:t + 1, :]                            # (rows_p, c1)
    h1 = jnp.maximum(acc1 + b1_ref[...], 0.0)
    # Store only the interior rows (border-row values are meaningless and must stay 0:
    # they are exactly the zero padding conv2 reads).
    for h in range(board):
        g = ((h + 1) * Hp + 1) * bp
        h1pad_ref[guard + g:guard + g + chunk, :] = h1[g:g + chunk, :]

    # conv2: 9 tap matmuls (rows_p, c1) @ (c1, c2), bf16 operands, f32 accumulation
    # in registers -- no VMEM read-modify-write of the accumulator.
    acc2 = jnp.zeros((rows_p, c2), jnp.float32)
    for t in range(9):
        hs = h1pad_ref[guard + shifts[t]:guard + shifts[t] + rows_p, :]  # (rows_p, c1)
        acc2 = acc2 + jnp.dot(hs.astype(bf16),
                              w2_ref[t * c1:(t + 1) * c1, :],
                              preferred_element_type=jnp.float32)
    h2 = jnp.maximum(acc2 + b2_ref[...], 0.0)                            # (rows_p, c2)

    # fc1: the PyTorch NCHW flatten is folded into wf1's row permutation, so fc1 is a
    # sum over the board's 25 interior positions of (bp, c2) @ (c2, 128) matmuls.
    # TODO(synk): fuse into one (bp, P*c2) @ (P*c2, 128) matmul once the lane-merge
    # transpose/reshape is worth the relayout (matters at serving batch, not here).
    acc3 = jnp.zeros((bp, nfc1), jnp.float32)
    for h in range(board):
        for w in range(board):
            q = h * board + w
            g = ((h + 1) * Hp + (w + 1)) * bp
            acc3 = acc3 + jnp.dot(h2[g:g + bp, :].astype(bf16),
                                  wf1_ref[q * c2:(q + 1) * c2, :],
                                  preferred_element_type=jnp.float32)
    h3 = jnp.maximum(acc3 + bf1_ref[...], 0.0)

    # fc2 + softmax over a lane-dense 128-wide logit row (pad columns: weight 0,
    # bias -1e30 in f32 -> exactly zero probability).
    logits = jnp.dot(h3.astype(bf16), wf2_ref[...],
                     preferred_element_type=jnp.float32) + bf2_ref[...]
    m = jnp.max(logits, axis=1, keepdims=True)
    e = jnp.exp(logits - m)
    s = jnp.sum(e, axis=1, keepdims=True)
    o_ref[...] = e * pl.reciprocal(s, approx=True)       # divide on the idle EUP


def _fused_policy_call(x_buf, pp, bp, board):
    Hp = board + 2
    P = board * board
    rows_p = Hp * Hp * bp
    guard = (Hp + 1) * bp
    c1 = pp["w1"].shape[1]
    c2 = pp["w2"].shape[1]
    nfc1 = pp["wf1"].shape[1]
    nout = pp["wf2"].shape[1]            # 128, lane-dense

    kernel = functools.partial(_policy_fused_kernel, bp=bp, board=board)

    flops = (2 * rows_p * 9 * c1                 # conv1
             + 2 * rows_p * 9 * c1 * c2          # conv2
             + 2 * bp * P * c2 * nfc1            # fc1
             + 2 * bp * nfc1 * nout)             # fc2
    bytes_accessed = int(sum(int(v.size) * v.dtype.itemsize for v in pp.values())
                         + int(x_buf.size) * 4 + bp * nout * 4)

    return pl.pallas_call(
        kernel,
        out_shape=jax.ShapeDtypeStruct((bp, nout), jnp.float32),
        in_specs=[pl.BlockSpec(memory_space=pltpu.MemorySpace.VMEM)] * 9,
        out_specs=pl.BlockSpec(memory_space=pltpu.MemorySpace.VMEM),
        scratch_shapes=[
            pltpu.VMEM((rows_p + 2 * guard, c1), jnp.float32),   # padded conv1 output
        ],
        compiler_params=pltpu.CompilerParams(vmem_limit_bytes=16 * 1024 * 1024),
        cost_estimate=pl.CostEstimate(flops=flops, transcendentals=bp * nout,
                                      bytes_accessed=bytes_accessed),
    )(x_buf, pp["w1"], pp["b1"], pp["w2"], pp["b2"],
      pp["wf1"], pp["bf1"], pp["wf2"], pp["bf2"])


# ------------------------ one-time parameter re-layout ---------------------- #

def prepare_params(params, board_size=5):
    """Re-lay PyTorch-convention weights into matmul layout ONCE (not per forward).

    Large matrices are stored in bf16 (weight DMA dominates the kernel); biases stay
    f32, accumulation/softmax stay f32 in-kernel.
    """
    H = W = board_size
    nact = H * W + 1
    f32, bf16 = jnp.float32, jnp.bfloat16
    c1 = params["w_conv1"].shape[0]            # 32
    c2 = params["w_conv2"].shape[0]            # 64
    nfc1 = params["w_fc1"].shape[0]            # 128

    # conv weights (O, I, kh, kw) -> (kh*kw*I, O), rows ordered (tap, c_in).
    w1 = jnp.transpose(params["w_conv1"], (2, 3, 1, 0)).reshape(9 * 1, c1).astype(f32)
    w2 = jnp.transpose(params["w_conv2"], (2, 3, 1, 0)).reshape(9 * c1, c2).astype(bf16)
    b1 = params["b_conv1"].reshape(1, c1).astype(f32)
    b2 = params["b_conv2"].reshape(1, c2).astype(f32)

    # fc1 weight (128, c2*H*W) expects NCHW flatten (c,h,w); permute its input columns
    # to (h,w,c) so the kernel consumes the (spatial, channel) activations directly.
    wf1 = params["w_fc1"].reshape(nfc1, c2, H, W)
    wf1 = jnp.transpose(wf1, (2, 3, 1, 0)).reshape(H * W * c2, nfc1).astype(bf16)
    bf1 = params["b_fc1"].reshape(1, nfc1).astype(f32)

    # fc2 (nact, 128) -> (128, 128) lane-dense; pad columns: weight 0, bias -1e30 (f32).
    wf2 = (jnp.zeros((nfc1, 128), f32)
           .at[:, :nact].set(params["w_fc2"].T.astype(f32))).astype(bf16)
    bf2 = jnp.full((1, 128), -1e30, f32).at[:, :nact].set(
        params["b_fc2"].reshape(1, nact).astype(f32))

    return {"w1": w1, "b1": b1, "w2": w2, "b2": b2,
            "wf1": wf1, "bf1": bf1, "wf2": wf2, "bf2": bf2}


# --------------------------------- forward ---------------------------------- #

@functools.partial(jax.jit, static_argnames=("board_size",))
def policy_network_forward(x_nchw, prepped, board_size=5):
    """Pallas implementation of PolicyNetwork.forward. x is NCHW float32."""
    B = x_nchw.shape[0]
    P = board_size * board_size
    nact = P + 1
    BP = max(8, ((B + 7) // 8) * 8)      # batch padded to a sublane multiple
    Hp = board_size + 2
    rows_p = Hp * Hp * BP
    guard = (Hp + 1) * BP

    # Wrapper-side layout (tiny input): zero-pad batch to BP, zero-pad the board to
    # (board+2)^2 (the conv "SAME" border), order rows (spatial p', batch b), and add
    # zero DMA guard rows so every in-kernel tap is a plain aligned slice.
    x = x_nchw.reshape(B, P)
    x = jnp.pad(x, ((0, BP - B), (0, 0))).reshape(BP, board_size, board_size)
    x = jnp.pad(x, ((0, 0), (1, 1), (1, 1)))                   # (BP, Hp, Hp)
    x = jnp.transpose(x, (1, 2, 0)).reshape(rows_p, 1)         # rows ordered (p', b)
    x_buf = jnp.pad(x, ((guard, guard), (0, 0)))               # guard rows

    probs_padded = _fused_policy_call(x_buf, prepped, BP, board_size)   # (BP, 128)
    return probs_padded[:B, :nact]


# --------------------------- pure-JAX reference ------------------------------ #

def reference_forward(x_nchw, params, board_size=5):
    B = x_nchw.shape[0]
    dn = ("NCHW", "OIHW", "NCHW")
    y = jax.lax.conv_general_dilated(x_nchw, params["w_conv1"], (1, 1), "SAME",
                                     dimension_numbers=dn)
    y = jnp.maximum(y + params["b_conv1"][None, :, None, None], 0.0)
    y = jax.lax.conv_general_dilated(y, params["w_conv2"], (1, 1), "SAME",
                                     dimension_numbers=dn)
    y = jnp.maximum(y + params["b_conv2"][None, :, None, None], 0.0)
    flat = y.reshape(B, -1)
    h = jnp.maximum(flat @ params["w_fc1"].T + params["b_fc1"], 0.0)
    logits = h @ params["w_fc2"].T + params["b_fc2"]
    return jax.nn.softmax(logits, axis=1)


# ----------------------------------- main ------------------------------------ #

def init_params(key, board_size=5):
    num_actions = board_size * board_size + 1
    ks = jax.random.split(key, 8)
    s = 0.1
    return {
        "w_conv1": s * jax.random.normal(ks[0], (32, 1, 3, 3), jnp.float32),
        "b_conv1": s * jax.random.normal(ks[1], (32,), jnp.float32),
        "w_conv2": s * jax.random.normal(ks[2], (64, 32, 3, 3), jnp.float32),
        "b_conv2": s * jax.random.normal(ks[3], (64,), jnp.float32),
        "w_fc1":   s * jax.random.normal(ks[4], (128, 64 * board_size * board_size), jnp.float32),
        "b_fc1":   s * jax.random.normal(ks[5], (128,), jnp.float32),
        "w_fc2":   s * jax.random.normal(ks[6], (num_actions, 128), jnp.float32),
        "b_fc2":   s * jax.random.normal(ks[7], (num_actions,), jnp.float32),
    }


if __name__ == "__main__":
    board_size = 5
    batch = 2

    key = jax.random.PRNGKey(0)
    key_x, key_p = jax.random.split(key)
    x = jax.random.normal(key_x, (batch, 1, board_size, board_size), jnp.float32)
    params = init_params(key_p, board_size)
    prepped = prepare_params(params, board_size)          # one-time weight re-layout

    probs = jax.block_until_ready(
        policy_network_forward(x, prepped, board_size=board_size))
    ref = jax.block_until_ready(reference_forward(x, params, board_size))

    assert probs.shape == (batch, board_size * board_size + 1)
    assert bool(jnp.all(jnp.isfinite(probs)))
    # Tolerances account for bf16 weight storage + approx reciprocal in the softmax;
    # the f32 reference uses full-precision weights.
    assert bool(jnp.allclose(jnp.sum(probs, axis=1), 1.0, atol=1e-2))
    assert bool(jnp.allclose(probs, ref, rtol=3e-2, atol=2e-3))

    print("KERNEL_OK")
</pallas_src>

<mosaic_0001>
module attributes {stable_mosaic.version = 11 : i64} {
  func.func @_policy_fused_kernel(%arg0: memref<520x1xf32, #tpu.memory_space<vmem>>, %arg1: memref<9x32xf32, #tpu.memory_space<vmem>>, %arg2: memref<1x32xf32, #tpu.memory_space<vmem>>, %arg3: memref<288x64xbf16, #tpu.memory_space<vmem>>, %arg4: memref<1x64xf32, #tpu.memory_space<vmem>>, %arg5: memref<1600x128xbf16, #tpu.memory_space<vmem>>, %arg6: memref<1x128xf32, #tpu.memory_space<vmem>>, %arg7: memref<128x128xbf16, #tpu.memory_space<vmem>>, %arg8: memref<1x128xf32, #tpu.memory_space<vmem>>, %arg9: memref<8x128xf32, #tpu.memory_space<vmem>>, %arg10: memref<520x32xf32, #tpu.memory_space<vmem>>) attributes {dimension_semantics = [], scalar_prefetch = 0 : i64, scratch_operands = 1 : i64, tpu.core_type = #tpu.core_type<tc>} {
    %cst = arith.constant 0.000000e+00 : f32
    %0 = vector.broadcast %cst : f32 to vector<128x32xf32>
    %c0 = arith.constant 0 : index
    %c0_0 = arith.constant 0 : index
    %1 = vector.load %arg10[%c0, %c0_0] : memref<520x32xf32, #tpu.memory_space<vmem>>, vector<128x32xf32>
    tpu.vector_store %arg10[%c0, %c0_0], %0 {strides = array<i32>} : memref<520x32xf32, #tpu.memory_space<vmem>>, vector<128x32xf32>,
    %cst_1 = arith.constant 0.000000e+00 : f32
    %2 = vector.broadcast %cst_1 : f32 to vector<16x32xf32>
    %c168 = arith.constant 168 : index
    %c0_2 = arith.constant 0 : index
    %3 = vector.load %arg10[%c168, %c0_2] : memref<520x32xf32, #tpu.memory_space<vmem>>, vector<16x32xf32>
    tpu.vector_store %arg10[%c168, %c0_2], %2 {strides = array<i32>} : memref<520x32xf32, #tpu.memory_space<vmem>>, vector<16x32xf32>,
    %cst_3 = arith.constant 0.000000e+00 : f32
    %4 = vector.broadcast %cst_3 : f32 to vector<16x32xf32>
    %c224 = arith.constant 224 : index
    %c0_4 = arith.constant 0 : index
    %5 = vector.load %arg10[%c224, %c0_4] : memref<520x32xf32, #tpu.memory_space<vmem>>, vector<16x32xf32>
    tpu.vector_store %arg10[%c224, %c0_4], %4 {strides = array<i32>} : memref<520x32xf32, #tpu.memory_space<vmem>>, vector<16x32xf32>,
    %cst_5 = arith.constant 0.000000e+00 : f32
    %6 = vector.broadcast %cst_5 : f32 to vector<16x32xf32>
    %c280 = arith.constant 280 : index
    %c0_6 = arith.constant 0 : index
    %7 = vector.load %arg10[%c280, %c0_6] : memref<520x32xf32, #tpu.memory_space<vmem>>, vector<16x32xf32>
    tpu.vector_store %arg10[%c280, %c0_6], %6 {strides = array<i32>} : memref<520x32xf32, #tpu.memory_space<vmem>>, vector<16x32xf32>,
    %cst_7 = arith.constant 0.000000e+00 : f32
    %8 = vector.broadcast %cst_7 : f32 to vector<16x32xf32>
    %c336 = arith.constant 336 : index
    %c0_8 = arith.constant 0 : index
    %9 = vector.load %arg10[%c336, %c0_8] : memref<520x32xf32, #tpu.memory_space<vmem>>, vector<16x32xf32>
    tpu.vector_store %arg10[%c336, %c0_8], %8 {strides = array<i32>} : memref<520x32xf32, #tpu.memory_space<vmem>>, vector<16x32xf32>,
    %cst_9 = arith.constant 0.000000e+00 : f32
    %10 = vector.broadcast %cst_9 : f32 to vector<128x32xf32>
    %c392 = arith.constant 392 : index
    %c0_10 = arith.constant 0 : index
    %11 = vector.load %arg10[%c392, %c0_10] : memref<520x32xf32, #tpu.memory_space<vmem>>, vector<128x32xf32>
    tpu.vector_store %arg10[%c392, %c0_10], %10 {strides = array<i32>} : memref<520x32xf32, #tpu.memory_space<vmem>>, vector<128x32xf32>,
    %cst_11 = arith.constant 0.000000e+00 : f32
    %12 = vector.broadcast %cst_11 : f32 to vector<392x32xf32>
    %c0_12 = arith.constant 0 : index
    %c0_13 = arith.constant 0 : index
    %13 = vector.load %arg0[%c0_12, %c0_13] : memref<520x1xf32, #tpu.memory_space<vmem>>, vector<392x1xf32>
    %c0_14 = arith.constant 0 : index
    %c0_15 = arith.constant 0 : index
    %14 = vector.load %arg1[%c0_14, %c0_15] : memref<9x32xf32, #tpu.memory_space<vmem>>, vector<1x32xf32>
    %15 = vector.broadcast %13 : vector<392x1xf32> to vector<392x32xf32>
    %16 = vector.broadcast %14 : vector<1x32xf32> to vector<392x32xf32>
    %17 = arith.mulf %15, %16 : vector<392x32xf32>
    %18 = arith.addf %12, %17 : vector<392x32xf32>
    %c8 = arith.constant 8 : index
    %c0_16 = arith.constant 0 : index
    %19 = vector.load %arg0[%c8, %c0_16] : memref<520x1xf32, #tpu.memory_space<vmem>>, vector<392x1xf32>
    %c1 = arith.constant 1 : index
    %c0_17 = arith.constant 0 : index
    %20 = vector.load %arg1[%c1, %c0_17] : memref<9x32xf32, #tpu.memory_space<vmem>>, vector<1x32xf32>
    %21 = vector.broadcast %19 : vector<392x1xf32> to vector<392x32xf32>
    %22 = vector.broadcast %20 : vector<1x32xf32> to vector<392x32xf32>
    %23 = arith.mulf %21, %22 : vector<392x32xf32>
    %24 = arith.addf %18, %23 : vector<392x32xf32>
    %c16 = arith.constant 16 : index
    %c0_18 = arith.constant 0 : index
    %25 = vector.load %arg0[%c16, %c0_18] : memref<520x1xf32, #tpu.memory_space<vmem>>, vector<392x1xf32>
    %c2 = arith.constant 2 : index
    %c0_19 = arith.constant 0 : index
    %26 = vector.load %arg1[%c2, %c0_19] : memref<9x32xf32, #tpu.memory_space<vmem>>, vector<1x32xf32>
    %27 = vector.broadcast %25 : vector<392x1xf32> to vector<392x32xf32>
    %28 = vector.broadcast %26 : vector<1x32xf32> to vector<392x32xf32>
    %29 = arith.mulf %27, %28 : vector<392x32xf32>
    %30 = arith.addf %24, %29 : vector<392x32xf32>
    %c56 = arith.constant 56 : index
    %c0_20 = arith.constant 0 : index
    %31 = vector.load %arg0[%c56, %c0_20] : memref<520x1xf32, #tpu.memory_space<vmem>>, vector<392x1xf32>
    %c3 = arith.constant 3 : index
    %c0_21 = arith.constant 0 : index
    %32 = vector.load %arg1[%c3, %c0_21] : memref<9x32xf32, #tpu.memory_space<vmem>>, vector<1x32xf32>
    %33 = vector.broadcast %31 : vector<392x1xf32> to vector<392x32xf32>
    %34 = vector.broadcast %32 : vector<1x32xf32> to vector<392x32xf32>
    %35 = arith.mulf %33, %34 : vector<392x32xf32>
    %36 = arith.addf %30, %35 : vector<392x32xf32>
    %c64 = arith.constant 64 : index
    %c0_22 = arith.constant 0 : index
    %37 = vector.load %arg0[%c64, %c0_22] : memref<520x1xf32, #tpu.memory_space<vmem>>, vector<392x1xf32>
    %c4 = arith.constant 4 : index
    %c0_23 = arith.constant 0 : index
    %38 = vector.load %arg1[%c4, %c0_23] : memref<9x32xf32, #tpu.memory_space<vmem>>, vector<1x32xf32>
    %39 = vector.broadcast %37 : vector<392x1xf32> to vector<392x32xf32>
    %40 = vector.broadcast %38 : vector<1x32xf32> to vector<392x32xf32>
    %41 = arith.mulf %39, %40 : vector<392x32xf32>
    %42 = arith.addf %36, %41 : vector<392x32xf32>
    %c72 = arith.constant 72 : index
    %c0_24 = arith.constant 0 : index
    %43 = vector.load %arg0[%c72, %c0_24] : memref<520x1xf32, #tpu.memory_space<vmem>>, vector<392x1xf32>
    %c5 = arith.constant 5 : index
    %c0_25 = arith.constant 0 : index
    %44 = vector.load %arg1[%c5, %c0_25] : memref<9x32xf32, #tpu.memory_space<vmem>>, vector<1x32xf32>
    %45 = vector.broadcast %43 : vector<392x1xf32> to vector<392x32xf32>
    %46 = vector.broadcast %44 : vector<1x32xf32> to vector<392x32xf32>
    %47 = arith.mulf %45, %46 : vector<392x32xf32>
    %48 = arith.addf %42, %47 : vector<392x32xf32>
    %c112 = arith.constant 112 : index
    %c0_26 = arith.constant 0 : index
    %49 = vector.load %arg0[%c112, %c0_26] : memref<520x1xf32, #tpu.memory_space<vmem>>, vector<392x1xf32>
    %c6 = arith.constant 6 : index
    %c0_27 = arith.constant 0 : index
    %50 = vector.load %arg1[%c6, %c0_27] : memref<9x32xf32, #tpu.memory_space<vmem>>, vector<1x32xf32>
    %51 = vector.broadcast %49 : vector<392x1xf32> to vector<392x32xf32>
    %52 = vector.broadcast %50 : vector<1x32xf32> to vector<392x32xf32>
    %53 = arith.mulf %51, %52 : vector<392x32xf32>
    %54 = arith.addf %48, %53 : vector<392x32xf32>
    %c120 = arith.constant 120 : index
    %c0_28 = arith.constant 0 : index
    %55 = vector.load %arg0[%c120, %c0_28] : memref<520x1xf32, #tpu.memory_space<vmem>>, vector<392x1xf32>
    %c7 = arith.constant 7 : index
    %c0_29 = arith.constant 0 : index
    %56 = vector.load %arg1[%c7, %c0_29] : memref<9x32xf32, #tpu.memory_space<vmem>>, vector<1x32xf32>
    %57 = vector.broadcast %55 : vector<392x1xf32> to vector<392x32xf32>
    %58 = vector.broadcast %56 : vector<1x32xf32> to vector<392x32xf32>
    %59 = arith.mulf %57, %58 : vector<392x32xf32>
    %60 = arith.addf %54, %59 : vector<392x32xf32>
    %c128 = arith.constant 128 : index
    %c0_30 = arith.constant 0 : index
    %61 = vector.load %arg0[%c128, %c0_30] : memref<520x1xf32, #tpu.memory_space<vmem>>, vector<392x1xf32>
    %c8_31 = arith.constant 8 : index
    %c0_32 = arith.constant 0 : index
    %62 = vector.load %arg1[%c8_31, %c0_32] : memref<9x32xf32, #tpu.memory_space<vmem>>, vector<1x32xf32>
    %63 = vector.broadcast %61 : vector<392x1xf32> to vector<392x32xf32>
    %64 = vector.broadcast %62 : vector<1x32xf32> to vector<392x32xf32>
    %65 = arith.mulf %63, %64 : vector<392x32xf32>
    %66 = arith.addf %60, %65 : vector<392x32xf32>
    %c0_33 = arith.constant 0 : index
    %c0_34 = arith.constant 0 : index
    %67 = vector.load %arg2[%c0_33, %c0_34] : memref<1x32xf32, #tpu.memory_space<vmem>>, vector<1x32xf32>
    %68 = vector.broadcast %67 : vector<1x32xf32> to vector<392x32xf32>
    %69 = arith.addf %66, %68 : vector<392x32xf32>
    %cst_35 = arith.constant 0.000000e+00 : f32
    %70 = vector.broadcast %cst_35 : f32 to vector<392x32xf32>
    %71 = arith.maximumf %69, %70 : vector<392x32xf32>
    %72 = vector.extract_strided_slice %71 {offsets = [64, 0], sizes = [40, 32], strides = [1, 1]} : vector<392x32xf32> to vector<40x32xf32>
    %c128_36 = arith.constant 128 : index
    %c0_37 = arith.constant 0 : index
    %73 = vector.load %arg10[%c128_36, %c0_37] : memref<520x32xf32, #tpu.memory_space<vmem>>, vector<40x32xf32>
    tpu.vector_store %arg10[%c128_36, %c0_37], %72 {strides = array<i32>} : memref<520x32xf32, #tpu.memory_space<vmem>>, vector<40x32xf32>,
    %74 = vector.extract_strided_slice %71 {offsets = [120, 0], sizes = [40, 32], strides = [1, 1]} : vector<392x32xf32> to vector<40x32xf32>
    %c184 = arith.constant 184 : index
    %c0_38 = arith.constant 0 : index
    %75 = vector.load %arg10[%c184, %c0_38] : memref<520x32xf32, #tpu.memory_space<vmem>>, vector<40x32xf32>
    tpu.vector_store %arg10[%c184, %c0_38], %74 {strides = array<i32>} : memref<520x32xf32, #tpu.memory_space<vmem>>, vector<40x32xf32>,
    %76 = vector.extract_strided_slice %71 {offsets = [176, 0], sizes = [40, 32], strides = [1, 1]} : vector<392x32xf32> to vector<40x32xf32>
    %c240 = arith.constant 240 : index
    %c0_39 = arith.constant 0 : index
    %77 = vector.load %arg10[%c240, %c0_39] : memref<520x32xf32, #tpu.memory_space<vmem>>, vector<40x32xf32>
    tpu.vector_store %arg10[%c240, %c0_39], %76 {strides = array<i32>} : memref<520x32xf32, #tpu.memory_space<vmem>>, vector<40x32xf32>,
    %78 = vector.extract_strided_slice %71 {offsets = [232, 0], sizes = [40, 32], strides = [1, 1]} : vector<392x32xf32> to vector<40x32xf32>
    %c296 = arith.constant 296 : index
    %c0_40 = arith.constant 0 : index
    %79 = vector.load %arg10[%c296, %c0_40] : memref<520x32xf32, #tpu.memory_space<vmem>>, vector<40x32xf32>
    tpu.vector_store %arg10[%c296, %c0_40], %78 {strides = array<i32>} : memref<520x32xf32, #tpu.memory_space<vmem>>, vector<40x32xf32>,
    %80 = vector.extract_strided_slice %71 {offsets = [288, 0], sizes = [40, 32], strides = [1, 1]} : vector<392x32xf32> to vector<40x32xf32>
    %c352 = arith.constant 352 : index
    %c0_41 = arith.constant 0 : index
    %81 = vector.load %arg10[%c352, %c0_41] : memref<520x32xf32, #tpu.memory_space<vmem>>, vector<40x32xf32>
    tpu.vector_store %arg10[%c352, %c0_41], %80 {strides = array<i32>} : memref<520x32xf32, #tpu.memory_space<vmem>>, vector<40x32xf32>,
    %cst_42 = arith.constant 0.000000e+00 : f32
    %82 = vector.broadcast %cst_42 : f32 to vector<392x64xf32>
    %c0_43 = arith.constant 0 : index
    %c0_44 = arith.constant 0 : index
    %83 = vector.load %arg10[%c0_43, %c0_44] : memref<520x32xf32, #tpu.memory_space<vmem>>, vector<392x32xf32>
    %84 = arith.truncf %83 : vector<392x32xf32> to vector<392x32xbf16>
    %c0_45 = arith.constant 0 : index
    %c0_46 = arith.constant 0 : index
    %85 = vector.load %arg3[%c0_45, %c0_46] : memref<288x64xbf16, #tpu.memory_space<vmem>>, vector<32x64xbf16>
    %cst_47 = arith.constant dense<0.000000e+00> : vector<392x64xf32>
    %86 = tpu.matmul %84, %85, %cst_47 {dimension_numbers = #tpu.dot_dimension_numbers<[1], [0], [0], [1], [0, 0, 1, 1], [], []>} : vector<392x32xbf16>, vector<32x64xbf16>, vector<392x64xf32> -> vector<392x64xf32>
    %87 = arith.addf %82, %86 : vector<392x64xf32>
    %c8_48 = arith.constant 8 : index
    %c0_49 = arith.constant 0 : index
    %88 = vector.load %arg10[%c8_48, %c0_49] : memref<520x32xf32, #tpu.memory_space<vmem>>, vector<392x32xf32>
    %89 = arith.truncf %88 : vector<392x32xf32> to vector<392x32xbf16>
    %c32 = arith.constant 32 : index
    %c0_50 = arith.constant 0 : index
    %90 = vector.load %arg3[%c32, %c0_50] : memref<288x64xbf16, #tpu.memory_space<vmem>>, vector<32x64xbf16>
    %cst_51 = arith.constant dense<0.000000e+00> : vector<392x64xf32>
    %91 = tpu.matmul %89, %90, %cst_51 {dimension_numbers = #tpu.dot_dimension_numbers<[1], [0], [0], [1], [0, 0, 1, 1], [], []>} : vector<392x32xbf16>, vector<32x64xbf16>, vector<392x64xf32> -> vector<392x64xf32>
    %92 = arith.addf %87, %91 : vector<392x64xf32>
    %c16_52 = arith.constant 16 : index
    %c0_53 = arith.constant 0 : index
    %93 = vector.load %arg10[%c16_52, %c0_53] : memref<520x32xf32, #tpu.memory_space<vmem>>, vector<392x32xf32>
    %94 = arith.truncf %93 : vector<392x32xf32> to vector<392x32xbf16>
    %c64_54 = arith.constant 64 : index
    %c0_55 = arith.constant 0 : index
    %95 = vector.load %arg3[%c64_54, %c0_55] : memref<288x64xbf16, #tpu.memory_space<vmem>>, vector<32x64xbf16>
    %cst_56 = arith.constant dense<0.000000e+00> : vector<392x64xf32>
    %96 = tpu.matmul %94, %95, %cst_56 {dimension_numbers = #tpu.dot_dimension_numbers<[1], [0], [0], [1], [0, 0, 1, 1], [], []>} : vector<392x32xbf16>, vector<32x64xbf16>, vector<392x64xf32> -> vector<392x64xf32>
    %97 = arith.addf %92, %96 : vector<392x64xf32>
    %c56_57 = arith.constant 56 : index
    %c0_58 = arith.constant 0 : index
    %98 = vector.load %arg10[%c56_57, %c0_58] : memref<520x32xf32, #tpu.memory_space<vmem>>, vector<392x32xf32>
    %99 = arith.truncf %98 : vector<392x32xf32> to vector<392x32xbf16>
    %c96 = arith.constant 96 : index
    %c0_59 = arith.constant 0 : index
    %100 = vector.load %arg3[%c96, %c0_59] : memref<288x64xbf16, #tpu.memory_space<vmem>>, vector<32x64xbf16>
    %cst_60 = arith.constant dense<0.000000e+00> : vector<392x64xf32>
    %101 = tpu.matmul %99, %100, %cst_60 {dimension_numbers = #tpu.dot_dimension_numbers<[1], [0], [0], [1], [0, 0, 1, 1], [], []>} : vector<392x32xbf16>, vector<32x64xbf16>, vector<392x64xf32> -> vector<392x64xf32>
    %102 = arith.addf %97, %101 : vector<392x64xf32>
    %c64_61 = arith.constant 64 : index
    %c0_62 = arith.constant 0 : index
    %103 = vector.load %arg10[%c64_61, %c0_62] : memref<520x32xf32, #tpu.memory_space<vmem>>, vector<392x32xf32>
    %104 = arith.truncf %103 : vector<392x32xf32> to vector<392x32xbf16>
    %c128_63 = arith.constant 128 : index
    %c0_64 = arith.constant 0 : index
    %105 = vector.load %arg3[%c128_63, %c0_64] : memref<288x64xbf16, #tpu.memory_space<vmem>>, vector<32x64xbf16>
    %cst_65 = arith.constant dense<0.000000e+00> : vector<392x64xf32>
    %106 = tpu.matmul %104, %105, %cst_65 {dimension_numbers = #tpu.dot_dimension_numbers<[1], [0], [0], [1], [0, 0, 1, 1], [], []>} : vector<392x32xbf16>, vector<32x64xbf16>, vector<392x64xf32> -> vector<392x64xf32>
    %107 = arith.addf %102, %106 : vector<392x64xf32>
    %c72_66 = arith.constant 72 : index
    %c0_67 = arith.constant 0 : index
    %108 = vector.load %arg10[%c72_66, %c0_67] : memref<520x32xf32, #tpu.memory_space<vmem>>, vector<392x32xf32>
    %109 = arith.truncf %108 : vector<392x32xf32> to vector<392x32xbf16>
    %c160 = arith.constant 160 : index
    %c0_68 = arith.constant 0 : index
    %110 = vector.load %arg3[%c160, %c0_68] : memref<288x64xbf16, #tpu.memory_space<vmem>>, vector<32x64xbf16>
    %cst_69 = arith.constant dense<0.000000e+00> : vector<392x64xf32>
    %111 = tpu.matmul %109, %110, %cst_69 {dimension_numbers = #tpu.dot_dimension_numbers<[1], [0], [0], [1], [0, 0, 1, 1], [], []>} : vector<392x32xbf16>, vector<32x64xbf16>, vector<392x64xf32> -> vector<392x64xf32>
    %112 = arith.addf %107, %111 : vector<392x64xf32>
    %c112_70 = arith.constant 112 : index
    %c0_71 = arith.constant 0 : index
    %113 = vector.load %arg10[%c112_70, %c0_71] : memref<520x32xf32, #tpu.memory_space<vmem>>, vector<392x32xf32>
    %114 = arith.truncf %113 : vector<392x32xf32> to vector<392x32xbf16>
    %c192 = arith.constant 192 : index
    %c0_72 = arith.constant 0 : index
    %115 = vector.load %arg3[%c192, %c0_72] : memref<288x64xbf16, #tpu.memory_space<vmem>>, vector<32x64xbf16>
    %cst_73 = arith.constant dense<0.000000e+00> : vector<392x64xf32>
    %116 = tpu.matmul %114, %115, %cst_73 {dimension_numbers = #tpu.dot_dimension_numbers<[1], [0], [0], [1], [0, 0, 1, 1], [], []>} : vector<392x32xbf16>, vector<32x64xbf16>, vector<392x64xf32> -> vector<392x64xf32>
    %117 = arith.addf %112, %116 : vector<392x64xf32>
    %c120_74 = arith.constant 120 : index
    %c0_75 = arith.constant 0 : index
    %118 = vector.load %arg10[%c120_74, %c0_75] : memref<520x32xf32, #tpu.memory_space<vmem>>, vector<392x32xf32>
    %119 = arith.truncf %118 : vector<392x32xf32> to vector<392x32xbf16>
    %c224_76 = arith.constant 224 : index
    %c0_77 = arith.constant 0 : index
    %120 = vector.load %arg3[%c224_76, %c0_77] : memref<288x64xbf16, #tpu.memory_space<vmem>>, vector<32x64xbf16>
    %cst_78 = arith.constant dense<0.000000e+00> : vector<392x64xf32>
    %121 = tpu.matmul %119, %120, %cst_78 {dimension_numbers = #tpu.dot_dimension_numbers<[1], [0], [0], [1], [0, 0, 1, 1], [], []>} : vector<392x32xbf16>, vector<32x64xbf16>, vector<392x64xf32> -> vector<392x64xf32>
    %122 = arith.addf %117, %121 : vector<392x64xf32>
    %c128_79 = arith.constant 128 : index
    %c0_80 = arith.constant 0 : index
    %123 = vector.load %arg10[%c128_79, %c0_80] : memref<520x32xf32, #tpu.memory_space<vmem>>, vector<392x32xf32>
    %124 = arith.truncf %123 : vector<392x32xf32> to vector<392x32xbf16>
    %c256 = arith.constant 256 : index
    %c0_81 = arith.constant 0 : index
    %125 = vector.load %arg3[%c256, %c0_81] : memref<288x64xbf16, #tpu.memory_space<vmem>>, vector<32x64xbf16>
    %cst_82 = arith.constant dense<0.000000e+00> : vector<392x64xf32>
    %126 = tpu.matmul %124, %125, %cst_82 {dimension_numbers = #tpu.dot_dimension_numbers<[1], [0], [0], [1], [0, 0, 1, 1], [], []>} : vector<392x32xbf16>, vector<32x64xbf16>, vector<392x64xf32> -> vector<392x64xf32>
    %127 = arith.addf %122, %126 : vector<392x64xf32>
    %c0_83 = arith.constant 0 : index
    %c0_84 = arith.constant 0 : index
    %128 = vector.load %arg4[%c0_83, %c0_84] : memref<1x64xf32, #tpu.memory_space<vmem>>, vector<1x64xf32>
    %129 = vector.broadcast %128 : vector<1x64xf32> to vector<392x64xf32>
    %130 = arith.addf %127, %129 : vector<392x64xf32>
    %cst_85 = arith.constant 0.000000e+00 : f32
    %131 = vector.broadcast %cst_85 : f32 to vector<392x64xf32>
    %132 = arith.maximumf %130, %131 : vector<392x64xf32>
    %cst_86 = arith.constant 0.000000e+00 : f32
    %133 = vector.broadcast %cst_86 : f32 to vector<8x128xf32>
    %134 = vector.extract_strided_slice %132 {offsets = [64, 0], sizes = [8, 64], strides = [1, 1]} : vector<392x64xf32> to vector<8x64xf32>
    %135 = arith.truncf %134 : vector<8x64xf32> to vector<8x64xbf16>
    %c0_87 = arith.constant 0 : index
    %c0_88 = arith.constant 0 : index
    %136 = vector.load %arg5[%c0_87, %c0_88] : memref<1600x128xbf16, #tpu.memory_space<vmem>>, vector<64x128xbf16>
    %cst_89 = arith.constant dense<0.000000e+00> : vector<8x128xf32>
    %137 = tpu.matmul %135, %136, %cst_89 {dimension_numbers = #tpu.dot_dimension_numbers<[1], [0], [0], [1], [0, 0, 1, 1], [], []>} : vector<8x64xbf16>, vector<64x128xbf16>, vector<8x128xf32> -> vector<8x128xf32>
    %138 = arith.addf %133, %137 : vector<8x128xf32>
    %139 = vector.extract_strided_slice %132 {offsets = [72, 0], sizes = [8, 64], strides = [1, 1]} : vector<392x64xf32> to vector<8x64xf32>
    %140 = arith.truncf %139 : vector<8x64xf32> to vector<8x64xbf16>
    %c64_90 = arith.constant 64 : index
    %c0_91 = arith.constant 0 : index
    %141 = vector.load %arg5[%c64_90, %c0_91] : memref<1600x128xbf16, #tpu.memory_space<vmem>>, vector<64x128xbf16>
    %cst_92 = arith.constant dense<0.000000e+00> : vector<8x128xf32>
    %142 = tpu.matmul %140, %141, %cst_92 {dimension_numbers = #tpu.dot_dimension_numbers<[1], [0], [0], [1], [0, 0, 1, 1], [], []>} : vector<8x64xbf16>, vector<64x128xbf16>, vector<8x128xf32> -> vector<8x128xf32>
    %143 = arith.addf %138, %142 : vector<8x128xf32>
    %144 = vector.extract_strided_slice %132 {offsets = [80, 0], sizes = [8, 64], strides = [1, 1]} : vector<392x64xf32> to vector<8x64xf32>
    %145 = arith.truncf %144 : vector<8x64xf32> to vector<8x64xbf16>
    %c128_93 = arith.constant 128 : index
    %c0_94 = arith.constant 0 : index
    %146 = vector.load %arg5[%c128_93, %c0_94] : memref<1600x128xbf16, #tpu.memory_space<vmem>>, vector<64x128xbf16>
    %cst_95 = arith.constant dense<0.000000e+00> : vector<8x128xf32>
    %147 = tpu.matmul %145, %146, %cst_95 {dimension_numbers = #tpu.dot_dimension_numbers<[1], [0], [0], [1], [0, 0, 1, 1], [], []>} : vector<8x64xbf16>, vector<64x128xbf16>, vector<8x128xf32> -> vector<8x128xf32>
    %148 = arith.addf %143, %147 : vector<8x128xf32>
    %149 = vector.extract_strided_slice %132 {offsets = [88, 0], sizes = [8, 64], strides = [1, 1]} : vector<392x64xf32> to vector<8x64xf32>
    %150 = arith.truncf %149 : vector<8x64xf32> to vector<8x64xbf16>
    %c192_96 = arith.constant 192 : index
    %c0_97 = arith.constant 0 : index
    %151 = vector.load %arg5[%c192_96, %c0_97] : memref<1600x128xbf16, #tpu.memory_space<vmem>>, vector<64x128xbf16>
    %cst_98 = arith.constant dense<0.000000e+00> : vector<8x128xf32>
    %152 = tpu.matmul %150, %151, %cst_98 {dimension_numbers = #tpu.dot_dimension_numbers<[1], [0], [0], [1], [0, 0, 1, 1], [], []>} : vector<8x64xbf16>, vector<64x128xbf16>, vector<8x128xf32> -> vector<8x128xf32>
    %153 = arith.addf %148, %152 : vector<8x128xf32>
    %154 = vector.extract_strided_slice %132 {offsets = [96, 0], sizes = [8, 64], strides = [1, 1]} : vector<392x64xf32> to vector<8x64xf32>
    %155 = arith.truncf %154 : vector<8x64xf32> to vector<8x64xbf16>
    %c256_99 = arith.constant 256 : index
    %c0_100 = arith.constant 0 : index
    %156 = vector.load %arg5[%c256_99, %c0_100] : memref<1600x128xbf16, #tpu.memory_space<vmem>>, vector<64x128xbf16>
    %cst_101 = arith.constant dense<0.000000e+00> : vector<8x128xf32>
    %157 = tpu.matmul %155, %156, %cst_101 {dimension_numbers = #tpu.dot_dimension_numbers<[1], [0], [0], [1], [0, 0, 1, 1], [], []>} : vector<8x64xbf16>, vector<64x128xbf16>, vector<8x128xf32> -> vector<8x128xf32>
    %158 = arith.addf %153, %157 : vector<8x128xf32>
    %159 = vector.extract_strided_slice %132 {offsets = [120, 0], sizes = [8, 64], strides = [1, 1]} : vector<392x64xf32> to vector<8x64xf32>
    %160 = arith.truncf %159 : vector<8x64xf32> to vector<8x64xbf16>
    %c320 = arith.constant 320 : index
    %c0_102 = arith.constant 0 : index
    %161 = vector.load %arg5[%c320, %c0_102] : memref<1600x128xbf16, #tpu.memory_space<vmem>>, vector<64x128xbf16>
    %cst_103 = arith.constant dense<0.000000e+00> : vector<8x128xf32>
    %162 = tpu.matmul %160, %161, %cst_103 {dimension_numbers = #tpu.dot_dimension_numbers<[1], [0], [0], [1], [0, 0, 1, 1], [], []>} : vector<8x64xbf16>, vector<64x128xbf16>, vector<8x128xf32> -> vector<8x128xf32>
    %163 = arith.addf %158, %162 : vector<8x128xf32>
    %164 = vector.extract_strided_slice %132 {offsets = [128, 0], sizes = [8, 64], strides = [1, 1]} : vector<392x64xf32> to vector<8x64xf32>
    %165 = arith.truncf %164 : vector<8x64xf32> to vector<8x64xbf16>
    %c384 = arith.constant 384 : index
    %c0_104 = arith.constant 0 : index
    %166 = vector.load %arg5[%c384, %c0_104] : memref<1600x128xbf16, #tpu.memory_space<vmem>>, vector<64x128xbf16>
    %cst_105 = arith.constant dense<0.000000e+00> : vector<8x128xf32>
    %167 = tpu.matmul %165, %166, %cst_105 {dimension_numbers = #tpu.dot_dimension_numbers<[1], [0], [0], [1], [0, 0, 1, 1], [], []>} : vector<8x64xbf16>, vector<64x128xbf16>, vector<8x128xf32> -> vector<8x128xf32>
    %168 = arith.addf %163, %167 : vector<8x128xf32>
    %169 = vector.extract_strided_slice %132 {offsets = [136, 0], sizes = [8, 64], strides = [1, 1]} : vector<392x64xf32> to vector<8x64xf32>
    %170 = arith.truncf %169 : vector<8x64xf32> to vector<8x64xbf16>
    %c448 = arith.constant 448 : index
    %c0_106 = arith.constant 0 : index
    %171 = vector.load %arg5[%c448, %c0_106] : memref<1600x128xbf16, #tpu.memory_space<vmem>>, vector<64x128xbf16>
    %cst_107 = arith.constant dense<0.000000e+00> : vector<8x128xf32>
    %172 = tpu.matmul %170, %171, %cst_107 {dimension_numbers = #tpu.dot_dimension_numbers<[1], [0], [0], [1], [0, 0, 1, 1], [], []>} : vector<8x64xbf16>, vector<64x128xbf16>, vector<8x128xf32> -> vector<8x128xf32>
    %173 = arith.addf %168, %172 : vector<8x128xf32>
    %174 = vector.extract_strided_slice %132 {offsets = [144, 0], sizes = [8, 64], strides = [1, 1]} : vector<392x64xf32> to vector<8x64xf32>
    %175 = arith.truncf %174 : vector<8x64xf32> to vector<8x64xbf16>
    %c512 = arith.constant 512 : index
    %c0_108 = arith.constant 0 : index
    %176 = vector.load %arg5[%c512, %c0_108] : memref<1600x128xbf16, #tpu.memory_space<vmem>>, vector<64x128xbf16>
    %cst_109 = arith.constant dense<0.000000e+00> : vector<8x128xf32>
    %177 = tpu.matmul %175, %176, %cst_109 {dimension_numbers = #tpu.dot_dimension_numbers<[1], [0], [0], [1], [0, 0, 1, 1], [], []>} : vector<8x64xbf16>, vector<64x128xbf16>, vector<8x128xf32> -> vector<8x128xf32>
    %178 = arith.addf %173, %177 : vector<8x128xf32>
    %179 = vector.extract_strided_slice %132 {offsets = [152, 0], sizes = [8, 64], strides = [1, 1]} : vector<392x64xf32> to vector<8x64xf32>
    %180 = arith.truncf %179 : vector<8x64xf32> to vector<8x64xbf16>
    %c576 = arith.constant 576 : index
    %c0_110 = arith.constant 0 : index
    %181 = vector.load %arg5[%c576, %c0_110] : memref<1600x128xbf16, #tpu.memory_space<vmem>>, vector<64x128xbf16>
    %cst_111 = arith.constant dense<0.000000e+00> : vector<8x128xf32>
    %182 = tpu.matmul %180, %181, %cst_111 {dimension_numbers = #tpu.dot_dimension_numbers<[1], [0], [0], [1], [0, 0, 1, 1], [], []>} : vector<8x64xbf16>, vector<64x128xbf16>, vector<8x128xf32> -> vector<8x128xf32>
    %183 = arith.addf %178, %182 : vector<8x128xf32>
    %184 = vector.extract_strided_slice %132 {offsets = [176, 0], sizes = [8, 64], strides = [1, 1]} : vector<392x64xf32> to vector<8x64xf32>
    %185 = arith.truncf %184 : vector<8x64xf32> to vector<8x64xbf16>
    %c640 = arith.constant 640 : index
    %c0_112 = arith.constant 0 : index
    %186 = vector.load %arg5[%c640, %c0_112] : memref<1600x128xbf16, #tpu.memory_space<vmem>>, vector<64x128xbf16>
    %cst_113 = arith.constant dense<0.000000e+00> : vector<8x128xf32>
    %187 = tpu.matmul %185, %186, %cst_113 {dimension_numbers = #tpu.dot_dimension_numbers<[1], [0], [0], [1], [0, 0, 1, 1], [], []>} : vector<8x64xbf16>, vector<64x128xbf16>, vector<8x128xf32> -> vector<8x128xf32>
    %188 = arith.addf %183, %187 : vector<8x128xf32>
    %189 = vector.extract_strided_slice %132 {offsets = [184, 0], sizes = [8, 64], strides = [1, 1]} : vector<392x64xf32> to vector<8x64xf32>
    %190 = arith.truncf %189 : vector<8x64xf32> to vector<8x64xbf16>
    %c704 = arith.constant 704 : index
    %c0_114 = arith.constant 0 : index
    %191 = vector.load %arg5[%c704, %c0_114] : memref<1600x128xbf16, #tpu.memory_space<vmem>>, vector<64x128xbf16>
    %cst_115 = arith.constant dense<0.000000e+00> : vector<8x128xf32>
    %192 = tpu.matmul %190, %191, %cst_115 {dimension_numbers = #tpu.dot_dimension_numbers<[1], [0], [0], [1], [0, 0, 1, 1], [], []>} : vector<8x64xbf16>, vector<64x128xbf16>, vector<8x128xf32> -> vector<8x128xf32>
    %193 = arith.addf %188, %192 : vector<8x128xf32>
    %194 = vector.extract_strided_slice %132 {offsets = [192, 0], sizes = [8, 64], strides = [1, 1]} : vector<392x64xf32> to vector<8x64xf32>
    %195 = arith.truncf %194 : vector<8x64xf32> to vector<8x64xbf16>
    %c768 = arith.constant 768 : index
    %c0_116 = arith.constant 0 : index
    %196 = vector.load %arg5[%c768, %c0_116] : memref<1600x128xbf16, #tpu.memory_space<vmem>>, vector<64x128xbf16>
    %cst_117 = arith.constant dense<0.000000e+00> : vector<8x128xf32>
    %197 = tpu.matmul %195, %196, %cst_117 {dimension_numbers = #tpu.dot_dimension_numbers<[1], [0], [0], [1], [0, 0, 1, 1], [], []>} : vector<8x64xbf16>, vector<64x128xbf16>, vector<8x128xf32> -> vector<8x128xf32>
    %198 = arith.addf %193, %197 : vector<8x128xf32>
    %199 = vector.extract_strided_slice %132 {offsets = [200, 0], sizes = [8, 64], strides = [1, 1]} : vector<392x64xf32> to vector<8x64xf32>
    %200 = arith.truncf %199 : vector<8x64xf32> to vector<8x64xbf16>
    %c832 = arith.constant 832 : index
    %c0_118 = arith.constant 0 : index
    %201 = vector.load %arg5[%c832, %c0_118] : memref<1600x128xbf16, #tpu.memory_space<vmem>>, vector<64x128xbf16>
    %cst_119 = arith.constant dense<0.000000e+00> : vector<8x128xf32>
    %202 = tpu.matmul %200, %201, %cst_119 {dimension_numbers = #tpu.dot_dimension_numbers<[1], [0], [0], [1], [0, 0, 1, 1], [], []>} : vector<8x64xbf16>, vector<64x128xbf16>, vector<8x128xf32> -> vector<8x128xf32>
    %203 = arith.addf %198, %202 : vector<8x128xf32>
    %204 = vector.extract_strided_slice %132 {offsets = [208, 0], sizes = [8, 64], strides = [1, 1]} : vector<392x64xf32> to vector<8x64xf32>
    %205 = arith.truncf %204 : vector<8x64xf32> to vector<8x64xbf16>
    %c896 = arith.constant 896 : index
    %c0_120 = arith.constant 0 : index
    %206 = vector.load %arg5[%c896, %c0_120] : memref<1600x128xbf16, #tpu.memory_space<vmem>>, vector<64x128xbf16>
    %cst_121 = arith.constant dense<0.000000e+00> : vector<8x128xf32>
    %207 = tpu.matmul %205, %206, %cst_121 {dimension_numbers = #tpu.dot_dimension_numbers<[1], [0], [0], [1], [0, 0, 1, 1], [], []>} : vector<8x64xbf16>, vector<64x128xbf16>, vector<8x128xf32> -> vector<8x128xf32>
    %208 = arith.addf %203, %207 : vector<8x128xf32>
    %209 = vector.extract_strided_slice %132 {offsets = [232, 0], sizes = [8, 64], strides = [1, 1]} : vector<392x64xf32> to vector<8x64xf32>
    %210 = arith.truncf %209 : vector<8x64xf32> to vector<8x64xbf16>
    %c960 = arith.constant 960 : index
    %c0_122 = arith.constant 0 : index
    %211 = vector.load %arg5[%c960, %c0_122] : memref<1600x128xbf16, #tpu.memory_space<vmem>>, vector<64x128xbf16>
    %cst_123 = arith.constant dense<0.000000e+00> : vector<8x128xf32>
    %212 = tpu.matmul %210, %211, %cst_123 {dimension_numbers = #tpu.dot_dimension_numbers<[1], [0], [0], [1], [0, 0, 1, 1], [], []>} : vector<8x64xbf16>, vector<64x128xbf16>, vector<8x128xf32> -> vector<8x128xf32>
    %213 = arith.addf %208, %212 : vector<8x128xf32>
    %214 = vector.extract_strided_slice %132 {offsets = [240, 0], sizes = [8, 64], strides = [1, 1]} : vector<392x64xf32> to vector<8x64xf32>
    %215 = arith.truncf %214 : vector<8x64xf32> to vector<8x64xbf16>
    %c1024 = arith.constant 1024 : index
    %c0_124 = arith.constant 0 : index
    %216 = vector.load %arg5[%c1024, %c0_124] : memref<1600x128xbf16, #tpu.memory_space<vmem>>, vector<64x128xbf16>
    %cst_125 = arith.constant dense<0.000000e+00> : vector<8x128xf32>
    %217 = tpu.matmul %215, %216, %cst_125 {dimension_numbers = #tpu.dot_dimension_numbers<[1], [0], [0], [1], [0, 0, 1, 1], [], []>} : vector<8x64xbf16>, vector<64x128xbf16>, vector<8x128xf32> -> vector<8x128xf32>
    %218 = arith.addf %213, %217 : vector<8x128xf32>
    %219 = vector.extract_strided_slice %132 {offsets = [248, 0], sizes = [8, 64], strides = [1, 1]} : vector<392x64xf32> to vector<8x64xf32>
    %220 = arith.truncf %219 : vector<8x64xf32> to vector<8x64xbf16>
    %c1088 = arith.constant 1088 : index
    %c0_126 = arith.constant 0 : index
    %221 = vector.load %arg5[%c1088, %c0_126] : memref<1600x128xbf16, #tpu.memory_space<vmem>>, vector<64x128xbf16>
    %cst_127 = arith.constant dense<0.000000e+00> : vector<8x128xf32>
    %222 = tpu.matmul %220, %221, %cst_127 {dimension_numbers = #tpu.dot_dimension_numbers<[1], [0], [0], [1], [0, 0, 1, 1], [], []>} : vector<8x64xbf16>, vector<64x128xbf16>, vector<8x128xf32> -> vector<8x128xf32>
    %223 = arith.addf %218, %222 : vector<8x128xf32>
    %224 = vector.extract_strided_slice %132 {offsets = [256, 0], sizes = [8, 64], strides = [1, 1]} : vector<392x64xf32> to vector<8x64xf32>
    %225 = arith.truncf %224 : vector<8x64xf32> to vector<8x64xbf16>
    %c1152 = arith.constant 1152 : index
    %c0_128 = arith.constant 0 : index
    %226 = vector.load %arg5[%c1152, %c0_128] : memref<1600x128xbf16, #tpu.memory_space<vmem>>, vector<64x128xbf16>
    %cst_129 = arith.constant dense<0.000000e+00> : vector<8x128xf32>
    %227 = tpu.matmul %225, %226, %cst_129 {dimension_numbers = #tpu.dot_dimension_numbers<[1], [0], [0], [1], [0, 0, 1, 1], [], []>} : vector<8x64xbf16>, vector<64x128xbf16>, vector<8x128xf32> -> vector<8x128xf32>
    %228 = arith.addf %223, %227 : vector<8x128xf32>
    %229 = vector.extract_strided_slice %132 {offsets = [264, 0], sizes = [8, 64], strides = [1, 1]} : vector<392x64xf32> to vector<8x64xf32>
    %230 = arith.truncf %229 : vector<8x64xf32> to vector<8x64xbf16>
    %c1216 = arith.constant 1216 : index
    %c0_130 = arith.constant 0 : index
    %231 = vector.load %arg5[%c1216, %c0_130] : memref<1600x128xbf16, #tpu.memory_space<vmem>>, vector<64x128xbf16>
    %cst_131 = arith.constant dense<0.000000e+00> : vector<8x128xf32>
    %232 = tpu.matmul %230, %231, %cst_131 {dimension_numbers = #tpu.dot_dimension_numbers<[1], [0], [0], [1], [0, 0, 1, 1], [], []>} : vector<8x64xbf16>, vector<64x128xbf16>, vector<8x128xf32> -> vector<8x128xf32>
    %233 = arith.addf %228, %232 : vector<8x128xf32>
    %234 = vector.extract_strided_slice %132 {offsets = [288, 0], sizes = [8, 64], strides = [1, 1]} : vector<392x64xf32> to vector<8x64xf32>
    %235 = arith.truncf %234 : vector<8x64xf32> to vector<8x64xbf16>
    %c1280 = arith.constant 1280 : index
    %c0_132 = arith.constant 0 : index
    %236 = vector.load %arg5[%c1280, %c0_132] : memref<1600x128xbf16, #tpu.memory_space<vmem>>, vector<64x128xbf16>
    %cst_133 = arith.constant dense<0.000000e+00> : vector<8x128xf32>
    %237 = tpu.matmul %235, %236, %cst_133 {dimension_numbers = #tpu.dot_dimension_numbers<[1], [0], [0], [1], [0, 0, 1, 1], [], []>} : vector<8x64xbf16>, vector<64x128xbf16>, vector<8x128xf32> -> vector<8x128xf32>
    %238 = arith.addf %233, %237 : vector<8x128xf32>
    %239 = vector.extract_strided_slice %132 {offsets = [296, 0], sizes = [8, 64], strides = [1, 1]} : vector<392x64xf32> to vector<8x64xf32>
    %240 = arith.truncf %239 : vector<8x64xf32> to vector<8x64xbf16>
    %c1344 = arith.constant 1344 : index
    %c0_134 = arith.constant 0 : index
    %241 = vector.load %arg5[%c1344, %c0_134] : memref<1600x128xbf16, #tpu.memory_space<vmem>>, vector<64x128xbf16>
    %cst_135 = arith.constant dense<0.000000e+00> : vector<8x128xf32>
    %242 = tpu.matmul %240, %241, %cst_135 {dimension_numbers = #tpu.dot_dimension_numbers<[1], [0], [0], [1], [0, 0, 1, 1], [], []>} : vector<8x64xbf16>, vector<64x128xbf16>, vector<8x128xf32> -> vector<8x128xf32>
    %243 = arith.addf %238, %242 : vector<8x128xf32>
    %244 = vector.extract_strided_slice %132 {offsets = [304, 0], sizes = [8, 64], strides = [1, 1]} : vector<392x64xf32> to vector<8x64xf32>
    %245 = arith.truncf %244 : vector<8x64xf32> to vector<8x64xbf16>
    %c1408 = arith.constant 1408 : index
    %c0_136 = arith.constant 0 : index
    %246 = vector.load %arg5[%c1408, %c0_136] : memref<1600x128xbf16, #tpu.memory_space<vmem>>, vector<64x128xbf16>
    %cst_137 = arith.constant dense<0.000000e+00> : vector<8x128xf32>
    %247 = tpu.matmul %245, %246, %cst_137 {dimension_numbers = #tpu.dot_dimension_numbers<[1], [0], [0], [1], [0, 0, 1, 1], [], []>} : vector<8x64xbf16>, vector<64x128xbf16>, vector<8x128xf32> -> vector<8x128xf32>
    %248 = arith.addf %243, %247 : vector<8x128xf32>
    %249 = vector.extract_strided_slice %132 {offsets = [312, 0], sizes = [8, 64], strides = [1, 1]} : vector<392x64xf32> to vector<8x64xf32>
    %250 = arith.truncf %249 : vector<8x64xf32> to vector<8x64xbf16>
    %c1472 = arith.constant 1472 : index
    %c0_138 = arith.constant 0 : index
    %251 = vector.load %arg5[%c1472, %c0_138] : memref<1600x128xbf16, #tpu.memory_space<vmem>>, vector<64x128xbf16>
    %cst_139 = arith.constant dense<0.000000e+00> : vector<8x128xf32>
    %252 = tpu.matmul %250, %251, %cst_139 {dimension_numbers = #tpu.dot_dimension_numbers<[1], [0], [0], [1], [0, 0, 1, 1], [], []>} : vector<8x64xbf16>, vector<64x128xbf16>, vector<8x128xf32> -> vector<8x128xf32>
    %253 = arith.addf %248, %252 : vector<8x128xf32>
    %254 = vector.extract_strided_slice %132 {offsets = [320, 0], sizes = [8, 64], strides = [1, 1]} : vector<392x64xf32> to vector<8x64xf32>
    %255 = arith.truncf %254 : vector<8x64xf32> to vector<8x64xbf16>
    %c1536 = arith.constant 1536 : index
    %c0_140 = arith.constant 0 : index
    %256 = vector.load %arg5[%c1536, %c0_140] : memref<1600x128xbf16, #tpu.memory_space<vmem>>, vector<64x128xbf16>
    %cst_141 = arith.constant dense<0.000000e+00> : vector<8x128xf32>
    %257 = tpu.matmul %255, %256, %cst_141 {dimension_numbers = #tpu.dot_dimension_numbers<[1], [0], [0], [1], [0, 0, 1, 1], [], []>} : vector<8x64xbf16>, vector<64x128xbf16>, vector<8x128xf32> -> vector<8x128xf32>
    %258 = arith.addf %253, %257 : vector<8x128xf32>
    %c0_142 = arith.constant 0 : index
    %c0_143 = arith.constant 0 : index
    %259 = vector.load %arg6[%c0_142, %c0_143] : memref<1x128xf32, #tpu.memory_space<vmem>>, vector<1x128xf32>
    %260 = vector.broadcast %259 : vector<1x128xf32> to vector<8x128xf32>
    %261 = arith.addf %258, %260 : vector<8x128xf32>
    %cst_144 = arith.constant 0.000000e+00 : f32
    %262 = vector.broadcast %cst_144 : f32 to vector<8x128xf32>
    %263 = arith.maximumf %261, %262 : vector<8x128xf32>
    %264 = arith.truncf %263 : vector<8x128xf32> to vector<8x128xbf16>
    %c0_145 = arith.constant 0 : index
    %c0_146 = arith.constant 0 : index
    %265 = vector.load %arg7[%c0_145, %c0_146] : memref<128x128xbf16, #tpu.memory_space<vmem>>, vector<128x128xbf16>
    %cst_147 = arith.constant dense<0.000000e+00> : vector<8x128xf32>
    %266 = tpu.matmul %264, %265, %cst_147 {dimension_numbers = #tpu.dot_dimension_numbers<[1], [0], [0], [1], [0, 0, 1, 1], [], []>} : vector<8x128xbf16>, vector<128x128xbf16>, vector<8x128xf32> -> vector<8x128xf32>
    %c0_148 = arith.constant 0 : index
    %c0_149 = arith.constant 0 : index
    %267 = vector.load %arg8[%c0_148, %c0_149] : memref<1x128xf32, #tpu.memory_space<vmem>>, vector<1x128xf32>
    %268 = vector.broadcast %267 : vector<1x128xf32> to vector<8x128xf32>
    %269 = arith.addf %266, %268 : vector<8x128xf32>
    %cst_150 = arith.constant dense<0xFF800000> : vector<8xf32>
    %270 = vector.multi_reduction <maximumf>, %269, %cst_150 [1] : vector<8x128xf32> to vector<8xf32>
    %271 = vector.shape_cast %270 : vector<8xf32> to vector<8x1xf32>
    %272 = vector.broadcast %271 : vector<8x1xf32> to vector<8x128xf32>
    %273 = arith.subf %269, %272 : vector<8x128xf32>
    %274 = math.exp %273 : vector<8x128xf32>
    %cst_151 = arith.constant dense<0.000000e+00> : vector<8xf32>
    %275 = vector.multi_reduction <add>, %274, %cst_151 [1] : vector<8x128xf32> to vector<8xf32>
    %276 = vector.shape_cast %275 : vector<8xf32> to vector<8x1xf32>
    %277 = tpu.reciprocal %276 {approx = true} : vector<8x1xf32> -> vector<8x1xf32>
    %278 = vector.broadcast %277 : vector<8x1xf32> to vector<8x128xf32>
    %279 = arith.mulf %274, %278 : vector<8x128xf32>
    %c0_152 = arith.constant 0 : index
    %c0_153 = arith.constant 0 : index
    %280 = vector.load %arg9[%c0_152, %c0_153] : memref<8x128xf32, #tpu.memory_space<vmem>>, vector<8x128xf32>
    tpu.vector_store %arg9[%c0_152, %c0_153], %279 {strides = array<i32>} : memref<8x128xf32, #tpu.memory_space<vmem>>, vector<8x128xf32>,
    return
  }
}

</mosaic_0001>

<bundles_post_ra>
// kernel: policy_network_forward.1
= control target key start
LH: loop header
LB: loop body
LE: loop exit
PB: predicated region body
PF: predicated region fallthrough
CT: control target
= control target key end

     0   :  { %vm33_vm0 = vcmask 261120   ;;  %v9788_v0 = vmov 0   ;;  %v13117_v3 = vmov 0.0   ;;  %vm9790_vm1 = vmmov 0   ;;  %s13107_s0 = inlined_call_operand.vmem [shape: f32[520,1], index: 0, kind: input, shape index: {}]   ;;  %s13108_s3 = inlined_call_operand.vmem [shape: bf16[288,64], index: 3, kind: input, shape index: {}]   ;;  %s13109_s1 = inlined_call_operand.vmem [shape: f32[9,32], index: 1, kind: input, shape index: {}]   ;;  %s13110_s2 = inlined_call_operand.vmem [shape: f32[1,32], index: 2, kind: input, shape index: {}]   ;;  %s13111_s5 = inlined_call_operand.vmem [shape: bf16[1600,128], index: 5, kind: input, shape index: {}]   ;;  %s13112_s4 = inlined_call_operand.vmem [shape: f32[1,64], index: 4, kind: input, shape index: {}]   ;;  %s13113_s7 = inlined_call_operand.vmem [shape: bf16[128,128], index: 7, kind: input, shape index: {}]   ;;  %s13114_s6 = inlined_call_operand.vmem [shape: f32[1,128], index: 6, kind: input, shape index: {}]   ;;  %s13115_s8 = inlined_call_operand.vmem [shape: f32[1,128], index: 8, kind: input, shape index: {}]   ;;  %s13116_s9 = inlined_call_operand.vmem [shape: f32[8,128], index: 9, kind: output, shape index: {}]  }
   0x1   :  { %9631 = vset.pattern.permute.xlu1 %v9788_v0  ;;  %9630 = vset.pattern.permute.xlu0 %v9788_v0  ;;  %v9844_v1 = vld [vmem:[%s13107_s0 + $0x50] sm:$0xff]  ;;  %v74_v2 = vld [vmem:[%s13107_s0 + $0x40] sm:$0xff]  ;;  %58 = vst.msk [vmem:[#allocation2 + $0x188] sm:$0xff] %vm33_vm0, %v13117_v3  ;;  %34 = vst.msk [vmem:[#allocation2] sm:$0xff] %vm33_vm0, %v13117_v3  ;;  %vm5584_vm2 = vcmask 523264  }
   0x2   :  { %35 = vst.msk [vmem:[#allocation2 + $0x8] sm:$0xff] %vm33_vm0, %v13117_v3  ;;  %36 = vst.msk [vmem:[#allocation2 + $0x10] sm:$0xff] %vm33_vm0, %v13117_v3  ;;  %512 = vperm.xlu1 %9631, %v9844_v1   ;;  %102 = vperm.xlu0 %9630, %v74_v2   ;;  %v9933_v4 = vld [vmem:[%s13107_s0 + $0x78] sm:$0xff]  ;;  %v279_v5 = vld [vmem:[%s13107_s0 + $0x48] sm:$0xff] }
   0x3   :  { %37 = vst.msk [vmem:[#allocation2 + $0x18] sm:$0xff] %vm33_vm0, %v13117_v3  ;;  %38 = vst.msk [vmem:[#allocation2 + $0x20] sm:$0xff] %vm33_vm0, %v13117_v3  ;;  %9623 = vmatprep.subr.bf16.mxu1 %v13117_v3  ;;  %8467 = vmatprep.mubr.msk.bf16.mxu1 %vm9790_vm1, %v13117_v3  ;;  %v9948_v6 = vld [vmem:[%s13107_s0 + $0x80] sm:$0xff]  ;;  %v9632_v7 = vld [vmem:[%s13108_s3 + $0x10] sm:$0xff]  }
   0x4   :  { %39 = vst.msk [vmem:[#allocation2 + $0x28] sm:$0xff] %vm33_vm0, %v13117_v3  ;;  %40 = vst.msk [vmem:[#allocation2 + $0x30] sm:$0xff] %vm33_vm0, %v13117_v3  ;;  %8367 = vmatprep.subr.bf16.mxu0 %v13117_v3  ;;  %8371 = vmatprep.mubr.msk.bf16.mxu0 %vm9790_vm1, %v13117_v3  ;;  %v9633_v8 = vld [vmem:[%s13108_s3 + $0x18] sm:$0xff]   ;;  %v9964_v12 = vld [vmem:[%s13107_s0 + $0x88] sm:$0xff] }
   0x5   :  { %41 = vst.msk [vmem:[#allocation2 + $0x38] sm:$0xff] %vm33_vm0, %v13117_v3  ;;  %42 = vst.msk [vmem:[#allocation2 + $0x40] sm:$0xff] %vm33_vm0, %v13117_v3  ;;  %9625 = vmatpush3.bf16.msra.mxu1 %v9632_v7  ;;  %8368 = vmatpush3.bf16.msra.mxu0 %v9632_v7  ;;  %v281_v13 = vld [vmem:[%s13107_s0 + $0x58] sm:$0xff]  ;;  %v9634_v16 = vld [vmem:[%s13108_s3] sm:$0xff]  }
   0x6   :  { %43 = vst.msk [vmem:[#allocation2 + $0x48] sm:$0xff] %vm33_vm0, %v13117_v3  ;;  %44 = vst.msk [vmem:[#allocation2 + $0x50] sm:$0xff] %vm33_vm0, %v13117_v3  ;;  %717 = vperm.xlu1 %9631, %v9933_v4   ;;  %307 = vperm.xlu0 %9630, %v279_v5   ;;  %v486_v17 = vld [vmem:[%s13107_s0 + $0x60] sm:$0xff]  ;;  %v9635_v18 = vld [vmem:[%s13108_s3 + $0x8] sm:$0xff]  }
   0x7   :  { %45 = vst.msk [vmem:[#allocation2 + $0x58] sm:$0xff] %vm33_vm0, %v13117_v3  ;;  %46 = vst.msk [vmem:[#allocation2 + $0x60] sm:$0xff] %vm33_vm0, %v13117_v3  ;;  %9624 = vmatprep.subr.bf16.mxu1 %v13117_v3  ;;  %8369 = vmatprep.subr.bf16.mxu0 %v13117_v3  ;;  %v9988_v22 = vld [vmem:[%s13107_s0 + $0xb0] sm:$0xff]  ;;  %v9996_v25 = vld [vmem:[%s13107_s0 + $0xb8] sm:$0xff] }
   0x8   :  { %47 = vst.msk [vmem:[#allocation2 + $0x68] sm:$0xff] %vm33_vm0, %v13117_v3  ;;  %48 = vst.msk [vmem:[#allocation2 + $0x70] sm:$0xff] %vm33_vm0, %v13117_v3  ;;  %v2079_v9 = vld [vmem:[#allocation2 + $0x188] sm:$0xff]  ;;  %v2001_v19 = vld [vmem:[#allocation2] sm:$0xff] }
   0x9   :  { %49 = vst.msk [vmem:[#allocation2 + $0x78] sm:$0xff] %vm33_vm0, %v13117_v3  ;;  %50 = vst.msk [vmem:[#allocation2 + $0xa8] sm:$0xff] %vm33_vm0, %v13117_v3  ;;  %v2002_v10 = vld [vmem:[#allocation2 + $0x8] sm:$0xff]  ;;  %v2003_v11 = vld [vmem:[#allocation2 + $0x10] sm:$0xff]  ;;  %9626 = vmatpush3.bf16.msra.mxu1 %v9633_v8  ;;  %v2104_v14 = vpack.c.bf16 %v2079_v9, %v2079_v9  ;;  %8370 = vmatpush3.bf16.msra.mxu0 %v9633_v8 }
   0xa   :  { %51 = vst.msk [vmem:[#allocation2 + $0xb0] sm:$0xff] %vm33_vm0, %v13117_v3  ;;  %52 = vst.msk [vmem:[#allocation2 + $0xe0] sm:$0xff] %vm33_vm0, %v13117_v3  ;;  %107 = vperm.xlu1 %9631, %v279_v5   ;;  %922 = vperm.xlu0 %9630, %v9948_v6   ;;  %v2080_v15 = vpack.c.bf16 %v2003_v11, %v2002_v10  ;;  %v2004_v20 = vld [vmem:[#allocation2 + $0x18] sm:$0xff]  ;;  %v2005_v21 = vld [vmem:[#allocation2 + $0x20] sm:$0xff]  ;;  %v2050_v23 = vpack.c.bf16 %v2002_v10, %v2001_v19 }
   0xb   :  { %53 = vst.msk [vmem:[#allocation2 + $0xe8] sm:$0xff] %vm33_vm0, %v13117_v3  ;;  %54 = vst.msk [vmem:[#allocation2 + $0x118] sm:$0xff] %vm33_vm0, %v13117_v3  ;;  %8471 = vmatprep.subr.bf16.mxu1 %v13117_v3  ;;  %8575 = vmatprep.subr.bf16.mxu0 %v13117_v3  ;;  %v2081_v24 = vpack.c.bf16 %v2005_v21, %v2004_v20  ;;  %v2006_v26 = vld [vmem:[#allocation2 + $0x28] sm:$0xff]  ;;  %v2007_v27 = vld [vmem:[#allocation2 + $0x30] sm:$0xff]  ;;  %v2051_v29 = vpack.c.bf16 %v2004_v20, %v2003_v11 }
   0xc   :  { %55 = vst.msk [vmem:[#allocation2 + $0x120] sm:$0xff] %vm33_vm0, %v13117_v3  ;;  %56 = vst.msk [vmem:[#allocation2 + $0x150] sm:$0xff] %vm33_vm0, %v13117_v3  ;;  %8468 = vmatmul.mubr.msk.bf16.vlgmr.msra.gmra.mrb[0].mxu1 %vm33_vm0, %v2104_v14  ;;  %8372 = vmatmul.mubr.msk.bf16.vlgmr.msra.gmra.mrb[0].mxu0 %vm33_vm0, %v2080_v15  ;;  %v10012_v28 = vld [vmem:[%s13107_s0 + $0x90] sm:$0xff]  ;;  %v2082_v30 = vpack.c.bf16 %v2007_v27, %v2006_v26  ;;  %v10019_v31 = vld [vmem:[%s13107_s0 + $0xc0] sm:$0xff]  ;;  %v2052_v34 = vpack.c.bf16 %v2006_v26, %v2005_v21 }
   0xd   :  { %57 = vst.msk [vmem:[#allocation2 + $0x158] sm:$0xff] %vm33_vm0, %v13117_v3  ;;  %59 = vst.msk [vmem:[#allocation2 + $0x190] sm:$0xff] %vm33_vm0, %v13117_v3  ;;  %8472 = vmatpush3.bf16.msra.mxu1 %v9634_v16  ;;  %8475 = vmatprep.mubr.msk.bf16.mxu1 %vm9790_vm1, %v13117_v3  ;;  %v2008_v32 = vld [vmem:[#allocation2 + $0x38] sm:$0xff]  ;;  %v2009_v33 = vld [vmem:[#allocation2 + $0x40] sm:$0xff] }
   0xe   :  { %60 = vst.msk [vmem:[#allocation2 + $0x198] sm:$0xff] %vm33_vm0, %v13117_v3  ;;  %61 = vst.msk [vmem:[#allocation2 + $0x1a0] sm:$0xff] %vm33_vm0, %v13117_v3  ;;  %312 = vperm.xlu1 %9631, %v9844_v1   ;;  %112 = vperm.xlu0 %9630, %v9844_v1   ;;  %v2083_v35 = vpack.c.bf16 %v2009_v33, %v2008_v32  ;;  %v283_v36 = vld [vmem:[%s13107_s0 + $0x68] sm:$0xff]  ;;  %v2011_v38 = vld [vmem:[#allocation2 + $0x50] sm:$0xff]  ;;  %v2053_v40 = vpack.c.bf16 %v2008_v32, %v2007_v27 }
   0xf   :  { %62 = vst.msk [vmem:[#allocation2 + $0x1a8] sm:$0xff] %vm33_vm0, %v13117_v3  ;;  %63 = vst.msk [vmem:[#allocation2 + $0x1b0] sm:$0xff] %vm33_vm0, %v13117_v3  ;;  %8473 = vmatprep.subr.bf16.mxu1 %v13117_v3  ;;  %8375 = vmatprep.mubr.msk.bf16.mxu0 %vm9790_vm1, %v13117_v3  ;;  %v2010_v37 = vld [vmem:[#allocation2 + $0x48] sm:$0xff]  ;;  %v10041_v39 = vld [vmem:[%s13107_s0 + $0x98] sm:$0xff] }
  0x10   :  { %64 = vst.msk [vmem:[#allocation2 + $0x1b8] sm:$0xff] %vm33_vm0, %v13117_v3  ;;  %65 = vst.msk [vmem:[#allocation2 + $0x1c0] sm:$0xff] %vm33_vm0, %v13117_v3  ;;  %v2084_v41 = vpack.c.bf16 %v2011_v38, %v2010_v37  ;;  %v488_v42 = vld [vmem:[%s13107_s0 + $0x70] sm:$0xff]  ;;  %v2012_v43 = vld [vmem:[#allocation2 + $0x58] sm:$0xff]  ;;  %v2054_v45 = vpack.c.bf16 %v2010_v37, %v2009_v33 }
  0x11   :  { %66 = vst.msk [vmem:[#allocation2 + $0x1c8] sm:$0xff] %vm33_vm0, %v13117_v3  ;;  %67 = vst.msk [vmem:[#allocation2 + $0x1d0] sm:$0xff] %vm33_vm0, %v13117_v3  ;;  %8474 = vmatpush3.bf16.msra.mxu1 %v9635_v18  ;;  %v2013_v44 = vld [vmem:[#allocation2 + $0x60] sm:$0xff]  ;;  %v2014_v47 = vld [vmem:[#allocation2 + $0x68] sm:$0xff]  ;;  %v2055_v50 = vpack.c.bf16 %v2012_v43, %v2011_v38 }
  0x12   :  { %68 = vst.msk [vmem:[#allocation2 + $0x1d8] sm:$0xff] %vm33_vm0, %v13117_v3  ;;  %69 = vst.msk [vmem:[#allocation2 + $0x1e0] sm:$0xff] %vm33_vm0, %v13117_v3  ;;  %1127 = vperm.xlu1 %9631, %v9964_v12   ;;  %317 = vperm.xlu0 %9630, %v281_v13   ;;  %v2085_v46 = vpack.c.bf16 %v2013_v44, %v2012_v43  ;;  %v2015_v48 = vld [vmem:[#allocation2 + $0x70] sm:$0xff]  ;;  %v10067_v49 = vld [vmem:[%s13107_s0 + $0xc8] sm:$0xff]  ;;  %v2056_v54 = vpack.c.bf16 %v2014_v47, %v2013_v44 }
  0x13   :  { %70 = vst.msk [vmem:[#allocation2 + $0x1e8] sm:$0xff] %vm33_vm0, %v13117_v3  ;;  %71 = vst.msk [vmem:[#allocation2 + $0x1f0] sm:$0xff] %vm33_vm0, %v13117_v3  ;;  %8679 = vmatprep.subr.bf16.mxu1 %v13117_v3  ;;  %v2086_v51 = vpack.c.bf16 %v2015_v48, %v2014_v47  ;;  %v10074_v52 = vld [vmem:[%s13107_s0 + $0xa0] sm:$0xff]  ;;  %v10087_v53 = vld [vmem:[%s13107_s0 + $0xd0] sm:$0xff] }
  0x14   :  { %72 = vst.msk [vmem:[#allocation2 + $0x1f8] sm:$0xff] %vm33_vm0, %v13117_v3  ;;  %73 = vst.msk [vmem:[#allocation2 + $0x200] sm:$0xff] %vm33_vm0, %v13117_v3  ;;  %8476 = vmatmul.mubr.msk.bf16.vlgmr.msra.gmra.mrb[4].mxu1 %vm33_vm0, %v2050_v23  ;;  %8376 = vmatmul.mubr.msk.bf16.gmra.mrb[4].mxu0 %vm33_vm0, %v2081_v24  ;;  %v10094_v55 = vld [vmem:[%s13107_s0 + $0xa8] sm:$0xff]  ;;  %v10099_v56 = vld [vmem:[#allocation2 + $0x78] sm:$0xff] }
  0x15   :  { %8479 = vmatprep.mubr.msk.bf16.mxu1 %vm9790_vm1, %v13117_v3  ;;  %8379 = vmatprep.mubr.msk.bf16.mxu0 %vm9790_vm1, %v13117_v3  ;;  %v2057_v57 = vpack.c.bf16 %v10099_v56, %v2015_v48  ;;  %v10109_v58 = vld [vmem:[%s13107_s0 + $0xd8] sm:$0xff]  ;;  %v10119_v59 = vld [vmem:[%s13107_s0 + $0xe0] sm:$0xff]  ;;  %v10142_v60 = vld [vmem:[%s13107_s0 + $0xe8] sm:$0xff] }
  0x16   :  { %522 = vperm.xlu1 %9631, %v486_v17   ;;  %517 = vperm.xlu0 %9630, %v281_v13   ;;  %v10149_v61 = vld [vmem:[%s13107_s0 + $0xf0] sm:$0xff]  ;;  %v10158_v2 = vld [vmem:[%s13107_s0 + $0xf8] sm:$0xff]  ;;  %v10178_v9 = vld [vmem:[%s13109_s1] ss:$0 sm:$0xff] }
  0x17   :  { %v10183_v10 = vld [vmem:[%s13107_s0 + $0x100] sm:$0xff]  ;;  %v10248_v43 = vld [vmem:[%s13109_s1 + $0x8] ss:$0 sm:$0xff] }
  0x18   :  { %v10194_v15 = vld [vmem:[%s13109_s1 + $0x2] ss:$0 sm:$0xff]  ;;  %v10206_v20 = vld [vmem:[%s13109_s1 + $0x3] ss:$0 sm:$0xff]  ;;  %v10216_v27 = vld [vmem:[%s13109_s1 + $0x4] ss:$0 sm:$0xff] }
  0x19   :  { %v10253_v44 = vld [vmem:[%s13107_s0 + $0x108] sm:$0xff] }
  0x1a   :  { %722 = vperm.xlu1 %9631, %v9948_v6   ;;  %1332 = vperm.xlu0 %9630, %v9988_v22  }
  0x1c   :  { %8480 = vmatmul.mubr.msk.bf16.gmra.mrb[8].mxu1 %vm33_vm0, %v2051_v29  ;;  %8380 = vmatmul.mubr.msk.bf16.gmra.mrb[8].mxu0 %vm33_vm0, %v2082_v30  ;;  %v10226_v30 = vld [vmem:[%s13109_s1 + $0x6] ss:$0 sm:$0xff] }
  0x1d   :  { %8483 = vmatprep.mubr.msk.bf16.mxu1 %vm9790_vm1, %v13117_v3  ;;  %8383 = vmatprep.mubr.msk.bf16.mxu0 %vm9790_vm1, %v13117_v3 }
  0x1e   :  { %1537 = vperm.xlu1 %9631, %v9996_v25   ;;  %727 = vperm.xlu0 %9630, %v9964_v12  }
  0x22   :  { %932 = vperm.xlu1 %9631, %v10012_v28   ;;  %927 = vperm.xlu0 %9630, %v9964_v12  }
  0x24   :  { %8484 = vmatmul.mubr.msk.bf16.gmra.mrb[12].mxu1 %vm33_vm0, %v2052_v34  ;;  %8384 = vmatmul.mubr.msk.bf16.gmra.mrb[12].mxu0 %vm33_vm0, %v2083_v35 }
  0x25   :  { %8487 = vmatprep.mubr.msk.bf16.mxu1 %vm9790_vm1, %v13117_v3  ;;  %8387 = vmatprep.mubr.msk.bf16.mxu0 %vm9790_vm1, %v13117_v3 }
  0x26   :  { %117 = vperm.xlu1 %9631, %v281_v13   ;;  %1742 = vperm.xlu0 %9630, %v10019_v31  }
  0x2a   :  { %322 = vperm.xlu1 %9631, %v486_v17   ;;  %122 = vperm.xlu0 %9630, %v486_v17  }
  0x2c   :  { %8488 = vmatmul.mubr.msk.bf16.gmra.mrb[16].mxu1 %vm33_vm0, %v2053_v40  ;;  %8388 = vmatmul.mubr.msk.bf16.gmra.mrb[16].mxu0 %vm33_vm0, %v2084_v41 }
  0x2d   :  { %8491 = vmatprep.mubr.msk.bf16.mxu1 %vm9790_vm1, %v13117_v3  ;;  %8391 = vmatprep.mubr.msk.bf16.mxu0 %vm9790_vm1, %v13117_v3 }
  0x2e   :  { %1132 = vperm.xlu1 %9631, %v10012_v28   ;;  %327 = vperm.xlu0 %9630, %v283_v36  }
  0x32   :  { %527 = vperm.xlu1 %9631, %v283_v36   ;;  %1137 = vperm.xlu0 %9630, %v10041_v39   ;;  %v10237_v36 = vld [vmem:[%s13109_s1 + $0x7] ss:$0 sm:$0xff] }
  0x34   :  { %8492 = vmatmul.mubr.msk.bf16.gmra.mrb[20].mxu1 %vm33_vm0, %v2054_v45  ;;  %8392 = vmatmul.mubr.msk.bf16.gmra.mrb[20].mxu0 %vm33_vm0, %v2085_v46 }
  0x35   :  { %8495 = vmatprep.mubr.msk.bf16.mxu1 %vm9790_vm1, %v13117_v3  ;;  %8395 = vmatprep.mubr.msk.bf16.mxu0 %vm9790_vm1, %v13117_v3 }
  0x36   :  { %1337 = vperm.xlu1 %9631, %v9996_v25   ;;  %532 = vperm.xlu0 %9630, %v488_v42  }
  0x3a   :  { %732 = vperm.xlu1 %9631, %v10012_v28   ;;  %1342 = vperm.xlu0 %9630, %v10019_v31  }
  0x3c   :  { %8496 = vmatmul.mubr.msk.bf16.gmra.mrb[24].mxu1 %vm33_vm0, %v2055_v50  ;;  %8396 = vmatmul.mubr.msk.bf16.gmra.mrb[24].mxu0 %vm33_vm0, %v2086_v51  ;;  %v10263_v51 = vld [vmem:[%s13110_s2] ss:$0 sm:$0xff] }
  0x3d   :  { %8499 = vmatprep.mubr.msk.bf16.mxu1 %vm9790_vm1, %v13117_v3  ;;  %8399 = vmatprep.mubr.msk.bf16.mxu0 %vm9790_vm1, %v13117_v3 }
  0x3e   :  { %1542 = vperm.xlu1 %9631, %v10019_v31   ;;  %737 = vperm.xlu0 %9630, %v10041_v39  }
  0x42   :  { %937 = vperm.xlu1 %9631, %v10041_v39   ;;  %1547 = vperm.xlu0 %9630, %v10067_v49  }
  0x44   :  { %8500 = vmatmul.mubr.msk.bf16.gmra.mrb[28].mxu1 %vm33_vm0, %v2056_v54 }
  0x45   :  { %8503 = vmatprep.mubr.msk.bf16.mxu1 %vm9790_vm1, %v13117_v3 }
  0x46   :  { %1747 = vperm.xlu1 %9631, %v10067_v49   ;;  %942 = vperm.xlu0 %9630, %v10074_v52  }
  0x4a   :  { %1142 = vperm.xlu1 %9631, %v10074_v52   ;;  %1752 = vperm.xlu0 %9630, %v10087_v53  }
  0x4c   :  { %8504 = vmatmul.mubr.msk.bf16.gmra.mrb[32].mxu1 %vm33_vm0, %v2057_v57 }
  0x4d   :  { %8507 = vmatprep.mubr.msk.bf16.mxu1 %vm9790_vm1, %v13117_v3 }
  0x4e   :  { %1347 = vperm.xlu1 %9631, %v10067_v49   ;;  %1147 = vperm.xlu0 %9630, %v10094_v55  }
  0x52   :  { %1552 = vperm.xlu1 %9631, %v10087_v53   ;;  %1352 = vperm.xlu0 %9630, %v10087_v53  }
  0x56   :  { %1757 = vperm.xlu1 %9631, %v10109_v58   ;;  %1557 = vperm.xlu0 %9630, %v10109_v58  }
  0x5a   :  { %127 = vperm.xlu1 %9631, %v9933_v4   ;;  %1762 = vperm.xlu0 %9630, %v10119_v59  }
  0x5e   :  { %332 = vperm.xlu1 %9631, %v9948_v6   ;;  %132 = vperm.xlu0 %9630, %v9948_v6   ;;  %v10167_v6 = vld [vmem:[%s13109_s1 + $0x1] ss:$0 sm:$0xff] }
  0x62   :  { %537 = vperm.xlu1 %9631, %v9964_v12   ;;  %337 = vperm.xlu0 %9630, %v9964_v12  }
  0x66   :  { %742 = vperm.xlu1 %9631, %v9988_v22   ;;  %542 = vperm.xlu0 %9630, %v10012_v28  }
  0x6a   :  { %947 = vperm.xlu1 %9631, %v9996_v25   ;;  %747 = vperm.xlu0 %9630, %v9996_v25  }
  0x6e   :  { %137 = vperm.xlu1 %9631, %v9964_v12   ;;  %952 = vperm.xlu0 %9630, %v10019_v31  }
  0x72   :  { %342 = vperm.xlu1 %9631, %v10012_v28   ;;  %142 = vperm.xlu0 %9630, %v10012_v28   ;;  %v10221_v28 = vld [vmem:[%s13109_s1 + $0x5] ss:$0 sm:$0xff] }
  0x76   :  { %1152 = vperm.xlu1 %9631, %v10019_v31   ;;  %347 = vperm.xlu0 %9630, %v10041_v39  }
  0x7a   :  { %547 = vperm.xlu1 %9631, %v10041_v39   ;;  %1157 = vperm.xlu0 %9630, %v10067_v49  }
  0x7e   :  { %1357 = vperm.xlu1 %9631, %v10142_v60   ;;  %552 = vperm.xlu0 %9630, %v10074_v52  }
  0x81   :  { %v513_v62 = vpop.permute.xlu1 %512  ;;  %v103_v63 = vpop.permute.xlu0 %102 }
  0x82   :  { %752 = vperm.xlu1 %9631, %v10019_v31   ;;  %1362 = vperm.xlu0 %9630, %v10149_v61   ;;  %v229_v14 = vmul.f32 %v10178_v9, %v103_v63  ;;  %v639_v19 = vmul.f32 %v10194_v15, %v513_v62 }
  0x85   :  { %v718_v0 = vpop.permute.xlu1 %717  ;;  %v308_v1 = vpop.permute.xlu0 %307 }
  0x86   :  { %1562 = vperm.xlu1 %9631, %v10149_v61   ;;  %757 = vperm.xlu0 %9630, %v10067_v49   ;;  %v434_v11 = vmul.f32 %v10167_v6, %v308_v1  ;;  %v844_v26 = vmul.f32 %v10206_v20, %v718_v0 }
  0x88   :  { %v459_v16 = vadd.f32 %v434_v11, %v229_v14 }
  0x89   :  { %v10160_v4 = vpop.permute.xlu1 %107  ;;  %v923_v5 = vpop.permute.xlu0 %922 }
  0x8a   :  { %957 = vperm.xlu1 %9631, %v10067_v49   ;;  %1567 = vperm.xlu0 %9630, %v10158_v2   ;;  %v664_v21 = vadd.f32 %v639_v19, %v459_v16  ;;  %v1049_v34 = vmul.f32 %v10216_v27, %v923_v5 }
  0x8c   :  { %v869_v29 = vadd.f32 %v844_v26, %v664_v21  ;;  %v230_v21 = vmul.f32 %v10178_v9, %v10160_v4 }
  0x8d   :  { %v10169_v7 = vpop.permute.xlu1 %312  ;;  %v10171_v8 = vpop.permute.xlu0 %112 }
  0x8e   :  { %1767 = vperm.xlu1 %9631, %v10158_v2   ;;  %962 = vperm.xlu0 %9630, %v10087_v53   ;;  %v1074_v37 = vadd.f32 %v1049_v34, %v869_v29  ;;  %v435_v19 = vmul.f32 %v10167_v6, %v10169_v7  ;;  %v231_v4 = vmul.f32 %v10178_v9, %v10171_v8 }
  0x91   :  { %v1128_v12 = vpop.permute.xlu1 %1127  ;;  %v10186_v13 = vpop.permute.xlu0 %317 }
  0x92   :  { %147 = vperm.xlu1 %9631, %v10041_v39   ;;  %1772 = vperm.xlu0 %9630, %v10183_v10   ;;  %v1254_v35 = vmul.f32 %v10221_v28, %v1128_v12  ;;  %v436_v26 = vmul.f32 %v10167_v6, %v10186_v13  ;;  %v10312_v13 = vld [vmem:[%s13107_s0 + $0x118] sm:$0xff] }
  0x94   :  { %v1279_v41 = vadd.f32 %v1254_v35, %v1074_v37  ;;  %v461_v37 = vadd.f32 %v436_v26, %v231_v4 }
  0x95   :  { %v10196_v17 = vpop.permute.xlu1 %522  ;;  %v10198_v18 = vpop.permute.xlu0 %517 }
  0x96   :  { %1162 = vperm.xlu1 %9631, %v10087_v53   ;;  %352 = vperm.xlu0 %9630, %v10074_v52   ;;  %v10268_v52 = vld [vmem:[%s13107_s0 + $0x110] sm:$0xff] }
  0x99   :  { %v10208_v23 = vpop.permute.xlu1 %722  ;;  %v1333_v24 = vpop.permute.xlu0 %1332 }
  0x9a   :  { %557 = vperm.xlu1 %9631, %v10094_v55   ;;  %1167 = vperm.xlu0 %9630, %v10109_v58   ;;  %v1459_v38 = vmul.f32 %v10226_v30, %v1333_v24  ;;  %v640_v24 = vmul.f32 %v10194_v15, %v10198_v18  ;;  %v641_v18 = vmul.f32 %v10194_v15, %v10196_v17 }
  0x9c   :  { %v1484_v45 = vadd.f32 %v1459_v38, %v1279_v41  ;;  %v666_v17 = vadd.f32 %v641_v18, %v461_v37 }
  0x9d   :  { %v1538_v32 = vpop.permute.xlu1 %1537  ;;  %v10228_v33 = vpop.permute.xlu0 %727 }
  0x9e   :  { %1372 = vperm.xlu1 %9631, %v10183_v10   ;;  %1367 = vperm.xlu0 %9630, %v10158_v2   ;;  %v1664_v42 = vmul.f32 %v10237_v36, %v1538_v32  ;;  %v460_v32 = vadd.f32 %v435_v19, %v230_v21 }
  0xa0   :  { %v1689_v48 = vadd.f32 %v1664_v42, %v1484_v45  ;;  %v665_v34 = vadd.f32 %v640_v24, %v460_v32 }
  0xa1   :  { %v10240_v39 = vpop.permute.xlu1 %932  ;;  %v928_v40 = vpop.permute.xlu0 %927 }
  0xa2   :  { %1572 = vperm.xlu1 %9631, %v10183_v10   ;;  %762 = vperm.xlu0 %9630, %v10087_v53   ;;  %v1050_v35 = vmul.f32 %v10216_v27, %v928_v40  ;;  %v1051_v45 = vmul.f32 %v10216_v27, %v10240_v39 }
  0xa5   :  { %v10255_v46 = vpop.permute.xlu1 %117  ;;  %v1743_v47 = vpop.permute.xlu0 %1742 }
  0xa6   :  { %v1869_v50 = vmul.f32 %v10248_v43, %v1743_v47  ;;  %967 = vperm.xlu1 %9631, %v10109_v58   ;;  %1577 = vperm.xlu0 %9630, %v10253_v44  }
  0xa8   :  { %v1894_v54 = vadd.f32 %v1869_v50, %v1689_v48 }
  0xa9   :  { %v323_v55 = vpop.permute.xlu1 %322  ;;  %v10270_v57 = vpop.permute.xlu0 %122 }
  0xaa   :  { %v1926_v62 = vadd.f32 %v10263_v51, %v1894_v54  ;;  %1782 = vperm.xlu1 %9631, %v10268_v52   ;;  %1777 = vperm.xlu0 %9630, %v10253_v44   ;;  %v437_v39 = vmul.f32 %v10167_v6, %v323_v55 }
  0xac   :  { %v1951_v63 = vmax.f32 %v1926_v62, 0.0 }
  0xad   :  { %v1133_v0 = vpop.permute.xlu1 %1132  ;;  %v10275_v1 = vpop.permute.xlu0 %327 }
  0xae   :  { %1976 = vst.msk [vmem:[#allocation2 + $0x80] sm:$0xff] %vm33_vm0, %v1951_v63  ;;  %357 = vperm.xlu1 %9631, %v9996_v25   ;;  %152 = vperm.xlu0 %9630, %v9988_v22   ;;  %v1255_v8 = vmul.f32 %v10221_v28, %v1133_v0  ;;  %v438_v4 = vmul.f32 %v10167_v6, %v10275_v1 }
  0xb1   :  { %v528_v5 = vpop.permute.xlu1 %527  ;;  %v1138_v11 = vpop.permute.xlu0 %1137 }
  0xb2   :  { %562 = vperm.xlu1 %9631, %v10019_v31   ;;  %1172 = vperm.xlu0 %9630, %v10119_v59   ;;  %v1256_v50 = vmul.f32 %v10221_v28, %v1138_v11  ;;  %v642_v32 = vmul.f32 %v10194_v15, %v528_v5 }
  0xb5   :  { %v10282_v12 = vld [vmem:[#allocation2 + $0x80] sm:$0xff]  ;;  %v1338_v14 = vpop.permute.xlu1 %1337  ;;  %v10284_v16 = vpop.permute.xlu0 %532 }
  0xb6   :  { %767 = vperm.xlu1 %9631, %v10142_v60   ;;  %1377 = vperm.xlu0 %9630, %v10253_v44   ;;  %v2087_v22 = vpack.c.bf16 %v10282_v12, %v10099_v56  ;;  %v845_v56 = vmul.f32 %v10206_v20, %v10208_v23  ;;  %v846_v23 = vmul.f32 %v10206_v20, %v10228_v33 }
  0xb7   :  { %v1460_v40 = vmul.f32 %v10226_v30, %v1338_v14  ;;  %v643_v1 = vmul.f32 %v10194_v15, %v10284_v16 }
  0xb8   :  { %8400 = vmatmul.mubr.msk.bf16.gmra.mrb[28].mxu0 %vm33_vm0, %v2087_v22  ;;  %v870_v42 = vadd.f32 %v845_v56, %v665_v34  ;;  %v871_v48 = vadd.f32 %v846_v23, %v666_v17 }
  0xb9   :  { %v733_v29 = vpop.permute.xlu1 %732  ;;  %v1343_v7 = vpop.permute.xlu0 %1342  ;;  %8403 = vmatprep.mubr.msk.bf16.mxu0 %vm9790_vm1, %v13117_v3 }
  0xba   :  { %972 = vperm.xlu1 %9631, %v10149_v61   ;;  %1582 = vperm.xlu0 %9630, %v10268_v52   ;;  %v1075_v47 = vadd.f32 %v1050_v35, %v870_v42  ;;  %v1461_v19 = vmul.f32 %v10226_v30, %v1343_v7  ;;  %v847_v18 = vmul.f32 %v10206_v20, %v733_v29  ;;  %v10351_v42 = vld [vmem:[%s13107_s0 + $0x120] sm:$0xff] }
  0xbc   :  { %v1280_v62 = vadd.f32 %v1255_v8, %v1075_v47 }
  0xbd   :  { %v1543_v38 = vpop.permute.xlu1 %1542  ;;  %v738_v41 = vpop.permute.xlu0 %737 }
  0xbe   :  { %157 = vperm.xlu1 %9631, %v9996_v25   ;;  %1787 = vperm.xlu0 %9630, %v10312_v13   ;;  %v1665_v63 = vmul.f32 %v10237_v36, %v1543_v38  ;;  %v1076_v25 = vadd.f32 %v1051_v45, %v871_v48  ;;  %v1485_v0 = vadd.f32 %v1460_v40, %v1280_v62 }
  0xbf   :  { %v848_v40 = vmul.f32 %v10206_v20, %v738_v41  ;;  %v10364_v41 = vld [vmem:[%s13107_s0 + $0x128] sm:$0xff] }
  0xc0   :  { %v1281_v22 = vadd.f32 %v1256_v50, %v1076_v25  ;;  %v1690_v24 = vadd.f32 %v1665_v63, %v1485_v0 }
  0xc1   :  { %v938_v33 = vpop.permute.xlu1 %937  ;;  %v1548_v54 = vpop.permute.xlu0 %1547 }
  0xc2   :  { %362 = vperm.xlu1 %9631, %v10019_v31   ;;  %162 = vperm.xlu0 %9630, %v10019_v31   ;;  %v1666_v11 = vmul.f32 %v10237_v36, %v1548_v54  ;;  %v232_v31 = vmul.f32 %v10178_v9, %v10255_v46  ;;  %v1486_v7 = vadd.f32 %v1461_v19, %v1281_v22 }
  0xc3   :  { %v233_v46 = vmul.f32 %v10178_v9, %v10270_v57  ;;  %v1052_v29 = vmul.f32 %v10216_v27, %v938_v33 }
  0xc4   :  { %v462_v55 = vadd.f32 %v437_v39, %v232_v31  ;;  %v1691_v37 = vadd.f32 %v1666_v11, %v1486_v7 }
  0xc5   :  { %v1748_v14 = vpop.permute.xlu1 %1747  ;;  %v943_v21 = vpop.permute.xlu0 %942  ;;  %v463_v45 = vadd.f32 %v438_v4, %v233_v46 }
  0xc6   :  { %v1870_v26 = vmul.f32 %v10248_v43, %v1748_v14  ;;  %1177 = vperm.xlu1 %9631, %v10158_v2   ;;  %367 = vperm.xlu0 %9630, %v10067_v49   ;;  %v667_v5 = vadd.f32 %v642_v32, %v462_v55  ;;  %v1053_v62 = vmul.f32 %v10216_v27, %v943_v21 }
  0xc7   :  { %v668_v33 = vadd.f32 %v643_v1, %v463_v45 }
  0xc8   :  { %v1895_v56 = vadd.f32 %v1870_v26, %v1690_v24  ;;  %v872_v47 = vadd.f32 %v847_v18, %v667_v5 }
  0xc9   :  { %v1143_v34 = vpop.permute.xlu1 %1142  ;;  %v1753_v35 = vpop.permute.xlu0 %1752  ;;  %v873_v0 = vadd.f32 %v848_v40, %v668_v33 }
  0xca   :  { %v1927_v23 = vadd.f32 %v10263_v51, %v1895_v56  ;;  %v1871_v38 = vmul.f32 %v10248_v43, %v1753_v35  ;;  %572 = vperm.xlu1 %9631, %v10087_v53   ;;  %567 = vperm.xlu0 %9630, %v10067_v49   ;;  %v1257_v48 = vmul.f32 %v10221_v28, %v1143_v34  ;;  %v10382_v35 = vld [vmem:[%s13107_s0 + $0x130] sm:$0xff] }
  0xcb   :  { %v1077_v54 = vadd.f32 %v1052_v29, %v872_v47  ;;  %v1078_v21 = vadd.f32 %v1053_v62, %v873_v0 }
  0xcc   :  { %v1952_v8 = vmax.f32 %v1927_v23, 0.0  ;;  %v1896_v17 = vadd.f32 %v1871_v38, %v1691_v37 }
  0xcd   :  { %v1348_v57 = vpop.permute.xlu1 %1347  ;;  %v1148_v50 = vpop.permute.xlu0 %1147  ;;  %v1282_v19 = vadd.f32 %v1257_v48, %v1077_v54 }
  0xce   :  { %1977 = vst.msk [vmem:[#allocation2 + $0x88] sm:$0xff] %vm33_vm0, %v1952_v8  ;;  %v1928_v16 = vadd.f32 %v10263_v51, %v1896_v17  ;;  %772 = vperm.xlu1 %9631, %v10149_v61   ;;  %1382 = vperm.xlu0 %9630, %v10351_v42   ;;  %v1462_v63 = vmul.f32 %v10226_v30, %v1348_v57 }
  0xcf   :  { %v1258_v39 = vmul.f32 %v10221_v28, %v1148_v50 }
  0xd0   :  { %v1953_v25 = vmax.f32 %v1928_v16, 0.0  ;;  %v1487_v11 = vadd.f32 %v1462_v63, %v1282_v19 }
  0xd1   :  { %v1553_v22 = vpop.permute.xlu1 %1552  ;;  %v1353_v14 = vpop.permute.xlu0 %1352  ;;  %v1283_v32 = vadd.f32 %v1258_v39, %v1078_v21 }
  0xd2   :  { %1978 = vst.msk [vmem:[#allocation2 + $0x90] sm:$0xff] %vm33_vm0, %v1953_v25  ;;  %v1667_v24 = vmul.f32 %v10237_v36, %v1553_v22  ;;  %1587 = vperm.xlu1 %9631, %v10364_v41   ;;  %777 = vperm.xlu0 %9630, %v10158_v2   ;;  %v1463_v26 = vmul.f32 %v10226_v30, %v1353_v14 }
  0xd4   :  { %v1692_v7 = vadd.f32 %v1667_v24, %v1487_v11  ;;  %v1488_v37 = vadd.f32 %v1463_v26, %v1283_v32  ;;  %v2022_v26 = vld [vmem:[#allocation2 + $0xa8] sm:$0xff] }
  0xd5   :  { %v5088_v31 = vld [vmem:[#allocation2 + $0x88] sm:$0xff]  ;;  %v1758_v56 = vpop.permute.xlu1 %1757  ;;  %v1558_v55 = vpop.permute.xlu0 %1557 }
  0xd6   :  { %v10373_v4 = vpack.c.bf16 %v5088_v31, %v10282_v12  ;;  %v1872_v18 = vmul.f32 %v10248_v43, %v1758_v56  ;;  %v1668_v34 = vmul.f32 %v10237_v36, %v1558_v55  ;;  %982 = vperm.xlu1 %9631, %v10183_v10   ;;  %977 = vperm.xlu0 %9630, %v10158_v2  }
  0xd8   :  { %13120 = vst [vmem:[#allocation3_spill] sm:$0xff] %v10373_v4  ;;  %v1897_v23 = vadd.f32 %v1872_v18, %v1692_v7  ;;  %8508 = vmatmul.mubr.msk.bf16.gmra.mrb[36].mxu1 %vm33_vm0, %v10373_v4  ;;  %v1693_v1 = vadd.f32 %v1668_v34, %v1488_v37  ;;  %v10434_v7 = vld [vmem:[#allocation2 + $0xb0] sm:$0xff]  ;;  %v3118_v4 = vld [vmem:[#allocation2 + $0xe0] sm:$0xff] }
  0xd9   :  { %v10386_v12 = vpop.permute.xlu1 %127  ;;  %v1763_v38 = vpop.permute.xlu0 %1762  ;;  %v2019_v46 = vld [vmem:[#allocation2 + $0x90] sm:$0xff]  ;;  %8511 = vmatprep.mubr.msk.bf16.mxu1 %vm9790_vm1, %v13117_v3  ;;  %v2090_v37 = vpack.c.bf16 %v10434_v7, %v2022_v26 }
  0xda   :  { %v1929_v5 = vadd.f32 %v10263_v51, %v1897_v23  ;;  %v1873_v29 = vmul.f32 %v10248_v43, %v1763_v38  ;;  %167 = vperm.xlu1 %9631, %v10067_v49   ;;  %1792 = vperm.xlu0 %9630, %v10382_v35   ;;  %v2088_v8 = vpack.c.bf16 %v2019_v46, %v5088_v31 }
  0xdc   :  { %v1954_v17 = vmax.f32 %v1929_v5, 0.0  ;;  %v1898_v45 = vadd.f32 %v1873_v29, %v1693_v1  ;;  %8404 = vmatmul.mubr.msk.bf16.gmra.mrb[32].mxu0 %vm33_vm0, %v2088_v8  ;;  %v10451_v8 = vld [vmem:[%s13107_s0 + $0x138] sm:$0xff] }
  0xdd   :  { %v10395_v47 = vpop.permute.xlu1 %332  ;;  %v10397_v40 = vpop.permute.xlu0 %132  ;;  %8407 = vmatprep.mubr.msk.bf16.mxu0 %vm9790_vm1, %v13117_v3 }
  0xde   :  { %1979 = vst.msk [vmem:[#allocation2 + $0x98] sm:$0xff] %vm33_vm0, %v1954_v17  ;;  %v1930_v48 = vadd.f32 %v10263_v51, %v1898_v45  ;;  %372 = vperm.xlu1 %9631, %v10087_v53   ;;  %172 = vperm.xlu0 %9630, %v10087_v53  }
  0xdf   :  { %v2399_v62 = vpop.f32.mrb[0].mxu1  ;;  %v2230_v63 = vpop.f32.mrb[0].mxu0 }
  0xe0   :  { %v1955_v49 = vmax.f32 %v1930_v48, 0.0  ;;  %v8469_v25 = vpop.f32.mrb[1].mxu1  ;;  %v8373_v0 = vpop.f32.mrb[1].mxu0 }
  0xe1   :  { %v10405_v57 = vpop.permute.xlu1 %537  ;;  %v10407_v50 = vpop.permute.xlu0 %337 }
  0xe2   :  { %1980 = vst.msk [vmem:[#allocation2 + $0xa0] sm:$0xff] %vm33_vm0, %v1955_v49  ;;  %1182 = vperm.xlu1 %9631, %v10183_v10   ;;  %377 = vperm.xlu0 %9630, %v10109_v58   ;;  %v2401_v19 = vpop.f32.mrb[2].mxu1  ;;  %v2232_v39 = vpop.f32.mrb[2].mxu0 }
  0xe3   :  { %v8470_v21 = vpop.f32.mrb[3].mxu1  ;;  %v8374_v11 = vpop.f32.mrb[3].mxu0 }
  0xe4   :  { %v439_v11 = vmul.f32 %v10167_v6, %v10395_v47 }
  0xe5   :  { %v10412_v16 = vpop.permute.xlu1 %742  ;;  %v10414_v33 = vpop.permute.xlu0 %542  ;;  %v2020_v54 = vld [vmem:[#allocation2 + $0x98] sm:$0xff] }
  0xe6   :  { %577 = vperm.xlu1 %9631, %v10109_v58   ;;  %1187 = vperm.xlu0 %9630, %v10253_v44   ;;  %v2059_v53 = vpack.c.bf16 %v2020_v54, %v2019_v46 }
  0xe7   :  { %v2525_v56 = vpop.f32.mrb[4].mxu1  ;;  %v2236_v55 = vpop.f32.mrb[4].mxu0 }
  0xe8   :  { %8512 = vmatmul.mubr.msk.bf16.gmra.mrb[40].mxu1 %vm33_vm0, %v2059_v53  ;;  %v8477_v18 = vpop.f32.mrb[5].mxu1  ;;  %v8377_v34 = vpop.f32.mrb[5].mxu0 }
  0xe9   :  { %v10419_v22 = vpop.permute.xlu1 %947  ;;  %v10421_v14 = vpop.permute.xlu0 %747  ;;  %v2021_v24 = vld [vmem:[#allocation2 + $0xa0] sm:$0xff]  ;;  %8515 = vmatprep.mubr.msk.bf16.mxu1 %vm9790_vm1, %v13117_v3  ;;  %v234_v18 = vmul.f32 %v10178_v9, %v10386_v12  ;;  %v644_v34 = vmul.f32 %v10194_v15, %v10405_v57  ;;  %v235_v57 = vmul.f32 %v10178_v9, %v10397_v40 }
  0xea   :  { %1387 = vperm.xlu1 %9631, %v10364_v41   ;;  %582 = vperm.xlu0 %9630, %v10119_v59   ;;  %v2089_v58 = vpack.c.bf16 %v2021_v24, %v2020_v54  ;;  %v2060_v59 = vpack.c.bf16 %v2022_v26, %v2021_v24  ;;  %v2527_v23 = vpop.f32.mrb[6].mxu1  ;;  %v2238_v38 = vpop.f32.mrb[6].mxu0  ;;  %v10467_v24 = vld [vmem:[%s13107_s0 + $0x140] sm:$0xff] }
  0xeb   :  { %v8478_v1 = vpop.f32.mrb[7].mxu1  ;;  %v8378_v29 = vpop.f32.mrb[7].mxu0  ;;  %v440_v38 = vmul.f32 %v10167_v6, %v10407_v50 }
  0xec   :  { %8408 = vmatmul.mubr.msk.bf16.gmra.mrb[36].mxu0 %vm33_vm0, %v2089_v58  ;;  %v464_v29 = vadd.f32 %v439_v11, %v234_v18 }
  0xed   :  { %v10428_v31 = vpop.permute.xlu1 %137  ;;  %v10430_v32 = vpop.permute.xlu0 %952  ;;  %8411 = vmatprep.mubr.msk.bf16.mxu0 %vm9790_vm1, %v13117_v3 }
  0xee   :  { %782 = vperm.xlu1 %9631, %v10183_v10   ;;  %1392 = vperm.xlu0 %9630, %v10382_v35   ;;  %v669_v50 = vadd.f32 %v644_v34, %v464_v29 }
  0xef   :  { %v2531_v48 = vpop.f32.mrb[8].mxu1  ;;  %v2242_v49 = vpop.f32.mrb[8].mxu0 }
  0xf0   :  { %8516 = vmatmul.mubr.msk.bf16.gmra.mrb[44].mxu1 %vm33_vm0, %v2060_v59  ;;  %v8481_v54 = vpop.f32.mrb[9].mxu1  ;;  %v8381_v53 = vpop.f32.mrb[9].mxu0  ;;  %v849_v48 = vmul.f32 %v10206_v20, %v10412_v16  ;;  %v850_v16 = vmul.f32 %v10206_v20, %v10421_v14  ;;  %v10505_v14 = vld [vmem:[%s13107_s0 + $0x148] sm:$0xff] }
  0xf1   :  { %v10440_v46 = vpop.permute.xlu1 %342  ;;  %v10442_v5 = vpop.permute.xlu0 %142  ;;  %8519 = vmatprep.mubr.msk.bf16.mxu1 %vm9790_vm1, %v13117_v3  ;;  %v645_v54 = vmul.f32 %v10194_v15, %v10414_v33  ;;  %v1054_v53 = vmul.f32 %v10216_v27, %v10419_v22  ;;  %v1055_v22 = vmul.f32 %v10216_v27, %v10430_v32 }
  0xf2   :  { %1592 = vperm.xlu1 %9631, %v10382_v35   ;;  %787 = vperm.xlu0 %9630, %v10253_v44   ;;  %v2533_v62 = vpop.f32.mrb[10].mxu1  ;;  %v2244_v63 = vpop.f32.mrb[10].mxu0 }
  0xf3   :  { %v8482_v19 = vpop.f32.mrb[11].mxu1  ;;  %v8382_v39 = vpop.f32.mrb[11].mxu0  ;;  %v465_v62 = vadd.f32 %v440_v38, %v235_v57 }
  0xf4   :  { %8412 = vmatmul.mubr.msk.bf16.gmra.mrb[40].mxu0 %vm33_vm0, %v2090_v37  ;;  %v874_v39 = vadd.f32 %v849_v48, %v669_v50 }
  0xf5   :  { %v1153_v17 = vpop.permute.xlu1 %1152  ;;  %v10454_v45 = vpop.permute.xlu0 %347  ;;  %8415 = vmatprep.mubr.msk.bf16.mxu0 %vm9790_vm1, %v13117_v3 }
  0xf6   :  { %987 = vperm.xlu1 %9631, %v10253_v44   ;;  %1597 = vperm.xlu0 %9630, %v10451_v8   ;;  %v1259_v11 = vmul.f32 %v10221_v28, %v1153_v17 }
  0xf7   :  { %v2537_v26 = vpop.f32.mrb[12].mxu1  ;;  %v2248_v59 = vpop.f32.mrb[12].mxu0 }
  0xf8   :  { %v8485_v56 = vpop.f32.mrb[13].mxu1  ;;  %v8385_v55 = vpop.f32.mrb[13].mxu0  ;;  %v670_v26 = vadd.f32 %v645_v54, %v465_v62 }
  0xf9   :  { %v10460_v25 = vpop.permute.xlu1 %547  ;;  %v1158_v0 = vpop.permute.xlu0 %1157  ;;  %v1079_v55 = vadd.f32 %v1054_v53, %v874_v39 }
  0xfa   :  { %1797 = vperm.xlu1 %9631, %v10451_v8   ;;  %992 = vperm.xlu0 %9630, %v10268_v52   ;;  %v2539_v37 = vpop.f32.mrb[14].mxu1  ;;  %v2250_v23 = vpop.f32.mrb[14].mxu0 }
  0xfb   :  { %v8486_v12 = vpop.f32.mrb[15].mxu1  ;;  %v8386_v49 = vpop.f32.mrb[15].mxu0  ;;  %v875_v37 = vadd.f32 %v850_v16, %v670_v26  ;;  %v1260_v23 = vmul.f32 %v10221_v28, %v1158_v0  ;;  %v1284_v48 = vadd.f32 %v1259_v11, %v1079_v55 }
  0xfd   :  { %v1358_v58 = vpop.permute.xlu1 %1357  ;;  %v10469_v21 = vpop.permute.xlu0 %552  ;;  %v1080_v57 = vadd.f32 %v1055_v22, %v875_v37 }
  0xfe   :  { %1192 = vperm.xlu1 %9631, %v10268_v52   ;;  %1802 = vperm.xlu0 %9630, %v10467_v24   ;;  %v1464_v17 = vmul.f32 %v10226_v30, %v1358_v58  ;;  %v10517_v58 = vld [vmem:[%s13107_s0 + $0x150] sm:$0xff] }
  0xff   :  { %v2543_v40 = vpop.f32.mrb[16].mxu1  ;;  %v2254_v33 = vpop.f32.mrb[16].mxu0  ;;  %v1285_v50 = vadd.f32 %v1260_v23, %v1080_v57 }
 0x100   :  { %v8489_v59 = vpop.f32.mrb[17].mxu1  ;;  %v8389_v56 = vpop.f32.mrb[17].mxu0  ;;  %v1489_v54 = vadd.f32 %v1464_v17, %v1284_v48 }
 0x101   :  { %v10481_v47 = vpop.permute.xlu1 %752  ;;  %v1363_v1 = vpop.permute.xlu0 %1362 }
 0x102   :  { %1397 = vperm.xlu1 %9631, %v10451_v8   ;;  %1197 = vperm.xlu0 %9630, %v10312_v13   ;;  %v2545_v18 = vpop.f32.mrb[18].mxu1  ;;  %v2257_v34 = vpop.f32.mrb[18].mxu0  ;;  %v1465_v0 = vmul.f32 %v10226_v30, %v1363_v1 }
 0x103   :  { %v8490_v12 = vpop.f32.mrb[19].mxu1  ;;  %v8390_v49 = vpop.f32.mrb[19].mxu0 }
 0x104   :  { %v1490_v1 = vadd.f32 %v1465_v0, %v1285_v50 }
 0x105   :  { %v1563_v63 = vpop.permute.xlu1 %1562  ;;  %v10495_v19 = vpop.permute.xlu0 %757 }
 0x106   :  { %1602 = vperm.xlu1 %9631, %v10467_v24   ;;  %1402 = vperm.xlu0 %9630, %v10467_v24   ;;  %v1669_v32 = vmul.f32 %v10237_v36, %v1563_v63 }
 0x107   :  { %v2549_v11 = vpop.f32.mrb[20].mxu1  ;;  %v2262_v40 = vpop.f32.mrb[20].mxu0 }
 0x108   :  { %v1694_v16 = vadd.f32 %v1669_v32, %v1489_v54  ;;  %v10526_v26 = vadd.f32 %v2549_v11, %v2254_v33  ;;  %v8493_v22 = vpop.f32.mrb[21].mxu1  ;;  %v8393_v59 = vpop.f32.mrb[21].mxu0 }
 0x109   :  { %v10509_v38 = vpop.permute.xlu1 %957  ;;  %v1568_v29 = vpop.permute.xlu0 %1567  ;;  %v441_v22 = vmul.f32 %v10167_v6, %v10440_v46  ;;  %v646_v46 = vmul.f32 %v10194_v15, %v10460_v25  ;;  %v852_v25 = vmul.f32 %v10206_v20, %v10495_v19 }
 0x10a   :  { %1807 = vperm.xlu1 %9631, %v10505_v14   ;;  %1607 = vperm.xlu0 %9630, %v10505_v14   ;;  %v1670_v63 = vmul.f32 %v10237_v36, %v1568_v29  ;;  %v2552_v55 = vpop.f32.mrb[22].mxu1  ;;  %v2265_v17 = vpop.f32.mrb[22].mxu0 }
 0x10b   :  { %v10530_v23 = vadd.f32 %v2552_v55, %v2257_v34  ;;  %v8494_v33 = vpop.f32.mrb[23].mxu1  ;;  %v8394_v32 = vpop.f32.mrb[23].mxu0  ;;  %v442_v55 = vmul.f32 %v10167_v6, %v10454_v45  ;;  %v647_v45 = vmul.f32 %v10194_v15, %v10469_v21 }
 0x10c   :  { %v1695_v29 = vadd.f32 %v1670_v63, %v1490_v1 }
 0x10d   :  { %v1768_v53 = vpop.permute.xlu1 %1767  ;;  %v10520_v62 = vpop.permute.xlu0 %962 }
 0x10e   :  { %v1874_v39 = vmul.f32 %v10248_v43, %v1768_v53  ;;  %177 = vperm.xlu1 %9631, %v10142_v60   ;;  %1812 = vperm.xlu0 %9630, %v10517_v58  }
 0x10f   :  { %v2557_v0 = vpop.f32.mrb[24].mxu1  ;;  %v2270_v50 = vpop.f32.mrb[24].mxu0 }
 0x110   :  { %v1899_v56 = vadd.f32 %v1874_v39, %v1694_v16  ;;  %v10542_v53 = vadd.f32 %v2557_v0, %v2262_v40  ;;  %v8397_v16 = vpop.f32.mrb[25].mxu0 }
 0x111   :  { %v10528_v18 = vpop.permute.xlu1 %147  ;;  %v1773_v37 = vpop.permute.xlu0 %1772 }
 0x112   :  { %v1931_v60 = vadd.f32 %v10263_v51, %v1899_v56  ;;  %v1875_v48 = vmul.f32 %v10248_v43, %v1773_v37  ;;  %382 = vperm.xlu1 %9631, %v10149_v61   ;;  %182 = vperm.xlu0 %9630, %v10149_v61   ;;  %v8497_v61 = vpop.f32.mrb[25].mxu1  ;;  %v2273_v11 = vpop.f32.mrb[26].mxu0 }
 0x113   :  { %v2560_v39 = vpop.f32.mrb[26].mxu1  ;;  %v8398_v37 = vpop.f32.mrb[27].mxu0 }
 0x114   :  { %v1956_v12 = vmax.f32 %v1931_v60, 0.0  ;;  %v1900_v49 = vadd.f32 %v1875_v48, %v1695_v29  ;;  %v10548_v56 = vadd.f32 %v2560_v39, %v2265_v17  ;;  %v8498_v40 = vpop.f32.mrb[27].mxu1  ;;  %v236_v29 = vmul.f32 %v10178_v9, %v10428_v31  ;;  %v9636_v31 = vld [vmem:[%s13108_s3 + $0x20] sm:$0xff]  }
 0x115   :  { %v1163_v57 = vpop.permute.xlu1 %1162  ;;  %v10536_v54 = vpop.permute.xlu0 %352  ;;  %v237_v17 = vmul.f32 %v10178_v9, %v10442_v5  ;;  %v851_v48 = vmul.f32 %v10206_v20, %v10481_v47  ;;  %v1056_v47 = vmul.f32 %v10216_v27, %v10509_v38  ;;  %8576 = vmatpush3.bf16.msra.mxu0 %v9636_v31 }
 0x116   :  { %1981 = vst.msk [vmem:[#allocation2 + $0xb8] sm:$0xff] %vm33_vm0, %v1956_v12  ;;  %v1932_v34 = vadd.f32 %v10263_v51, %v1900_v49  ;;  %587 = vperm.xlu1 %9631, %v10158_v2   ;;  %387 = vperm.xlu0 %9630, %v10158_v2   ;;  %v466_v60 = vadd.f32 %v441_v22, %v236_v29 }
 0x117   :  { %v467_v49 = vadd.f32 %v442_v55, %v237_v17  ;;  %v2565_v21 = vpop.f32.mrb[28].mxu1  ;;  %8577 = vmatprep.subr.bf16.mxu0 %v13117_v3 }
 0x118   :  { %v1957_v63 = vmax.f32 %v1932_v34, 0.0  ;;  %v671_v34 = vadd.f32 %v646_v46, %v466_v60  ;;  %v10575_v0 = vadd.f32 %v2565_v21, %v2270_v50  ;;  %v8501_v61 = vpop.f32.mrb[29].mxu1 }
 0x119   :  { %v10546_v59 = vpop.permute.xlu1 %557  ;;  %v1168_v1 = vpop.permute.xlu0 %1167  ;;  %v672_v16 = vadd.f32 %v647_v45, %v467_v49 }
 0x11a   :  { %1982 = vst.msk [vmem:[#allocation2 + $0xc0] sm:$0xff] %vm33_vm0, %v1957_v63  ;;  %792 = vperm.xlu1 %9631, %v10351_v42   ;;  %592 = vperm.xlu0 %9630, %v10183_v10   ;;  %v1057_v63 = vmul.f32 %v10216_v27, %v10520_v62  ;;  %v2568_v19 = vpop.f32.mrb[30].mxu1  ;;  %v876_v39 = vadd.f32 %v851_v48, %v671_v34 }
 0x11b   :  { %v877_v38 = vadd.f32 %v852_v25, %v672_v16  ;;  %v1262_v50 = vmul.f32 %v10221_v28, %v1168_v1  ;;  %v8502_v40 = vpop.f32.mrb[31].mxu1 }
 0x11c   :  { %v1081_v37 = vadd.f32 %v1056_v47, %v876_v39  ;;  %v648_v40 = vmul.f32 %v10194_v15, %v10546_v59  ;;  %v10635_v15 = vld [vmem:[%s13107_s0 + $0x160] sm:$0xff] }
 0x11d   :  { %v1373_v33 = vpop.permute.xlu1 %1372  ;;  %v1368_v32 = vpop.permute.xlu0 %1367  ;;  %v2024_v12 = vld [vmem:[#allocation2 + $0xb8] sm:$0xff]  ;;  %v1082_v29 = vadd.f32 %v1057_v63, %v877_v38 }
 0x11e   :  { %997 = vperm.xlu1 %9631, %v10364_v41   ;;  %797 = vperm.xlu0 %9630, %v10364_v41   ;;  %v2061_v5 = vpack.c.bf16 %v2024_v12, %v10434_v7  ;;  %v1261_v7 = vmul.f32 %v10221_v28, %v1163_v57  ;;  %v1466_v57 = vmul.f32 %v10226_v30, %v1368_v32 }
 0x11f   :  { %v1467_v46 = vmul.f32 %v10226_v30, %v1373_v33  ;;  %v2572_v32 = vpop.f32.mrb[32].mxu1 }
 0x120   :  { %8520 = vmatmul.mubr.msk.bf16.gmra.mrb[48].mxu1 %vm33_vm0, %v2061_v5  ;;  %v1286_v17 = vadd.f32 %v1261_v7, %v1081_v37  ;;  %v8505_v33 = vpop.f32.mrb[33].mxu1  ;;  %v443_v7 = vmul.f32 %v10167_v6, %v10536_v54 }
 0x121   :  { %v1573_v11 = vpop.permute.xlu1 %1572  ;;  %v763_v22 = vpop.permute.xlu0 %762  ;;  %v10582_v55 = vld [vmem:[#allocation2 + $0xc0] sm:$0xff]  ;;  %8523 = vmatprep.mubr.msk.bf16.mxu1 %vm9790_vm1, %v13117_v3 }
 0x122   :  { %187 = vperm.xlu1 %9631, %v10158_v2   ;;  %1002 = vperm.xlu0 %9630, %v10382_v35   ;;  %v2091_v62 = vpack.c.bf16 %v10582_v55, %v2024_v12  ;;  %v1671_v45 = vmul.f32 %v10237_v36, %v1573_v11  ;;  %v1287_v2 = vadd.f32 %v1262_v50, %v1082_v29  ;;  %v10599_v49 = vpop.f32.mrb[34].mxu1  ;;  %v10618_v50 = vld [vmem:[%s13107_s0 + $0x158] sm:$0xff] }
 0x123   :  { %v1491_v12 = vadd.f32 %v1466_v57, %v1286_v17  ;;  %v8506_v16 = vpop.f32.mrb[35].mxu1 }
 0x124   :  { %8416 = vmatmul.mubr.msk.bf16.gmra.mrb[44].mxu0 %vm33_vm0, %v2091_v62  ;;  %v1492_v31 = vadd.f32 %v1467_v46, %v1287_v2  ;;  %v238_v62 = vmul.f32 %v10178_v9, %v10528_v18  ;;  %v853_v46 = vmul.f32 %v10206_v20, %v763_v22 }
 0x125   :  { %v968_v60 = vpop.permute.xlu1 %967  ;;  %v1578_v1 = vpop.permute.xlu0 %1577  ;;  %8419 = vmatprep.mubr.msk.bf16.mxu0 %vm9790_vm1, %v13117_v3  ;;  %v1696_v25 = vadd.f32 %v1671_v45, %v1491_v12 }
 0x126   :  { %v1672_v48 = vmul.f32 %v10237_v36, %v1578_v1  ;;  %392 = vperm.xlu1 %9631, %v10183_v10   ;;  %192 = vperm.xlu0 %9630, %v10183_v10   ;;  %v468_v29 = vadd.f32 %v443_v7, %v238_v62  ;;  %v1058_v18 = vmul.f32 %v10216_v27, %v968_v60  ;;  %v10692_v62 = vld [vmem:[%s13109_s1] ss:$0 sm:$0xff] }
 0x128   :  { %v1697_v34 = vadd.f32 %v1672_v48, %v1492_v31  ;;  %v673_v9 = vadd.f32 %v648_v40, %v468_v29  ;;  %v2029_v40 = vld [vmem:[#allocation2 + $0xe0] sm:$0xff] }
 0x129   :  { %v1783_v5 = vpop.permute.xlu1 %1782  ;;  %v1778_v21 = vpop.permute.xlu0 %1777 }
 0x12a   :  { %v1877_v47 = vmul.f32 %v10248_v43, %v1783_v5  ;;  %v1876_v61 = vmul.f32 %v10248_v43, %v1778_v21  ;;  %1202 = vperm.xlu1 %9631, %v10382_v35   ;;  %397 = vperm.xlu0 %9630, %v10253_v44   ;;  %v878_v45 = vadd.f32 %v853_v46, %v673_v9 }
 0x12c   :  { %v1902_v10 = vadd.f32 %v1877_v47, %v1697_v34  ;;  %v1901_v63 = vadd.f32 %v1876_v61, %v1696_v25  ;;  %v1083_v22 = vadd.f32 %v1058_v18, %v878_v45 }
 0x12d   :  { %v10605_v19 = vpop.permute.xlu1 %357  ;;  %v10607_v39 = vpop.permute.xlu0 %152 }
 0x12e   :  { %v1934_v11 = vadd.f32 %v10263_v51, %v1902_v10  ;;  %v1933_v38 = vadd.f32 %v10263_v51, %v1901_v63  ;;  %597 = vperm.xlu1 %9631, %v10253_v44   ;;  %1207 = vperm.xlu0 %9630, %v10451_v8  }
 0x130   :  { %v1959_v6 = vmax.f32 %v1934_v11, 0.0  ;;  %v1958_v54 = vmax.f32 %v1933_v38, 0.0  ;;  %v10685_v11 = vld [vmem:[%s13109_s1 + $0x1] ss:$0 sm:$0xff] }
 0x131   :  { %v10624_v37 = vpop.permute.xlu1 %562  ;;  %v1173_v57 = vpop.permute.xlu0 %1172  ;;  %v444_v38 = vmul.f32 %v10685_v11, %v10605_v19 }
 0x132   :  { %1984 = vst.msk [vmem:[#allocation2 + $0xd0] sm:$0xff] %vm33_vm0, %v1959_v6  ;;  %1983 = vst.msk [vmem:[#allocation2 + $0xc8] sm:$0xff] %vm33_vm0, %v1958_v54  ;;  %1407 = vperm.xlu1 %9631, %v10618_v50   ;;  %602 = vperm.xlu0 %9630, %v10268_v52   ;;  %v1263_v20 = vmul.f32 %v10221_v28, %v1173_v57  ;;  %v10701_v6 = vld [vmem:[%s13109_s1 + $0x2] ss:$0 sm:$0xff] }
 0x133   :  { %v649_v19 = vmul.f32 %v10701_v6, %v10624_v37  ;;  %v10718_v37 = vld [vmem:[%s13109_s1 + $0x4] ss:$0 sm:$0xff] }
 0x134   :  { %v1288_v32 = vadd.f32 %v1263_v20, %v1083_v22 }
 0x135   :  { %v768_v59 = vpop.permute.xlu1 %767  ;;  %v1378_v17 = vpop.permute.xlu0 %1377 }
 0x136   :  { %802 = vperm.xlu1 %9631, %v10382_v35   ;;  %1412 = vperm.xlu0 %9630, %v10635_v15   ;;  %v1468_v1 = vmul.f32 %v10226_v30, %v1378_v17  ;;  %v10650_v30 = vld [vmem:[%s13107_s0 + $0x168] sm:$0xff] }
 0x138   :  { %v1493_v28 = vadd.f32 %v1468_v1, %v1288_v32  ;;  %v10732_v1 = vld [vmem:[%s13109_s1 + $0x5] ss:$0 sm:$0xff] }
 0x139   :  { %v973_v2 = vpop.permute.xlu1 %972  ;;  %v1583_v48 = vpop.permute.xlu0 %1582  ;;  %v2026_v27 = vld [vmem:[#allocation2 + $0xc8] sm:$0xff]  ;;  %v2027_v60 = vld [vmem:[#allocation2 + $0xd0] sm:$0xff] }
 0x13a   :  { %v1673_v12 = vmul.f32 %v10237_v36, %v1583_v48  ;;  %1612 = vperm.xlu1 %9631, %v10635_v15   ;;  %v2092_v33 = vpack.c.bf16 %v2027_v60, %v2026_v27  ;;  %v2062_v31 = vpack.c.bf16 %v2026_v27, %v10582_v55  ;;  %807 = vperm.xlu0 %9630, %v10451_v8   ;;  %v10740_v27 = vld [vmem:[%s13109_s1 + $0x6] ss:$0 sm:$0xff] }
 0x13b   :  { %v1059_v45 = vmul.f32 %v10718_v37, %v973_v2 }
 0x13c   :  { %8420 = vmatmul.mubr.msk.bf16.gmra.mrb[48].mxu0 %vm33_vm0, %v2092_v33  ;;  %8524 = vmatmul.mubr.msk.bf16.gmra.mrb[52].mxu1 %vm33_vm0, %v2062_v31  ;;  %v1698_v55 = vadd.f32 %v1673_v12, %v1493_v28  ;;  %v10748_v28 = vld [vmem:[%s13109_s1 + $0x7] ss:$0 sm:$0xff] }
 0x13d   :  { %v10652_v25 = vpop.permute.xlu1 %157  ;;  %v1788_v36 = vpop.permute.xlu0 %1787  ;;  %8423 = vmatprep.mubr.msk.bf16.mxu0 %vm9790_vm1, %v13117_v3  ;;  %8527 = vmatprep.mubr.msk.bf16.mxu1 %vm9790_vm1, %v13117_v3 }
 0x13e   :  { %v1878_v5 = vmul.f32 %v10248_v43, %v1788_v36  ;;  %1007 = vperm.xlu1 %9631, %v10451_v8   ;;  %1617 = vperm.xlu0 %9630, %v10650_v30   ;;  %v10671_v43 = vld [vmem:[%s13107_s0 + $0x170] sm:$0xff] }
 0x140   :  { %v1903_v21 = vadd.f32 %v1878_v5, %v1698_v55  ;;  %v10756_v5 = vld [vmem:[%s13107_s0 + $0x178] sm:$0xff] }
 0x141   :  { %v10661_v34 = vpop.permute.xlu1 %362  ;;  %v10663_v47 = vpop.permute.xlu0 %162 }
 0x142   :  { %v1935_v61 = vadd.f32 %v10263_v51, %v1903_v21  ;;  %1817 = vperm.xlu1 %9631, %v10650_v30   ;;  %1012 = vperm.xlu0 %9630, %v10467_v24  }
 0x144   :  { %v1960_v16 = vmax.f32 %v1935_v61, 0.0 }
 0x145   :  { %v1178_v10 = vpop.permute.xlu1 %1177  ;;  %v10673_v63 = vpop.permute.xlu0 %367 }
 0x146   :  { %1985 = vst.msk [vmem:[#allocation2 + $0xd8] sm:$0xff] %vm33_vm0, %v1960_v16  ;;  %197 = vperm.xlu1 %9631, %v10253_v44   ;;  %1822 = vperm.xlu0 %9630, %v10671_v43   ;;  %v239_v44 = vmul.f32 %v10692_v62, %v10607_v39  ;;  %v10710_v39 = vld [vmem:[%s13109_s1 + $0x3] ss:$0 sm:$0xff]  ;;  %v1264_v2 = vmul.f32 %v10732_v1, %v1178_v10  ;;  %v10766_v10 = vld [vmem:[%s13109_s1 + $0x8] ss:$0 sm:$0xff] }
 0x148   :  { %v469_v46 = vadd.f32 %v444_v38, %v239_v44  ;;  %v10774_v44 = vld [vmem:[%s13107_s0 + $0x180] sm:$0xff] }
 0x149   :  { %v10678_v51 = vpop.permute.xlu1 %572  ;;  %v10680_v7 = vpop.permute.xlu0 %567 }
 0x14a   :  { %1212 = vperm.xlu1 %9631, %v10467_v24   ;;  %402 = vperm.xlu0 %9630, %v10268_v52   ;;  %v854_v52 = vmul.f32 %v10710_v39, %v768_v59  ;;  %v674_v17 = vadd.f32 %v649_v19, %v469_v46 }
 0x14c   :  { %v879_v22 = vadd.f32 %v854_v52, %v674_v17 }
 0x14d   :  { %v10705_v54 = vpop.permute.xlu1 %772  ;;  %v1383_v57 = vpop.permute.xlu0 %1382  ;;  %v2028_v29 = vld [vmem:[#allocation2 + $0xd8] sm:$0xff] }
 0x14e   :  { %607 = vperm.xlu1 %9631, %v10312_v13   ;;  %v2093_v9 = vpack.c.bf16 %v2029_v40, %v2028_v29  ;;  %v2063_v18 = vpack.c.bf16 %v2028_v29, %v2027_v60  ;;  %1217 = vperm.xlu0 %9630, %v10505_v14   ;;  %v2030_v13 = vld [vmem:[#allocation2 + $0xe8] sm:$0xff]  ;;  %v1084_v48 = vadd.f32 %v1059_v45, %v879_v22  ;;  %v10781_v29 = vld [vmem:[%s13110_s2] ss:$0 sm:$0xff] }
 0x14f   :  { %v1469_v60 = vmul.f32 %v10740_v27, %v1383_v57  ;;  %v2064_v32 = vpack.c.bf16 %v2030_v13, %v2029_v40 }
 0x150   :  { %8424 = vmatmul.mubr.msk.bf16.gmra.mrb[52].mxu0 %vm33_vm0, %v2093_v9  ;;  %8528 = vmatmul.mubr.msk.bf16.gmra.mrb[56].mxu1 %vm33_vm0, %v2063_v18  ;;  %v1289_v31 = vadd.f32 %v1264_v2, %v1084_v48  ;;  %v445_v48 = vmul.f32 %v10685_v11, %v10661_v34 }
 0x151   :  { %v1588_v20 = vpop.permute.xlu1 %1587  ;;  %v10723_v59 = vpop.permute.xlu0 %777  ;;  %8427 = vmatprep.mubr.msk.bf16.mxu0 %vm9790_vm1, %v13117_v3  ;;  %8531 = vmatprep.mubr.msk.bf16.mxu1 %vm9790_vm1, %v13117_v3 }
 0x152   :  { %1422 = vperm.xlu1 %9631, %v10671_v43   ;;  %1417 = vperm.xlu0 %9630, %v10650_v30   ;;  %v1674_v36 = vmul.f32 %v10748_v28, %v1588_v20  ;;  %v1494_v55 = vadd.f32 %v1469_v60, %v1289_v31 }
 0x154   :  { %v1699_v16 = vadd.f32 %v1674_v36, %v1494_v55 }
 0x155   :  { %v10743_v12 = vpop.permute.xlu1 %982  ;;  %v978_v33 = vpop.permute.xlu0 %977 }
 0x156   :  { %1622 = vperm.xlu1 %9631, %v10671_v43   ;;  %812 = vperm.xlu0 %9630, %v10467_v24  }
 0x158   :  { %8532 = vmatmul.mubr.msk.bf16.gmra.mrb[60].mxu1 %vm33_vm0, %v2064_v32  ;;  %v650_v32 = vmul.f32 %v10701_v6, %v10680_v7  ;;  %v651_v7 = vmul.f32 %v10701_v6, %v10678_v51 }
 0x159   :  { %v10759_v21 = vpop.permute.xlu1 %167  ;;  %v1793_v61 = vpop.permute.xlu0 %1792  ;;  %8535 = vmatprep.mubr.msk.bf16.mxu1 %vm9790_vm1, %v13117_v3 }
 0x15a   :  { %v1879_v38 = vmul.f32 %v10766_v10, %v1793_v61  ;;  %1017 = vperm.xlu1 %9631, %v10505_v14   ;;  %1627 = vperm.xlu0 %9630, %v10756_v5   ;;  %v1060_v61 = vmul.f32 %v10718_v37, %v978_v33  ;;  %v1061_v33 = vmul.f32 %v10718_v37, %v10743_v12 }
 0x15c   :  { %v1904_v40 = vadd.f32 %v1879_v38, %v1699_v16 }
 0x15d   :  { %v373_v19 = vpop.permute.xlu1 %372  ;;  %v10776_v57 = vpop.permute.xlu0 %172 }
 0x15e   :  { %v1936_v46 = vadd.f32 %v10781_v29, %v1904_v40  ;;  %1832 = vperm.xlu1 %9631, %v10774_v44   ;;  %1827 = vperm.xlu0 %9630, %v10756_v5   ;;  %v447_v12 = vmul.f32 %v10685_v11, %v373_v19 }
 0x160   :  { %v1961_v52 = vmax.f32 %v1936_v46, 0.0  ;;  %v856_v46 = vmul.f32 %v10710_v39, %v10723_v59 }
 0x161   :  { %v1183_v9 = vpop.permute.xlu1 %1182  ;;  %v10786_v18 = vpop.permute.xlu0 %377 }
 0x162   :  { %1986 = vst.msk [vmem:[#allocation2 + $0xf0] sm:$0xff] %vm33_vm0, %v1961_v52  ;;  %407 = vperm.xlu1 %9631, %v10364_v41   ;;  %202 = vperm.xlu0 %9630, %v10351_v42   ;;  %v240_v42 = vmul.f32 %v10692_v62, %v10652_v25  ;;  %v241_v25 = vmul.f32 %v10692_v62, %v10663_v47 }
 0x163   :  { %v1265_v47 = vmul.f32 %v10732_v1, %v1183_v9 }
 0x164   :  { %v470_v34 = vadd.f32 %v445_v48, %v240_v42 }
 0x165   :  { %v578_v17 = vpop.permute.xlu1 %577  ;;  %v1188_v45 = vpop.permute.xlu0 %1187 }
 0x166   :  { %612 = vperm.xlu1 %9631, %v10382_v35   ;;  %1222 = vperm.xlu0 %9630, %v10517_v58   ;;  %v675_v55 = vadd.f32 %v650_v32, %v470_v34 }
 0x169   :  { %v1388_v20 = vpop.permute.xlu1 %1387  ;;  %v10793_v22 = vpop.permute.xlu0 %582  ;;  %v10795_v2 = vld [vmem:[#allocation2 + $0xf0] sm:$0xff] }
 0x16a   :  { %817 = vperm.xlu1 %9631, %v10618_v50   ;;  %v2094_v60 = vpack.c.bf16 %v10795_v2, %v2030_v13  ;;  %1427 = vperm.xlu0 %9630, %v10756_v5   ;;  %v446_v50 = vmul.f32 %v10685_v11, %v10673_v63  ;;  %v855_v13 = vmul.f32 %v10710_v39, %v10705_v54  ;;  %v10823_v63 = vld [vmem:[%s13107_s0 + $0x188] sm:$0xff] }
 0x16b   :  { %v1470_v48 = vmul.f32 %v10740_v27, %v1388_v20 }
 0x16c   :  { %8428 = vmatmul.mubr.msk.bf16.gmra.mrb[56].mxu0 %vm33_vm0, %v2094_v60  ;;  %v471_v38 = vadd.f32 %v446_v50, %v241_v25  ;;  %v880_v40 = vadd.f32 %v855_v13, %v675_v55  ;;  %v1266_v50 = vmul.f32 %v10732_v1, %v1188_v45 }
 0x16d   :  { %v783_v31 = vpop.permute.xlu1 %782  ;;  %v1393_v36 = vpop.permute.xlu0 %1392  ;;  %8431 = vmatprep.mubr.msk.bf16.mxu0 %vm9790_vm1, %v13117_v3 }
 0x16e   :  { %1022 = vperm.xlu1 %9631, %v10635_v15   ;;  %1632 = vperm.xlu0 %9630, %v10774_v44   ;;  %v676_v51 = vadd.f32 %v651_v7, %v471_v38  ;;  %v1085_v52 = vadd.f32 %v1060_v61, %v880_v40  ;;  %v1471_v13 = vmul.f32 %v10740_v27, %v1393_v36 }
 0x170   :  { %v881_v32 = vadd.f32 %v856_v46, %v676_v51  ;;  %v1290_v34 = vadd.f32 %v1265_v47, %v1085_v52  ;;  %v9637_v47 = vld [vmem:[%s13108_s3 + $0x28] sm:$0xff]   ;;  %v857_v51 = vmul.f32 %v10710_v39, %v783_v31  ;;  %v1324_v31 = vld [vmem:[%s13107_s0 + $0x190] sm:$0xff] }
 0x171   :  { %v1593_v16 = vpop.permute.xlu1 %1592  ;;  %v10825_v54 = vpop.permute.xlu0 %787  ;;  %8578 = vmatpush3.bf16.msra.mxu0 %v9637_v47 }
 0x172   :  { %207 = vperm.xlu1 %9631, %v10364_v41   ;;  %1837 = vperm.xlu0 %9630, %v10823_v63   ;;  %v1675_v59 = vmul.f32 %v10748_v28, %v1593_v16  ;;  %v1086_v41 = vadd.f32 %v1061_v33, %v881_v32  ;;  %v1495_v9 = vadd.f32 %v1470_v48, %v1290_v34 }
 0x173   :  { %v242_v16 = vmul.f32 %v10692_v62, %v10759_v21  ;;  %8783 = vmatprep.subr.bf16.mxu0 %v13117_v3 }
 0x174   :  { %v1291_v7 = vadd.f32 %v1266_v50, %v1086_v41  ;;  %v1700_v55 = vadd.f32 %v1675_v59, %v1495_v9  ;;  %v243_v50 = vmul.f32 %v10692_v62, %v10776_v57  ;;  %v10876_v57 = vld [vmem:[%s13107_s0 + $0x198] sm:$0xff] }
 0x175   :  { %v988_v60 = vpop.permute.xlu1 %987  ;;  %v1598_v42 = vpop.permute.xlu0 %1597  ;;  %v472_v19 = vadd.f32 %v447_v12, %v242_v16  ;;  %v858_v12 = vmul.f32 %v10710_v39, %v10825_v54 }
 0x176   :  { %412 = vperm.xlu1 %9631, %v10382_v35   ;;  %212 = vperm.xlu0 %9630, %v10382_v35   ;;  %v1676_v61 = vmul.f32 %v10748_v28, %v1598_v42  ;;  %v652_v35 = vmul.f32 %v10701_v6, %v578_v17  ;;  %v1496_v36 = vadd.f32 %v1471_v13, %v1291_v7 }
 0x177   :  { %v448_v17 = vmul.f32 %v10685_v11, %v10786_v18  ;;  %v1062_v42 = vmul.f32 %v10718_v37, %v988_v60  ;;  %v653_v18 = vmul.f32 %v10701_v6, %v10793_v22 }
 0x178   :  { %v1701_v33 = vadd.f32 %v1676_v61, %v1496_v36  ;;  %v677_v48 = vadd.f32 %v652_v35, %v472_v19 }
 0x179   :  { %v1798_v25 = vpop.permute.xlu1 %1797  ;;  %v993_v20 = vpop.permute.xlu0 %992  ;;  %v473_v13 = vadd.f32 %v448_v17, %v243_v50 }
 0x17a   :  { %v1880_v45 = vmul.f32 %v10766_v10, %v1798_v25  ;;  %1227 = vperm.xlu1 %9631, %v10650_v30   ;;  %417 = vperm.xlu0 %9630, %v10451_v8   ;;  %v882_v41 = vadd.f32 %v857_v51, %v677_v48  ;;  %v1063_v61 = vmul.f32 %v10718_v37, %v993_v20 }
 0x17c   :  { %v1905_v38 = vadd.f32 %v1880_v45, %v1700_v55  ;;  %v1087_v22 = vadd.f32 %v1062_v42, %v882_v41  ;;  %v678_v55 = vadd.f32 %v653_v18, %v473_v13  ;;  %v97_v42 = vld [vmem:[%s13107_s0 + $0x138] sm:$0xff] }
 0x17d   :  { %v1193_v40 = vpop.permute.xlu1 %1192  ;;  %v1803_v46 = vpop.permute.xlu0 %1802 }
 0x17e   :  { %v1937_v52 = vadd.f32 %v10781_v29, %v1905_v38  ;;  %v1881_v21 = vmul.f32 %v10766_v10, %v1803_v46  ;;  %622 = vperm.xlu1 %9631, %v10467_v24   ;;  %617 = vperm.xlu0 %9630, %v10451_v8   ;;  %v1267_v60 = vmul.f32 %v10732_v1, %v1193_v40 }
 0x17f   :  { %v883_v35 = vadd.f32 %v858_v12, %v678_v55 }
 0x180   :  { %v1962_v32 = vmax.f32 %v1937_v52, 0.0  ;;  %v1906_v34 = vadd.f32 %v1881_v21, %v1701_v33 }
 0x181   :  { %v1398_v59 = vpop.permute.xlu1 %1397  ;;  %v1198_v8 = vpop.permute.xlu0 %1197  ;;  %v1088_v19 = vadd.f32 %v1063_v61, %v883_v35 }
 0x182   :  { %1987 = vst.msk [vmem:[#allocation2 + $0xf8] sm:$0xff] %vm33_vm0, %v1962_v32  ;;  %v1938_v9 = vadd.f32 %v10781_v29, %v1906_v34  ;;  %822 = vperm.xlu1 %9631, %v10635_v15   ;;  %1432 = vperm.xlu0 %9630, %v1324_v31   ;;  %v1472_v7 = vmul.f32 %v10740_v27, %v1398_v59  ;;  %v1734_v31 = vld [vmem:[%s13107_s0 + $0x1a0] sm:$0xff] }
 0x183   :  { %v1292_v15 = vadd.f32 %v1267_v60, %v1087_v22  ;;  %v1268_v36 = vmul.f32 %v10732_v1, %v1198_v8 }
 0x184   :  { %v1963_v25 = vmax.f32 %v1938_v9, 0.0 }
 0x185   :  { %v1603_v45 = vpop.permute.xlu1 %1602  ;;  %v1403_v16 = vpop.permute.xlu0 %1402  ;;  %v1497_v38 = vadd.f32 %v1472_v7, %v1292_v15  ;;  %v1293_v21 = vadd.f32 %v1268_v36, %v1088_v19 }
 0x186   :  { %1988 = vst.msk [vmem:[#allocation2 + $0x100] sm:$0xff] %vm33_vm0, %v1963_v25  ;;  %v1677_v54 = vmul.f32 %v10748_v28, %v1603_v45  ;;  %1637 = vperm.xlu1 %9631, %v10876_v57   ;;  %827 = vperm.xlu0 %9630, %v10650_v30   ;;  %v1473_v40 = vmul.f32 %v10740_v27, %v1403_v16 }
 0x188   :  { %v1702_v51 = vadd.f32 %v1677_v54, %v1497_v38  ;;  %v1498_v50 = vadd.f32 %v1473_v40, %v1293_v21 }
 0x189   :  { %v1808_v46 = vpop.permute.xlu1 %1807  ;;  %v1608_v20 = vpop.permute.xlu0 %1607  ;;  %v2032_v47 = vld [vmem:[#allocation2 + $0xf8] sm:$0xff] }
 0x18a   :  { %v1882_v33 = vmul.f32 %v10766_v10, %v1808_v46  ;;  %1032 = vperm.xlu1 %9631, %v10671_v43   ;;  %v2065_v52 = vpack.c.bf16 %v2032_v47, %v10795_v2  ;;  %v1678_v17 = vmul.f32 %v10748_v28, %v1608_v20  ;;  %1027 = vperm.xlu0 %9630, %v10650_v30   ;;  %v2036_v46 = vld [vmem:[#allocation2 + $0x118] sm:$0xff] }
 0x18b   :  { %v2277_v48 = vpop.f32.mrb[28].mxu0 }
 0x18c   :  { %v1907_v32 = vadd.f32 %v1882_v33, %v1702_v51  ;;  %v8401_v34 = vpop.f32.mrb[29].mxu0  ;;  %8536 = vmatmul.mubr.msk.bf16.gmra.mrb[64].mxu1 %vm33_vm0, %v2065_v52  ;;  %v1703_v13 = vadd.f32 %v1678_v17, %v1498_v50  ;;  %v10944_v51 = vld [vmem:[#allocation2 + $0x120] sm:$0xff] }
 0x18d   :  { %v10898_v2 = vpop.permute.xlu1 %177  ;;  %v2279_v18 = vpop.f32.mrb[30].mxu0  ;;  %v2033_v59 = vld [vmem:[#allocation2 + $0x100] sm:$0xff]  ;;  %8539 = vmatprep.mubr.msk.bf16.mxu1 %vm9790_vm1, %v13117_v3 }
 0x18e   :  { %v1939_v30 = vadd.f32 %v10781_v29, %v1907_v32  ;;  %v10904_v8 = vadd.f32 %v10599_v49, %v2279_v18  ;;  %v1813_v41 = vpop.permute.xlu0 %1812  ;;  %217 = vperm.xlu1 %9631, %v97_v42   ;;  %v8402_v60 = vpop.f32.mrb[31].mxu0  ;;  %v2095_v9 = vpack.c.bf16 %v2033_v59, %v2032_v47  ;;  %1842 = vperm.xlu0 %9630, %v1734_v31   ;;  %v1736_v18 = vld [vmem:[%s13107_s0 + $0x1b0] sm:$0xff] }
 0x18f   :  { %v1883_v12 = vmul.f32 %v10766_v10, %v1813_v41 }
 0x190   :  { %v1964_v22 = vmax.f32 %v1939_v30, 0.0  ;;  %8432 = vmatmul.mubr.msk.bf16.gmra.mrb[60].mxu0 %vm33_vm0, %v2095_v9 }
 0x191   :  { %v1908_v25 = vadd.f32 %v1883_v12, %v1703_v13  ;;  %v10908_v7 = vpop.permute.xlu1 %382  ;;  %8435 = vmatprep.mubr.msk.bf16.mxu0 %vm9790_vm1, %v13117_v3 }
 0x192   :  { %1989 = vst.msk [vmem:[#allocation2 + $0x108] sm:$0xff] %vm33_vm0, %v1964_v22  ;;  %v10913_v49 = vpop.permute.xlu0 %182  ;;  %422 = vperm.xlu1 %9631, %v10467_v24   ;;  %222 = vperm.xlu0 %9630, %v10467_v24   ;;  %v449_v41 = vmul.f32 %v10685_v11, %v10908_v7  ;;  %v244_v22 = vmul.f32 %v10692_v62, %v10898_v2 }
 0x193   :  { %v1940_v55 = vadd.f32 %v10781_v29, %v1908_v25  ;;  %v245_v2 = vmul.f32 %v10692_v62, %v10913_v49  ;;  %v1737_v49 = vld [vmem:[%s13107_s0 + $0x1b8] sm:$0xff] }
 0x195   :  { %v1965_v61 = vmax.f32 %v1940_v55, 0.0  ;;  %v10918_v45 = vpop.permute.xlu1 %587 }
 0x196   :  { %v10920_v16 = vpop.permute.xlu0 %387  ;;  %1232 = vperm.xlu1 %9631, %v10671_v43   ;;  %427 = vperm.xlu0 %9630, %v10505_v14   ;;  %v654_v25 = vmul.f32 %v10701_v6, %v10918_v45 }
 0x197   :  { %1990 = vst.msk [vmem:[#allocation2 + $0x110] sm:$0xff] %vm33_vm0, %v1965_v61  ;;  %v474_v61 = vadd.f32 %v449_v41, %v244_v22 }
 0x199   :  { %v793_v15 = vpop.permute.xlu1 %792  ;;  %v2034_v54 = vld [vmem:[#allocation2 + $0x108] sm:$0xff] }
 0x19a   :  { %v10925_v35 = vpop.permute.xlu0 %592  ;;  %627 = vperm.xlu1 %9631, %v10505_v14   ;;  %v2066_v36 = vpack.c.bf16 %v2034_v54, %v2033_v59  ;;  %1237 = vperm.xlu0 %9630, %v10756_v5   ;;  %v859_v7 = vmul.f32 %v10710_v39, %v793_v15 }
 0x19b   :  { %v655_v45 = vmul.f32 %v10701_v6, %v10925_v35 }
 0x19c   :  { %8540 = vmatmul.mubr.msk.bf16.gmra.mrb[68].mxu1 %vm33_vm0, %v2066_v36  ;;  %v679_v36 = vadd.f32 %v654_v25, %v474_v61 }
 0x19d   :  { %v998_v24 = vpop.permute.xlu1 %997  ;;  %8543 = vmatprep.mubr.msk.bf16.mxu1 %vm9790_vm1, %v13117_v3 }
 0x19e   :  { %v10932_v38 = vpop.permute.xlu0 %797  ;;  %1437 = vperm.xlu1 %9631, %v10876_v57   ;;  %v2035_v19 = vld [vmem:[#allocation2 + $0x110] sm:$0xff]  ;;  %632 = vperm.xlu0 %9630, %v10517_v58   ;;  %v2097_v57 = vpack.c.bf16 %v10944_v51, %v2036_v46 }
 0x19f   :  { %v2096_v40 = vpack.c.bf16 %v2035_v19, %v2034_v54  ;;  %v2067_v47 = vpack.c.bf16 %v2036_v46, %v2035_v19  ;;  %v1064_v19 = vmul.f32 %v10718_v37, %v998_v24  ;;  %v884_v46 = vadd.f32 %v859_v7, %v679_v36 }
 0x1a1   :  { %8436 = vmatmul.mubr.msk.bf16.gmra.mrb[64].mxu0 %vm33_vm0, %v2096_v40  ;;  %v10937_v14 = vpop.permute.xlu1 %187  ;;  %v1089_v24 = vadd.f32 %v1064_v19, %v884_v46 }
 0x1a2   :  { %v10939_v20 = vpop.permute.xlu0 %1002  ;;  %832 = vperm.xlu1 %9631, %v10671_v43   ;;  %8439 = vmatprep.mubr.msk.bf16.mxu0 %vm9790_vm1, %v13117_v3  ;;  %v1531_v43 = vld [vmem:[%s13107_s0 + $0x1a8] sm:$0xff] }
 0x1a3   :  { %1442 = vperm.xlu0 %9630, %v1734_v31  }
 0x1a4   :  { %8544 = vmatmul.mubr.msk.bf16.gmra.mrb[72].mxu1 %vm33_vm0, %v2067_v47 }
 0x1a5   :  { %v10947_v58 = vpop.permute.xlu1 %392  ;;  %8547 = vmatprep.mubr.msk.bf16.mxu1 %vm9790_vm1, %v13117_v3 }
 0x1a6   :  { %v10952_v33 = vpop.permute.xlu0 %192  ;;  %1642 = vperm.xlu1 %9631, %v1734_v31  }
 0x1a7   :  { %837 = vperm.xlu0 %9630, %v10756_v5  }
 0x1a9   :  { %v1203_v52 = vpop.permute.xlu1 %1202  ;;  %8440 = vmatmul.mubr.msk.bf16.gmra.mrb[68].mxu0 %vm33_vm0, %v2097_v57 }
 0x1aa   :  { %v10959_v21 = vpop.permute.xlu0 %397  ;;  %1037 = vperm.xlu1 %9631, %v10756_v5   ;;  %8443 = vmatprep.mubr.msk.bf16.mxu0 %vm9790_vm1, %v13117_v3  ;;  %v1269_v15 = vmul.f32 %v10732_v1, %v1203_v52  ;;  %v1065_v52 = vmul.f32 %v10718_v37, %v10939_v20  ;;  %v1738_v20 = vld [vmem:[%s13107_s0 + $0x1c0] sm:$0xff] }
 0x1ab   :  { %1647 = vperm.xlu0 %9630, %v1531_v43   ;;  %v2579_v17 = vpop.f32.mrb[36].mxu1 }
 0x1ac   :  { %v8509_v48 = vpop.f32.mrb[37].mxu1 }
 0x1ad   :  { %v10964_v42 = vpop.permute.xlu1 %597  ;;  %v2582_v32 = vpop.f32.mrb[38].mxu1 }
 0x1ae   :  { %v1208_v34 = vpop.permute.xlu0 %1207  ;;  %1847 = vperm.xlu1 %9631, %v1531_v43   ;;  %v8510_v31 = vpop.f32.mrb[39].mxu1 }
 0x1af   :  { %1042 = vperm.xlu0 %9630, %v10774_v44   ;;  %v2284_v50 = vpop.f32.mrb[32].mxu0  ;;  %v1294_v31 = vadd.f32 %v1269_v15, %v1089_v24  ;;  %v1270_v41 = vmul.f32 %v10732_v1, %v1208_v34 }
 0x1b0   :  { %v10970_v5 = vadd.f32 %v2579_v17, %v2284_v50  ;;  %v8405_v59 = vpop.f32.mrb[33].mxu0 }
 0x1b1   :  { %v1408_v30 = vpop.permute.xlu1 %1407  ;;  %v2287_v60 = vpop.f32.mrb[34].mxu0 }
 0x1b2   :  { %v10974_v9 = vpop.permute.xlu0 %602  ;;  %1242 = vperm.xlu1 %9631, %v10774_v44   ;;  %v10977_v13 = vadd.f32 %v2582_v32, %v2287_v60  ;;  %v8406_v12 = vpop.f32.mrb[35].mxu0  ;;  %v450_v44 = vmul.f32 %v10685_v11, %v10920_v16  ;;  %v1474_v35 = vmul.f32 %v10740_v27, %v1408_v30 }
 0x1b3   :  { %1852 = vperm.xlu0 %9630, %v1736_v18  }
 0x1b4   :  { %v475_v57 = vadd.f32 %v450_v44, %v245_v2  ;;  %v1499_v30 = vadd.f32 %v1474_v35, %v1294_v31 }
 0x1b5   :  { %v10983_v55 = vpop.permute.xlu1 %802 }
 0x1b6   :  { %v1413_v54 = vpop.permute.xlu0 %1412  ;;  %1447 = vperm.xlu1 %9631, %v1531_v43   ;;  %v680_v17 = vadd.f32 %v655_v45, %v475_v57 }
 0x1b7   :  { %1247 = vperm.xlu0 %9630, %v10823_v63   ;;  %v860_v63 = vmul.f32 %v10710_v39, %v10932_v38  ;;  %v1475_v61 = vmul.f32 %v10740_v27, %v1413_v54 }
 0x1b9   :  { %v1613_v40 = vpop.permute.xlu1 %1612  ;;  %v885_v59 = vadd.f32 %v860_v63, %v680_v17 }
 0x1ba   :  { %v10995_v47 = vpop.permute.xlu0 %807  ;;  %1652 = vperm.xlu1 %9631, %v1736_v18   ;;  %v1679_v38 = vmul.f32 %v10748_v28, %v1613_v40 }
 0x1bb   :  { %1452 = vperm.xlu0 %9630, %v1736_v18   ;;  %v2587_v16 = vpop.f32.mrb[40].mxu1  ;;  %v1090_v25 = vadd.f32 %v1065_v52, %v885_v59 }
 0x1bc   :  { %v8513_v43 = vpop.f32.mrb[41].mxu1  ;;  %v1704_v36 = vadd.f32 %v1679_v38, %v1499_v30 }
 0x1bd   :  { %v11005_v48 = vpop.permute.xlu1 %1007  ;;  %v2590_v32 = vpop.f32.mrb[42].mxu1  ;;  %v1295_v40 = vadd.f32 %v1270_v41, %v1090_v25  ;;  %v452_v25 = vmul.f32 %v10685_v11, %v10959_v21 }
 0x1be   :  { %v1618_v50 = vpop.permute.xlu0 %1617  ;;  %1857 = vperm.xlu1 %9631, %v1737_v49   ;;  %v8514_v18 = vpop.f32.mrb[43].mxu1 }
 0x1bf   :  { %1657 = vperm.xlu0 %9630, %v1737_v49   ;;  %v2292_v60 = vpop.f32.mrb[36].mxu0  ;;  %v1680_v46 = vmul.f32 %v10748_v28, %v1618_v50 }
 0x1c0   :  { %v11009_v12 = vadd.f32 %v2587_v16, %v2292_v60  ;;  %v8409_v22 = vpop.f32.mrb[37].mxu0  ;;  %v1500_v16 = vadd.f32 %v1475_v61, %v1295_v40 }
 0x1c1   :  { %v1818_v7 = vpop.permute.xlu1 %1817  ;;  %v2295_v44 = vpop.f32.mrb[38].mxu0 }
 0x1c2   :  { %v1884_v19 = vmul.f32 %v10766_v10, %v1818_v7  ;;  %v11016_v2 = vadd.f32 %v2590_v32, %v2295_v44  ;;  %v1013_v34 = vpop.permute.xlu0 %1012  ;;  %v8410_v45 = vpop.f32.mrb[39].mxu0  ;;  %v1705_v17 = vadd.f32 %v1680_v46, %v1500_v16  ;;  %v451_v7 = vmul.f32 %v10685_v11, %v10947_v58 }
 0x1c3   :  { %1862 = vperm.xlu0 %9630, %v1738_v20   ;;  %v2595_v15 = vpop.f32.mrb[44].mxu1  ;;  %v247_v44 = vmul.f32 %v10692_v62, %v10952_v33  ;;  %v656_v45 = vmul.f32 %v10701_v6, %v10964_v42  ;;  %v862_v58 = vmul.f32 %v10710_v39, %v10995_v47  ;;  %v861_v33 = vmul.f32 %v10710_v39, %v10983_v55 }
 0x1c4   :  { %v1909_v57 = vadd.f32 %v1884_v19, %v1704_v36  ;;  %v8517_v63 = vpop.f32.mrb[45].mxu1  ;;  %v657_v36 = vmul.f32 %v10701_v6, %v10974_v9  ;;  %v246_v19 = vmul.f32 %v10692_v62, %v10937_v14  ;;  %v1067_v16 = vmul.f32 %v10718_v37, %v1013_v34 }
 0x1c5   :  { %v11019_v49 = vpop.permute.xlu1 %197  ;;  %v2597_v54 = vpop.f32.mrb[46].mxu1  ;;  %v477_v46 = vadd.f32 %v452_v25, %v247_v44  ;;  %v1066_v42 = vmul.f32 %v10718_v37, %v11005_v48  ;;  %v9640_v44 = vld [vmem:[%s13108_s3 + $0x38] sm:$0xff]  }
 0x1c6   :  { %v1941_v24 = vadd.f32 %v10781_v29, %v1909_v57  ;;  %v1823_v35 = vpop.permute.xlu0 %1822  ;;  %v8518_v43 = vpop.f32.mrb[47].mxu1  ;;  %v476_v63 = vadd.f32 %v451_v7, %v246_v19 }
 0x1c7   :  { %v1885_v52 = vmul.f32 %v10766_v10, %v1823_v35  ;;  %v2300_v32 = vpop.f32.mrb[40].mxu0  ;;  %v682_v9 = vadd.f32 %v657_v36, %v477_v46 }
 0x1c8   :  { %v1966_v31 = vmax.f32 %v1941_v24, 0.0  ;;  %v8413_v38 = vpop.f32.mrb[41].mxu0  ;;  %v681_v14 = vadd.f32 %v656_v45, %v476_v63 }
 0x1c9   :  { %v1910_v18 = vadd.f32 %v1885_v52, %v1705_v17  ;;  %v1213_v50 = vpop.permute.xlu1 %1212  ;;  %v2302_v59 = vpop.f32.mrb[42].mxu0  ;;  %v887_v47 = vadd.f32 %v862_v58, %v682_v9  ;;  %v9638_v38 = vld [vmem:[%s13108_s3 + $0x30] sm:$0xff]  }
 0x1ca   :  { %1991 = vst.msk [vmem:[#allocation2 + $0x128] sm:$0xff] %vm33_vm0, %v1966_v31  ;;  %v11024_v41 = vpop.permute.xlu0 %402  ;;  %v8414_v60 = vpop.f32.mrb[43].mxu0  ;;  %v886_v34 = vadd.f32 %v861_v33, %v681_v14  ;;  %v1271_v17 = vmul.f32 %v10732_v1, %v1213_v50  ;;  %8680 = vmatpush3.bf16.msra.mxu1 %v9638_v38 }
 0x1cb   :  { %v1942_v30 = vadd.f32 %v10781_v29, %v1910_v18  ;;  %v1092_v32 = vadd.f32 %v1067_v16, %v887_v47  ;;  %8681 = vmatprep.subr.bf16.mxu1 %v13117_v3  ;;  %v453_v16 = vmul.f32 %v10685_v11, %v11024_v41 }
 0x1cc   :  { %v1091_v18 = vadd.f32 %v1066_v42, %v886_v34 }
 0x1cd   :  { %v1967_v22 = vmax.f32 %v1942_v30, 0.0  ;;  %v11027_v20 = vpop.permute.xlu1 %607 }
 0x1ce   :  { %v1218_v61 = vpop.permute.xlu0 %1217  ;;  %8682 = vmatpush3.bf16.msra.mxu1 %v9640_v44  ;;  %v658_v47 = vmul.f32 %v10701_v6, %v11027_v20 }
 0x1cf   :  { %1992 = vst.msk [vmem:[#allocation2 + $0x130] sm:$0xff] %vm33_vm0, %v1967_v22  ;;  %v1296_v22 = vadd.f32 %v1271_v17, %v1091_v18  ;;  %8887 = vmatprep.subr.bf16.mxu1 %v13117_v3 }
 0x1d1   :  { %v1423_v40 = vpop.permute.xlu1 %1422  ;;  %v2038_v21 = vld [vmem:[#allocation2 + $0x128] sm:$0xff] }
 0x1d2   :  { %v1418_v15 = vpop.permute.xlu0 %1417  ;;  %v2068_v57 = vpack.c.bf16 %v2038_v21, %v10944_v51  ;;  %v1272_v51 = vmul.f32 %v10732_v1, %v1218_v61  ;;  %v11056_v55 = vld [vmem:[#allocation2 + $0x128] sm:$0xff]  ;;  %v1477_v31 = vmul.f32 %v10740_v27, %v1423_v40 }
 0x1d3   :  { %v1476_v59 = vmul.f32 %v10740_v27, %v1418_v15 }
 0x1d4   :  { %8548 = vmatmul.mubr.msk.bf16.gmra.mrb[76].mxu1 %vm33_vm0, %v2068_v57  ;;  %v1297_v60 = vadd.f32 %v1272_v51, %v1092_v32 }
 0x1d5   :  { %v1623_v54 = vpop.permute.xlu1 %1622  ;;  %8551 = vmatprep.mubr.msk.bf16.mxu1 %vm9790_vm1, %v13117_v3  ;;  %v1501_v36 = vadd.f32 %v1476_v59, %v1296_v22 }
 0x1d6   :  { %v813_v24 = vpop.permute.xlu0 %812  ;;  %v11054_v35 = vld [vmem:[#allocation2 + $0x130] sm:$0xff]  ;;  %v1681_v25 = vmul.f32 %v10748_v28, %v1623_v54  ;;  %v1502_v7 = vadd.f32 %v1477_v31, %v1297_v60  ;;  %v248_v54 = vmul.f32 %v10692_v62, %v11019_v49 }
 0x1d7   :  { %v11058_v43 = vld [vmem:[#allocation2 + $0x130] sm:$0xff]  ;;  %v11062_v52 = vpack.c.bf16 %v11054_v35, %v2038_v21  ;;  %v863_v31 = vmul.f32 %v10710_v39, %v813_v24 }
 0x1d8   :  { %v1706_v46 = vadd.f32 %v1681_v25, %v1501_v36  ;;  %v478_v32 = vadd.f32 %v453_v16, %v248_v54 }
 0x1d9   :  { %8444 = vmatmul.mubr.msk.bf16.gmra.mrb[72].mxu0 %vm33_vm0, %v11062_v52  ;;  %v1018_v50 = vpop.permute.xlu1 %1017 }
 0x1da   :  { %v1628_v30 = vpop.permute.xlu0 %1627  ;;  %8447 = vmatprep.mubr.msk.bf16.mxu0 %vm9790_vm1, %v13117_v3  ;;  %v683_v41 = vadd.f32 %v658_v47, %v478_v32  ;;  %v1068_v38 = vmul.f32 %v10718_v37, %v1018_v50 }
 0x1db   :  { %v1682_v61 = vmul.f32 %v10748_v28, %v1628_v30 }
 0x1dc   :  { %v888_v60 = vadd.f32 %v863_v31, %v683_v41 }
 0x1dd   :  { %v1833_v19 = vpop.permute.xlu1 %1832  ;;  %v1707_v45 = vadd.f32 %v1682_v61, %v1502_v7 }
 0x1de   :  { %v1887_v40 = vmul.f32 %v10766_v10, %v1833_v19  ;;  %v1828_v21 = vpop.permute.xlu0 %1827  ;;  %v1093_v30 = vadd.f32 %v1068_v38, %v888_v60 }
 0x1df   :  { %v1886_v58 = vmul.f32 %v10766_v10, %v1828_v21 }
 0x1e0   :  { %v1912_v15 = vadd.f32 %v1887_v40, %v1707_v45 }
 0x1e1   :  { %v1911_v57 = vadd.f32 %v1886_v58, %v1706_v46  ;;  %v408_v63 = vpop.permute.xlu1 %407 }
 0x1e2   :  { %v1944_v33 = vadd.f32 %v10781_v29, %v1912_v15  ;;  %v203_v9 = vpop.permute.xlu0 %202 }
 0x1e3   :  { %v1943_v14 = vadd.f32 %v10781_v29, %v1911_v57 }
 0x1e4   :  { %v1969_v42 = vmax.f32 %v1944_v33, 0.0 }
 0x1e5   :  { %v1968_v51 = vmax.f32 %v1943_v14, 0.0  ;;  %v613_v34 = vpop.permute.xlu1 %612 }
 0x1e6   :  { %1994 = vst.msk [vmem:[#allocation2 + $0x140] sm:$0xff] %vm33_vm0, %v1969_v42  ;;  %v1223_v17 = vpop.permute.xlu0 %1222 }
 0x1e7   :  { %1993 = vst.msk [vmem:[#allocation2 + $0x138] sm:$0xff] %vm33_vm0, %v1968_v51  ;;  %v1273_v49 = vmul.f32 %v10732_v1, %v1223_v17 }
 0x1e9   :  { %v818_v18 = vpop.permute.xlu1 %817  ;;  %v1298_v44 = vadd.f32 %v1273_v49, %v1093_v30  ;;  %v454_v30 = vmul.f32 %v10685_v11, %v408_v63  ;;  %v2044_v63 = vld [vmem:[#allocation2 + $0x158] sm:$0xff] }
 0x1ea   :  { %v1428_v59 = vpop.permute.xlu0 %1427 }
 0x1eb   :  { %v1478_v20 = vmul.f32 %v10740_v27, %v1428_v59 }
 0x1ed   :  { %v1023_v22 = vpop.permute.xlu1 %1022  ;;  %v2041_v25 = vld [vmem:[#allocation2 + $0x140] sm:$0xff]  ;;  %v1503_v19 = vadd.f32 %v1478_v20, %v1298_v44  ;;  %v249_v20 = vmul.f32 %v10692_v62, %v203_v9  ;;  %v659_v44 = vmul.f32 %v10701_v6, %v613_v34 }
 0x1ee   :  { %v1633_v61 = vpop.permute.xlu0 %1632  ;;  %v11098_v7 = vld [vmem:[#allocation2 + $0x138] sm:$0xff] }
 0x1ef   :  { %v1683_v24 = vmul.f32 %v10748_v28, %v1633_v61  ;;  %v11102_v36 = vpack.c.bf16 %v2041_v25, %v11098_v7  ;;  %v2069_v50 = vpack.c.bf16 %v11098_v7, %v11054_v35  ;;  %v2043_v61 = vld [vmem:[#allocation2 + $0x150] sm:$0xff] }
 0x1f1   :  { %8448 = vmatmul.mubr.msk.bf16.gmra.mrb[76].mxu0 %vm33_vm0, %v11102_v36  ;;  %8552 = vmatmul.mubr.msk.bf16.gmra.mrb[80].mxu1 %vm33_vm0, %v2069_v50  ;;  %v11109_v45 = vpop.permute.xlu1 %207  ;;  %v1708_v21 = vadd.f32 %v1683_v24, %v1503_v19 }
 0x1f2   :  { %v1838_v40 = vpop.permute.xlu0 %1837  ;;  %8451 = vmatprep.mubr.msk.bf16.mxu0 %vm9790_vm1, %v13117_v3  ;;  %8555 = vmatprep.mubr.msk.bf16.mxu1 %vm9790_vm1, %v13117_v3 }
 0x1f3   :  { %v1888_v46 = vmul.f32 %v10766_v10, %v1838_v40  ;;  %v2601_v58 = vpop.f32.mrb[48].mxu1  ;;  %v479_v40 = vadd.f32 %v454_v30, %v249_v20 }
 0x1f4   :  { %v8521_v35 = vpop.f32.mrb[49].mxu1 }
 0x1f5   :  { %v1913_v15 = vadd.f32 %v1888_v46, %v1708_v21  ;;  %v11116_v57 = vpop.permute.xlu1 %412  ;;  %v2604_v33 = vpop.f32.mrb[50].mxu1  ;;  %v864_v21 = vmul.f32 %v10710_v39, %v818_v18  ;;  %v684_v35 = vadd.f32 %v659_v44, %v479_v40  ;;  %v11157_v18 = vpack.c.bf16 %v2044_v63, %v2043_v61 }
 0x1f6   :  { %v11118_v16 = vpop.permute.xlu0 %212  ;;  %v8522_v14 = vpop.f32.mrb[51].mxu1 }
 0x1f7   :  { %v1945_v42 = vadd.f32 %v10781_v29, %v1913_v15  ;;  %v2306_v54 = vpop.f32.mrb[44].mxu0  ;;  %v1069_v15 = vmul.f32 %v10718_v37, %v1023_v22  ;;  %v889_v6 = vadd.f32 %v864_v21, %v684_v35 }
 0x1f8   :  { %v11121_v47 = vadd.f32 %v2601_v58, %v2306_v54  ;;  %v8417_v51 = vpop.f32.mrb[45].mxu0 }
 0x1f9   :  { %v1970_v17 = vmax.f32 %v1945_v42, 0.0  ;;  %v1228_v32 = vpop.permute.xlu1 %1227  ;;  %v2309_v31 = vpop.f32.mrb[46].mxu0  ;;  %v1094_v37 = vadd.f32 %v1069_v15, %v889_v6 }
 0x1fa   :  { %13121 = vst [vmem:[#allocation4_spill] sm:$0xff] %v11121_v47  ;;  %v11123_v41 = vadd.f32 %v2604_v33, %v2309_v31  ;;  %v11125_v38 = vpop.permute.xlu0 %417  ;;  %v8418_v59 = vpop.f32.mrb[47].mxu0  ;;  %v1274_v39 = vmul.f32 %v10732_v1, %v1228_v32 }
 0x1fb   :  { %1995 = vst.msk [vmem:[#allocation2 + $0x148] sm:$0xff] %vm33_vm0, %v1970_v17 }
 0x1fc   :  { %13122 = vst [vmem:[#allocation5_spill] sm:$0xff] %v11123_v41 }
 0x1fd   :  { %v11128_v60 = vpop.permute.xlu1 %622 }
 0x1fe   :  { %v11130_v49 = vpop.permute.xlu0 %617 }
 0x201   :  { %v11135_v24 = vpop.permute.xlu1 %822 }
 0x202   :  { %v1433_v50 = vpop.permute.xlu0 %1432  ;;  %v2042_v19 = vld [vmem:[#allocation2 + $0x148] sm:$0xff] }
 0x203   :  { %v11138_v46 = vpack.c.bf16 %v2043_v61, %v2042_v19  ;;  %v11140_v58 = vpack.c.bf16 %v2042_v19, %v2041_v25  ;;  %v1479_v9 = vmul.f32 %v10740_v27, %v1433_v50  ;;  %v1299_v25 = vadd.f32 %v1274_v39, %v1094_v37  ;;  %v11184_v37 = vld [vmem:[%s13109_s1 + $0x1] ss:$0 sm:$0xff] }
 0x205   :  { %8452 = vmatmul.mubr.msk.bf16.gmra.mrb[80].mxu0 %vm33_vm0, %v11138_v46  ;;  %8556 = vmatmul.mubr.msk.bf16.gmra.mrb[84].mxu1 %vm33_vm0, %v11140_v58  ;;  %v1638_v11 = vpop.permute.xlu1 %1637  ;;  %v1504_v14 = vadd.f32 %v1479_v9, %v1299_v25 }
 0x206   :  { %v11147_v62 = vpop.permute.xlu0 %827  ;;  %8455 = vmatprep.mubr.msk.bf16.mxu0 %vm9790_vm1, %v13117_v3  ;;  %8559 = vmatprep.mubr.msk.bf16.mxu1 %vm9790_vm1, %v13117_v3  ;;  %v1684_v33 = vmul.f32 %v10748_v28, %v1638_v11 }
 0x208   :  { %v1709_v1 = vadd.f32 %v1684_v33, %v1504_v14  ;;  %v11198_v14 = vld [vmem:[%s13109_s1] ss:$0 sm:$0xff] }
 0x209   :  { %v11155_v34 = vpop.permute.xlu1 %1032 }
 0x20a   :  { %v1028_v22 = vpop.permute.xlu0 %1027 }
 0x20d   :  { %v11160_v42 = vpop.permute.xlu1 %217  ;;  %8560 = vmatmul.mubr.msk.bf16.gmra.mrb[88].mxu1 %vm33_vm0, %v11157_v18 }
 0x20e   :  { %v1843_v54 = vpop.permute.xlu0 %1842  ;;  %8563 = vmatprep.mubr.msk.bf16.mxu1 %vm9790_vm1, %v13117_v3 }
 0x20f   :  { %v1889_v27 = vmul.f32 %v10766_v10, %v1843_v54  ;;  %v2314_v51 = vpop.f32.mrb[48].mxu0  ;;  %v2609_v17 = vpop.f32.mrb[52].mxu1  ;;  %v250_v54 = vmul.f32 %v11198_v14, %v11109_v45 }
 0x210   :  { %v11167_v32 = vadd.f32 %v2609_v17, %v2314_v51  ;;  %v8421_v31 = vpop.f32.mrb[49].mxu0  ;;  %v8525_v59 = vpop.f32.mrb[53].mxu1  ;;  %v11214_v51 = vld [vmem:[%s13109_s1 + $0x3] ss:$0 sm:$0xff] }
 0x211   :  { %v1914_v28 = vadd.f32 %v1889_v27, %v1709_v1  ;;  %v11169_v30 = vpop.permute.xlu1 %422  ;;  %v2317_v20 = vpop.f32.mrb[50].mxu0  ;;  %v11205_v1 = vld [vmem:[%s13109_s1 + $0x2] ss:$0 sm:$0xff]  ;;  %v865_v45 = vmul.f32 %v11214_v51, %v11135_v24 }
 0x212   :  { %13123 = vst [vmem:[#allocation6_spill] sm:$0xff] %v11167_v32  ;;  %v2612_v61 = vpop.f32.mrb[54].mxu1  ;;  %v11171_v44 = vpop.permute.xlu0 %222 }
 0x213   :  { %v1946_v50 = vadd.f32 %v10781_v29, %v1914_v28  ;;  %v11174_v19 = vadd.f32 %v2612_v61, %v2317_v20  ;;  %v8422_v40 = vpop.f32.mrb[51].mxu0  ;;  %v8526_v21 = vpop.f32.mrb[55].mxu1  ;;  %v455_v29 = vmul.f32 %v11184_v37, %v11116_v57  ;;  %v660_v57 = vmul.f32 %v11205_v1, %v11130_v49  ;;  %v11225_v20 = vld [vmem:[%s13109_s1 + $0x4] ss:$0 sm:$0xff] }
 0x214   :  { %v456_v49 = vmul.f32 %v11184_v37, %v11125_v38  ;;  %v1070_v61 = vmul.f32 %v11225_v20, %v1028_v22  ;;  %v251_v21 = vmul.f32 %v11198_v14, %v11118_v16  ;;  %v661_v38 = vmul.f32 %v11205_v1, %v11128_v60  ;;  %v11245_v60 = vld [vmem:[%s13109_s1 + $0x6] ss:$0 sm:$0xff] }
 0x215   :  { %13124 = vst [vmem:[#allocation7_spill] sm:$0xff] %v11174_v19  ;;  %v1971_v10 = vmax.f32 %v1946_v50, 0.0  ;;  %v1233_v35 = vpop.permute.xlu1 %1232  ;;  %v480_v27 = vadd.f32 %v455_v29, %v250_v54 }
 0x216   :  { %v11176_v15 = vpop.permute.xlu0 %427 }
 0x217   :  { %1996 = vst.msk [vmem:[#allocation2 + $0x160] sm:$0xff] %vm33_vm0, %v1971_v10  ;;  %v685_v28 = vadd.f32 %v660_v57, %v480_v27  ;;  %v11237_v57 = vld [vmem:[%s13109_s1 + $0x5] ss:$0 sm:$0xff] }
 0x218   :  { %v1275_v22 = vmul.f32 %v11237_v57, %v1233_v35  ;;  %v1071_v35 = vmul.f32 %v11225_v20, %v11155_v34 }
 0x219   :  { %v11179_v11 = vpop.permute.xlu1 %627  ;;  %v890_v54 = vadd.f32 %v865_v45, %v685_v28 }
 0x21a   :  { %v1238_v6 = vpop.permute.xlu0 %1237 }
 0x21b   :  { %v1095_v48 = vadd.f32 %v1070_v61, %v890_v54  ;;  %v1276_v54 = vmul.f32 %v11237_v57, %v1238_v6 }
 0x21d   :  { %v1438_v39 = vpop.permute.xlu1 %1437 }
 0x21e   :  { %v11188_v9 = vpop.permute.xlu0 %632  ;;  %v11190_v25 = vld [vmem:[#allocation2 + $0x160] sm:$0xff]  ;;  %v1480_v45 = vmul.f32 %v11245_v60, %v1438_v39 }
 0x21f   :  { %v11193_v33 = vpack.c.bf16 %v11190_v25, %v2044_v63 }
 0x221   :  { %8456 = vmatmul.mubr.msk.bf16.gmra.mrb[84].mxu0 %vm33_vm0, %v11193_v33  ;;  %v833_v63 = vpop.permute.xlu1 %832 }
 0x222   :  { %v1443_v17 = vpop.permute.xlu0 %1442  ;;  %8459 = vmatprep.mubr.msk.bf16.mxu0 %vm9790_vm1, %v13117_v3 }
 0x223   :  { %v2322_v31 = vpop.f32.mrb[52].mxu0  ;;  %v2617_v59 = vpop.f32.mrb[56].mxu1 }
 0x224   :  { %v11228_v50 = vadd.f32 %v2617_v59, %v2322_v31  ;;  %v8425_v24 = vpop.f32.mrb[53].mxu0  ;;  %v8529_v40 = vpop.f32.mrb[57].mxu1  ;;  %v481_v59 = vadd.f32 %v456_v49, %v251_v21 }
 0x225   :  { %v1643_v10 = vpop.permute.xlu1 %1642  ;;  %v2325_v29 = vpop.f32.mrb[54].mxu0  ;;  %v866_v24 = vmul.f32 %v11214_v51, %v11147_v62  ;;  %v11253_v62 = vld [vmem:[%s13109_s1 + $0x7] ss:$0 sm:$0xff] }
 0x226   :  { %13125 = vst [vmem:[#allocation8_spill] sm:$0xff] %v11228_v50  ;;  %v2620_v27 = vpop.f32.mrb[58].mxu1  ;;  %v838_v31 = vpop.permute.xlu0 %837  ;;  %v686_v28 = vadd.f32 %v661_v38, %v481_v59  ;;  %v1685_v49 = vmul.f32 %v11253_v62, %v1643_v10  ;;  %v1481_v59 = vmul.f32 %v11245_v60, %v1443_v17  ;;  %v11265_v10 = vld [vmem:[%s13109_s1 + $0x8] ss:$0 sm:$0xff]  ;;  %v252_v17 = vmul.f32 %v11198_v14, %v11160_v42 }
 0x227   :  { %v8426_v16 = vpop.f32.mrb[55].mxu0  ;;  %v8530_v40 = vpop.f32.mrb[59].mxu1  ;;  %v1300_v27 = vadd.f32 %v1275_v22, %v1095_v48  ;;  %v457_v48 = vmul.f32 %v11184_v37, %v11169_v30  ;;  %v458_v42 = vmul.f32 %v11184_v37, %v11176_v15  ;;  %v3123_v50 = vld [vmem:[#allocation2 + $0x108] sm:$0xff] }
 0x228   :  { %v891_v21 = vadd.f32 %v866_v24, %v686_v28 }
 0x229   :  { %v1038_v29 = vpop.permute.xlu1 %1037  ;;  %v1505_v40 = vadd.f32 %v1480_v45, %v1300_v27  ;;  %v662_v27 = vmul.f32 %v11205_v1, %v11179_v11 }
 0x22a   :  { %v1648_v61 = vpop.permute.xlu0 %1647  ;;  %v1096_v38 = vadd.f32 %v1071_v35, %v891_v21 }
 0x22b   :  { %v2624_v16 = vpop.f32.mrb[60].mxu1  ;;  %v1710_v22 = vadd.f32 %v1685_v49, %v1505_v40  ;;  %v1686_v35 = vmul.f32 %v11253_v62, %v1648_v61  ;;  %v867_v40 = vmul.f32 %v11214_v51, %v833_v63  ;;  %v253_v63 = vmul.f32 %v11198_v14, %v11171_v44 }
 0x22c   :  { %v8533_v39 = vpop.f32.mrb[61].mxu1  ;;  %v1301_v28 = vadd.f32 %v1276_v54, %v1096_v38  ;;  %v482_v16 = vadd.f32 %v457_v48, %v252_v17  ;;  %v868_v17 = vmul.f32 %v11214_v51, %v838_v31 }
 0x22d   :  { %v1848_v34 = vpop.permute.xlu1 %1847  ;;  %v11258_v3 = vpop.f32.mrb[62].mxu1  ;;  %v11277_v39 = vld [vmem:[%s13110_s2] ss:$0 sm:$0xff] }
 0x22e   :  { %v1890_v6 = vmul.f32 %v11265_v10, %v1848_v34  ;;  %v1043_v24 = vpop.permute.xlu0 %1042  ;;  %v8534_v45 = vpop.f32.mrb[63].mxu1  ;;  %v1506_v49 = vadd.f32 %v1481_v59, %v1301_v28  ;;  %v687_v34 = vadd.f32 %v662_v27, %v482_v16  ;;  %v1072_v59 = vmul.f32 %v11225_v20, %v1038_v29 }
 0x22f   :  { %v1073_v14 = vmul.f32 %v11225_v20, %v1043_v24 }
 0x230   :  { %v1915_v30 = vadd.f32 %v1890_v6, %v1710_v22  ;;  %v1711_v38 = vadd.f32 %v1686_v35, %v1506_v49  ;;  %v663_v22 = vmul.f32 %v11205_v1, %v11188_v9  ;;  %v892_v28 = vadd.f32 %v867_v40, %v687_v34 }
 0x231   :  { %v1243_v21 = vpop.permute.xlu1 %1242  ;;  %v483_v35 = vadd.f32 %v458_v42, %v253_v63 }
 0x232   :  { %v1947_v54 = vadd.f32 %v11277_v39, %v1915_v30  ;;  %v1853_v61 = vpop.permute.xlu0 %1852  ;;  %v1277_v15 = vmul.f32 %v11237_v57, %v1243_v21  ;;  %v1097_v27 = vadd.f32 %v1072_v59, %v892_v28 }
 0x233   :  { %v1891_v11 = vmul.f32 %v11265_v10, %v1853_v61  ;;  %v688_v44 = vadd.f32 %v663_v22, %v483_v35 }
 0x234   :  { %v1972_v48 = vmax.f32 %v1947_v54, 0.0  ;;  %v1302_v49 = vadd.f32 %v1277_v15, %v1097_v27 }
 0x235   :  { %v1916_v6 = vadd.f32 %v1891_v11, %v1711_v38  ;;  %v1448_v45 = vpop.permute.xlu1 %1447  ;;  %v893_v54 = vadd.f32 %v868_v17, %v688_v44 }
 0x236   :  { %1997 = vst.msk [vmem:[#allocation2 + $0x168] sm:$0xff] %vm33_vm0, %v1972_v48  ;;  %v1248_v37 = vpop.permute.xlu0 %1247  ;;  %v1482_v30 = vmul.f32 %v11245_v60, %v1448_v45  ;;  %v13126_v45 = vmov 0.0  }
 0x237   :  { %v1948_v29 = vadd.f32 %v11277_v39, %v1916_v6  ;;  %v1278_v21 = vmul.f32 %v11237_v57, %v1248_v37  ;;  %v1098_v31 = vadd.f32 %v1073_v14, %v893_v54  ;;  %v3097_v54 = vld [vmem:[#allocation2 + $0x38] sm:$0xff] }
 0x238   :  { %v1507_v51 = vadd.f32 %v1482_v30, %v1302_v49  ;;  %v2699_v49 = vld [vmem:[#allocation2 + $0x10] sm:$0xff] }
 0x239   :  { %v1973_v9 = vmax.f32 %v1948_v29, 0.0  ;;  %v1653_v1 = vpop.permute.xlu1 %1652  ;;  %v1303_v59 = vadd.f32 %v1278_v21, %v1098_v31  ;;  %v3098_v21 = vld [vmem:[#allocation2 + $0x40] sm:$0xff] }
 0x23a   :  { %v1687_v16 = vmul.f32 %v11253_v62, %v1653_v1  ;;  %v1453_v40 = vpop.permute.xlu0 %1452  ;;  %v3146_v31 = vpack.c.bf16 %v3098_v21, %v3097_v54 }
 0x23b   :  { %1998 = vst.msk [vmem:[#allocation2 + $0x170] sm:$0xff] %vm33_vm0, %v1973_v9  ;;  %v1483_v61 = vmul.f32 %v11245_v60, %v1453_v40 }
 0x23c   :  { %v1712_v11 = vadd.f32 %v1687_v16, %v1507_v51  ;;  %v2700_v16 = vld [vmem:[#allocation2 + $0x18] sm:$0xff]  ;;  %v9639_v51 = vld [vmem:[%s13108_s3 + $0x40] sm:$0xff]  }
 0x23d   :  { %v1858_v42 = vpop.permute.xlu1 %1857  ;;  %v2046_v38 = vld [vmem:[#allocation2 + $0x168] sm:$0xff]  ;;  %v1508_v57 = vadd.f32 %v1483_v61, %v1303_v59  ;;  %v2748_v40 = vpack.c.bf16 %v2700_v16, %v2699_v49  ;;  %v2701_v61 = vld [vmem:[#allocation2 + $0x20] sm:$0xff] }
 0x23e   :  { %v1892_v20 = vmul.f32 %v11265_v10, %v1858_v42  ;;  %v1658_v24 = vpop.permute.xlu0 %1657  ;;  %v11300_v34 = vpack.c.bf16 %v2046_v38, %v11190_v25  ;;  %v2702_v42 = vld [vmem:[#allocation2 + $0x28] sm:$0xff] }
 0x23f   :  { %v1688_v48 = vmul.f32 %v11253_v62, %v1658_v24  ;;  %v2329_v63 = vpop.f32.mrb[56].mxu0  ;;  %v2749_v59 = vpack.c.bf16 %v2702_v42, %v2701_v61  ;;  %v3103_v16 = vld [vmem:[#allocation2 + $0x68] sm:$0xff] }
 0x240   :  { %v1917_v22 = vadd.f32 %v1892_v20, %v1712_v11  ;;  %v8429_v6 = vpop.f32.mrb[57].mxu0  ;;  %8564 = vmatmul.mubr.msk.bf16.gmra.mrb[92].mxu1 %vm33_vm0, %v11300_v34  ;;  %v3100_v63 = vld [vmem:[#allocation2 + $0x50] sm:$0xff] }
 0x241   :  { %v2331_v60 = vpop.f32.mrb[58].mxu0  ;;  %8567 = vmatprep.mubr.msk.bf16.mxu1 %vm9790_vm1, %v13126_v45  ;;  %v1713_v62 = vadd.f32 %v1688_v48, %v1508_v57  ;;  %v3099_v48 = vld [vmem:[#allocation2 + $0x48] sm:$0xff] }
 0x242   :  { %v1949_v28 = vadd.f32 %v11277_v39, %v1917_v22  ;;  %v11309_v15 = vadd.f32 %v11258_v3, %v2331_v60  ;;  %v1863_v25 = vpop.permute.xlu0 %1862  ;;  %v8430_v37 = vpop.f32.mrb[59].mxu0  ;;  %v2047_v35 = vld [vmem:[#allocation2 + $0x170] sm:$0xff]  ;;  %v11375_v49 = vpack.c.bf16 %v3099_v48, %v3098_v21 }
 0x243   :  { %v1893_v17 = vmul.f32 %v11265_v10, %v1863_v25  ;;  %v11312_v29 = vpack.c.bf16 %v2047_v35, %v2046_v38  ;;  %v9641_v38 = vld [vmem:[%s13108_s3 + $0x48] sm:$0xff]  }
 0x244   :  { %13127 = vst [vmem:[#allocation9_spill] sm:$0xff] %v11309_v15  ;;  %v1974_v27 = vmax.f32 %v1949_v28, 0.0  ;;  %v11357_v28 = vpack.c.bf16 %v3100_v63, %v3099_v48 }
 0x245   :  { %v1918_v30 = vadd.f32 %v1893_v17, %v1713_v62  ;;  %8460 = vmatmul.mubr.msk.bf16.gmra.mrb[88].mxu0 %vm33_vm0, %v11312_v29  ;;  %v2703_v62 = vld [vmem:[#allocation2 + $0x30] sm:$0xff] }
 0x246   :  { %1999 = vst.msk [vmem:[#allocation2 + $0x178] sm:$0xff] %vm33_vm0, %v1974_v27  ;;  %8463 = vmatprep.mubr.msk.bf16.mxu0 %vm9790_vm1, %v13126_v45  ;;  %v2750_v17 = vpack.c.bf16 %v3097_v54, %v2703_v62  ;;  %v3101_v27 = vld [vmem:[#allocation2 + $0x58] sm:$0xff] }
 0x247   :  { %v1950_v3 = vadd.f32 %v11277_v39, %v1918_v30  ;;  %v3102_v30 = vld [vmem:[#allocation2 + $0x60] sm:$0xff]  ;;  %v11391_v48 = vpack.c.bf16 %v3101_v27, %v3100_v63 }
 0x248   :  { %v11403_v63 = vpack.c.bf16 %v3103_v16, %v3102_v30 }
 0x249   :  { %v1975_v44 = vmax.f32 %v1950_v3, 0.0  ;;  %v11368_v3 = vpack.c.bf16 %v3102_v30, %v3101_v27  ;;  %v3108_v27 = vld [vmem:[#allocation2 + $0x90] sm:$0xff]  ;;  %v3110_v30 = vld [vmem:[#allocation2 + $0xa0] sm:$0xff] }
 0x24b   :  { %2000 = vst.msk [vmem:[#allocation2 + $0x180] sm:$0xff] %vm33_vm0, %v1975_v44 }
 0x24d   :  { %v2048_v14 = vld [vmem:[#allocation2 + $0x178] sm:$0xff] }
 0x24e   :  { %v11321_v9 = vpack.c.bf16 %v2048_v14, %v2047_v35 }
 0x250   :  { %8568 = vmatmul.mubr.msk.bf16.gmra.mrb[96].mxu1 %vm33_vm0, %v11321_v9 }
 0x251   :  { %8571 = vmatprep.mubr.msk.bf16.mxu1 %vm9790_vm1, %v13126_v45 }
 0x252   :  { %v11327_v10 = vld [vmem:[#allocation2 + $0x180] sm:$0xff] }
 0x253   :  { %v11330_v1 = vpack.c.bf16 %v11327_v10, %v2048_v14  ;;  %v2074_v39 = vpack.c.bf16 %v11327_v10, %v11327_v10 }
 0x255   :  { %8464 = vmatmul.mubr.msk.bf16.gmra.mrb[92].mxu0 %vm33_vm0, %v11330_v1 }
 0x256   :  { %8579 = vmatprep.mubr.msk.bf16.mxu0 %vm9790_vm1, %v13126_v45 }
 0x258   :  { %8572 = vmatmul.mubr.msk.bf16.gmra.mrb[100].mxu1 %vm33_vm0, %v2074_v39 }
 0x259   :  { %8683 = vmatprep.mubr.msk.bf16.mxu1 %vm9790_vm1, %v13126_v45 }
 0x25d   :  { %8580 = vmatmul.mubr.msk.bf16.vlgmr.msra.gmra.mrb[96].mxu0 %vm33_vm0, %v2748_v40  ;;  %v3104_v40 = vld [vmem:[#allocation2 + $0x70] sm:$0xff] }
 0x25e   :  { %8784 = vmatpush3.bf16.msra.mxu0 %v9639_v51  ;;  %8583 = vmatprep.mubr.msk.bf16.mxu0 %vm9790_vm1, %v13126_v45 }
 0x25f   :  { %v2631_v11 = vpop.f32.mrb[64].mxu1  ;;  %8785 = vmatprep.subr.bf16.mxu0 %v13126_v45 }
 0x260   :  { %v8537_v20 = vpop.f32.mrb[65].mxu1  ;;  %8684 = vmatmul.mubr.msk.bf16.vlgmr.msra.gmra.mrb[104].mxu1 %vm33_vm0, %v3146_v31  ;;  %v11379_v31 = vpack.c.bf16 %v3104_v40, %v3103_v16  ;;  %v3109_v16 = vld [vmem:[#allocation2 + $0x98] sm:$0xff] }
 0x261   :  { %v2634_v24 = vpop.f32.mrb[66].mxu1  ;;  %8687 = vmatprep.mubr.msk.bf16.mxu1 %vm9790_vm1, %v13126_v45 }
 0x262   :  { %v8538_v22 = vpop.f32.mrb[67].mxu1  ;;  %8786 = vmatpush3.bf16.msra.mxu0 %v9641_v38 }
 0x263   :  { %v2336_v6 = vpop.f32.mrb[60].mxu0  ;;  %8991 = vmatprep.subr.bf16.mxu0 %v13126_v45 }
 0x264   :  { %v11355_v57 = vadd.f32 %v2631_v11, %v2336_v6  ;;  %v8433_v60 = vpop.f32.mrb[61].mxu0  ;;  %v3105_v6 = vld [vmem:[#allocation2 + $0x78] sm:$0xff] }
 0x265   :  { %8584 = vmatmul.mubr.msk.bf16.gmra.mrb[100].mxu0 %vm33_vm0, %v2749_v59  ;;  %v2339_v25 = vpop.f32.mrb[62].mxu0  ;;  %v3106_v60 = vld [vmem:[#allocation2 + $0x80] sm:$0xff] }
 0x266   :  { %13128 = vst [vmem:[#allocation10_spill] sm:$0xff] %v11355_v57  ;;  %v11360_v37 = vadd.f32 %v2634_v24, %v2339_v25  ;;  %v8434_v35 = vpop.f32.mrb[63].mxu0  ;;  %8587 = vmatprep.mubr.msk.bf16.mxu0 %vm9790_vm1, %v13126_v45  ;;  %v11397_v62 = vpack.c.bf16 %v3106_v60, %v3105_v6 }
 0x268   :  { %13129 = vst [vmem:[#allocation11_spill] sm:$0xff] %v11360_v37  ;;  %8688 = vmatmul.mubr.msk.bf16.gmra.mrb[108].mxu1 %vm33_vm0, %v11357_v28 }
 0x269   :  { %8691 = vmatprep.mubr.msk.bf16.mxu1 %vm9790_vm1, %v13126_v45 }
 0x26d   :  { %8588 = vmatmul.mubr.msk.bf16.gmra.mrb[104].mxu0 %vm33_vm0, %v2750_v17 }
 0x26e   :  { %8591 = vmatprep.mubr.msk.bf16.mxu0 %vm9790_vm1, %v13126_v45 }
 0x26f   :  { %v2639_v44 = vpop.f32.mrb[68].mxu1 }
 0x270   :  { %v8541_v14 = vpop.f32.mrb[69].mxu1  ;;  %8692 = vmatmul.mubr.msk.bf16.gmra.mrb[112].mxu1 %vm33_vm0, %v11368_v3 }
 0x271   :  { %v2642_v39 = vpop.f32.mrb[70].mxu1  ;;  %8695 = vmatprep.mubr.msk.bf16.mxu1 %vm9790_vm1, %v13126_v45  ;;  %v3107_v14 = vld [vmem:[#allocation2 + $0x88] sm:$0xff] }
 0x272   :  { %v8542_v54 = vpop.f32.mrb[71].mxu1 }
 0x273   :  { %v11415_v54 = vpack.c.bf16 %v3105_v6, %v3104_v40  ;;  %v11429_v40 = vpack.c.bf16 %v3107_v14, %v3106_v60  ;;  %v9642_v6 = vld [vmem:[%s13108_s3 + $0x50] sm:$0xff]  }
 0x274   :  { %v2344_v51 = vpop.f32.mrb[64].mxu0  ;;  %8888 = vmatpush3.bf16.msra.mxu1 %v9642_v6  ;;  %v3117_v6 = vld [vmem:[#allocation2 + $0xd8] sm:$0xff] }
 0x275   :  { %v11381_v61 = vadd.f32 %v2639_v44, %v2344_v51  ;;  %v8437_v42 = vpop.f32.mrb[65].mxu0  ;;  %8592 = vmatmul.mubr.msk.bf16.gmra.mrb[108].mxu0 %vm33_vm0, %v11375_v49  ;;  %v11421_v51 = vpack.c.bf16 %v3110_v30, %v3109_v16  ;;  %8889 = vmatprep.subr.bf16.mxu1 %v13126_v45 }
 0x276   :  { %v2347_v38 = vpop.f32.mrb[66].mxu0  ;;  %8595 = vmatprep.mubr.msk.bf16.mxu0 %vm9790_vm1, %v13126_v45  ;;  %v3111_v42 = vld [vmem:[#allocation2 + $0xa8] sm:$0xff] }
 0x277   :  { %13130 = vst [vmem:[#allocation12_spill] sm:$0xff] %v11381_v61  ;;  %v11387_v21 = vadd.f32 %v2642_v39, %v2347_v38  ;;  %v8438_v11 = vpop.f32.mrb[67].mxu0  ;;  %v2647_v20 = vpop.f32.mrb[72].mxu1  ;;  %v11409_v39 = vpack.c.bf16 %v3108_v27, %v3107_v14  ;;  %v3112_v38 = vld [vmem:[#allocation2 + $0xb0] sm:$0xff]  ;;  %v11456_v60 = vpack.c.bf16 %v3111_v42, %v3110_v30 }
 0x278   :  { %v8545_v24 = vpop.f32.mrb[73].mxu1  ;;  %8696 = vmatmul.mubr.msk.bf16.gmra.mrb[116].mxu1 %vm33_vm0, %v11379_v31  ;;  %v11431_v11 = vpack.c.bf16 %v3112_v38, %v3111_v42  ;;  %v11441_v20 = vpack.c.bf16 %v3109_v16, %v3108_v27 }
 0x279   :  { %13131 = vst [vmem:[#allocation13_spill] sm:$0xff] %v11387_v21  ;;  %v2649_v59 = vpop.f32.mrb[74].mxu1  ;;  %8699 = vmatprep.mubr.msk.bf16.mxu1 %vm9790_vm1, %v13126_v45  ;;  %v3114_v24 = vld [vmem:[#allocation2 + $0xc0] sm:$0xff] }
 0x27a   :  { %v8546_v22 = vpop.f32.mrb[75].mxu1  ;;  %v3113_v59 = vld [vmem:[#allocation2 + $0xb8] sm:$0xff] }
 0x27b   :  { %v11445_v22 = vpack.c.bf16 %v3114_v24, %v3113_v59  ;;  %v11473_v42 = vpack.c.bf16 %v3113_v59, %v3112_v38  ;;  %v3120_v38 = vld [vmem:[#allocation2 + $0xf0] sm:$0xff] }
 0x27c   :  { %v2352_v25 = vpop.f32.mrb[68].mxu0 }
 0x27d   :  { %8596 = vmatmul.mubr.msk.bf16.gmra.mrb[112].mxu0 %vm33_vm0, %v11391_v48  ;;  %v8441_v35 = vpop.f32.mrb[69].mxu0  ;;  %v3115_v25 = vld [vmem:[#allocation2 + $0xc8] sm:$0xff] }
 0x27e   :  { %8599 = vmatprep.mubr.msk.bf16.mxu0 %vm9790_vm1, %v13126_v45  ;;  %v2354_v17 = vpop.f32.mrb[70].mxu0  ;;  %v3116_v35 = vld [vmem:[#allocation2 + $0xd0] sm:$0xff] }
 0x27f   :  { %v8442_v44 = vpop.f32.mrb[71].mxu0  ;;  %v9644_v17 = vld [vmem:[%s13108_s3 + $0x58] sm:$0xff]  }
 0x280   :  { %8700 = vmatmul.mubr.msk.bf16.gmra.mrb[120].mxu1 %vm33_vm0, %v11397_v62  ;;  %v11464_v44 = vpack.c.bf16 %v3116_v35, %v3115_v25 }
 0x281   :  { %8703 = vmatprep.mubr.msk.bf16.mxu1 %vm9790_vm1, %v13126_v45  ;;  %8890 = vmatpush3.bf16.msra.mxu1 %v9644_v17 }
 0x282   :  { %9095 = vmatprep.subr.bf16.mxu1 %v13126_v45 }
 0x285   :  { %8600 = vmatmul.mubr.msk.bf16.gmra.mrb[116].mxu0 %vm33_vm0, %v11403_v63 }
 0x286   :  { %8603 = vmatprep.mubr.msk.bf16.mxu0 %vm9790_vm1, %v13126_v45 }
 0x288   :  { %8704 = vmatmul.mubr.msk.bf16.gmra.mrb[124].mxu1 %vm33_vm0, %v11409_v39 }
 0x289   :  { %8707 = vmatprep.mubr.msk.bf16.mxu1 %vm9790_vm1, %v13126_v45 }
 0x28d   :  { %8604 = vmatmul.mubr.msk.bf16.gmra.mrb[120].mxu0 %vm33_vm0, %v11415_v54 }
 0x28e   :  { %8607 = vmatprep.mubr.msk.bf16.mxu0 %vm9790_vm1, %v13126_v45 }
 0x290   :  { %8708 = vmatmul.mubr.msk.bf16.gmra.mrb[128].mxu1 %vm33_vm0, %v11421_v51 }
 0x291   :  { %8711 = vmatprep.mubr.msk.bf16.mxu1 %vm9790_vm1, %v13126_v45 }
 0x295   :  { %8608 = vmatmul.mubr.msk.bf16.gmra.mrb[124].mxu0 %vm33_vm0, %v11429_v40 }
 0x296   :  { %8611 = vmatprep.mubr.msk.bf16.mxu0 %vm9790_vm1, %v13126_v45 }
 0x298   :  { %8712 = vmatmul.mubr.msk.bf16.gmra.mrb[132].mxu1 %vm33_vm0, %v11431_v11 }
 0x299   :  { %8715 = vmatprep.mubr.msk.bf16.mxu1 %vm9790_vm1, %v13126_v45 }
 0x29d   :  { %8612 = vmatmul.mubr.msk.bf16.gmra.mrb[128].mxu0 %vm33_vm0, %v11441_v20 }
 0x29e   :  { %8615 = vmatprep.mubr.msk.bf16.mxu0 %vm9790_vm1, %v13126_v45 }
 0x2a0   :  { %8716 = vmatmul.mubr.msk.bf16.gmra.mrb[136].mxu1 %vm33_vm0, %v11445_v22 }
 0x2a1   :  { %8719 = vmatprep.mubr.msk.bf16.mxu1 %vm9790_vm1, %v13126_v45 }
 0x2a5   :  { %8616 = vmatmul.mubr.msk.bf16.gmra.mrb[132].mxu0 %vm33_vm0, %v11456_v60 }
 0x2a6   :  { %8619 = vmatprep.mubr.msk.bf16.mxu0 %vm9790_vm1, %v13126_v45 }
 0x2a7   :  { %v2653_v27 = vpop.f32.mrb[76].mxu1 }
 0x2a8   :  { %v8549_v14 = vpop.f32.mrb[77].mxu1  ;;  %8720 = vmatmul.mubr.msk.bf16.gmra.mrb[140].mxu1 %vm33_vm0, %v11464_v44 }
 0x2a9   :  { %v2656_v30 = vpop.f32.mrb[78].mxu1  ;;  %8723 = vmatprep.mubr.msk.bf16.mxu1 %vm9790_vm1, %v13126_v45  ;;  %v11479_v14 = vpack.c.bf16 %v3118_v4, %v3117_v6 }
 0x2aa   :  { %v8550_v16 = vpop.f32.mrb[79].mxu1 }
 0x2ac   :  { %v2358_v21 = vpop.f32.mrb[72].mxu0 }
 0x2ad   :  { %v11475_v61 = vadd.f32 %v2653_v27, %v2358_v21  ;;  %v8445_v37 = vpop.f32.mrb[73].mxu0  ;;  %8620 = vmatmul.mubr.msk.bf16.gmra.mrb[136].mxu0 %vm33_vm0, %v11473_v42  ;;  %v11489_v21 = vpack.c.bf16 %v3115_v25, %v3114_v24  ;;  %v11501_v27 = vpack.c.bf16 %v3117_v6, %v3116_v35  ;;  %v3122_v24 = vld [vmem:[#allocation2 + $0x100] sm:$0xff]  ;;  %v3121_v25 = vld [vmem:[#allocation2 + $0xf8] sm:$0xff]  ;;  %v3124_v35 = vld [vmem:[#allocation2 + $0x110] sm:$0xff] }
 0x2ae   :  { %v2361_v17 = vpop.f32.mrb[74].mxu0  ;;  %8623 = vmatprep.mubr.msk.bf16.mxu0 %vm9790_vm1, %v13126_v45  ;;  %v3119_v37 = vld [vmem:[#allocation2 + $0xe8] sm:$0xff]  ;;  %v11519_v41 = vpack.c.bf16 %v3124_v35, %v3123_v50 }
 0x2af   :  { %13132 = vst [vmem:[#allocation14_spill] sm:$0xff] %v11475_v61  ;;  %v11483_v57 = vadd.f32 %v2656_v30, %v2361_v17  ;;  %v8446_v16 = vpop.f32.mrb[75].mxu0  ;;  %v11493_v59 = vpack.c.bf16 %v3120_v38, %v3119_v37  ;;  %v11505_v30 = vpack.c.bf16 %v3122_v24, %v3121_v25  ;;  %v11511_v17 = vpack.c.bf16 %v3119_v37, %v3118_v4 }
 0x2b0   :  { %8724 = vmatmul.mubr.msk.bf16.gmra.mrb[144].mxu1 %vm33_vm0, %v11479_v14 }
 0x2b1   :  { %13133 = vst [vmem:[#allocation15_spill] sm:$0xff] %v11483_v57  ;;  %8727 = vmatprep.mubr.msk.bf16.mxu1 %vm9790_vm1, %v13126_v45 }
 0x2b5   :  { %8624 = vmatmul.mubr.msk.bf16.gmra.mrb[140].mxu0 %vm33_vm0, %v11489_v21 }
 0x2b6   :  { %8627 = vmatprep.mubr.msk.bf16.mxu0 %vm9790_vm1, %v13126_v45 }
 0x2b8   :  { %8728 = vmatmul.mubr.msk.bf16.gmra.mrb[148].mxu1 %vm33_vm0, %v11493_v59 }
 0x2b9   :  { %8731 = vmatprep.mubr.msk.bf16.mxu1 %vm9790_vm1, %v13126_v45 }
 0x2bd   :  { %8628 = vmatmul.mubr.msk.bf16.gmra.mrb[144].mxu0 %vm33_vm0, %v11501_v27 }
 0x2be   :  { %8631 = vmatprep.mubr.msk.bf16.mxu0 %vm9790_vm1, %v13126_v45 }
 0x2c0   :  { %8732 = vmatmul.mubr.msk.bf16.gmra.mrb[152].mxu1 %vm33_vm0, %v11505_v30 }
 0x2c1   :  { %8735 = vmatprep.mubr.msk.bf16.mxu1 %vm9790_vm1, %v13126_v45 }
 0x2c4   :  { %v2366_v6 = vpop.f32.mrb[76].mxu0  ;;  %v2661_v16 = vpop.f32.mrb[80].mxu1 }
 0x2c5   :  { %v11515_v57 = vadd.f32 %v2661_v16, %v2366_v6  ;;  %v8449_v61 = vpop.f32.mrb[77].mxu0  ;;  %v8553_v15 = vpop.f32.mrb[81].mxu1  ;;  %8632 = vmatmul.mubr.msk.bf16.gmra.mrb[148].mxu0 %vm33_vm0, %v11511_v17  ;;  %v9782_v6 = vld [vmem:[#allocation2 + $0x120] sm:$0xff] }
 0x2c6   :  { %v2369_v19 = vpop.f32.mrb[78].mxu0  ;;  %v2664_v32 = vpop.f32.mrb[82].mxu1  ;;  %8635 = vmatprep.mubr.msk.bf16.mxu0 %vm9790_vm1, %v13126_v45  ;;  %v11529_v15 = vpack.c.bf16 %v3121_v25, %v3120_v38  ;;  %v11531_v61 = vld [vmem:[#allocation2 + $0x118] sm:$0xff] }
 0x2c7   :  { %v11523_v4 = vadd.f32 %v2664_v32, %v2369_v19  ;;  %v8450_v37 = vpop.f32.mrb[79].mxu0  ;;  %v8554_v47 = vpop.f32.mrb[83].mxu1  ;;  %v3160_v16 = vpack.c.bf16 %v9782_v6, %v11531_v61 }
 0x2c8   :  { %8736 = vmatmul.mubr.msk.bf16.gmra.mrb[156].mxu1 %vm33_vm0, %v11519_v41  ;;  %v11541_v47 = vpack.c.bf16 %v3123_v50, %v3122_v24 }
 0x2c9   :  { %13134 = vst [vmem:[#allocation16_spill] sm:$0xff] %v11523_v4  ;;  %8739 = vmatprep.mubr.msk.bf16.mxu1 %vm9790_vm1, %v13126_v45  ;;  %v11554_v4 = vpack.c.bf16 %v11531_v61, %v3124_v35 }
 0x2cd   :  { %8636 = vmatmul.mubr.msk.bf16.gmra.mrb[152].mxu0 %vm33_vm0, %v11529_v15 }
 0x2ce   :  { %8639 = vmatprep.mubr.msk.bf16.mxu0 %vm9790_vm1, %v13126_v45 }
 0x2d0   :  { %8740 = vmatmul.mubr.msk.bf16.gmra.mrb[160].mxu1 %vm33_vm0, %v3160_v16 }
 0x2d1   :  { %8743 = vmatprep.mubr.msk.bf16.mxu1 %vm9790_vm1, %v13126_v45 }
 0x2d5   :  { %8640 = vmatmul.mubr.msk.bf16.gmra.mrb[156].mxu0 %vm33_vm0, %v11541_v47 }
 0x2d6   :  { %8643 = vmatprep.mubr.msk.bf16.mxu0 %vm9790_vm1, %v13126_v45 }
 0x2d8   :  { %v2374_v32 = vpop.f32.mrb[80].mxu0  ;;  %v2669_v19 = vpop.f32.mrb[84].mxu1  ;;  %8744 = vmatmul.mubr.msk.bf16.gmra.mrb[164].mxu1 %vm33_vm0, %v11062_v52  ;;  %v11562_v52 = vld [vmem:[#allocation2 + $0x120] sm:$0xff] }
 0x2d9   :  { %v11549_v38 = vadd.f32 %v2669_v19, %v2374_v32  ;;  %v8453_v25 = vpop.f32.mrb[81].mxu0  ;;  %v8557_v37 = vpop.f32.mrb[85].mxu1  ;;  %8747 = vmatprep.mubr.msk.bf16.mxu1 %vm9790_vm1, %v13126_v45  ;;  %v11568_v35 = vpack.c.bf16 %v11056_v55, %v11562_v52 }
 0x2da   :  { %v2377_v50 = vpop.f32.mrb[82].mxu0  ;;  %v2672_v24 = vpop.f32.mrb[86].mxu1 }
 0x2db   :  { %v8454_v6 = vpop.f32.mrb[83].mxu0  ;;  %v8558_v16 = vpop.f32.mrb[87].mxu1 }
 0x2dc   :  { %v11637_v16 = vld [vmem:[#allocation2 + $0x1b0] sm:$0xff] }
 0x2dd   :  { %8644 = vmatmul.mubr.msk.bf16.gmra.mrb[160].mxu0 %vm33_vm0, %v11554_v4 }
 0x2de   :  { %8647 = vmatprep.mubr.msk.bf16.mxu0 %vm9790_vm1, %v13126_v45 }
 0x2e0   :  { %8748 = vmatmul.mubr.msk.bf16.gmra.mrb[168].mxu1 %vm33_vm0, %v11102_v36  ;;  %v2676_v32 = vpop.f32.mrb[88].mxu1  ;;  %v2766_v36 = vpack.c.bf16 %v11098_v7, %v11058_v43 }
 0x2e1   :  { %8751 = vmatprep.mubr.msk.bf16.mxu1 %vm9790_vm1, %v13126_v45  ;;  %v8561_v19 = vpop.f32.mrb[89].mxu1 }
 0x2e2   :  { %v2678_v25 = vpop.f32.mrb[90].mxu1 }
 0x2e3   :  { %v8562_v37 = vpop.f32.mrb[91].mxu1 }
 0x2e5   :  { %8648 = vmatmul.mubr.msk.bf16.gmra.mrb[164].mxu0 %vm33_vm0, %v11568_v35 }
 0x2e6   :  { %8651 = vmatprep.mubr.msk.bf16.mxu0 %vm9790_vm1, %v13126_v45 }
 0x2e8   :  { %8752 = vmatmul.mubr.msk.bf16.gmra.mrb[172].mxu1 %vm33_vm0, %v11138_v46 }
 0x2e9   :  { %8755 = vmatprep.mubr.msk.bf16.mxu1 %vm9790_vm1, %v13126_v45 }
 0x2ed   :  { %8652 = vmatmul.mubr.msk.bf16.gmra.mrb[168].mxu0 %vm33_vm0, %v2766_v36 }
 0x2ee   :  { %8655 = vmatprep.mubr.msk.bf16.mxu0 %vm9790_vm1, %v13126_v45 }
 0x2f0   :  { %8756 = vmatmul.mubr.msk.bf16.gmra.mrb[176].mxu1 %vm33_vm0, %v11193_v33  ;;  %v11605_v33 = vld [vmem:[#allocation2 + $0x188] sm:$0xff] }
 0x2f1   :  { %8759 = vmatprep.mubr.msk.bf16.mxu1 %vm9790_vm1, %v13126_v45  ;;  %v2771_v19 = vpack.c.bf16 %v11605_v33, %v11327_v10 }
 0x2f4   :  { %v2381_v50 = vpop.f32.mrb[84].mxu0 }
 0x2f5   :  { %v8457_v24 = vpop.f32.mrb[85].mxu0  ;;  %8656 = vmatmul.mubr.msk.bf16.gmra.mrb[172].mxu0 %vm33_vm0, %v11140_v58  ;;  %v11603_v58 = vld [vmem:[#allocation2 + $0x190] sm:$0xff] }
 0x2f6   :  { %v2383_v46 = vpop.f32.mrb[86].mxu0  ;;  %8659 = vmatprep.mubr.msk.bf16.mxu0 %vm9790_vm1, %v13126_v45  ;;  %v2772_v10 = vpack.c.bf16 %v11603_v58, %v11603_v58 }
 0x2f7   :  { %v8458_v7 = vpop.f32.mrb[87].mxu0  ;;  %v11654_v46 = vld [vmem:[#allocation2 + $0x1b8] sm:$0xff] }
 0x2f8   :  { %8760 = vmatmul.mubr.msk.bf16.gmra.mrb[180].mxu1 %vm33_vm0, %v11312_v29  ;;  %v11609_v29 = vpack.c.bf16 %v11603_v58, %v11605_v33 }
 0x2f9   :  { %8763 = vmatprep.mubr.msk.bf16.mxu1 %vm9790_vm1, %v13126_v45 }
 0x2fd   :  { %8660 = vmatmul.mubr.msk.bf16.gmra.mrb[176].mxu0 %vm33_vm0, %v11157_v18  ;;  %v11619_v18 = vld [vmem:[#allocation2 + $0x198] sm:$0xff] }
 0x2fe   :  { %8663 = vmatprep.mubr.msk.bf16.mxu0 %vm9790_vm1, %v13126_v45 }
 0x300   :  { %8764 = vmatmul.mubr.msk.bf16.gmra.mrb[184].mxu1 %vm33_vm0, %v11330_v1  ;;  %v11621_v1 = vld [vmem:[#allocation2 + $0x1a0] sm:$0xff] }
 0x301   :  { %8767 = vmatprep.mubr.msk.bf16.mxu1 %vm9790_vm1, %v13126_v45  ;;  %v11625_v6 = vpack.c.bf16 %v11621_v1, %v11619_v18 }
 0x305   :  { %8664 = vmatmul.mubr.msk.bf16.gmra.mrb[180].mxu0 %vm33_vm0, %v11300_v34  ;;  %v11635_v34 = vld [vmem:[#allocation2 + $0x1a8] sm:$0xff] }
 0x306   :  { %8667 = vmatprep.mubr.msk.bf16.mxu0 %vm9790_vm1, %v13126_v45 }
 0x308   :  { %8768 = vmatmul.mubr.msk.bf16.gmra.mrb[188].mxu1 %vm33_vm0, %v11609_v29 }
 0x309   :  { %8771 = vmatprep.mubr.msk.bf16.mxu1 %vm9790_vm1, %v13126_v45 }
 0x30d   :  { %8668 = vmatmul.mubr.msk.bf16.gmra.mrb[184].mxu0 %vm33_vm0, %v11321_v9  ;;  %v11643_v9 = vpack.c.bf16 %v11637_v16, %v11635_v34 }
 0x30e   :  { %8671 = vmatprep.mubr.msk.bf16.mxu0 %vm9790_vm1, %v13126_v45 }
 0x310   :  { %8772 = vmatmul.mubr.msk.bf16.gmra.mrb[192].mxu1 %vm33_vm0, %v11625_v6 }
 0x311   :  { %8775 = vmatprep.mubr.msk.bf16.mxu1 %vm9790_vm1, %v13126_v45 }
 0x313   :  { %v2682_v32 = vpop.f32.mrb[92].mxu1 }
 0x314   :  { %v8565_v25 = vpop.f32.mrb[93].mxu1 }
 0x315   :  { %8672 = vmatmul.mubr.msk.bf16.gmra.mrb[188].mxu0 %vm33_vm0, %v2771_v19  ;;  %v2684_v37 = vpop.f32.mrb[94].mxu1  ;;  %v3170_v19 = vpack.c.bf16 %v11654_v46, %v11654_v46  ;;  %v9643_v25 = vld [vmem:[%s13108_s3 + $0x60] sm:$0xff]  }
 0x316   :  { %v8566_v36 = vpop.f32.mrb[95].mxu1  ;;  %8675 = vmatprep.mubr.msk.bf16.mxu0 %vm9790_vm1, %v13126_v45 }
 0x318   :  { %v2387_v50 = vpop.f32.mrb[88].mxu0  ;;  %8776 = vmatmul.mubr.msk.bf16.gmra.mrb[196].mxu1 %vm33_vm0, %v11643_v9 }
 0x319   :  { %v8461_v24 = vpop.f32.mrb[89].mxu0  ;;  %8779 = vmatprep.mubr.msk.bf16.mxu1 %vm9790_vm1, %v13126_v45 }
 0x31a   :  { %v2389_v7 = vpop.f32.mrb[90].mxu0 }
 0x31b   :  { %v8462_v32 = vpop.f32.mrb[91].mxu0 }
 0x31d   :  { %8676 = vmatmul.mubr.msk.bf16.gmra.mrb[192].mxu0 %vm33_vm0, %v2772_v10  ;;  %v9645_v10 = vld [vmem:[%s13108_s3 + $0x68] sm:$0xff]  }
 0x31e   :  { %8787 = vmatprep.mubr.msk.bf16.mxu0 %vm9790_vm1, %v13126_v45 }
 0x320   :  { %8780 = vmatmul.mubr.msk.bf16.gmra.mrb[200].mxu1 %vm33_vm0, %v3170_v19 }
 0x321   :  { %8891 = vmatprep.mubr.msk.bf16.mxu1 %vm9790_vm1, %v13126_v45 }
 0x323   :  { %v2688_v37 = vpop.f32.mrb[96].mxu1 }
 0x324   :  { %v8569_v36 = vpop.f32.mrb[97].mxu1 }
 0x325   :  { %8788 = vmatmul.mubr.msk.bf16.vlgmr.msra.gmra.mrb[196].mxu0 %vm33_vm0, %v11375_v49  ;;  %v2690_v50 = vpop.f32.mrb[98].mxu1 }
 0x326   :  { %8992 = vmatpush3.bf16.msra.mxu0 %v9643_v25  ;;  %v8570_v24 = vpop.f32.mrb[99].mxu1  ;;  %8791 = vmatprep.mubr.msk.bf16.mxu0 %vm9790_vm1, %v13126_v45 }
 0x327   :  { %8993 = vmatprep.subr.bf16.mxu0 %v13126_v45 }
 0x328   :  { %v2393_v7 = vpop.f32.mrb[92].mxu0  ;;  %8892 = vmatmul.mubr.msk.bf16.vlgmr.msra.gmra.mrb[204].mxu1 %vm33_vm0, %v11357_v28 }
 0x329   :  { %v8465_v32 = vpop.f32.mrb[93].mxu0  ;;  %8895 = vmatprep.mubr.msk.bf16.mxu1 %vm9790_vm1, %v13126_v45 }
 0x32a   :  { %v2395_v49 = vpop.f32.mrb[94].mxu0  ;;  %8994 = vmatpush3.bf16.msra.mxu0 %v9645_v10 }
 0x32b   :  { %v8466_v19 = vpop.f32.mrb[95].mxu0  ;;  %v2694_v25 = vpop.f32.mrb[100].mxu1  ;;  %9199 = vmatprep.subr.bf16.mxu0 %v13126_v45 }
 0x32c   :  { %v8573_v37 = vpop.f32.mrb[101].mxu1 }
 0x32d   :  { %8792 = vmatmul.mubr.msk.bf16.gmra.mrb[200].mxu0 %vm33_vm0, %v11391_v48  ;;  %v2696_v36 = vpop.f32.mrb[102].mxu1 }
 0x32e   :  { %v8574_v50 = vpop.f32.mrb[103].mxu1  ;;  %8795 = vmatprep.mubr.msk.bf16.mxu0 %vm9790_vm1, %v13126_v45 }
 0x330   :  { %v2898_v28 = vpop.f32.mrb[96].mxu0  ;;  %8896 = vmatmul.mubr.msk.bf16.gmra.mrb[208].mxu1 %vm33_vm0, %v11368_v3 }
 0x331   :  { %v8581_v24 = vpop.f32.mrb[97].mxu0  ;;  %8899 = vmatprep.mubr.msk.bf16.mxu1 %vm9790_vm1, %v13126_v45 }
 0x332   :  { %v2900_v10 = vpop.f32.mrb[98].mxu0 }
 0x333   :  { %v8582_v7 = vpop.f32.mrb[99].mxu0  ;;  %v3296_v32 = vpop.f32.mrb[104].mxu1 }
 0x334   :  { %v8685_v49 = vpop.f32.mrb[105].mxu1 }
 0x335   :  { %8796 = vmatmul.mubr.msk.bf16.gmra.mrb[204].mxu0 %vm33_vm0, %v11403_v63  ;;  %v3298_v48 = vpop.f32.mrb[106].mxu1 }
 0x336   :  { %8799 = vmatprep.mubr.msk.bf16.mxu0 %vm9790_vm1, %v13126_v45  ;;  %v8686_v19 = vpop.f32.mrb[107].mxu1 }
 0x338   :  { %v2904_v25 = vpop.f32.mrb[100].mxu0  ;;  %8900 = vmatmul.mubr.msk.bf16.gmra.mrb[212].mxu1 %vm33_vm0, %v11379_v31 }
 0x339   :  { %v8585_v3 = vpop.f32.mrb[101].mxu0  ;;  %8903 = vmatprep.mubr.msk.bf16.mxu1 %vm9790_vm1, %v13126_v45 }
 0x33a   :  { %v2906_v37 = vpop.f32.mrb[102].mxu0 }
 0x33b   :  { %v8586_v36 = vpop.f32.mrb[103].mxu0  ;;  %v3302_v50 = vpop.f32.mrb[108].mxu1 }
 0x33c   :  { %v8689_v28 = vpop.f32.mrb[109].mxu1 }
 0x33d   :  { %8800 = vmatmul.mubr.msk.bf16.gmra.mrb[208].mxu0 %vm33_vm0, %v11415_v54  ;;  %v3304_v63 = vpop.f32.mrb[110].mxu1 }
 0x33e   :  { %8803 = vmatprep.mubr.msk.bf16.mxu0 %vm9790_vm1, %v13126_v45  ;;  %v8690_v24 = vpop.f32.mrb[111].mxu1 }
 0x340   :  { %v2910_v10 = vpop.f32.mrb[104].mxu0  ;;  %8904 = vmatmul.mubr.msk.bf16.gmra.mrb[216].mxu1 %vm33_vm0, %v11397_v62 }
 0x341   :  { %v8589_v31 = vpop.f32.mrb[105].mxu0  ;;  %8907 = vmatprep.mubr.msk.bf16.mxu1 %vm9790_vm1, %v13126_v45 }
 0x342   :  { %v2912_v7 = vpop.f32.mrb[106].mxu0 }
 0x343   :  { %v8590_v32 = vpop.f32.mrb[107].mxu0  ;;  %v3308_v49 = vpop.f32.mrb[112].mxu1 }
 0x344   :  { %v8693_v48 = vpop.f32.mrb[113].mxu1 }
 0x345   :  { %8804 = vmatmul.mubr.msk.bf16.gmra.mrb[212].mxu0 %vm33_vm0, %v11429_v40  ;;  %v3310_v54 = vpop.f32.mrb[114].mxu1 }
 0x346   :  { %8807 = vmatprep.mubr.msk.bf16.mxu0 %vm9790_vm1, %v13126_v45  ;;  %v8694_v19 = vpop.f32.mrb[115].mxu1 }
 0x348   :  { %v2916_v25 = vpop.f32.mrb[108].mxu0  ;;  %8908 = vmatmul.mubr.msk.bf16.gmra.mrb[220].mxu1 %vm33_vm0, %v11409_v39 }
 0x349   :  { %v8593_v62 = vpop.f32.mrb[109].mxu0  ;;  %8911 = vmatprep.mubr.msk.bf16.mxu1 %vm9790_vm1, %v13126_v45 }
 0x34a   :  { %v2918_v3 = vpop.f32.mrb[110].mxu0 }
 0x34b   :  { %v8594_v37 = vpop.f32.mrb[111].mxu0  ;;  %v3314_v36 = vpop.f32.mrb[116].mxu1 }
 0x34c   :  { %v8697_v50 = vpop.f32.mrb[117].mxu1 }
 0x34d   :  { %8808 = vmatmul.mubr.msk.bf16.gmra.mrb[216].mxu0 %vm33_vm0, %v11441_v20  ;;  %v3316_v40 = vpop.f32.mrb[118].mxu1 }
 0x34e   :  { %v8698_v28 = vpop.f32.mrb[119].mxu1  ;;  %8811 = vmatprep.mubr.msk.bf16.mxu0 %vm9790_vm1, %v13126_v45 }
 0x350   :  { %v2922_v63 = vpop.f32.mrb[112].mxu0  ;;  %8912 = vmatmul.mubr.msk.bf16.gmra.mrb[224].mxu1 %vm33_vm0, %v11421_v51 }
 0x351   :  { %v3072_v39 = vadd.f32 %v2922_v63, %v10526_v26  ;;  %v8597_v24 = vpop.f32.mrb[113].mxu0  ;;  %8915 = vmatprep.mubr.msk.bf16.mxu1 %vm9790_vm1, %v13126_v45 }
 0x352   :  { %v2925_v10 = vpop.f32.mrb[114].mxu0 }
 0x353   :  { %v3073_v31 = vadd.f32 %v2925_v10, %v10530_v23  ;;  %v8598_v7 = vpop.f32.mrb[115].mxu0  ;;  %v3320_v20 = vpop.f32.mrb[120].mxu1 }
 0x354   :  { %v11722_v32 = vadd.f32 %v3320_v20, %v3072_v39  ;;  %v8701_v49 = vpop.f32.mrb[121].mxu1  ;;  %v9646_v20 = vld [vmem:[%s13108_s3 + $0x70] sm:$0xff]  }
 0x355   :  { %8812 = vmatmul.mubr.msk.bf16.gmra.mrb[220].mxu0 %vm33_vm0, %v11456_v60  ;;  %v3323_v48 = vpop.f32.mrb[122].mxu1  ;;  %9096 = vmatpush3.bf16.msra.mxu1 %v9646_v20 }
 0x356   :  { %v11726_v54 = vadd.f32 %v3323_v48, %v3073_v31  ;;  %v8702_v51 = vpop.f32.mrb[123].mxu1  ;;  %8815 = vmatprep.mubr.msk.bf16.mxu0 %vm9790_vm1, %v13126_v45  ;;  %9097 = vmatprep.subr.bf16.mxu1 %v13126_v45 }
 0x358   :  { %v2930_v26 = vpop.f32.mrb[116].mxu0  ;;  %8916 = vmatmul.mubr.msk.bf16.gmra.mrb[228].mxu1 %vm33_vm0, %v11431_v11 }
 0x359   :  { %v3074_v23 = vadd.f32 %v2930_v26, %v10542_v53  ;;  %v8601_v19 = vpop.f32.mrb[117].mxu0  ;;  %8919 = vmatprep.mubr.msk.bf16.mxu1 %vm9790_vm1, %v13126_v45 }
 0x35a   :  { %v2933_v25 = vpop.f32.mrb[118].mxu0 }
 0x35b   :  { %v3075_v60 = vadd.f32 %v2933_v25, %v10548_v56  ;;  %v8602_v62 = vpop.f32.mrb[119].mxu0  ;;  %v3328_v3 = vpop.f32.mrb[124].mxu1 }
 0x35c   :  { %v11736_v37 = vadd.f32 %v3328_v3, %v3074_v23  ;;  %v8705_v36 = vpop.f32.mrb[125].mxu1  ;;  %v9648_v23 = vld [vmem:[%s13108_s3 + $0x78] sm:$0xff]  }
 0x35d   :  { %8816 = vmatmul.mubr.msk.bf16.gmra.mrb[224].mxu0 %vm33_vm0, %v11473_v42  ;;  %v3331_v50 = vpop.f32.mrb[126].mxu1  ;;  %9098 = vmatpush3.bf16.msra.mxu1 %v9648_v23 }
 0x35e   :  { %v11740_v40 = vadd.f32 %v3331_v50, %v3075_v60  ;;  %v8706_v11 = vpop.f32.mrb[127].mxu1  ;;  %8819 = vmatprep.mubr.msk.bf16.mxu0 %vm9790_vm1, %v13126_v45  ;;  %9303 = vmatprep.subr.bf16.mxu1 %v13126_v45 }
 0x360   :  { %v2938_v53 = vpop.f32.mrb[120].mxu0  ;;  %8920 = vmatmul.mubr.msk.bf16.gmra.mrb[232].mxu1 %vm33_vm0, %v11445_v22 }
 0x361   :  { %v3076_v56 = vadd.f32 %v2938_v53, %v10575_v0  ;;  %v8605_v28 = vpop.f32.mrb[121].mxu0  ;;  %8923 = vmatprep.mubr.msk.bf16.mxu1 %vm9790_vm1, %v13126_v45 }
 0x362   :  { %v2941_v63 = vpop.f32.mrb[122].mxu0 }
 0x363   :  { %v8606_v39 = vpop.f32.mrb[123].mxu0  ;;  %v3336_v42 = vpop.f32.mrb[128].mxu1 }
 0x364   :  { %v11749_v24 = vadd.f32 %v3336_v42, %v3076_v56  ;;  %v8709_v10 = vpop.f32.mrb[129].mxu1 }
 0x365   :  { %8820 = vmatmul.mubr.msk.bf16.gmra.mrb[228].mxu0 %vm33_vm0, %v11489_v21  ;;  %v3339_v31 = vpop.f32.mrb[130].mxu1 }
 0x366   :  { %v8710_v7 = vpop.f32.mrb[131].mxu1  ;;  %8823 = vmatprep.mubr.msk.bf16.mxu0 %vm9790_vm1, %v13126_v45 }
 0x368   :  { %v2945_v22 = vpop.f32.mrb[124].mxu0  ;;  %8924 = vmatmul.mubr.msk.bf16.gmra.mrb[236].mxu1 %vm33_vm0, %v11464_v44 }
 0x369   :  { %v8609_v0 = vpop.f32.mrb[125].mxu0  ;;  %8927 = vmatprep.mubr.msk.bf16.mxu1 %vm9790_vm1, %v13126_v45 }
 0x36a   :  { %v2947_v49 = vpop.f32.mrb[126].mxu0 }
 0x36b   :  { %v3077_v21 = vadd.f32 %v2947_v49, %v10904_v8  ;;  %v8610_v48 = vpop.f32.mrb[127].mxu0  ;;  %v3343_v51 = vpop.f32.mrb[132].mxu1 }
 0x36c   :  { %v8713_v26 = vpop.f32.mrb[133].mxu1 }
 0x36d   :  { %8824 = vmatmul.mubr.msk.bf16.gmra.mrb[232].mxu0 %vm33_vm0, %v11501_v27  ;;  %v3345_v44 = vpop.f32.mrb[134].mxu1 }
 0x36e   :  { %v11769_v19 = vadd.f32 %v3345_v44, %v3077_v21  ;;  %v8714_v25 = vpop.f32.mrb[135].mxu1  ;;  %8827 = vmatprep.mubr.msk.bf16.mxu0 %vm9790_vm1, %v13126_v45 }
 0x370   :  { %v2952_v8 = vpop.f32.mrb[128].mxu0  ;;  %8928 = vmatmul.mubr.msk.bf16.gmra.mrb[240].mxu1 %vm33_vm0, %v11479_v14 }
 0x371   :  { %v3078_v27 = vadd.f32 %v2952_v8, %v10970_v5  ;;  %v8613_v60 = vpop.f32.mrb[129].mxu0  ;;  %8931 = vmatprep.mubr.msk.bf16.mxu1 %vm9790_vm1, %v13126_v45  ;;  %v13136_v8 = vld [vmem:[#allocation5_spill] sm:$0xff] }
 0x372   :  { %v2955_v62 = vpop.f32.mrb[130].mxu0 }
 0x373   :  { %v3079_v3 = vadd.f32 %v2955_v62, %v10977_v13  ;;  %v8614_v36 = vpop.f32.mrb[131].mxu0  ;;  %v3350_v50 = vpop.f32.mrb[136].mxu1 }
 0x374   :  { %v11780_v11 = vadd.f32 %v3350_v50, %v3078_v27  ;;  %v8717_v53 = vpop.f32.mrb[137].mxu1  ;;  %v3955_v36 = vpack.c.bf16 %v11562_v52, %v11531_v61  ;;  %v13138_v52 = vld [vmem:[#allocation7_spill] sm:$0xff] }
 0x375   :  { %8828 = vmatmul.mubr.msk.bf16.gmra.mrb[236].mxu0 %vm33_vm0, %v11511_v17  ;;  %v3353_v14 = vpop.f32.mrb[138].mxu1 }
 0x376   :  { %v11784_v56 = vadd.f32 %v3353_v14, %v3079_v3  ;;  %v8718_v28 = vpop.f32.mrb[139].mxu1  ;;  %8831 = vmatprep.mubr.msk.bf16.mxu0 %vm9790_vm1, %v13126_v45 }
 0x377   :  { %v13137_v28 = vld [vmem:[#allocation6_spill] sm:$0xff] }
 0x378   :  { %v2960_v5 = vpop.f32.mrb[132].mxu0  ;;  %8932 = vmatmul.mubr.msk.bf16.gmra.mrb[244].mxu1 %vm33_vm0, %v11493_v59 }
 0x379   :  { %v3080_v13 = vadd.f32 %v2960_v5, %v11009_v12  ;;  %v8617_v63 = vpop.f32.mrb[133].mxu0  ;;  %8935 = vmatprep.mubr.msk.bf16.mxu1 %vm9790_vm1, %v13126_v45 }
 0x37a   :  { %v2963_v39 = vpop.f32.mrb[134].mxu0 }
 0x37b   :  { %v3081_v17 = vadd.f32 %v2963_v39, %v11016_v2  ;;  %v8618_v42 = vpop.f32.mrb[135].mxu0  ;;  %v3358_v10 = vpop.f32.mrb[140].mxu1 }
 0x37c   :  { %v11794_v31 = vadd.f32 %v3358_v10, %v3080_v13  ;;  %v8721_v7 = vpop.f32.mrb[141].mxu1 }
 0x37d   :  { %8832 = vmatmul.mubr.msk.bf16.gmra.mrb[240].mxu0 %vm33_vm0, %v11529_v15  ;;  %v3361_v22 = vpop.f32.mrb[142].mxu1 }
 0x37e   :  { %v11798_v0 = vadd.f32 %v3361_v22, %v3081_v17  ;;  %v8722_v59 = vpop.f32.mrb[143].mxu1  ;;  %8835 = vmatprep.mubr.msk.bf16.mxu0 %vm9790_vm1, %v13126_v45 }
 0x380   :  { %v2968_v12 = vpop.f32.mrb[136].mxu0  ;;  %8936 = vmatmul.mubr.msk.bf16.gmra.mrb[248].mxu1 %vm33_vm0, %v11505_v30  ;;  %v13135_v30 = vld [vmem:[#allocation4_spill] sm:$0xff] }
 0x381   :  { %v8621_v2 = vpop.f32.mrb[137].mxu0  ;;  %8939 = vmatprep.mubr.msk.bf16.mxu1 %vm9790_vm1, %v13126_v45  ;;  %v13139_v12 = vpack.c.bf16 %v11058_v43, %v11056_v55 }
 0x382   :  { %v2970_v20 = vpop.f32.mrb[138].mxu0  ;;  %v11843_v2 = vld [vmem:[#allocation2 + $0x138] sm:$0xff] }
 0x383   :  { %v8622_v49 = vpop.f32.mrb[139].mxu0  ;;  %v3366_v21 = vpop.f32.mrb[144].mxu1  ;;  %v13140_v20 = vld [vmem:[#allocation8_spill] sm:$0xff] }
 0x384   :  { %v8725_v48 = vpop.f32.mrb[145].mxu1 }
 0x385   :  { %8836 = vmatmul.mubr.msk.bf16.gmra.mrb[244].mxu0 %vm33_vm0, %v11541_v47  ;;  %v3368_v15 = vpop.f32.mrb[146].mxu1 }
 0x386   :  { %v8726_v51 = vpop.f32.mrb[147].mxu1  ;;  %8839 = vmatprep.mubr.msk.bf16.mxu0 %vm9790_vm1, %v13126_v45 }
 0x387   :  { %v9783_v51 = vld [vmem:[#allocation2 + $0x130] sm:$0xff] }
 0x388   :  { %v2974_v26 = vpop.f32.mrb[140].mxu0  ;;  %8940 = vmatmul.mubr.msk.bf16.gmra.mrb[252].mxu1 %vm33_vm0, %v11519_v41 }
 0x389   :  { %v3082_v44 = vadd.f32 %v2974_v26, %v13135_v30  ;;  %v8625_v23 = vpop.f32.mrb[141].mxu0  ;;  %8943 = vmatprep.mubr.msk.bf16.mxu1 %vm9790_vm1, %v13126_v45  ;;  %v3559_v26 = vpack.c.bf16 %v11843_v2, %v9783_v51  ;;  %v3924_v30 = vld [vmem:[#allocation2 + $0x140] sm:$0xff] }
 0x38a   :  { %v2977_v25 = vpop.f32.mrb[142].mxu0 }
 0x38b   :  { %v3083_v27 = vadd.f32 %v2977_v25, %v13136_v8  ;;  %v8626_v60 = vpop.f32.mrb[143].mxu0  ;;  %v3372_v47 = vpop.f32.mrb[148].mxu1  ;;  %v11853_v25 = vpack.c.bf16 %v3924_v30, %v11843_v2 }
 0x38c   :  { %v11816_v62 = vadd.f32 %v3372_v47, %v3082_v44  ;;  %v8729_v3 = vpop.f32.mrb[149].mxu1 }
 0x38d   :  { %8840 = vmatmul.mubr.msk.bf16.gmra.mrb[248].mxu0 %vm33_vm0, %v11554_v4  ;;  %v3375_v41 = vpop.f32.mrb[150].mxu1  ;;  %v13141_v3 = vld [vmem:[#allocation9_spill] sm:$0xff] }
 0x38e   :  { %v11822_v50 = vadd.f32 %v3375_v41, %v3083_v27  ;;  %v8730_v53 = vpop.f32.mrb[151].mxu1  ;;  %8843 = vmatprep.mubr.msk.bf16.mxu0 %vm9790_vm1, %v13126_v45  ;;  %v3528_v27 = vld [vmem:[#allocation2 + $0x148] sm:$0xff] }
 0x390   :  { %v2982_v14 = vpop.f32.mrb[144].mxu0  ;;  %8944 = vmatmul.mubr.msk.bf16.gmra.mrb[0].mxu1 %vm33_vm0, %v3955_v36 }
 0x391   :  { %v3084_v5 = vadd.f32 %v2982_v14, %v13137_v28  ;;  %v8629_v13 = vpop.f32.mrb[145].mxu0  ;;  %8947 = vmatprep.mubr.msk.bf16.mxu1 %vm9790_vm1, %v13126_v45  ;;  %v11862_v14 = vpack.c.bf16 %v3528_v27, %v3924_v30  ;;  %v3926_v28 = vld [vmem:[#allocation2 + $0x150] sm:$0xff] }
 0x392   :  { %v2985_v61 = vpop.f32.mrb[146].mxu0 }
 0x393   :  { %v3085_v63 = vadd.f32 %v2985_v61, %v13138_v52  ;;  %v8630_v4 = vpop.f32.mrb[147].mxu0  ;;  %v3380_v39 = vpop.f32.mrb[152].mxu1  ;;  %v11868_v52 = vpack.c.bf16 %v3926_v28, %v3528_v27  ;;  %v13144_v27 = vld [vmem:[#allocation12_spill] sm:$0xff] }
 0x394   :  { %v11831_v17 = vadd.f32 %v3380_v39, %v3084_v5  ;;  %v8733_v42 = vpop.f32.mrb[153].mxu1  ;;  %v3530_v39 = vld [vmem:[#allocation2 + $0x158] sm:$0xff] }
 0x395   :  { %8844 = vmatmul.mubr.msk.bf16.gmra.mrb[252].mxu0 %vm33_vm0, %v11568_v35  ;;  %v3383_v10 = vpop.f32.mrb[154].mxu1  ;;  %v13142_v42 = vld [vmem:[#allocation10_spill] sm:$0xff] }
 0x396   :  { %v11835_v7 = vadd.f32 %v3383_v10, %v3085_v63  ;;  %v8734_v22 = vpop.f32.mrb[155].mxu1  ;;  %8847 = vmatprep.mubr.msk.bf16.mxu0 %vm9790_vm1, %v13126_v45 }
 0x398   :  { %v2990_v59 = vpop.f32.mrb[148].mxu0  ;;  %8948 = vmatmul.mubr.msk.bf16.gmra.mrb[4].mxu1 %vm33_vm0, %v13139_v12 }
 0x399   :  { %v3086_v49 = vadd.f32 %v2990_v59, %v13140_v20  ;;  %v8633_v21 = vpop.f32.mrb[149].mxu0  ;;  %8951 = vmatprep.mubr.msk.bf16.mxu1 %vm9790_vm1, %v13126_v45  ;;  %v11875_v59 = vpack.c.bf16 %v3530_v39, %v3926_v28  ;;  %v13143_v20 = vld [vmem:[#allocation11_spill] sm:$0xff] }
 0x39a   :  { %v2993_v35 = vpop.f32.mrb[150].mxu0 }
 0x39b   :  { %v8634_v48 = vpop.f32.mrb[151].mxu0  ;;  %v3388_v15 = vpop.f32.mrb[156].mxu1 }
 0x39c   :  { %v11849_v44 = vadd.f32 %v3388_v15, %v3086_v49  ;;  %v8737_v55 = vpop.f32.mrb[157].mxu1  ;;  %v3928_v48 = vld [vmem:[#allocation2 + $0x160] sm:$0xff] }
 0x39d   :  { %8848 = vmatmul.mubr.msk.bf16.gmra.mrb[0].mxu0 %vm33_vm0, %v3559_v26  ;;  %v3391_v43 = vpop.f32.mrb[158].mxu1 }
 0x39e   :  { %v8738_v23 = vpop.f32.mrb[159].mxu1  ;;  %8851 = vmatprep.mubr.msk.bf16.mxu0 %vm9790_vm1, %v13126_v45  ;;  %v11886_v43 = vpack.c.bf16 %v3928_v48, %v3530_v39 }
 0x3a0   :  { %v2997_v8 = vpop.f32.mrb[152].mxu0  ;;  %8952 = vmatmul.mubr.msk.bf16.gmra.mrb[8].mxu1 %vm33_vm0, %v11853_v25 }
 0x3a1   :  { %v8637_v60 = vpop.f32.mrb[153].mxu0  ;;  %8955 = vmatprep.mubr.msk.bf16.mxu1 %vm9790_vm1, %v13126_v45  ;;  %v3532_v8 = vld [vmem:[#allocation2 + $0x168] sm:$0xff] }
 0x3a2   :  { %v2999_v47 = vpop.f32.mrb[154].mxu0 }
 0x3a3   :  { %v3087_v36 = vadd.f32 %v2999_v47, %v13141_v3  ;;  %v8638_v41 = vpop.f32.mrb[155].mxu0  ;;  %v3395_v53 = vpop.f32.mrb[160].mxu1 }
 0x3a4   :  { %v8741_v5 = vpop.f32.mrb[161].mxu1 }
 0x3a5   :  { %8852 = vmatmul.mubr.msk.bf16.gmra.mrb[4].mxu0 %vm33_vm0, %v11862_v14  ;;  %v3397_v13 = vpop.f32.mrb[162].mxu1  ;;  %v11896_v5 = vpack.c.bf16 %v3532_v8, %v3928_v48 }
 0x3a6   :  { %v11866_v61 = vadd.f32 %v3397_v13, %v3087_v36  ;;  %v8742_v63 = vpop.f32.mrb[163].mxu1  ;;  %8855 = vmatprep.mubr.msk.bf16.mxu0 %vm9790_vm1, %v13126_v45  ;;  %v13145_v36 = vld [vmem:[#allocation13_spill] sm:$0xff]  ;;  %v3930_v13 = vld [vmem:[#allocation2 + $0x170] sm:$0xff] }
 0x3a8   :  { %v3004_v4 = vpop.f32.mrb[156].mxu0  ;;  %8956 = vmatmul.mubr.msk.bf16.gmra.mrb[12].mxu1 %vm33_vm0, %v11868_v52 }
 0x3a9   :  { %v3088_v10 = vadd.f32 %v3004_v4, %v13142_v42  ;;  %v8641_v22 = vpop.f32.mrb[157].mxu0  ;;  %8959 = vmatprep.mubr.msk.bf16.mxu1 %vm9790_vm1, %v13126_v45 }
 0x3aa   :  { %v3007_v12 = vpop.f32.mrb[158].mxu0  ;;  %v11904_v22 = vpack.c.bf16 %v3930_v13, %v3532_v8 }
 0x3ab   :  { %v3089_v49 = vadd.f32 %v3007_v12, %v13143_v20  ;;  %v8642_v21 = vpop.f32.mrb[159].mxu0  ;;  %v3402_v35 = vpop.f32.mrb[164].mxu1  ;;  %v3534_v20 = vld [vmem:[#allocation2 + $0x178] sm:$0xff] }
 0x3ac   :  { %v11880_v15 = vadd.f32 %v3402_v35, %v3088_v10  ;;  %v8745_v51 = vpop.f32.mrb[165].mxu1 }
 0x3ad   :  { %8856 = vmatmul.mubr.msk.bf16.gmra.mrb[8].mxu0 %vm33_vm0, %v11875_v59  ;;  %v3405_v26 = vpop.f32.mrb[166].mxu1  ;;  %v11912_v51 = vpack.c.bf16 %v3534_v20, %v3930_v13 }
 0x3ae   :  { %v11884_v30 = vadd.f32 %v3405_v26, %v3089_v49  ;;  %v8746_v55 = vpop.f32.mrb[167].mxu1  ;;  %8859 = vmatprep.mubr.msk.bf16.mxu0 %vm9790_vm1, %v13126_v45  ;;  %v11914_v26 = vld [vmem:[#allocation2 + $0x180] sm:$0xff] }
 0x3b0   :  { %v3012_v23 = vpop.f32.mrb[160].mxu0  ;;  %8960 = vmatmul.mubr.msk.bf16.gmra.mrb[16].mxu1 %vm33_vm0, %v11886_v43 }
 0x3b1   :  { %v3090_v60 = vadd.f32 %v3012_v23, %v13144_v27  ;;  %v8645_v47 = vpop.f32.mrb[161].mxu0  ;;  %8963 = vmatprep.mubr.msk.bf16.mxu1 %vm9790_vm1, %v13126_v45  ;;  %v11919_v27 = vpack.c.bf16 %v11914_v26, %v3534_v20 }
 0x3b2   :  { %v3015_v3 = vpop.f32.mrb[162].mxu0  ;;  %v13146_v47 = vld [vmem:[#allocation14_spill] sm:$0xff] }
 0x3b3   :  { %v3091_v41 = vadd.f32 %v3015_v3, %v13145_v36  ;;  %v8646_v53 = vpop.f32.mrb[163].mxu0  ;;  %v3410_v28 = vpop.f32.mrb[168].mxu1 }
 0x3b4   :  { %v11898_v63 = vadd.f32 %v3410_v28, %v3090_v60  ;;  %v8749_v4 = vpop.f32.mrb[169].mxu1  ;;  %v13147_v53 = vld [vmem:[#allocation15_spill] sm:$0xff] }
 0x3b5   :  { %8860 = vmatmul.mubr.msk.bf16.gmra.mrb[12].mxu0 %vm33_vm0, %v11896_v5  ;;  %v3413_v39 = vpop.f32.mrb[170].mxu1 }
 0x3b6   :  { %v11902_v42 = vadd.f32 %v3413_v39, %v3091_v41  ;;  %v8750_v10 = vpop.f32.mrb[171].mxu1  ;;  %8863 = vmatprep.mubr.msk.bf16.mxu0 %vm9790_vm1, %v13126_v45  ;;  %v3564_v39 = vpack.c.bf16 %v11605_v33, %v11914_v26  ;;  %v3565_v33 = vpack.c.bf16 %v11619_v18, %v11603_v58 }
 0x3b8   :  { %v3020_v12 = vpop.f32.mrb[164].mxu0  ;;  %8964 = vmatmul.mubr.msk.bf16.gmra.mrb[20].mxu1 %vm33_vm0, %v11904_v22 }
 0x3b9   :  { %v8649_v49 = vpop.f32.mrb[165].mxu0  ;;  %8967 = vmatprep.mubr.msk.bf16.mxu1 %vm9790_vm1, %v13126_v45 }
 0x3ba   :  { %v3022_v21 = vpop.f32.mrb[166].mxu0 }
 0x3bb   :  { %v8650_v35 = vpop.f32.mrb[167].mxu0  ;;  %v3418_v48 = vpop.f32.mrb[172].mxu1 }
 0x3bc   :  { %v8753_v55 = vpop.f32.mrb[173].mxu1 }
 0x3bd   :  { %8864 = vmatmul.mubr.msk.bf16.gmra.mrb[16].mxu0 %vm33_vm0, %v11912_v51  ;;  %v3420_v23 = vpop.f32.mrb[174].mxu1 }
 0x3be   :  { %v8754_v8 = vpop.f32.mrb[175].mxu1  ;;  %8867 = vmatprep.mubr.msk.bf16.mxu0 %vm9790_vm1, %v13126_v45 }
 0x3bf   :  { %v13148_v8 = vld [vmem:[#allocation16_spill] sm:$0xff] }
 0x3c0   :  { %v3026_v60 = vpop.f32.mrb[168].mxu0  ;;  %8968 = vmatmul.mubr.msk.bf16.gmra.mrb[24].mxu1 %vm33_vm0, %v11919_v27 }
 0x3c1   :  { %v3092_v3 = vadd.f32 %v3026_v60, %v13146_v47  ;;  %v8653_v36 = vpop.f32.mrb[169].mxu0  ;;  %8971 = vmatprep.mubr.msk.bf16.mxu1 %vm9790_vm1, %v13126_v45 }
 0x3c2   :  { %v3029_v41 = vpop.f32.mrb[170].mxu0 }
 0x3c3   :  { %v3093_v28 = vadd.f32 %v3029_v41, %v13147_v53  ;;  %v8654_v13 = vpop.f32.mrb[171].mxu0  ;;  %v3424_v4 = vpop.f32.mrb[176].mxu1 }
 0x3c4   :  { %v8757_v10 = vpop.f32.mrb[177].mxu1  ;;  %v11931_v12 = vadd.f32 %v3424_v4, %v3092_v3  ;;  %v3566_v13 = vpack.c.bf16 %v11635_v34, %v11621_v1  ;;  %v11971_v34 = vld [vmem:[#allocation2 + $0x1c0] sm:$0xff] }
 0x3c5   :  { %8868 = vmatmul.mubr.msk.bf16.gmra.mrb[20].mxu0 %vm33_vm0, %v3564_v39  ;;  %v3427_v20 = vpop.f32.mrb[178].mxu1 }
 0x3c6   :  { %v8758_v49 = vpop.f32.mrb[179].mxu1  ;;  %8871 = vmatprep.mubr.msk.bf16.mxu0 %vm9790_vm1, %v13126_v45  ;;  %v11936_v21 = vadd.f32 %v3427_v20, %v3093_v28 }
 0x3c8   :  { %v3034_v35 = vpop.f32.mrb[172].mxu0  ;;  %8972 = vmatmul.mubr.msk.bf16.gmra.mrb[28].mxu1 %vm33_vm0, %v11609_v29 }
 0x3c9   :  { %v3094_v48 = vadd.f32 %v3034_v35, %v11515_v57  ;;  %v8657_v55 = vpop.f32.mrb[173].mxu0  ;;  %8975 = vmatprep.mubr.msk.bf16.mxu1 %vm9790_vm1, %v13126_v45 }
 0x3ca   :  { %v3037_v23 = vpop.f32.mrb[174].mxu0 }
 0x3cb   :  { %v3095_v60 = vadd.f32 %v3037_v23, %v13148_v8  ;;  %v8658_v47 = vpop.f32.mrb[175].mxu0  ;;  %v3432_v3 = vpop.f32.mrb[180].mxu1  ;;  %v3965_v8 = vpack.c.bf16 %v11971_v34, %v11654_v46 }
 0x3cc   :  { %v8761_v36 = vpop.f32.mrb[181].mxu1  ;;  %v11946_v41 = vadd.f32 %v3432_v3, %v3094_v48 }
 0x3cd   :  { %8872 = vmatmul.mubr.msk.bf16.gmra.mrb[24].mxu0 %vm33_vm0, %v3565_v33  ;;  %v3435_v29 = vpop.f32.mrb[182].mxu1  ;;  %v3568_v36 = vpack.c.bf16 %v11971_v34, %v11971_v34 }
 0x3ce   :  { %v8762_v53 = vpop.f32.mrb[183].mxu1  ;;  %8875 = vmatprep.mubr.msk.bf16.mxu0 %vm9790_vm1, %v13126_v45  ;;  %v11951_v57 = vadd.f32 %v3435_v29, %v3095_v60  ;;  %v11983_v29 = vld [vmem:[#allocation2 + $0x1c8] sm:$0xff] }
 0x3d0   :  { %v3042_v58 = vpop.f32.mrb[176].mxu0  ;;  %8976 = vmatmul.mubr.msk.bf16.gmra.mrb[32].mxu1 %vm33_vm0, %v11625_v6  ;;  %v3567_v6 = vpack.c.bf16 %v11654_v46, %v11637_v16 }
 0x3d1   :  { %v3096_v18 = vadd.f32 %v3042_v58, %v11549_v38  ;;  %v8661_v28 = vpop.f32.mrb[177].mxu0  ;;  %8979 = vmatprep.mubr.msk.bf16.mxu1 %vm9790_vm1, %v13126_v45 }
 0x3d2   :  { %v3045_v4 = vpop.f32.mrb[178].mxu0 }
 0x3d3   :  { %v8662_v39 = vpop.f32.mrb[179].mxu0  ;;  %v3440_v10 = vpop.f32.mrb[184].mxu1  ;;  %v4291_v4 = vld [vmem:[#allocation2 + $0x70] sm:$0xff] }
 0x3d4   :  { %v8765_v20 = vpop.f32.mrb[185].mxu1  ;;  %v11960_v49 = vadd.f32 %v3440_v10, %v3096_v18  ;;  %v3966_v18 = vpack.c.bf16 %v11983_v29, %v11983_v29 }
 0x3d5   :  { %8876 = vmatmul.mubr.msk.bf16.gmra.mrb[28].mxu0 %vm33_vm0, %v3566_v13  ;;  %v3443_v35 = vpop.f32.mrb[186].mxu1  ;;  %v4292_v20 = vld [vmem:[#allocation2 + $0x78] sm:$0xff] }
 0x3d6   :  { %v8766_v48 = vpop.f32.mrb[187].mxu1  ;;  %8879 = vmatprep.mubr.msk.bf16.mxu0 %vm9790_vm1, %v13126_v45 }
 0x3d7   :  { %v4340_v48 = vpack.c.bf16 %v4292_v20, %v4291_v4 }
 0x3d8   :  { %v3049_v38 = vpop.f32.mrb[180].mxu0  ;;  %8980 = vmatmul.mubr.msk.bf16.gmra.mrb[36].mxu1 %vm33_vm0, %v11643_v9 }
 0x3d9   :  { %v8665_v1 = vpop.f32.mrb[181].mxu0  ;;  %8983 = vmatprep.mubr.msk.bf16.mxu1 %vm9790_vm1, %v13126_v45 }
 0x3da   :  { %v3051_v55 = vpop.f32.mrb[182].mxu0  ;;  %v9647_v1 = vld [vmem:[%s13108_s3 + $0x80] sm:$0xff]  }
 0x3db   :  { %v8666_v33 = vpop.f32.mrb[183].mxu0  ;;  %v3447_v23 = vpop.f32.mrb[188].mxu1 }
 0x3dc   :  { %v8769_v60 = vpop.f32.mrb[189].mxu1 }
 0x3dd   :  { %8880 = vmatmul.mubr.msk.bf16.gmra.mrb[32].mxu0 %vm33_vm0, %v3567_v6  ;;  %v3449_v47 = vpop.f32.mrb[190].mxu1 }
 0x3de   :  { %8883 = vmatprep.mubr.msk.bf16.mxu0 %vm9790_vm1, %v13126_v45  ;;  %v8770_v9 = vpop.f32.mrb[191].mxu1 }
 0x3df   :  { %v9649_v9 = vld [vmem:[%s13108_s3 + $0x88] sm:$0xff]  }
 0x3e0   :  { %v3055_v16 = vpop.f32.mrb[184].mxu0  ;;  %8984 = vmatmul.mubr.msk.bf16.gmra.mrb[40].mxu1 %vm33_vm0, %v3965_v8  ;;  %v9784_v8 = vld [vmem:[#allocation2 + $0x80] sm:$0xff] }
 0x3e1   :  { %v8669_v3 = vpop.f32.mrb[185].mxu0  ;;  %8987 = vmatprep.mubr.msk.bf16.mxu1 %vm9790_vm1, %v13126_v45  ;;  %v4738_v60 = vpack.c.bf16 %v9784_v8, %v4292_v20 }
 0x3e2   :  { %v3057_v46 = vpop.f32.mrb[186].mxu0  ;;  %v4294_v3 = vld [vmem:[#allocation2 + $0x88] sm:$0xff] }
 0x3e3   :  { %v8670_v53 = vpop.f32.mrb[187].mxu0  ;;  %v3453_v58 = vpop.f32.mrb[192].mxu1 }
 0x3e4   :  { %v8773_v28 = vpop.f32.mrb[193].mxu1  ;;  %v4293_v53 = vld [vmem:[#allocation2 + $0x80] sm:$0xff] }
 0x3e5   :  { %8884 = vmatmul.mubr.msk.bf16.gmra.mrb[36].mxu0 %vm33_vm0, %v3568_v36  ;;  %v3455_v13 = vpop.f32.mrb[194].mxu1  ;;  %v4692_v28 = vld [vmem:[#allocation2 + $0x90] sm:$0xff] }
 0x3e6   :  { %8995 = vmatprep.mubr.msk.bf16.mxu0 %vm9790_vm1, %v13126_v45  ;;  %v8774_v39 = vpop.f32.mrb[195].mxu1 }
 0x3e8   :  { %v3061_v10 = vpop.f32.mrb[188].mxu0  ;;  %8988 = vmatmul.mubr.msk.bf16.gmra.mrb[44].mxu1 %vm33_vm0, %v3966_v18  ;;  %v4341_v18 = vpack.c.bf16 %v4294_v3, %v4293_v53 }
 0x3e9   :  { %v8673_v35 = vpop.f32.mrb[189].mxu0  ;;  %9099 = vmatprep.mubr.msk.bf16.mxu1 %vm9790_vm1, %v13126_v45  ;;  %v4739_v10 = vpack.c.bf16 %v4692_v28, %v4294_v3  ;;  %v4298_v3 = vld [vmem:[#allocation2 + $0xa8] sm:$0xff] }
 0x3ea   :  { %v3063_v38 = vpop.f32.mrb[190].mxu0 }
 0x3eb   :  { %v8674_v6 = vpop.f32.mrb[191].mxu0  ;;  %v3459_v55 = vpop.f32.mrb[196].mxu1 }
 0x3ec   :  { %v8777_v33 = vpop.f32.mrb[197].mxu1 }
 0x3ed   :  { %8996 = vmatmul.mubr.msk.bf16.vlgmr.msra.gmra.mrb[40].mxu0 %vm33_vm0, %v4340_v48  ;;  %v3461_v23 = vpop.f32.mrb[198].mxu1  ;;  %v4296_v48 = vld [vmem:[#allocation2 + $0x98] sm:$0xff]  ;;  %v4694_v33 = vld [vmem:[#allocation2 + $0xa0] sm:$0xff] }
 0x3ee   :  { %9200 = vmatpush3.bf16.msra.mxu0 %v9647_v1  ;;  %8999 = vmatprep.mubr.msk.bf16.mxu0 %vm9790_vm1, %v13126_v45  ;;  %v8778_v47 = vpop.f32.mrb[199].mxu1  ;;  %v12013_v55 = vpack.c.bf16 %v4296_v48, %v4692_v28 }
 0x3ef   :  { %9201 = vmatprep.subr.bf16.mxu0 %v13126_v45  ;;  %v4740_v47 = vpack.c.bf16 %v4694_v33, %v4296_v48 }
 0x3f0   :  { %v3067_v16 = vpop.f32.mrb[192].mxu0  ;;  %9100 = vmatmul.mubr.msk.bf16.vlgmr.msra.gmra.mrb[48].mxu1 %vm33_vm0, %v4738_v60 }
 0x3f1   :  { %v8677_v36 = vpop.f32.mrb[193].mxu0  ;;  %9103 = vmatprep.mubr.msk.bf16.mxu1 %vm9790_vm1, %v13126_v45 }
 0x3f2   :  { %v3069_v46 = vpop.f32.mrb[194].mxu0  ;;  %9202 = vmatpush3.bf16.msra.mxu0 %v9649_v9 }
 0x3f3   :  { %v8678_v58 = vpop.f32.mrb[195].mxu0  ;;  %v3465_v13 = vpop.f32.mrb[200].mxu1  ;;  %9459 = vmatprep.subr.bf16.mxu0 %v13126_v45 }
 0x3f4   :  { %v8781_v4 = vpop.f32.mrb[201].mxu1  ;;  %v12022_v58 = vpack.c.bf16 %v4298_v3, %v4694_v33 }
 0x3f5   :  { %9000 = vmatmul.mubr.msk.bf16.gmra.mrb[44].mxu0 %vm33_vm0, %v4341_v18  ;;  %v3467_v39 = vpop.f32.mrb[202].mxu1  ;;  %v4696_v18 = vld [vmem:[#allocation2 + $0xb0] sm:$0xff] }
 0x3f6   :  { %9003 = vmatprep.mubr.msk.bf16.mxu0 %vm9790_vm1, %v13126_v45  ;;  %v8782_v20 = vpop.f32.mrb[203].mxu1  ;;  %v4741_v13 = vpack.c.bf16 %v4696_v18, %v4298_v3  ;;  %v4302_v3 = vld [vmem:[#allocation2 + $0xc8] sm:$0xff] }
 0x3f8   :  { %v3694_v35 = vpop.f32.mrb[196].mxu0  ;;  %9104 = vmatmul.mubr.msk.bf16.gmra.mrb[52].mxu1 %vm33_vm0, %v4739_v10 }
 0x3f9   :  { %v8789_v38 = vpop.f32.mrb[197].mxu0  ;;  %9107 = vmatprep.mubr.msk.bf16.mxu1 %vm9790_vm1, %v13126_v45  ;;  %v4300_v35 = vld [vmem:[#allocation2 + $0xb8] sm:$0xff] }
 0x3fa   :  { %v3696_v1 = vpop.f32.mrb[198].mxu0 }
 0x3fb   :  { %v8790_v6 = vpop.f32.mrb[199].mxu0  ;;  %v4092_v23 = vpop.f32.mrb[204].mxu1 }
 0x3fc   :  { %v8893_v8 = vpop.f32.mrb[205].mxu1  ;;  %v12031_v6 = vpack.c.bf16 %v4300_v35, %v4696_v18  ;;  %v4698_v23 = vld [vmem:[#allocation2 + $0xc0] sm:$0xff] }
 0x3fd   :  { %9004 = vmatmul.mubr.msk.bf16.gmra.mrb[48].mxu0 %vm33_vm0, %v12013_v55  ;;  %v4094_v60 = vpop.f32.mrb[206].mxu1 }
 0x3fe   :  { %9007 = vmatprep.mubr.msk.bf16.mxu0 %vm9790_vm1, %v13126_v45  ;;  %v8894_v9 = vpop.f32.mrb[207].mxu1 }
 0x400   :  { %v3700_v16 = vpop.f32.mrb[200].mxu0  ;;  %9108 = vmatmul.mubr.msk.bf16.gmra.mrb[56].mxu1 %vm33_vm0, %v4740_v47  ;;  %v4742_v47 = vpack.c.bf16 %v4698_v23, %v4300_v35 }
 0x401   :  { %v8793_v36 = vpop.f32.mrb[201].mxu0  ;;  %9111 = vmatprep.mubr.msk.bf16.mxu1 %vm9790_vm1, %v13126_v45 }
 0x402   :  { %v3702_v46 = vpop.f32.mrb[202].mxu0 }
 0x403   :  { %v8794_v53 = vpop.f32.mrb[203].mxu0  ;;  %v4098_v28 = vpop.f32.mrb[208].mxu1 }
 0x404   :  { %v8897_v4 = vpop.f32.mrb[209].mxu1  ;;  %v12040_v28 = vpack.c.bf16 %v4302_v3, %v4698_v23 }
 0x405   :  { %9008 = vmatmul.mubr.msk.bf16.gmra.mrb[52].mxu0 %vm33_vm0, %v12022_v58  ;;  %v4100_v39 = vpop.f32.mrb[210].mxu1 }
 0x406   :  { %9011 = vmatprep.mubr.msk.bf16.mxu0 %vm9790_vm1, %v13126_v45  ;;  %v8898_v10 = vpop.f32.mrb[211].mxu1 }
 0x408   :  { %v3706_v20 = vpop.f32.mrb[204].mxu0  ;;  %9112 = vmatmul.mubr.msk.bf16.gmra.mrb[60].mxu1 %vm33_vm0, %v4741_v13  ;;  %v4700_v13 = vld [vmem:[#allocation2 + $0xd0] sm:$0xff] }
 0x409   :  { %v8797_v48 = vpop.f32.mrb[205].mxu0  ;;  %9115 = vmatprep.mubr.msk.bf16.mxu1 %vm9790_vm1, %v13126_v45  ;;  %v4743_v20 = vpack.c.bf16 %v4700_v13, %v4302_v3 }
 0x40a   :  { %v3708_v38 = vpop.f32.mrb[206].mxu0  ;;  %v4304_v48 = vld [vmem:[#allocation2 + $0xd8] sm:$0xff] }
 0x40b   :  { %v8798_v1 = vpop.f32.mrb[207].mxu0  ;;  %v4104_v33 = vpop.f32.mrb[212].mxu1 }
 0x40c   :  { %v8901_v8 = vpop.f32.mrb[213].mxu1 }
 0x40d   :  { %9012 = vmatmul.mubr.msk.bf16.gmra.mrb[56].mxu0 %vm33_vm0, %v12031_v6  ;;  %v4106_v60 = vpop.f32.mrb[214].mxu1 }
 0x40e   :  { %v8902_v9 = vpop.f32.mrb[215].mxu1  ;;  %9015 = vmatprep.mubr.msk.bf16.mxu0 %vm9790_vm1, %v13126_v45 }
 0x40f   :  { %v4702_v9 = vld [vmem:[#allocation2 + $0xe0] sm:$0xff] }
 0x410   :  { %v3712_v16 = vpop.f32.mrb[208].mxu0  ;;  %9116 = vmatmul.mubr.msk.bf16.gmra.mrb[64].mxu1 %vm33_vm0, %v4742_v47  ;;  %v12051_v47 = vpack.c.bf16 %v4304_v48, %v4700_v13 }
 0x411   :  { %v8801_v36 = vpop.f32.mrb[209].mxu0  ;;  %9119 = vmatprep.mubr.msk.bf16.mxu1 %vm9790_vm1, %v13126_v45 }
 0x412   :  { %v3714_v46 = vpop.f32.mrb[210].mxu0 }
 0x413   :  { %v8802_v53 = vpop.f32.mrb[211].mxu0  ;;  %v4110_v18 = vpop.f32.mrb[216].mxu1  ;;  %v4744_v46 = vpack.c.bf16 %v4702_v9, %v4304_v48 }
 0x414   :  { %v8905_v4 = vpop.f32.mrb[217].mxu1  ;;  %v4306_v18 = vld [vmem:[#allocation2 + $0xe8] sm:$0xff] }
 0x415   :  { %9016 = vmatmul.mubr.msk.bf16.gmra.mrb[60].mxu0 %vm33_vm0, %v12040_v28  ;;  %v4112_v39 = vpop.f32.mrb[218].mxu1 }
 0x416   :  { %v8906_v10 = vpop.f32.mrb[219].mxu1  ;;  %9019 = vmatprep.mubr.msk.bf16.mxu0 %vm9790_vm1, %v13126_v45  ;;  %v12063_v39 = vpack.c.bf16 %v4306_v18, %v4702_v9 }
 0x418   :  { %v3718_v35 = vpop.f32.mrb[212].mxu0  ;;  %9120 = vmatmul.mubr.msk.bf16.gmra.mrb[68].mxu1 %vm33_vm0, %v4743_v20 }
 0x419   :  { %v3868_v38 = vadd.f32 %v3718_v35, %v11722_v32  ;;  %v8805_v1 = vpop.f32.mrb[213].mxu0  ;;  %9123 = vmatprep.mubr.msk.bf16.mxu1 %vm9790_vm1, %v13126_v45 }
 0x41a   :  { %v3721_v33 = vpop.f32.mrb[214].mxu0 }
 0x41b   :  { %v3869_v23 = vadd.f32 %v3721_v33, %v11726_v54  ;;  %v8806_v8 = vpop.f32.mrb[215].mxu0  ;;  %v4116_v60 = vpop.f32.mrb[220].mxu1 }
 0x41c   :  { %v8909_v16 = vpop.f32.mrb[221].mxu1  ;;  %v12053_v3 = vadd.f32 %v4116_v60, %v3868_v38  ;;  %v4704_v38 = vld [vmem:[#allocation2 + $0xf0] sm:$0xff] }
 0x41d   :  { %9020 = vmatmul.mubr.msk.bf16.gmra.mrb[64].mxu0 %vm33_vm0, %v12051_v47  ;;  %v4119_v36 = vpop.f32.mrb[222].mxu1  ;;  %v4745_v60 = vpack.c.bf16 %v4704_v38, %v4306_v18  ;;  %v4308_v16 = vld [vmem:[#allocation2 + $0xf8] sm:$0xff] }
 0x41e   :  { %v8910_v32 = vpop.f32.mrb[223].mxu1  ;;  %9023 = vmatprep.mubr.msk.bf16.mxu0 %vm9790_vm1, %v13126_v45  ;;  %v12059_v53 = vadd.f32 %v4119_v36, %v3869_v23 }
 0x420   :  { %v3726_v54 = vpop.f32.mrb[216].mxu0  ;;  %9124 = vmatmul.mubr.msk.bf16.gmra.mrb[72].mxu1 %vm33_vm0, %v4744_v46 }
 0x421   :  { %v8809_v13 = vpop.f32.mrb[217].mxu0  ;;  %v3870_v4 = vadd.f32 %v3726_v54, %v11736_v37  ;;  %9127 = vmatprep.mubr.msk.bf16.mxu1 %vm9790_vm1, %v13126_v45 }
 0x422   :  { %v3729_v10 = vpop.f32.mrb[218].mxu0  ;;  %v12080_v13 = vpack.c.bf16 %v4308_v16, %v4704_v38 }
 0x423   :  { %v8810_v20 = vpop.f32.mrb[219].mxu0  ;;  %v4124_v35 = vpop.f32.mrb[224].mxu1  ;;  %v3871_v48 = vadd.f32 %v3729_v10, %v11740_v40 }
 0x424   :  { %v12068_v1 = vadd.f32 %v4124_v35, %v3870_v4  ;;  %v8913_v33 = vpop.f32.mrb[225].mxu1  ;;  %v4706_v4 = vld [vmem:[#allocation2 + $0x100] sm:$0xff] }
 0x425   :  { %9024 = vmatmul.mubr.msk.bf16.gmra.mrb[68].mxu0 %vm33_vm0, %v12063_v39  ;;  %v4127_v23 = vpop.f32.mrb[226].mxu1  ;;  %v4746_v35 = vpack.c.bf16 %v4706_v4, %v4308_v16  ;;  %v4310_v33 = vld [vmem:[#allocation2 + $0x108] sm:$0xff]  ;;  %v4708_v16 = vld [vmem:[#allocation2 + $0x110] sm:$0xff] }
 0x426   :  { %v12072_v8 = vadd.f32 %v4127_v23, %v3871_v48  ;;  %v8914_v37 = vpop.f32.mrb[227].mxu1  ;;  %9027 = vmatprep.mubr.msk.bf16.mxu0 %vm9790_vm1, %v13126_v45 }
 0x428   :  { %v3734_v9 = vpop.f32.mrb[220].mxu0  ;;  %9128 = vmatmul.mubr.msk.bf16.gmra.mrb[76].mxu1 %vm33_vm0, %v4745_v60 }
 0x429   :  { %v8813_v40 = vpop.f32.mrb[221].mxu0  ;;  %v3872_v36 = vadd.f32 %v3734_v9, %v11749_v24  ;;  %9131 = vmatprep.mubr.msk.bf16.mxu1 %vm9790_vm1, %v13126_v45  ;;  %v12091_v9 = vpack.c.bf16 %v4310_v33, %v4706_v4  ;;  %v4312_v4 = vld [vmem:[#allocation2 + $0x118] sm:$0xff] }
 0x42a   :  { %v3737_v32 = vpop.f32.mrb[222].mxu0 }
 0x42b   :  { %v8814_v46 = vpop.f32.mrb[223].mxu0  ;;  %v4132_v54 = vpop.f32.mrb[228].mxu1 }
 0x42c   :  { %v12082_v18 = vadd.f32 %v4132_v54, %v3872_v36  ;;  %v8917_v10 = vpop.f32.mrb[229].mxu1 }
 0x42d   :  { %9028 = vmatmul.mubr.msk.bf16.gmra.mrb[72].mxu0 %vm33_vm0, %v12080_v13  ;;  %v4135_v20 = vpop.f32.mrb[230].mxu1  ;;  %v4747_v10 = vpack.c.bf16 %v4708_v16, %v4310_v33 }
 0x42e   :  { %v8918_v48 = vpop.f32.mrb[231].mxu1  ;;  %9031 = vmatprep.mubr.msk.bf16.mxu0 %vm9790_vm1, %v13126_v45 }
 0x430   :  { %v3741_v24 = vpop.f32.mrb[224].mxu0  ;;  %9132 = vmatmul.mubr.msk.bf16.gmra.mrb[80].mxu1 %vm33_vm0, %v4746_v35 }
 0x431   :  { %v8817_v23 = vpop.f32.mrb[225].mxu0  ;;  %9135 = vmatprep.mubr.msk.bf16.mxu1 %vm9790_vm1, %v13126_v45 }
 0x432   :  { %v3743_v38 = vpop.f32.mrb[226].mxu0 }
 0x433   :  { %v8818_v37 = vpop.f32.mrb[227].mxu0  ;;  %v4139_v60 = vpop.f32.mrb[232].mxu1  ;;  %v3873_v40 = vadd.f32 %v3743_v38, %v11769_v19  ;;  %v12104_v38 = vpack.c.bf16 %v4312_v4, %v4708_v16  ;;  %v4314_v16 = vld [vmem:[#allocation2 + $0x128] sm:$0xff] }
 0x434   :  { %v8921_v36 = vpop.f32.mrb[233].mxu1  ;;  %v4710_v37 = vld [vmem:[#allocation2 + $0x120] sm:$0xff] }
 0x435   :  { %9032 = vmatmul.mubr.msk.bf16.gmra.mrb[76].mxu0 %vm33_vm0, %v12091_v9  ;;  %v4141_v32 = vpop.f32.mrb[234].mxu1  ;;  %v4748_v36 = vpack.c.bf16 %v4710_v37, %v4312_v4 }
 0x436   :  { %v12096_v46 = vadd.f32 %v4141_v32, %v3873_v40  ;;  %v8922_v54 = vpop.f32.mrb[235].mxu1  ;;  %9035 = vmatprep.mubr.msk.bf16.mxu0 %vm9790_vm1, %v13126_v45 }
 0x438   :  { %v3748_v20 = vpop.f32.mrb[228].mxu0  ;;  %9136 = vmatmul.mubr.msk.bf16.gmra.mrb[84].mxu1 %vm33_vm0, %v4747_v10 }
 0x439   :  { %v8821_v35 = vpop.f32.mrb[229].mxu0  ;;  %v3874_v19 = vadd.f32 %v3748_v20, %v11780_v11  ;;  %9139 = vmatprep.mubr.msk.bf16.mxu1 %vm9790_vm1, %v13126_v45 }
 0x43a   :  { %v3751_v48 = vpop.f32.mrb[230].mxu0 }
 0x43b   :  { %v8822_v24 = vpop.f32.mrb[231].mxu0  ;;  %v4146_v23 = vpop.f32.mrb[236].mxu1  ;;  %v3875_v33 = vadd.f32 %v3751_v48, %v11784_v56  ;;  %v12119_v48 = vpack.c.bf16 %v4314_v16, %v4710_v37 }
 0x43c   :  { %v12107_v60 = vadd.f32 %v4146_v23, %v3874_v19  ;;  %v8925_v40 = vpop.f32.mrb[237].mxu1  ;;  %v4712_v23 = vld [vmem:[#allocation2 + $0x130] sm:$0xff] }
 0x43d   :  { %9036 = vmatmul.mubr.msk.bf16.gmra.mrb[80].mxu0 %vm33_vm0, %v12104_v38  ;;  %v4149_v32 = vpop.f32.mrb[238].mxu1 }
 0x43e   :  { %v12111_v11 = vadd.f32 %v4149_v32, %v3875_v33  ;;  %v8926_v54 = vpop.f32.mrb[239].mxu1  ;;  %9039 = vmatprep.mubr.msk.bf16.mxu0 %vm9790_vm1, %v13126_v45 }
 0x43f   :  { %v4749_v54 = vpack.c.bf16 %v4712_v23, %v4314_v16 }
 0x440   :  { %v3756_v10 = vpop.f32.mrb[232].mxu0  ;;  %9140 = vmatmul.mubr.msk.bf16.gmra.mrb[88].mxu1 %vm33_vm0, %v4748_v36 }
 0x441   :  { %v8825_v56 = vpop.f32.mrb[233].mxu0  ;;  %v3876_v20 = vadd.f32 %v3756_v10, %v11794_v31  ;;  %9143 = vmatprep.mubr.msk.bf16.mxu1 %vm9790_vm1, %v13126_v45 }
 0x442   :  { %v3759_v4 = vpop.f32.mrb[234].mxu0 }
 0x443   :  { %v8826_v35 = vpop.f32.mrb[235].mxu0  ;;  %v4154_v19 = vpop.f32.mrb[240].mxu1  ;;  %v3877_v24 = vadd.f32 %v3759_v4, %v11798_v0  ;;  %v4352_v4 = vpack.c.bf16 %v11843_v2, %v4712_v23 }
 0x444   :  { %v12122_v33 = vadd.f32 %v4154_v19, %v3876_v20  ;;  %v8929_v40 = vpop.f32.mrb[241].mxu1 }
 0x445   :  { %9040 = vmatmul.mubr.msk.bf16.gmra.mrb[84].mxu0 %vm33_vm0, %v12119_v48  ;;  %v4157_v36 = vpop.f32.mrb[242].mxu1 }
 0x446   :  { %v12126_v32 = vadd.f32 %v4157_v36, %v3877_v24  ;;  %v8930_v31 = vpop.f32.mrb[243].mxu1  ;;  %9043 = vmatprep.mubr.msk.bf16.mxu0 %vm9790_vm1, %v13126_v45 }
 0x448   :  { %v3764_v10 = vpop.f32.mrb[236].mxu0  ;;  %9144 = vmatmul.mubr.msk.bf16.gmra.mrb[92].mxu1 %vm33_vm0, %v4749_v54 }
 0x449   :  { %v8829_v37 = vpop.f32.mrb[237].mxu0  ;;  %9147 = vmatprep.mubr.msk.bf16.mxu1 %vm9790_vm1, %v13126_v45 }
 0x44a   :  { %v3766_v0 = vpop.f32.mrb[238].mxu0 }
 0x44b   :  { %v8830_v56 = vpop.f32.mrb[239].mxu0  ;;  %v4162_v20 = vpop.f32.mrb[244].mxu1 }
 0x44c   :  { %v8933_v35 = vpop.f32.mrb[245].mxu1 }
 0x44d   :  { %9044 = vmatmul.mubr.msk.bf16.gmra.mrb[88].mxu0 %vm33_vm0, %v4352_v4  ;;  %v4164_v19 = vpop.f32.mrb[246].mxu1 }
 0x44e   :  { %v8934_v16 = vpop.f32.mrb[247].mxu1  ;;  %9047 = vmatprep.mubr.msk.bf16.mxu0 %vm9790_vm1, %v13126_v45 }
 0x450   :  { %v3770_v24 = vpop.f32.mrb[240].mxu0  ;;  %9148 = vmatmul.mubr.msk.bf16.gmra.mrb[96].mxu1 %vm33_vm0, %v11853_v25 }
 0x451   :  { %v8833_v40 = vpop.f32.mrb[241].mxu0  ;;  %v3878_v36 = vadd.f32 %v3770_v24, %v11816_v62  ;;  %9151 = vmatprep.mubr.msk.bf16.mxu1 %vm9790_vm1, %v13126_v45 }
 0x452   :  { %v3773_v31 = vpop.f32.mrb[242].mxu0 }
 0x453   :  { %v8834_v2 = vpop.f32.mrb[243].mxu0  ;;  %v4168_v23 = vpop.f32.mrb[248].mxu1  ;;  %v3879_v54 = vadd.f32 %v3773_v31, %v11822_v50 }
 0x454   :  { %v12143_v10 = vadd.f32 %v4168_v23, %v3878_v36  ;;  %v8937_v37 = vpop.f32.mrb[249].mxu1 }
 0x455   :  { %9048 = vmatmul.mubr.msk.bf16.gmra.mrb[92].mxu0 %vm33_vm0, %v11862_v14  ;;  %v4171_v0 = vpop.f32.mrb[250].mxu1 }
 0x456   :  { %v12147_v56 = vadd.f32 %v4171_v0, %v3879_v54  ;;  %v8938_v25 = vpop.f32.mrb[251].mxu1  ;;  %9051 = vmatprep.mubr.msk.bf16.mxu0 %vm9790_vm1, %v13126_v45 }
 0x458   :  { %v3778_v62 = vpop.f32.mrb[244].mxu0  ;;  %9152 = vmatmul.mubr.msk.bf16.gmra.mrb[100].mxu1 %vm33_vm0, %v11868_v52 }
 0x459   :  { %v8837_v20 = vpop.f32.mrb[245].mxu0  ;;  %v3880_v50 = vadd.f32 %v3778_v62, %v11831_v17  ;;  %9155 = vmatprep.mubr.msk.bf16.mxu1 %vm9790_vm1, %v13126_v45 }
 0x45a   :  { %v3781_v4 = vpop.f32.mrb[246].mxu0 }
 0x45b   :  { %v8838_v35 = vpop.f32.mrb[247].mxu0  ;;  %v4176_v14 = vpop.f32.mrb[252].mxu1  ;;  %v3881_v19 = vadd.f32 %v3781_v4, %v11835_v7 }
 0x45c   :  { %v12157_v16 = vadd.f32 %v4176_v14, %v3880_v50  ;;  %v8941_v24 = vpop.f32.mrb[253].mxu1 }
 0x45d   :  { %9052 = vmatmul.mubr.msk.bf16.gmra.mrb[96].mxu0 %vm33_vm0, %v11875_v59  ;;  %v4179_v40 = vpop.f32.mrb[254].mxu1 }
 0x45e   :  { %v12161_v36 = vadd.f32 %v4179_v40, %v3881_v19  ;;  %v8942_v52 = vpop.f32.mrb[255].mxu1  ;;  %9055 = vmatprep.mubr.msk.bf16.mxu0 %vm9790_vm1, %v13126_v45 }
 0x460   :  { %v3786_v17 = vpop.f32.mrb[248].mxu0  ;;  %9156 = vmatmul.mubr.msk.bf16.gmra.mrb[104].mxu1 %vm33_vm0, %v11886_v43 }
 0x461   :  { %v8841_v31 = vpop.f32.mrb[249].mxu0  ;;  %v3882_v7 = vadd.f32 %v3786_v17, %v11849_v44  ;;  %9159 = vmatprep.mubr.msk.bf16.mxu1 %vm9790_vm1, %v13126_v45 }
 0x462   :  { %v3789_v2 = vpop.f32.mrb[250].mxu0 }
 0x463   :  { %v8842_v23 = vpop.f32.mrb[251].mxu0  ;;  %v4184_v59 = vpop.f32.mrb[0].mxu1 }
 0x464   :  { %v12170_v54 = vadd.f32 %v4184_v59, %v3882_v7  ;;  %v8945_v37 = vpop.f32.mrb[1].mxu1 }
 0x465   :  { %9056 = vmatmul.mubr.msk.bf16.gmra.mrb[100].mxu0 %vm33_vm0, %v11896_v5  ;;  %v4187_v0 = vpop.f32.mrb[2].mxu1  ;;  %v9650_v5 = vld [vmem:[%s13111_s5 + $0x20] sm:$0xff]  }
 0x466   :  { %v8946_v25 = vpop.f32.mrb[3].mxu1  ;;  %9059 = vmatprep.mubr.msk.bf16.mxu0 %vm9790_vm1, %v13126_v45  ;;  %9304 = vmatpush3.bf16.msra.mxu1 %v9650_v5 }
 0x467   :  { %9305 = vmatprep.subr.bf16.mxu1 %v13126_v45 }
 0x468   :  { %v3793_v43 = vpop.f32.mrb[252].mxu0  ;;  %9160 = vmatmul.mubr.msk.bf16.gmra.mrb[108].mxu1 %vm33_vm0, %v11904_v22 }
 0x469   :  { %v8845_v44 = vpop.f32.mrb[253].mxu0  ;;  %9163 = vmatprep.mubr.msk.bf16.mxu1 %vm9790_vm1, %v13126_v45  ;;  %v4328_v43 = vld [vmem:[#allocation2 + $0x198] sm:$0xff] }
 0x46a   :  { %v3795_v62 = vpop.f32.mrb[254].mxu0 }
 0x46b   :  { %v8846_v20 = vpop.f32.mrb[255].mxu0  ;;  %v4191_v50 = vpop.f32.mrb[4].mxu1  ;;  %v3883_v4 = vadd.f32 %v3795_v62, %v11866_v61  ;;  %v4326_v61 = vld [vmem:[#allocation2 + $0x188] sm:$0xff] }
 0x46c   :  { %v8949_v35 = vpop.f32.mrb[5].mxu1  ;;  %v4357_v2 = vpack.c.bf16 %v4326_v61, %v11914_v26  ;;  %v4726_v20 = vld [vmem:[#allocation2 + $0x1a0] sm:$0xff] }
 0x46d   :  { %9060 = vmatmul.mubr.msk.bf16.gmra.mrb[104].mxu0 %vm33_vm0, %v11912_v51  ;;  %v4193_v14 = vpop.f32.mrb[6].mxu1  ;;  %v4724_v51 = vld [vmem:[#allocation2 + $0x190] sm:$0xff] }
 0x46e   :  { %v12186_v19 = vadd.f32 %v4193_v14, %v3883_v4  ;;  %v8950_v22 = vpop.f32.mrb[7].mxu1  ;;  %9063 = vmatprep.mubr.msk.bf16.mxu0 %vm9790_vm1, %v13126_v45  ;;  %v4755_v0 = vpack.c.bf16 %v4724_v51, %v4326_v61  ;;  %v12207_v62 = vpack.c.bf16 %v4328_v43, %v4724_v51 }
 0x470   :  { %v3800_v24 = vpop.f32.mrb[0].mxu0  ;;  %9164 = vmatmul.mubr.msk.bf16.gmra.mrb[112].mxu1 %vm33_vm0, %v11919_v27 }
 0x471   :  { %v8849_v40 = vpop.f32.mrb[1].mxu0  ;;  %v3884_v52 = vadd.f32 %v3800_v24, %v11880_v15  ;;  %9167 = vmatprep.mubr.msk.bf16.mxu1 %vm9790_vm1, %v13126_v45  ;;  %v4756_v24 = vpack.c.bf16 %v4726_v20, %v4328_v43  ;;  %v4332_v43 = vld [vmem:[#allocation2 + $0x1b8] sm:$0xff] }
 0x472   :  { %v3803_v17 = vpop.f32.mrb[2].mxu0 }
 0x473   :  { %v8850_v31 = vpop.f32.mrb[3].mxu0  ;;  %v4198_v7 = vpop.f32.mrb[8].mxu1  ;;  %v3885_v23 = vadd.f32 %v3803_v17, %v11884_v30 }
 0x474   :  { %v12198_v59 = vadd.f32 %v4198_v7, %v3884_v52  ;;  %v8953_v37 = vpop.f32.mrb[9].mxu1  ;;  %v4330_v52 = vld [vmem:[#allocation2 + $0x1a8] sm:$0xff]  ;;  %v4728_v31 = vld [vmem:[#allocation2 + $0x1b0] sm:$0xff] }
 0x475   :  { %9064 = vmatmul.mubr.msk.bf16.gmra.mrb[108].mxu0 %vm33_vm0, %v4357_v2  ;;  %v4201_v27 = vpop.f32.mrb[10].mxu1 }
 0x476   :  { %v12201_v25 = vadd.f32 %v4201_v27, %v3885_v23  ;;  %v8954_v15 = vpop.f32.mrb[11].mxu1  ;;  %9067 = vmatprep.mubr.msk.bf16.mxu0 %vm9790_vm1, %v13126_v45 }
 0x478   :  { %v3808_v44 = vpop.f32.mrb[4].mxu0  ;;  %9168 = vmatmul.mubr.msk.bf16.gmra.mrb[116].mxu1 %vm33_vm0, %v4755_v0  ;;  %v4757_v0 = vpack.c.bf16 %v4728_v31, %v4330_v52 }
 0x479   :  { %v8853_v26 = vpop.f32.mrb[5].mxu0  ;;  %v3886_v30 = vadd.f32 %v3808_v44, %v11898_v63  ;;  %9171 = vmatprep.mubr.msk.bf16.mxu1 %vm9790_vm1, %v13126_v45 }
 0x47a   :  { %v3811_v50 = vpop.f32.mrb[6].mxu0 }
 0x47b   :  { %v8854_v4 = vpop.f32.mrb[7].mxu0  ;;  %v4206_v35 = vpop.f32.mrb[12].mxu1  ;;  %v3887_v5 = vadd.f32 %v3811_v50, %v11902_v42  ;;  %v12221_v42 = vpack.c.bf16 %v4330_v52, %v4726_v20  ;;  %v12231_v20 = vpack.c.bf16 %v4332_v43, %v4728_v31  ;;  %v4361_v31 = vpack.c.bf16 %v11983_v29, %v11971_v34 }
 0x47c   :  { %v12212_v14 = vadd.f32 %v4206_v35, %v3886_v30  ;;  %v8957_v22 = vpop.f32.mrb[13].mxu1 }
 0x47d   :  { %9068 = vmatmul.mubr.msk.bf16.gmra.mrb[112].mxu0 %vm33_vm0, %v12207_v62  ;;  %v4209_v61 = vpop.f32.mrb[14].mxu1 }
 0x47e   :  { %v12216_v63 = vadd.f32 %v4209_v61, %v3887_v5  ;;  %v8958_v40 = vpop.f32.mrb[15].mxu1  ;;  %9071 = vmatprep.mubr.msk.bf16.mxu0 %vm9790_vm1, %v13126_v45  ;;  %v4758_v61 = vpack.c.bf16 %v11971_v34, %v4332_v43  ;;  %v12255_v43 = vld [vmem:[#allocation2 + $0x1d0] sm:$0xff]  ;;  %v12261_v34 = vld [vmem:[#allocation2 + $0x1d8] sm:$0xff] }
 0x480   :  { %v3816_v51 = vpop.f32.mrb[8].mxu0  ;;  %9172 = vmatmul.mubr.msk.bf16.gmra.mrb[120].mxu1 %vm33_vm0, %v4756_v24 }
 0x481   :  { %v8857_v17 = vpop.f32.mrb[9].mxu0  ;;  %9175 = vmatprep.mubr.msk.bf16.mxu1 %vm9790_vm1, %v13126_v45 }
 0x482   :  { %v3818_v7 = vpop.f32.mrb[10].mxu0 }
 0x483   :  { %v8858_v2 = vpop.f32.mrb[11].mxu0  ;;  %v4214_v23 = vpop.f32.mrb[16].mxu1 }
 0x484   :  { %v8961_v37 = vpop.f32.mrb[17].mxu1 }
 0x485   :  { %9072 = vmatmul.mubr.msk.bf16.gmra.mrb[116].mxu0 %vm33_vm0, %v12221_v42  ;;  %v4216_v27 = vpop.f32.mrb[18].mxu1 }
 0x486   :  { %v8962_v15 = vpop.f32.mrb[19].mxu1  ;;  %9075 = vmatprep.mubr.msk.bf16.mxu0 %vm9790_vm1, %v13126_v45 }
 0x488   :  { %v3822_v44 = vpop.f32.mrb[12].mxu0  ;;  %9176 = vmatmul.mubr.msk.bf16.gmra.mrb[124].mxu1 %vm33_vm0, %v4757_v0 }
 0x489   :  { %v3888_v26 = vadd.f32 %v3822_v44, %v11931_v12  ;;  %v8861_v30 = vpop.f32.mrb[13].mxu0  ;;  %9179 = vmatprep.mubr.msk.bf16.mxu1 %vm9790_vm1, %v13126_v45 }
 0x48a   :  { %v3825_v50 = vpop.f32.mrb[14].mxu0  ;;  %v4362_v30 = vpack.c.bf16 %v12261_v34, %v12255_v43 }
 0x48b   :  { %v3889_v4 = vadd.f32 %v3825_v50, %v11936_v21  ;;  %v8862_v35 = vpop.f32.mrb[15].mxu0  ;;  %v4220_v5 = vpop.f32.mrb[20].mxu1 }
 0x48c   :  { %v12236_v22 = vadd.f32 %v4220_v5, %v3888_v26  ;;  %v8965_v24 = vpop.f32.mrb[21].mxu1 }
 0x48d   :  { %9076 = vmatmul.mubr.msk.bf16.gmra.mrb[120].mxu0 %vm33_vm0, %v12231_v20  ;;  %v4223_v12 = vpop.f32.mrb[22].mxu1  ;;  %v12268_v24 = vld [vmem:[#allocation2 + $0x1e0] sm:$0xff] }
 0x48e   :  { %v12241_v40 = vadd.f32 %v4223_v12, %v3889_v4  ;;  %v8966_v52 = vpop.f32.mrb[23].mxu1  ;;  %9079 = vmatprep.mubr.msk.bf16.mxu0 %vm9790_vm1, %v13126_v45 }
 0x48f   :  { %v9651_v52 = vld [vmem:[%s13111_s5 + $0x28] sm:$0xff]  }
 0x490   :  { %v3830_v51 = vpop.f32.mrb[16].mxu0  ;;  %9180 = vmatmul.mubr.msk.bf16.gmra.mrb[128].mxu1 %vm33_vm0, %v4758_v61 }
 0x491   :  { %v3890_v21 = vadd.f32 %v3830_v51, %v11946_v41  ;;  %v8865_v17 = vpop.f32.mrb[17].mxu0  ;;  %9183 = vmatprep.mubr.msk.bf16.mxu1 %vm9790_vm1, %v13126_v45  ;;  %9306 = vmatpush3.bf16.msra.mxu1 %v9651_v52 }
 0x492   :  { %v3833_v7 = vpop.f32.mrb[18].mxu0  ;;  %9307 = vmatprep.subr.bf16.mxu1 %v13126_v45 }
 0x493   :  { %v3891_v2 = vadd.f32 %v3833_v7, %v11951_v57  ;;  %v8866_v23 = vpop.f32.mrb[19].mxu0  ;;  %v4228_v37 = vpop.f32.mrb[24].mxu1 }
 0x494   :  { %v12252_v0 = vadd.f32 %v4228_v37, %v3890_v21  ;;  %v8969_v27 = vpop.f32.mrb[25].mxu1 }
 0x495   :  { %9080 = vmatmul.mubr.msk.bf16.gmra.mrb[124].mxu0 %vm33_vm0, %v4361_v31  ;;  %v4231_v15 = vpop.f32.mrb[26].mxu1 }
 0x496   :  { %v12257_v41 = vadd.f32 %v4231_v15, %v3891_v2  ;;  %v8970_v44 = vpop.f32.mrb[27].mxu1  ;;  %9083 = vmatprep.mubr.msk.bf16.mxu0 %vm9790_vm1, %v13126_v45  ;;  %v12284_v15 = vld [vmem:[#allocation2 + $0x1f0] sm:$0xff] }
 0x498   :  { %v3838_v29 = vpop.f32.mrb[20].mxu0 }
 0x499   :  { %v3892_v57 = vadd.f32 %v3838_v29, %v11960_v49  ;;  %v8869_v26 = vpop.f32.mrb[21].mxu0  ;;  %v12276_v49 = vld [vmem:[#allocation2 + $0x1e8] sm:$0xff] }
 0x49a   :  { %v3841_v50 = vpop.f32.mrb[22].mxu0  ;;  %v4363_v31 = vpack.c.bf16 %v12276_v49, %v12268_v24  ;;  %v4364_v26 = vpack.c.bf16 %v12284_v15, %v12284_v15 }
 0x49b   :  { %v8870_v4 = vpop.f32.mrb[23].mxu0  ;;  %v4236_v35 = vpop.f32.mrb[28].mxu1 }
 0x49c   :  { %v12266_v5 = vadd.f32 %v4236_v35, %v3892_v57  ;;  %v8973_v61 = vpop.f32.mrb[29].mxu1 }
 0x49d   :  { %9084 = vmatmul.mubr.msk.bf16.gmra.mrb[128].mxu0 %vm33_vm0, %v4362_v30  ;;  %v4239_v12 = vpop.f32.mrb[30].mxu1 }
 0x49e   :  { %9087 = vmatprep.mubr.msk.bf16.mxu0 %vm9790_vm1, %v13126_v45  ;;  %v8974_v51 = vpop.f32.mrb[31].mxu1 }
 0x4a0   :  { %v3845_v21 = vpop.f32.mrb[24].mxu0 }
 0x4a1   :  { %v8873_v17 = vpop.f32.mrb[25].mxu0 }
 0x4a2   :  { %v3847_v7 = vpop.f32.mrb[26].mxu0 }
 0x4a3   :  { %v8874_v2 = vpop.f32.mrb[27].mxu0  ;;  %v4243_v23 = vpop.f32.mrb[32].mxu1 }
 0x4a4   :  { %v8977_v37 = vpop.f32.mrb[33].mxu1  ;;  %v13149_v2 = vld [vmem:[#allocation3_spill] sm:$0xff] }
 0x4a5   :  { %9088 = vmatmul.mubr.msk.bf16.gmra.mrb[132].mxu0 %vm33_vm0, %v4363_v31  ;;  %v4245_v27 = vpop.f32.mrb[34].mxu1 }
 0x4a6   :  { %9091 = vmatprep.mubr.msk.bf16.mxu0 %vm9790_vm1, %v13126_v45  ;;  %v8978_v44 = vpop.f32.mrb[35].mxu1 }
 0x4a8   :  { %v3851_v29 = vpop.f32.mrb[28].mxu0 }
 0x4a9   :  { %v8877_v57 = vpop.f32.mrb[29].mxu0 }
 0x4aa   :  { %v3853_v30 = vpop.f32.mrb[30].mxu0 }
 0x4ab   :  { %v8878_v50 = vpop.f32.mrb[31].mxu0  ;;  %v4249_v4 = vpop.f32.mrb[36].mxu1 }
 0x4ac   :  { %v8981_v35 = vpop.f32.mrb[37].mxu1 }
 0x4ad   :  { %9092 = vmatmul.mubr.msk.bf16.gmra.mrb[136].mxu0 %vm33_vm0, %v4364_v26  ;;  %v4251_v61 = vpop.f32.mrb[38].mxu1 }
 0x4ae   :  { %9203 = vmatprep.mubr.msk.bf16.mxu0 %vm9790_vm1, %v13126_v45  ;;  %v8982_v12 = vpop.f32.mrb[39].mxu1 }
 0x4b0   :  { %v3857_v52 = vpop.f32.mrb[32].mxu0 }
 0x4b1   :  { %v8881_v51 = vpop.f32.mrb[33].mxu0 }
 0x4b2   :  { %v3859_v21 = vpop.f32.mrb[34].mxu0 }
 0x4b3   :  { %v8882_v17 = vpop.f32.mrb[35].mxu0  ;;  %v4255_v31 = vpop.f32.mrb[40].mxu1 }
 0x4b4   :  { %v8985_v7 = vpop.f32.mrb[41].mxu1 }
 0x4b5   :  { %9204 = vmatmul.mubr.msk.bf16.vlgmr.msra.gmra.mrb[140].mxu0 %vm33_vm0, %v13149_v2  ;;  %v4257_v23 = vpop.f32.mrb[42].mxu1 }
 0x4b6   :  { %9207 = vmatprep.mubr.msk.bf16.mxu0 %vm9790_vm1, %v13126_v45  ;;  %v8986_v37 = vpop.f32.mrb[43].mxu1 }
 0x4b8   :  { %v3863_v27 = vpop.f32.mrb[36].mxu0 }
 0x4b9   :  { %v8885_v44 = vpop.f32.mrb[37].mxu0 }
 0x4ba   :  { %v3865_v29 = vpop.f32.mrb[38].mxu0 }
 0x4bb   :  { %v8886_v57 = vpop.f32.mrb[39].mxu0  ;;  %v4261_v26 = vpop.f32.mrb[44].mxu1  ;;  %v9652_v29 = vld [vmem:[%s13111_s5 + $0x30] sm:$0xff]  }
 0x4bc   :  { %v8989_v30 = vpop.f32.mrb[45].mxu1  ;;  %9308 = vmatpush3.bf16.msra.mxu1 %v9652_v29 }
 0x4bd   :  { %9208 = vmatmul.mubr.msk.bf16.gmra.mrb[144].mxu0 %vm33_vm0, %v12013_v55  ;;  %v4263_v50 = vpop.f32.mrb[46].mxu1  ;;  %9309 = vmatprep.subr.bf16.mxu1 %v13126_v45 }
 0x4be   :  { %v8990_v4 = vpop.f32.mrb[47].mxu1  ;;  %9211 = vmatprep.mubr.msk.bf16.mxu0 %vm9790_vm1, %v13126_v45 }
 0x4c0   :  { %v4490_v35 = vpop.f32.mrb[40].mxu0 }
 0x4c1   :  { %v8997_v61 = vpop.f32.mrb[41].mxu0 }
 0x4c2   :  { %v4492_v12 = vpop.f32.mrb[42].mxu0 }
 0x4c3   :  { %v8998_v52 = vpop.f32.mrb[43].mxu0  ;;  %v4888_v51 = vpop.f32.mrb[48].mxu1 }
 0x4c4   :  { %v9101_v21 = vpop.f32.mrb[49].mxu1 }
 0x4c5   :  { %9212 = vmatmul.mubr.msk.bf16.gmra.mrb[148].mxu0 %vm33_vm0, %v12022_v58  ;;  %v4890_v17 = vpop.f32.mrb[50].mxu1 }
 0x4c6   :  { %v9102_v31 = vpop.f32.mrb[51].mxu1  ;;  %9215 = vmatprep.mubr.msk.bf16.mxu0 %vm9790_vm1, %v13126_v45 }
 0x4c8   :  { %v4496_v55 = vpop.f32.mrb[44].mxu0 }
 0x4c9   :  { %v9001_v7 = vpop.f32.mrb[45].mxu0 }
 0x4ca   :  { %v4498_v2 = vpop.f32.mrb[46].mxu0 }
 0x4cb   :  { %v9002_v23 = vpop.f32.mrb[47].mxu0  ;;  %v4894_v37 = vpop.f32.mrb[52].mxu1 }
 0x4cc   :  { %v9105_v27 = vpop.f32.mrb[53].mxu1 }
 0x4cd   :  { %9216 = vmatmul.mubr.msk.bf16.gmra.mrb[152].mxu0 %vm33_vm0, %v12031_v6  ;;  %v4896_v44 = vpop.f32.mrb[54].mxu1 }
 0x4ce   :  { %v9106_v58 = vpop.f32.mrb[55].mxu1  ;;  %9219 = vmatprep.mubr.msk.bf16.mxu0 %vm9790_vm1, %v13126_v45 }
 0x4d0   :  { %v4502_v57 = vpop.f32.mrb[48].mxu0 }
 0x4d1   :  { %v9005_v26 = vpop.f32.mrb[49].mxu0 }
 0x4d2   :  { %v4504_v30 = vpop.f32.mrb[50].mxu0 }
 0x4d3   :  { %v9006_v50 = vpop.f32.mrb[51].mxu0  ;;  %v4900_v4 = vpop.f32.mrb[56].mxu1 }
 0x4d4   :  { %v9109_v35 = vpop.f32.mrb[57].mxu1 }
 0x4d5   :  { %9220 = vmatmul.mubr.msk.bf16.gmra.mrb[156].mxu0 %vm33_vm0, %v12040_v28  ;;  %v4902_v6 = vpop.f32.mrb[58].mxu1 }
 0x4d6   :  { %v9110_v61 = vpop.f32.mrb[59].mxu1  ;;  %9223 = vmatprep.mubr.msk.bf16.mxu0 %vm9790_vm1, %v13126_v45 }
 0x4d8   :  { %v4508_v12 = vpop.f32.mrb[52].mxu0 }
 0x4d9   :  { %v9009_v52 = vpop.f32.mrb[53].mxu0 }
 0x4da   :  { %v4510_v51 = vpop.f32.mrb[54].mxu0 }
 0x4db   :  { %v9010_v21 = vpop.f32.mrb[55].mxu0  ;;  %v4906_v17 = vpop.f32.mrb[60].mxu1 }
 0x4dc   :  { %v9113_v31 = vpop.f32.mrb[61].mxu1 }
 0x4dd   :  { %9224 = vmatmul.mubr.msk.bf16.gmra.mrb[160].mxu0 %vm33_vm0, %v12051_v47  ;;  %v4908_v55 = vpop.f32.mrb[62].mxu1 }
 0x4de   :  { %v9114_v7 = vpop.f32.mrb[63].mxu1  ;;  %9227 = vmatprep.mubr.msk.bf16.mxu0 %vm9790_vm1, %v13126_v45 }
 0x4e0   :  { %v4514_v28 = vpop.f32.mrb[56].mxu0 }
 0x4e1   :  { %v4664_v2 = vadd.f32 %v4514_v28, %v12053_v3  ;;  %v9013_v23 = vpop.f32.mrb[57].mxu0 }
 0x4e2   :  { %v4517_v37 = vpop.f32.mrb[58].mxu0 }
 0x4e3   :  { %v4665_v27 = vadd.f32 %v4517_v37, %v12059_v53  ;;  %v9014_v44 = vpop.f32.mrb[59].mxu0  ;;  %v4912_v29 = vpop.f32.mrb[64].mxu1 }
 0x4e4   :  { %v12321_v58 = vadd.f32 %v4912_v29, %v4664_v2  ;;  %v9117_v57 = vpop.f32.mrb[65].mxu1 }
 0x4e5   :  { %9228 = vmatmul.mubr.msk.bf16.gmra.mrb[164].mxu0 %vm33_vm0, %v12063_v39  ;;  %v4915_v47 = vpop.f32.mrb[66].mxu1 }
 0x4e6   :  { %v12325_v26 = vadd.f32 %v4915_v47, %v4665_v27  ;;  %v9118_v30 = vpop.f32.mrb[67].mxu1  ;;  %9231 = vmatprep.mubr.msk.bf16.mxu0 %vm9790_vm1, %v13126_v45 }
 0x4e8   :  { %v4522_v3 = vpop.f32.mrb[60].mxu0 }
 0x4e9   :  { %v4666_v50 = vadd.f32 %v4522_v3, %v12068_v1  ;;  %v9017_v4 = vpop.f32.mrb[61].mxu0 }
 0x4ea   :  { %v4525_v53 = vpop.f32.mrb[62].mxu0 }
 0x4eb   :  { %v4667_v35 = vadd.f32 %v4525_v53, %v12072_v8  ;;  %v9018_v6 = vpop.f32.mrb[63].mxu0  ;;  %v4920_v61 = vpop.f32.mrb[68].mxu1 }
 0x4ec   :  { %v12331_v12 = vadd.f32 %v4920_v61, %v4666_v50  ;;  %v9121_v52 = vpop.f32.mrb[69].mxu1 }
 0x4ed   :  { %9232 = vmatmul.mubr.msk.bf16.gmra.mrb[168].mxu0 %vm33_vm0, %v12080_v13  ;;  %v4923_v39 = vpop.f32.mrb[70].mxu1 }
 0x4ee   :  { %v12335_v51 = vadd.f32 %v4923_v39, %v4667_v35  ;;  %v9122_v21 = vpop.f32.mrb[71].mxu1  ;;  %9235 = vmatprep.mubr.msk.bf16.mxu0 %vm9790_vm1, %v13126_v45 }
 0x4f0   :  { %v4530_v1 = vpop.f32.mrb[64].mxu0 }
 0x4f1   :  { %v4668_v17 = vadd.f32 %v4530_v1, %v12082_v18  ;;  %v9021_v31 = vpop.f32.mrb[65].mxu0 }
 0x4f2   :  { %v4533_v8 = vpop.f32.mrb[66].mxu0 }
 0x4f3   :  { %v9022_v55 = vpop.f32.mrb[67].mxu0  ;;  %v4928_v7 = vpop.f32.mrb[72].mxu1 }
 0x4f4   :  { %v12340_v28 = vadd.f32 %v4928_v7, %v4668_v17  ;;  %v9125_v2 = vpop.f32.mrb[73].mxu1  ;;  %v12368_v7 = vld [vmem:[#allocation2 + $0x1c8] sm:$0xff] }
 0x4f5   :  { %9236 = vmatmul.mubr.msk.bf16.gmra.mrb[172].mxu0 %vm33_vm0, %v12091_v9  ;;  %v4931_v13 = vpop.f32.mrb[74].mxu1 }
 0x4f6   :  { %v9126_v23 = vpop.f32.mrb[75].mxu1  ;;  %9239 = vmatprep.mubr.msk.bf16.mxu0 %vm9790_vm1, %v13126_v45 }
 0x4f8   :  { %v4537_v37 = vpop.f32.mrb[68].mxu0 }
 0x4f9   :  { %v9025_v27 = vpop.f32.mrb[69].mxu0 }
 0x4fa   :  { %v4539_v44 = vpop.f32.mrb[70].mxu0  ;;  %v4759_v27 = vpack.c.bf16 %v12255_v43, %v12368_v7 }
 0x4fb   :  { %v4669_v18 = vadd.f32 %v4539_v44, %v12096_v46  ;;  %v9026_v29 = vpop.f32.mrb[71].mxu0  ;;  %v4935_v57 = vpop.f32.mrb[76].mxu1  ;;  %v9653_v46 = vld [vmem:[%s13111_s5 + $0x38] sm:$0xff]  }
 0x4fc   :  { %v9129_v47 = vpop.f32.mrb[77].mxu1  ;;  %9310 = vmatpush3.bf16.msra.mxu1 %v9653_v46  ;;  %v4760_v46 = vpack.c.bf16 %v12268_v24, %v12261_v34 }
 0x4fd   :  { %9240 = vmatmul.mubr.msk.bf16.gmra.mrb[176].mxu0 %vm33_vm0, %v12104_v38  ;;  %v4937_v30 = vpop.f32.mrb[78].mxu1  ;;  %9315 = vmatprep.subr.bf16.mxu1 %v13126_v45  ;;  %v5112_v47 = vld [vmem:[#allocation2 + $0x148] sm:$0xff] }
 0x4fe   :  { %v12349_v3 = vadd.f32 %v4937_v30, %v4669_v18  ;;  %v9130_v9 = vpop.f32.mrb[79].mxu1  ;;  %9243 = vmatprep.mubr.msk.bf16.mxu0 %vm9790_vm1, %v13126_v45  ;;  %9184 = vmatmul.mubr.msk.bf16.gmra.mrb[132].mxu1 %vm33_vm0, %v4759_v27 }
 0x4ff   :  { %9187 = vmatprep.mubr.msk.bf16.mxu1 %vm9790_vm1, %v13126_v45  ;;  %v5111_v9 = vld [vmem:[#allocation2 + $0x140] sm:$0xff] }
 0x500   :  { %v4544_v50 = vpop.f32.mrb[72].mxu0 }
 0x501   :  { %v4670_v4 = vadd.f32 %v4544_v50, %v12107_v60  ;;  %v9029_v53 = vpop.f32.mrb[73].mxu0 }
 0x502   :  { %v4547_v35 = vpop.f32.mrb[74].mxu0 }
 0x503   :  { %v4671_v6 = vadd.f32 %v4547_v35, %v12111_v11  ;;  %v9030_v61 = vpop.f32.mrb[75].mxu0  ;;  %v4942_v38 = vpop.f32.mrb[80].mxu1  ;;  %v5110_v11 = vld [vmem:[#allocation2 + $0x138] sm:$0xff] }
 0x504   :  { %v12358_v52 = vadd.f32 %v4942_v38, %v4670_v4  ;;  %v9133_v39 = vpop.f32.mrb[81].mxu1  ;;  %v5148_v4 = vpack.c.bf16 %v5112_v47, %v5111_v9  ;;  %v5113_v38 = vld [vmem:[#allocation2 + $0x150] sm:$0xff] }
 0x505   :  { %9244 = vmatmul.mubr.msk.bf16.gmra.mrb[180].mxu0 %vm33_vm0, %v12119_v48  ;;  %v4945_v60 = vpop.f32.mrb[82].mxu1  ;;  %v9785_v48 = vld [vmem:[#allocation2 + $0x130] sm:$0xff]  ;;  %v5114_v39 = vld [vmem:[#allocation2 + $0x158] sm:$0xff] }
 0x506   :  { %v12363_v21 = vadd.f32 %v4945_v60, %v4671_v6  ;;  %v9134_v1 = vpop.f32.mrb[83].mxu1  ;;  %9247 = vmatprep.mubr.msk.bf16.mxu0 %vm9790_vm1, %v13126_v45  ;;  %v5147_v37 = vpack.c.bf16 %v5110_v11, %v9785_v48  ;;  %9188 = vmatmul.mubr.msk.bf16.gmra.mrb[136].mxu1 %vm33_vm0, %v4760_v46  ;;  %v5149_v34 = vpack.c.bf16 %v5114_v39, %v5113_v38  ;;  %v5118_v46 = vld [vmem:[#allocation2 + $0x178] sm:$0xff]  ;;  %v5117_v38 = vld [vmem:[#allocation2 + $0x170] sm:$0xff] }
 0x507   :  { %9191 = vmatprep.mubr.msk.bf16.mxu1 %vm9790_vm1, %v13126_v45 }
 0x508   :  { %v4552_v17 = vpop.f32.mrb[76].mxu0 }
 0x509   :  { %v4672_v31 = vadd.f32 %v4552_v17, %v12122_v33  ;;  %v9033_v8 = vpop.f32.mrb[77].mxu0 }
 0x50a   :  { %v4555_v55 = vpop.f32.mrb[78].mxu0 }
 0x50b   :  { %v4673_v2 = vadd.f32 %v4555_v55, %v12126_v32  ;;  %v9034_v13 = vpop.f32.mrb[79].mxu0  ;;  %v4950_v23 = vpop.f32.mrb[84].mxu1  ;;  %v4761_v55 = vpack.c.bf16 %v12284_v15, %v12276_v49 }
 0x50c   :  { %v12373_v44 = vadd.f32 %v4950_v23, %v4672_v31  ;;  %v9137_v18 = vpop.f32.mrb[85].mxu1 }
 0x50d   :  { %9248 = vmatmul.mubr.msk.bf16.gmra.mrb[184].mxu0 %vm33_vm0, %v5147_v37  ;;  %v4953_v29 = vpop.f32.mrb[86].mxu1  ;;  %v5116_v37 = vld [vmem:[#allocation2 + $0x168] sm:$0xff]  ;;  %v5115_v18 = vld [vmem:[#allocation2 + $0x160] sm:$0xff] }
 0x50e   :  { %v12377_v33 = vadd.f32 %v4953_v29, %v4673_v2  ;;  %v9138_v57 = vpop.f32.mrb[87].mxu1  ;;  %9251 = vmatprep.mubr.msk.bf16.mxu0 %vm9790_vm1, %v13126_v45  ;;  %9192 = vmatmul.mubr.msk.bf16.gmra.mrb[140].mxu1 %vm33_vm0, %v4761_v55  ;;  %v5150_v47 = vpack.c.bf16 %v5116_v37, %v5115_v18 }
 0x50f   :  { %9195 = vmatprep.mubr.msk.bf16.mxu1 %vm9790_vm1, %v13126_v45 }
 0x510   :  { %v4560_v32 = vpop.f32.mrb[80].mxu0 }
 0x511   :  { %v9037_v43 = vpop.f32.mrb[81].mxu0 }
 0x512   :  { %v4562_v30 = vpop.f32.mrb[82].mxu0  ;;  %v12407_v43 = vld [vmem:[#allocation2 + $0x1f8] sm:$0xff] }
 0x513   :  { %v9038_v50 = vpop.f32.mrb[83].mxu0  ;;  %v4958_v53 = vpop.f32.mrb[88].mxu1 }
 0x514   :  { %v9141_v35 = vpop.f32.mrb[89].mxu1  ;;  %v4762_v50 = vpack.c.bf16 %v12407_v43, %v12407_v43 }
 0x515   :  { %9252 = vmatmul.mubr.msk.bf16.gmra.mrb[188].mxu0 %vm33_vm0, %v5148_v4  ;;  %v4960_v6 = vpop.f32.mrb[90].mxu1 }
 0x516   :  { %v9142_v61 = vpop.f32.mrb[91].mxu1  ;;  %9255 = vmatprep.mubr.msk.bf16.mxu0 %vm9790_vm1, %v13126_v45  ;;  %9196 = vmatmul.mubr.msk.bf16.gmra.mrb[144].mxu1 %vm33_vm0, %v4762_v50 }
 0x517   :  { %9311 = vmatprep.mubr.msk.bf16.mxu1 %vm9790_vm1, %v13126_v45 }
 0x518   :  { %v4566_v60 = vpop.f32.mrb[84].mxu0 }
 0x519   :  { %v4674_v1 = vadd.f32 %v4566_v60, %v12143_v10  ;;  %v9041_v17 = vpop.f32.mrb[85].mxu0 }
 0x51a   :  { %v4569_v24 = vpop.f32.mrb[86].mxu0 }
 0x51b   :  { %v4675_v11 = vadd.f32 %v4569_v24, %v12147_v56  ;;  %v9042_v31 = vpop.f32.mrb[87].mxu0  ;;  %v4964_v8 = vpop.f32.mrb[92].mxu1 }
 0x51c   :  { %v12395_v2 = vadd.f32 %v4964_v8, %v4674_v1  ;;  %v9145_v13 = vpop.f32.mrb[93].mxu1  ;;  %v5151_v1 = vpack.c.bf16 %v5118_v46, %v5117_v38  ;;  %v5119_v8 = vld [vmem:[#allocation2 + $0x180] sm:$0xff] }
 0x51d   :  { %9256 = vmatmul.mubr.msk.bf16.gmra.mrb[192].mxu0 %vm33_vm0, %v5149_v34  ;;  %v4967_v23 = vpop.f32.mrb[94].mxu1 }
 0x51e   :  { %v12399_v48 = vadd.f32 %v4967_v23, %v4675_v11  ;;  %v9146_v10 = vpop.f32.mrb[95].mxu1  ;;  %9259 = vmatprep.mubr.msk.bf16.mxu0 %vm9790_vm1, %v13126_v45 }
 0x520   :  { %v4574_v56 = vpop.f32.mrb[88].mxu0 }
 0x521   :  { %v4676_v49 = vadd.f32 %v4574_v56, %v12157_v16  ;;  %v9045_v15 = vpop.f32.mrb[89].mxu0  ;;  %v9786_v56 = vld [vmem:[#allocation2 + $0x188] sm:$0xff] }
 0x522   :  { %v4577_v27 = vpop.f32.mrb[90].mxu0  ;;  %v5152_v37 = vpack.c.bf16 %v9786_v56, %v5119_v8 }
 0x523   :  { %v4677_v29 = vadd.f32 %v4577_v27, %v12161_v36  ;;  %v9046_v57 = vpop.f32.mrb[91].mxu0  ;;  %v4972_v32 = vpop.f32.mrb[96].mxu1 }
 0x524   :  { %v12409_v30 = vadd.f32 %v4972_v32, %v4676_v49  ;;  %v9149_v9 = vpop.f32.mrb[97].mxu1 }
 0x525   :  { %9260 = vmatmul.mubr.msk.bf16.gmra.mrb[196].mxu0 %vm33_vm0, %v5150_v47  ;;  %v4975_v4 = vpop.f32.mrb[98].mxu1 }
 0x526   :  { %v12414_v16 = vadd.f32 %v4975_v4, %v4677_v29  ;;  %v9150_v53 = vpop.f32.mrb[99].mxu1  ;;  %9263 = vmatprep.mubr.msk.bf16.mxu0 %vm9790_vm1, %v13126_v45 }
 0x528   :  { %v4582_v36 = vpop.f32.mrb[92].mxu0 }
 0x529   :  { %v4678_v35 = vadd.f32 %v4582_v36, %v12170_v54  ;;  %v9049_v6 = vpop.f32.mrb[93].mxu0 }
 0x52a   :  { %v4585_v61 = vpop.f32.mrb[94].mxu0 }
 0x52b   :  { %v9050_v39 = vpop.f32.mrb[95].mxu0  ;;  %v4980_v60 = vpop.f32.mrb[100].mxu1 }
 0x52c   :  { %v12422_v17 = vadd.f32 %v4980_v60, %v4678_v35  ;;  %v9153_v34 = vpop.f32.mrb[101].mxu1 }
 0x52d   :  { %9264 = vmatmul.mubr.msk.bf16.gmra.mrb[200].mxu0 %vm33_vm0, %v5151_v1  ;;  %v4983_v24 = vpop.f32.mrb[102].mxu1 }
 0x52e   :  { %v9154_v11 = vpop.f32.mrb[103].mxu1  ;;  %9267 = vmatprep.mubr.msk.bf16.mxu0 %vm9790_vm1, %v13126_v45 }
 0x530   :  { %v4589_v31 = vpop.f32.mrb[96].mxu0 }
 0x531   :  { %v9053_v55 = vpop.f32.mrb[97].mxu0 }
 0x532   :  { %v4591_v54 = vpop.f32.mrb[98].mxu0 }
 0x533   :  { %v4679_v13 = vadd.f32 %v4591_v54, %v12186_v19  ;;  %v9054_v23 = vpop.f32.mrb[99].mxu0  ;;  %v4987_v10 = vpop.f32.mrb[104].mxu1 }
 0x534   :  { %v9157_v49 = vpop.f32.mrb[105].mxu1 }
 0x535   :  { %9268 = vmatmul.mubr.msk.bf16.gmra.mrb[204].mxu0 %vm33_vm0, %v5152_v37  ;;  %v4989_v15 = vpop.f32.mrb[106].mxu1 }
 0x536   :  { %v12429_v27 = vadd.f32 %v4989_v15, %v4679_v13  ;;  %v9158_v18 = vpop.f32.mrb[107].mxu1  ;;  %9271 = vmatprep.mubr.msk.bf16.mxu0 %vm9790_vm1, %v13126_v45 }
 0x538   :  { %v4596_v29 = vpop.f32.mrb[100].mxu0 }
 0x539   :  { %v4680_v57 = vadd.f32 %v4596_v29, %v12198_v59  ;;  %v9057_v32 = vpop.f32.mrb[101].mxu0  ;;  %v9656_v59 = vld [vmem:[%s13111_s5 + $0x1a0] sm:$0xff]  }
 0x53a   :  { %v4599_v47 = vpop.f32.mrb[102].mxu0  ;;  %9460 = vmatpush3.bf16.msra.mxu0 %v9656_v59 }
 0x53b   :  { %v4681_v19 = vadd.f32 %v4599_v47, %v12201_v25  ;;  %v9058_v9 = vpop.f32.mrb[103].mxu0  ;;  %v4994_v50 = vpop.f32.mrb[108].mxu1  ;;  %9461 = vmatprep.subr.bf16.mxu0 %v13126_v45 }
 0x53c   :  { %v12435_v4 = vadd.f32 %v4994_v50, %v4680_v57  ;;  %v9161_v53 = vpop.f32.mrb[109].mxu1 }
 0x53d   :  { %9272 = vmatmul.mubr.msk.bf16.gmra.mrb[208].mxu0 %vm33_vm0, %v12207_v62  ;;  %v4997_v36 = vpop.f32.mrb[110].mxu1  ;;  %v5130_v53 = vld [vmem:[#allocation2 + $0x1d8] sm:$0xff] }
 0x53e   :  { %v12439_v46 = vadd.f32 %v4997_v36, %v4681_v19  ;;  %v9162_v35 = vpop.f32.mrb[111].mxu1  ;;  %9275 = vmatprep.mubr.msk.bf16.mxu0 %vm9790_vm1, %v13126_v45 }
 0x540   :  { %v4604_v25 = vpop.f32.mrb[104].mxu0 }
 0x541   :  { %v4682_v6 = vadd.f32 %v4604_v25, %v12212_v14  ;;  %v9061_v61 = vpop.f32.mrb[105].mxu0 }
 0x542   :  { %v4607_v38 = vpop.f32.mrb[106].mxu0 }
 0x543   :  { %v4683_v62 = vadd.f32 %v4607_v38, %v12216_v63  ;;  %v9062_v39 = vpop.f32.mrb[107].mxu0  ;;  %v5002_v60 = vpop.f32.mrb[112].mxu1 }
 0x544   :  { %v12449_v1 = vadd.f32 %v5002_v60, %v4682_v6  ;;  %v9165_v34 = vpop.f32.mrb[113].mxu1 }
 0x545   :  { %9276 = vmatmul.mubr.msk.bf16.gmra.mrb[212].mxu0 %vm33_vm0, %v12221_v42  ;;  %v5005_v24 = vpop.f32.mrb[114].mxu1  ;;  %v5127_v42 = vld [vmem:[#allocation2 + $0x1c0] sm:$0xff] }
 0x546   :  { %v12453_v11 = vadd.f32 %v5005_v24, %v4683_v62  ;;  %v9166_v31 = vpop.f32.mrb[115].mxu1  ;;  %9279 = vmatprep.mubr.msk.bf16.mxu0 %vm9790_vm1, %v13126_v45  ;;  %v5156_v15 = vpack.c.bf16 %v12368_v7, %v5127_v42  ;;  %v5132_v24 = vld [vmem:[#allocation2 + $0x1e8] sm:$0xff]  ;;  %v5133_v42 = vld [vmem:[#allocation2 + $0x1f0] sm:$0xff] }
 0x548   :  { %v4612_v14 = vpop.f32.mrb[108].mxu0 }
 0x549   :  { %v9065_v8 = vpop.f32.mrb[109].mxu0 }
 0x54a   :  { %v4614_v55 = vpop.f32.mrb[110].mxu0 }
 0x54b   :  { %v9066_v54 = vpop.f32.mrb[111].mxu0  ;;  %v5010_v63 = vpop.f32.mrb[116].mxu1 }
 0x54c   :  { %v9169_v13 = vpop.f32.mrb[117].mxu1 }
 0x54d   :  { %9280 = vmatmul.mubr.msk.bf16.gmra.mrb[216].mxu0 %vm33_vm0, %v12231_v20  ;;  %v5012_v23 = vpop.f32.mrb[118].mxu1 }
 0x54e   :  { %v9170_v10 = vpop.f32.mrb[119].mxu1  ;;  %9283 = vmatprep.mubr.msk.bf16.mxu0 %vm9790_vm1, %v13126_v45 }
 0x550   :  { %v4618_v56 = vpop.f32.mrb[112].mxu0 }
 0x551   :  { %v4684_v37 = vadd.f32 %v4618_v56, %v12236_v22  ;;  %v9069_v49 = vpop.f32.mrb[113].mxu0  ;;  %v5129_v22 = vld [vmem:[#allocation2 + $0x1d0] sm:$0xff] }
 0x552   :  { %v4621_v18 = vpop.f32.mrb[114].mxu0  ;;  %v5157_v35 = vpack.c.bf16 %v5130_v53, %v5129_v22 }
 0x553   :  { %v4685_v29 = vadd.f32 %v4621_v18, %v12241_v40  ;;  %v9070_v57 = vpop.f32.mrb[115].mxu0  ;;  %v5016_v32 = vpop.f32.mrb[120].mxu1 }
 0x554   :  { %v12464_v47 = vadd.f32 %v5016_v32, %v4684_v37  ;;  %v9173_v20 = vpop.f32.mrb[121].mxu1  ;;  %v9671_v57 = vld [vmem:[%s13111_s5 + $0x1b0] sm:$0xff]   ;;  %v5135_v32 = vld [vmem:[#allocation2 + $0x200] sm:$0xff] }
 0x555   :  { %9284 = vmatmul.mubr.msk.bf16.gmra.mrb[220].mxu0 %vm33_vm0, %v5156_v15  ;;  %v5019_v19 = vpop.f32.mrb[122].mxu1  ;;  %v5159_v15 = vpack.c.bf16 %v12407_v43, %v5133_v42  ;;  %v9673_v43 = vld [vmem:[%s13111_s5 + $0x1b8] sm:$0xff]  }
 0x556   :  { %v12467_v9 = vadd.f32 %v5019_v19, %v4685_v29  ;;  %v9174_v50 = vpop.f32.mrb[123].mxu1  ;;  %9287 = vmatprep.mubr.msk.bf16.mxu0 %vm9790_vm1, %v13126_v45 }
 0x557   :  { %v5160_v50 = vpack.c.bf16 %v5135_v32, %v5135_v32 }
 0x558   :  { %v4626_v7 = vpop.f32.mrb[116].mxu0 }
 0x559   :  { %v4686_v36 = vadd.f32 %v4626_v7, %v12252_v0  ;;  %v9073_v40 = vpop.f32.mrb[117].mxu0  ;;  %v5131_v0 = vld [vmem:[#allocation2 + $0x1e0] sm:$0xff] }
 0x55a   :  { %v4629_v59 = vpop.f32.mrb[118].mxu0  ;;  %v5158_v8 = vpack.c.bf16 %v5132_v24, %v5131_v0 }
 0x55b   :  { %v4687_v25 = vadd.f32 %v4629_v59, %v12257_v41  ;;  %v9074_v6 = vpop.f32.mrb[119].mxu0  ;;  %v5024_v61 = vpop.f32.mrb[124].mxu1 }
 0x55c   :  { %v12473_v38 = vadd.f32 %v5024_v61, %v4686_v36  ;;  %v9177_v62 = vpop.f32.mrb[125].mxu1 }
 0x55d   :  { %v5027_v39 = vpop.f32.mrb[126].mxu1  ;;  %9288 = vmatmul.mubr.msk.bf16.gmra.mrb[224].mxu0 %vm33_vm0, %v5157_v35 }
 0x55e   :  { %v12476_v60 = vadd.f32 %v5027_v39, %v4687_v25  ;;  %v9178_v34 = vpop.f32.mrb[127].mxu1  ;;  %9291 = vmatprep.mubr.msk.bf16.mxu0 %vm9790_vm1, %v13126_v45 }
 0x560   :  { %v4634_v31 = vpop.f32.mrb[120].mxu0 }
 0x561   :  { %v4688_v14 = vadd.f32 %v4634_v31, %v12266_v5  ;;  %v9077_v41 = vpop.f32.mrb[121].mxu0  ;;  %v9669_v5 = vld [vmem:[%s13111_s5 + $0x1a8] sm:$0xff]  }
 0x562   :  { %v4637_v55 = vpop.f32.mrb[122].mxu0  ;;  %9462 = vmatpush3.bf16.msra.mxu0 %v9669_v5 }
 0x563   :  { %v9078_v54 = vpop.f32.mrb[123].mxu0  ;;  %v5032_v63 = vpop.f32.mrb[128].mxu1  ;;  %9463 = vmatprep.subr.bf16.mxu0 %v13126_v45 }
 0x564   :  { %v12481_v13 = vadd.f32 %v5032_v63, %v4688_v14  ;;  %v9181_v23 = vpop.f32.mrb[129].mxu1 }
 0x565   :  { %9292 = vmatmul.mubr.msk.bf16.gmra.mrb[228].mxu0 %vm33_vm0, %v5158_v8  ;;  %v5035_v10 = vpop.f32.mrb[130].mxu1 }
 0x566   :  { %9295 = vmatprep.mubr.msk.bf16.mxu0 %vm9790_vm1, %v13126_v45  ;;  %v9182_v56 = vpop.f32.mrb[131].mxu1  ;;  %9464 = vmatpush3.bf16.msra.mxu0 %v9671_v57  ;;  %v12510_v57 = vld [vmem:[%s13112_s4] ss:$0 sm:$0xff] }
 0x567   :  { %9465 = vmatprep.subr.bf16.mxu0 %v13126_v45 }
 0x568   :  { %v4641_v37 = vpop.f32.mrb[124].mxu0 }
 0x569   :  { %v9081_v49 = vpop.f32.mrb[125].mxu0 }
 0x56a   :  { %v4643_v18 = vpop.f32.mrb[126].mxu0  ;;  %9466 = vmatpush3.bf16.msra.mxu0 %v9673_v43 }
 0x56b   :  { %v9082_v29 = vpop.f32.mrb[127].mxu0  ;;  %9483 = vmatprep.subr.bf16.mxu0 %v13126_v45 }
 0x56d   :  { %9296 = vmatmul.mubr.msk.bf16.gmra.mrb[232].mxu0 %vm33_vm0, %v5159_v15 }
 0x56e   :  { %9299 = vmatprep.mubr.msk.bf16.mxu0 %vm9790_vm1, %v13126_v45 }
 0x570   :  { %v4647_v20 = vpop.f32.mrb[128].mxu0 }
 0x571   :  { %v9085_v19 = vpop.f32.mrb[129].mxu0 }
 0x572   :  { %v4649_v22 = vpop.f32.mrb[130].mxu0  ;;  %v9654_v19 = vld [vmem:[%s13111_s5] sm:$0xff]  }
 0x573   :  { %v9086_v53 = vpop.f32.mrb[131].mxu0 }
 0x575   :  { %9300 = vmatmul.mubr.msk.bf16.gmra.mrb[236].mxu0 %vm33_vm0, %v5160_v50 }
 0x576   :  { %9467 = vmatprep.mubr.msk.bf16.mxu0 %vm9790_vm1, %v13126_v45 }
 0x578   :  { %v4653_v7 = vpop.f32.mrb[132].mxu0 }
 0x579   :  { %v9089_v36 = vpop.f32.mrb[133].mxu0 }
 0x57a   :  { %v4655_v40 = vpop.f32.mrb[134].mxu0  ;;  %v9655_v36 = vld [vmem:[%s13111_s5 + $0x8] sm:$0xff]  }
 0x57b   :  { %v9090_v35 = vpop.f32.mrb[135].mxu0 }
 0x580   :  { %v4659_v59 = vpop.f32.mrb[136].mxu0 }
 0x581   :  { %v9093_v25 = vpop.f32.mrb[137].mxu0 }
 0x582   :  { %v4661_v6 = vpop.f32.mrb[138].mxu0 }
 0x583   :  { %v9094_v61 = vpop.f32.mrb[139].mxu0 }
 0x584   :  { %v9658_v61 = vld [vmem:[%s13111_s5 + $0x18] sm:$0xff]  }
 0x588   :  { %v5286_v62 = vpop.f32.mrb[140].mxu0 }
 0x589   :  { %v9205_v39 = vpop.f32.mrb[141].mxu0 }
 0x58a   :  { %v5288_v34 = vpop.f32.mrb[142].mxu0 }
 0x58b   :  { %v9206_v0 = vpop.f32.mrb[143].mxu0 }
 0x590   :  { %v5292_v24 = vpop.f32.mrb[144].mxu0 }
 0x591   :  { %v9209_v31 = vpop.f32.mrb[145].mxu0 }
 0x592   :  { %v5294_v14 = vpop.f32.mrb[146].mxu0 }
 0x593   :  { %v9210_v41 = vpop.f32.mrb[147].mxu0 }
 0x594   :  { %v9660_v41 = vld [vmem:[%s13111_s5 + $0x48] sm:$0xff]  }
 0x598   :  { %v5298_v8 = vpop.f32.mrb[148].mxu0 }
 0x599   :  { %v9213_v55 = vpop.f32.mrb[149].mxu0 }
 0x59a   :  { %v5300_v54 = vpop.f32.mrb[150].mxu0 }
 0x59b   :  { %v9214_v63 = vpop.f32.mrb[151].mxu0 }
 0x5a0   :  { %v5304_v23 = vpop.f32.mrb[152].mxu0 }
 0x5a1   :  { %v9217_v10 = vpop.f32.mrb[153].mxu0 }
 0x5a2   :  { %v5306_v42 = vpop.f32.mrb[154].mxu0 }
 0x5a3   :  { %v9218_v56 = vpop.f32.mrb[155].mxu0 }
 0x5a4   :  { %v9662_v56 = vld [vmem:[%s13111_s5 + $0x58] sm:$0xff]  }
 0x5a8   :  { %v5310_v5 = vpop.f32.mrb[156].mxu0 }
 0x5a9   :  { %v5460_v37 = vadd.f32 %v5310_v5, %v12321_v58  ;;  %v9221_v49 = vpop.f32.mrb[157].mxu0 }
 0x5aa   :  { %v5313_v15 = vpop.f32.mrb[158].mxu0 }
 0x5ab   :  { %v5461_v18 = vadd.f32 %v5313_v15, %v12325_v26  ;;  %v9222_v29 = vpop.f32.mrb[159].mxu0  ;;  %v5492_v40 = vadd.f32 %v12510_v57, %v5460_v37 }
 0x5ad   :  { %v5493_v32 = vadd.f32 %v12510_v57, %v5461_v18  ;;  %v5517_v62 = vmax.f32 %v5492_v40, 0.0 }
 0x5af   :  { %v5518_v43 = vmax.f32 %v5493_v32, 0.0  ;;  %v5542_v34 = vpack.c.bf16 %v5517_v62, %v5517_v62 }
 0x5b0   :  { %v5318_v20 = vpop.f32.mrb[160].mxu0 }
 0x5b1   :  { %v5551_v58 = vpack.c.bf16 %v5518_v43, %v5518_v43  ;;  %v5462_v50 = vadd.f32 %v5318_v20, %v12331_v12  ;;  %v9225_v22 = vpop.f32.mrb[161].mxu0  ;;  %v9664_v43 = vld [vmem:[%s13111_s5 + $0x68] sm:$0xff]  }
 0x5b2   :  { %v5321_v26 = vpop.f32.mrb[162].mxu0  ;;  %v9666_v22 = vld [vmem:[%s13111_s5 + $0x78] sm:$0xff]  }
 0x5b3   :  { %v12518_v53 = vadd.f32 %v5321_v26, %v12335_v51  ;;  %v9226_v7 = vpop.f32.mrb[163].mxu0  ;;  %9312 = vmatmul.mubr.msk.bf16.vlgmr.msra.gmra.mrb[148].mxu1 %vm5584_vm2, %v5551_v58  ;;  %v9657_v51 = vld [vmem:[%s13111_s5 + $0x10] sm:$0xff]   ;;  %v5494_v55 = vadd.f32 %v12510_v57, %v5462_v50 }
 0x5b4   :  { %9316 = vmatpush3.bf16.msra.mxu1 %v9654_v19  ;;  %9323 = vmatprep.mubr.msk.bf16.mxu1 %vm9790_vm1, %v13126_v45 }
 0x5b5   :  { %9317 = vmatprep.subr.bf16.mxu1 %v13126_v45  ;;  %v5519_v5 = vmax.f32 %v5494_v55, 0.0  ;;  %v5495_v20 = vadd.f32 %v12510_v57, %v12518_v53 }
 0x5b7   :  { %v5695_v49 = vpack.c.bf16 %v5519_v5, %v5519_v5  ;;  %v5520_v26 = vmax.f32 %v5495_v20, 0.0 }
 0x5b8   :  { %9318 = vmatpush3.bf16.msra.mxu1 %v9655_v36  ;;  %v5326_v12 = vpop.f32.mrb[164].mxu0  ;;  %v9667_v36 = vld [vmem:[%s13111_s5 + $0x80] sm:$0xff]  }
 0x5b9   :  { %v12532_v35 = vadd.f32 %v5326_v12, %v12340_v28  ;;  %9319 = vmatprep.subr.bf16.mxu1 %v13126_v45  ;;  %v9229_v59 = vpop.f32.mrb[165].mxu0  ;;  %v9659_v28 = vld [vmem:[%s13111_s5 + $0x40] sm:$0xff]   ;;  %v5772_v12 = vpack.c.bf16 %v5520_v26, %v5520_v26  ;;  %v9679_v26 = vld [vmem:[%s13111_s5 + $0x1f0] sm:$0xff]  }
 0x5ba   :  { %v5329_v25 = vpop.f32.mrb[166].mxu0 }
 0x5bb   :  { %v9230_v6 = vpop.f32.mrb[167].mxu0 }
 0x5bc   :  { %9320 = vmatpush3.bf16.msra.mxu1 %v9657_v51 }
 0x5bd   :  { %9321 = vmatprep.subr.bf16.mxu1 %v13126_v45 }
 0x5c0   :  { %9322 = vmatpush3.bf16.msra.mxu1 %v9658_v61  ;;  %v5333_v39 = vpop.f32.mrb[168].mxu0 }
 0x5c1   :  { %v9233_v0 = vpop.f32.mrb[169].mxu0  ;;  %9327 = vmatprep.subr.bf16.mxu1 %v13126_v45 }
 0x5c2   :  { %v5335_v24 = vpop.f32.mrb[170].mxu0  ;;  %v5496_v0 = vadd.f32 %v12510_v57, %v12532_v35 }
 0x5c3   :  { %v12544_v31 = vadd.f32 %v5335_v24, %v12349_v3  ;;  %9324 = vmatmul.mubr.msk.bf16.vlgmr.msra.gmra.mrb[152].mxu1 %vm5584_vm2, %v5542_v34  ;;  %v9234_v14 = vpop.f32.mrb[171].mxu0  ;;  %v9661_v3 = vld [vmem:[%s13111_s5 + $0x50] sm:$0xff]  }
 0x5c4   :  { %9328 = vmatpush3.bf16.msra.mxu1 %v9659_v28  ;;  %9335 = vmatprep.mubr.msk.bf16.mxu1 %vm9790_vm1, %v13126_v45  ;;  %v9668_v28 = vld [vmem:[%s13111_s5 + $0x88] sm:$0xff]  }
 0x5c5   :  { %9329 = vmatprep.subr.bf16.mxu1 %v13126_v45 }
 0x5c8   :  { %9330 = vmatpush3.bf16.msra.mxu1 %v9660_v41  ;;  %v5340_v8 = vpop.f32.mrb[172].mxu0 }
 0x5c9   :  { %v12558_v54 = vadd.f32 %v5340_v8, %v12358_v52  ;;  %v9237_v63 = vpop.f32.mrb[173].mxu0  ;;  %9331 = vmatprep.subr.bf16.mxu1 %v13126_v45  ;;  %v9663_v52 = vld [vmem:[%s13111_s5 + $0x60] sm:$0xff]  }
 0x5ca   :  { %v5343_v23 = vpop.f32.mrb[174].mxu0 }
 0x5cb   :  { %v12562_v10 = vadd.f32 %v5343_v23, %v12363_v21  ;;  %v9238_v42 = vpop.f32.mrb[175].mxu0 }
 0x5cc   :  { %9332 = vmatpush3.bf16.msra.mxu1 %v9661_v3  ;;  %v9672_v42 = vld [vmem:[%s13111_s5 + $0x98] sm:$0xff]  }
 0x5cd   :  { %9333 = vmatprep.subr.bf16.mxu1 %v13126_v45 }
 0x5d0   :  { %9334 = vmatpush3.bf16.msra.mxu1 %v9662_v56  ;;  %v5348_v37 = vpop.f32.mrb[176].mxu0  ;;  %v5521_v56 = vmax.f32 %v5496_v0, 0.0  ;;  %v9683_v0 = vld [vmem:[%s13111_s5 + $0x220] sm:$0xff]  }
 0x5d1   :  { %v12572_v15 = vadd.f32 %v5348_v37, %v12373_v44  ;;  %v9241_v21 = vpop.f32.mrb[177].mxu0  ;;  %9339 = vmatprep.subr.bf16.mxu1 %v13126_v45  ;;  %v5039_v53 = vpop.f32.mrb[132].mxu1  ;;  %v9674_v37 = vld [vmem:[%s13111_s5 + $0xa0] sm:$0xff]  }
 0x5d2   :  { %v5351_v18 = vpop.f32.mrb[178].mxu0  ;;  %v9185_v59 = vpop.f32.mrb[133].mxu1 }
 0x5d3   :  { %v12576_v29 = vadd.f32 %v5351_v18, %v12377_v33  ;;  %9336 = vmatmul.mubr.msk.bf16.vlgmr.msra.gmra.mrb[156].mxu1 %vm5584_vm2, %v5695_v49  ;;  %v9242_v32 = vpop.f32.mrb[179].mxu0  ;;  %v9665_v33 = vld [vmem:[%s13111_s5 + $0x70] sm:$0xff]   ;;  %v5041_v6 = vpop.f32.mrb[134].mxu1  ;;  %v5849_v49 = vpack.c.bf16 %v5521_v56, %v5521_v56 }
 0x5d4   :  { %9340 = vmatpush3.bf16.msra.mxu1 %v9663_v52  ;;  %9347 = vmatprep.mubr.msk.bf16.mxu1 %vm9790_vm1, %v13126_v45  ;;  %v9186_v39 = vpop.f32.mrb[135].mxu1  ;;  %v9686_v56 = vld [vmem:[%s13111_s5 + $0xd0] sm:$0xff]  }
 0x5d5   :  { %9341 = vmatprep.subr.bf16.mxu1 %v13126_v45 }
 0x5d8   :  { %9342 = vmatpush3.bf16.msra.mxu1 %v9664_v43  ;;  %v5356_v44 = vpop.f32.mrb[180].mxu0 }
 0x5d9   :  { %v9245_v19 = vpop.f32.mrb[181].mxu0  ;;  %9343 = vmatprep.subr.bf16.mxu1 %v13126_v45  ;;  %v5045_v34 = vpop.f32.mrb[136].mxu1 }
 0x5da   :  { %v5358_v58 = vpop.f32.mrb[182].mxu0  ;;  %v9189_v41 = vpop.f32.mrb[137].mxu1  ;;  %v9682_v34 = vld [vmem:[%s13111_s5 + $0xc0] sm:$0xff]  }
 0x5db   :  { %v9246_v50 = vpop.f32.mrb[183].mxu0  ;;  %v5047_v3 = vpop.f32.mrb[138].mxu1  ;;  %v9676_v58 = vld [vmem:[%s13111_s5 + $0xa8] sm:$0xff]  }
 0x5dc   :  { %9344 = vmatpush3.bf16.msra.mxu1 %v9665_v33  ;;  %v9190_v23 = vpop.f32.mrb[139].mxu1 }
 0x5dd   :  { %9345 = vmatprep.subr.bf16.mxu1 %v13126_v45 }
 0x5e0   :  { %9346 = vmatpush3.bf16.msra.mxu1 %v9666_v22  ;;  %v5362_v7 = vpop.f32.mrb[184].mxu0  ;;  %v9678_v22 = vld [vmem:[%s13111_s5 + $0xb0] sm:$0xff]  }
 0x5e1   :  { %v12599_v51 = vadd.f32 %v5362_v7, %v12395_v2  ;;  %v9249_v40 = vpop.f32.mrb[185].mxu0  ;;  %9351 = vmatprep.subr.bf16.mxu1 %v13126_v45  ;;  %v5051_v52 = vpop.f32.mrb[140].mxu1  ;;  %v5497_v7 = vadd.f32 %v12510_v57, %v12544_v31  ;;  %v9681_v31 = vld [vmem:[%s13111_s5 + $0x1f8] sm:$0xff]  }
 0x5e2   :  { %v5365_v25 = vpop.f32.mrb[186].mxu0  ;;  %v9193_v43 = vpop.f32.mrb[141].mxu1 }
 0x5e3   :  { %v12603_v61 = vadd.f32 %v5365_v25, %v12399_v48  ;;  %9348 = vmatmul.mubr.msk.bf16.vlgmr.msra.gmra.mrb[160].mxu1 %vm5584_vm2, %v5772_v12  ;;  %v9250_v62 = vpop.f32.mrb[187].mxu0  ;;  %v9670_v48 = vld [vmem:[%s13111_s5 + $0x90] sm:$0xff]   ;;  %v5053_v33 = vpop.f32.mrb[142].mxu1 }
 0x5e4   :  { %9352 = vmatpush3.bf16.msra.mxu1 %v9667_v36  ;;  %9359 = vmatprep.mubr.msk.bf16.mxu1 %vm9790_vm1, %v13126_v45  ;;  %v9194_v19 = vpop.f32.mrb[143].mxu1  ;;  %v9680_v62 = vld [vmem:[%s13111_s5 + $0xb8] sm:$0xff]  }
 0x5e5   :  { %9353 = vmatprep.subr.bf16.mxu1 %v13126_v45 }
 0x5e8   :  { %9354 = vmatpush3.bf16.msra.mxu1 %v9668_v28  ;;  %v5370_v2 = vpop.f32.mrb[188].mxu0  ;;  %v5522_v28 = vmax.f32 %v5497_v7, 0.0 }
 0x5e9   :  { %v12618_v24 = vadd.f32 %v5370_v2, %v12409_v30  ;;  %v9253_v14 = vpop.f32.mrb[189].mxu0  ;;  %9355 = vmatprep.subr.bf16.mxu1 %v13126_v45  ;;  %v5057_v53 = vpop.f32.mrb[144].mxu1 }
 0x5ea   :  { %v5373_v8 = vpop.f32.mrb[190].mxu0  ;;  %v9197_v40 = vpop.f32.mrb[145].mxu1  ;;  %v5926_v14 = vpack.c.bf16 %v5522_v28, %v5522_v28  ;;  %v9695_v53 = vld [vmem:[%s13111_s5 + $0x270] sm:$0xff]  }
 0x5eb   :  { %v5473_v55 = vadd.f32 %v5373_v8, %v12414_v16  ;;  %v9254_v63 = vpop.f32.mrb[191].mxu0  ;;  %v9675_v16 = vld [vmem:[%s13111_s5 + $0x1e0] sm:$0xff]   ;;  %v5059_v6 = vpop.f32.mrb[146].mxu1 }
 0x5ec   :  { %9356 = vmatpush3.bf16.msra.mxu1 %v9670_v48  ;;  %v9198_v39 = vpop.f32.mrb[147].mxu1 }
 0x5ed   :  { %v5505_v35 = vadd.f32 %v12510_v57, %v5473_v55  ;;  %9357 = vmatprep.subr.bf16.mxu1 %v13126_v45 }
 0x5ef   :  { %v5530_v30 = vmax.f32 %v5505_v35, 0.0  ;;  %v9687_v35 = vld [vmem:[%s13111_s5 + $0x230] sm:$0xff]  }
 0x5f0   :  { %9358 = vmatpush3.bf16.msra.mxu1 %v9672_v42  ;;  %v5378_v5 = vpop.f32.mrb[192].mxu0  ;;  %v9685_v42 = vld [vmem:[%s13111_s5 + $0x228] sm:$0xff]  }
 0x5f1   :  { %v6542_v21 = vpack.c.bf16 %v5530_v30, %v5530_v30  ;;  %v12634_v18 = vadd.f32 %v5378_v5, %v12422_v17  ;;  %9363 = vmatprep.subr.bf16.mxu1 %v13126_v45  ;;  %v9257_v32 = vpop.f32.mrb[193].mxu0  ;;  %v9677_v17 = vld [vmem:[%s13111_s5 + $0x1e8] sm:$0xff]   ;;  %v5498_v30 = vadd.f32 %v12510_v57, %v12558_v54  ;;  %v9688_v54 = vld [vmem:[%s13111_s5 + $0xd8] sm:$0xff]  }
 0x5f2   :  { %v5381_v44 = vpop.f32.mrb[194].mxu0 }
 0x5f3   :  { %9360 = vmatmul.mubr.msk.bf16.vlgmr.msra.gmra.mrb[164].mxu1 %vm5584_vm2, %v5849_v49  ;;  %9468 = vmatmul.mubr.msk.bf16.vlgmr.msra.gmra.mrb[240].mxu0 %vm5584_vm2, %v6542_v21  ;;  %v9258_v20 = vpop.f32.mrb[195].mxu0  ;;  %v5523_v32 = vmax.f32 %v5498_v30, 0.0  ;;  %v9691_v44 = vld [vmem:[%s13111_s5 + $0x260] sm:$0xff]  }
 0x5f4   :  { %9364 = vmatpush3.bf16.msra.mxu1 %v9674_v37  ;;  %9484 = vmatpush3.bf16.msra.mxu0 %v9675_v16 }
 0x5f5   :  { %9365 = vmatprep.subr.bf16.mxu1 %v13126_v45  ;;  %9485 = vmatprep.subr.bf16.mxu0 %v13126_v45  ;;  %v6003_v20 = vpack.c.bf16 %v5523_v32, %v5523_v32 }
 0x5f6   :  { %9371 = vmatprep.mubr.msk.bf16.mxu1 %vm9790_vm1, %v13126_v45  ;;  %9491 = vmatprep.mubr.msk.bf16.mxu0 %vm9790_vm1, %v13126_v45 }
 0x5f8   :  { %9366 = vmatpush3.bf16.msra.mxu1 %v9676_v58  ;;  %9486 = vmatpush3.bf16.msra.mxu0 %v9677_v17  ;;  %v5385_v50 = vpop.f32.mrb[196].mxu0 }
 0x5f9   :  { %v9261_v36 = vpop.f32.mrb[197].mxu0  ;;  %9367 = vmatprep.subr.bf16.mxu1 %v13126_v45  ;;  %9487 = vmatprep.subr.bf16.mxu0 %v13126_v45 }
 0x5fa   :  { %v5387_v12 = vpop.f32.mrb[198].mxu0  ;;  %v9694_v36 = vld [vmem:[%s13111_s5 + $0xf0] sm:$0xff]  }
 0x5fb   :  { %v5475_v59 = vadd.f32 %v5387_v12, %v12429_v27  ;;  %v9262_v25 = vpop.f32.mrb[199].mxu0  ;;  %v5499_v12 = vadd.f32 %v12510_v57, %v12562_v10  ;;  %v9696_v10 = vld [vmem:[%s13111_s5 + $0xf8] sm:$0xff]  }
 0x5fc   :  { %9368 = vmatpush3.bf16.msra.mxu1 %v9678_v22  ;;  %9488 = vmatpush3.bf16.msra.mxu0 %v9679_v26  ;;  %v9692_v22 = vld [vmem:[%s13111_s5 + $0xe8] sm:$0xff]  }
 0x5fd   :  { %v5507_v2 = vadd.f32 %v12510_v57, %v5475_v59  ;;  %9369 = vmatprep.subr.bf16.mxu1 %v13126_v45  ;;  %9489 = vmatprep.subr.bf16.mxu0 %v13126_v45  ;;  %v9693_v26 = vld [vmem:[%s13111_s5 + $0x268] sm:$0xff]   ;;  %v5524_v39 = vmax.f32 %v5499_v12, 0.0  ;;  %v9713_v12 = vld [vmem:[%s13111_s5 + $0x2f8] sm:$0xff]  }
 0x5ff   :  { %v5532_v27 = vmax.f32 %v5507_v2, 0.0  ;;  %v9698_v2 = vld [vmem:[%s13111_s5 + $0x100] sm:$0xff]  }
 0x600   :  { %9370 = vmatpush3.bf16.msra.mxu1 %v9680_v62  ;;  %9490 = vmatpush3.bf16.msra.mxu0 %v9681_v31  ;;  %v5392_v48 = vpop.f32.mrb[200].mxu0 }
 0x601   :  { %v6696_v41 = vpack.c.bf16 %v5532_v27, %v5532_v27  ;;  %v12678_v8 = vadd.f32 %v5392_v48, %v12435_v4  ;;  %v9265_v3 = vpop.f32.mrb[201].mxu0  ;;  %9375 = vmatprep.subr.bf16.mxu1 %v13126_v45  ;;  %9507 = vmatprep.subr.bf16.mxu0 %v13126_v45  ;;  %v9684_v4 = vld [vmem:[%s13111_s5 + $0xc8] sm:$0xff]   ;;  %v9699_v27 = vld [vmem:[%s13111_s5 + $0x2a0] sm:$0xff]   ;;  %v6080_v48 = vpack.c.bf16 %v5524_v39, %v5524_v39 }
 0x602   :  { %v5395_v55 = vpop.f32.mrb[202].mxu0 }
 0x603   :  { %v5477_v63 = vadd.f32 %v5395_v55, %v12439_v46  ;;  %9372 = vmatmul.mubr.msk.bf16.vlgmr.msra.gmra.mrb[168].mxu1 %vm5584_vm2, %v5926_v14  ;;  %v9266_v23 = vpop.f32.mrb[203].mxu0  ;;  %9492 = vmatmul.mubr.msk.bf16.vlgmr.msra.gmra.mrb[244].mxu0 %vm5584_vm2, %v6696_v41 }
 0x604   :  { %9376 = vmatpush3.bf16.msra.mxu1 %v9682_v34  ;;  %9508 = vmatpush3.bf16.msra.mxu0 %v9683_v0  ;;  %v9702_v23 = vld [vmem:[%s13111_s5 + $0x110] sm:$0xff]  }
 0x605   :  { %9377 = vmatprep.subr.bf16.mxu1 %v13126_v45  ;;  %9509 = vmatprep.subr.bf16.mxu0 %v13126_v45  ;;  %v5509_v5 = vadd.f32 %v12510_v57, %v5477_v63  ;;  %v9701_v63 = vld [vmem:[%s13111_s5 + $0x2a8] sm:$0xff]  }
 0x606   :  { %9383 = vmatprep.mubr.msk.bf16.mxu1 %vm9790_vm1, %v13126_v45  ;;  %9515 = vmatprep.mubr.msk.bf16.mxu0 %vm9790_vm1, %v13126_v45 }
 0x607   :  { %v5534_v43 = vmax.f32 %v5509_v5, 0.0 }
 0x608   :  { %9378 = vmatpush3.bf16.msra.mxu1 %v9684_v4  ;;  %9510 = vmatpush3.bf16.msra.mxu0 %v9685_v42  ;;  %v5400_v46 = vpop.f32.mrb[204].mxu0  ;;  %v9703_v4 = vld [vmem:[%s13111_s5 + $0x2b0] sm:$0xff]   ;;  %v5500_v42 = vadd.f32 %v12510_v57, %v12572_v15  ;;  %v9705_v15 = vld [vmem:[%s13111_s5 + $0x2b8] sm:$0xff]  }
 0x609   :  { %v12707_v37 = vadd.f32 %v5400_v46, %v12449_v1  ;;  %v9269_v16 = vpop.f32.mrb[205].mxu0  ;;  %9379 = vmatprep.subr.bf16.mxu1 %v13126_v45  ;;  %9511 = vmatprep.subr.bf16.mxu0 %v13126_v45  ;;  %v9689_v1 = vld [vmem:[%s13111_s5 + $0x238] sm:$0xff]   ;;  %v6850_v19 = vpack.c.bf16 %v5534_v43, %v5534_v43 }
 0x60a   :  { %v5403_v52 = vpop.f32.mrb[206].mxu0  ;;  %v9704_v16 = vld [vmem:[%s13111_s5 + $0x118] sm:$0xff]  }
 0x60b   :  { %v5479_v49 = vadd.f32 %v5403_v52, %v12453_v11  ;;  %v9270_v21 = vpop.f32.mrb[207].mxu0  ;;  %v9690_v11 = vld [vmem:[%s13111_s5 + $0xe0] sm:$0xff]   ;;  %v5525_v52 = vmax.f32 %v5500_v42, 0.0 }
 0x60c   :  { %9380 = vmatpush3.bf16.msra.mxu1 %v9686_v56  ;;  %9512 = vmatpush3.bf16.msra.mxu0 %v9687_v35  ;;  %v9707_v21 = vld [vmem:[%s13111_s5 + $0x2e0] sm:$0xff]  }
 0x60d   :  { %9381 = vmatprep.subr.bf16.mxu1 %v13126_v45  ;;  %9513 = vmatprep.subr.bf16.mxu0 %v13126_v45  ;;  %v5511_v40 = vadd.f32 %v12510_v57, %v5479_v49  ;;  %v9706_v49 = vld [vmem:[%s13111_s5 + $0x120] sm:$0xff]  }
 0x60e   :  { %v9722_v42 = vld [vmem:[%s13111_s5 + $0x180] sm:$0xff]  }
 0x60f   :  { %v5536_v28 = vmax.f32 %v5511_v40, 0.0 }
 0x610   :  { %9382 = vmatpush3.bf16.msra.mxu1 %v9688_v54  ;;  %9514 = vmatpush3.bf16.msra.mxu0 %v9689_v1  ;;  %v5408_v33 = vpop.f32.mrb[208].mxu0  ;;  %v6157_v1 = vpack.c.bf16 %v5525_v52, %v5525_v52 }
 0x611   :  { %9387 = vmatprep.subr.bf16.mxu1 %v13126_v45  ;;  %9531 = vmatprep.subr.bf16.mxu0 %v13126_v45  ;;  %v9273_v58 = vpop.f32.mrb[209].mxu0  ;;  %v7004_v34 = vpack.c.bf16 %v5536_v28, %v5536_v28  ;;  %v9708_v33 = vld [vmem:[%s13111_s5 + $0x128] sm:$0xff]  }
 0x612   :  { %v5410_v17 = vpop.f32.mrb[210].mxu0  ;;  %v9711_v58 = vld [vmem:[%s13111_s5 + $0x2f0] sm:$0xff]   ;;  %v9715_v28 = vld [vmem:[%s13111_s5 + $0x148] sm:$0xff]  }
 0x613   :  { %9384 = vmatmul.mubr.msk.bf16.vlgmr.msra.gmra.mrb[172].mxu1 %vm5584_vm2, %v6003_v20  ;;  %9516 = vmatmul.mubr.msk.bf16.vlgmr.msra.gmra.mrb[248].mxu0 %vm5584_vm2, %v6850_v19  ;;  %v9274_v50 = vpop.f32.mrb[211].mxu0  ;;  %v9709_v20 = vld [vmem:[%s13111_s5 + $0x2e8] sm:$0xff]   ;;  %v9710_v19 = vld [vmem:[%s13111_s5 + $0x130] sm:$0xff]  }
 0x614   :  { %9388 = vmatpush3.bf16.msra.mxu1 %v9690_v11  ;;  %9532 = vmatpush3.bf16.msra.mxu0 %v9691_v44  ;;  %v5501_v50 = vadd.f32 %v12510_v57, %v12576_v29 }
 0x615   :  { %9389 = vmatprep.subr.bf16.mxu1 %v13126_v45  ;;  %9533 = vmatprep.subr.bf16.mxu0 %v13126_v45 }
 0x616   :  { %9395 = vmatprep.mubr.msk.bf16.mxu1 %vm9790_vm1, %v13126_v45  ;;  %9539 = vmatprep.mubr.msk.bf16.mxu0 %vm9790_vm1, %v13126_v45  ;;  %v5526_v29 = vmax.f32 %v5501_v50, 0.0  ;;  %v9734_v50 = vld [vmem:[%s13111_s5 + $0x240] sm:$0xff]  }
 0x618   :  { %9390 = vmatpush3.bf16.msra.mxu1 %v9692_v22  ;;  %9534 = vmatpush3.bf16.msra.mxu0 %v9693_v26  ;;  %v5414_v7 = vpop.f32.mrb[212].mxu0 }
 0x619   :  { %v12752_v59 = vadd.f32 %v5414_v7, %v12464_v47  ;;  %v9277_v25 = vpop.f32.mrb[213].mxu0  ;;  %9391 = vmatprep.subr.bf16.mxu1 %v13126_v45  ;;  %9535 = vmatprep.subr.bf16.mxu0 %v13126_v45  ;;  %v9697_v47 = vld [vmem:[%s13111_s5 + $0x278] sm:$0xff]  }
 0x61a   :  { %v5417_v6 = vpop.f32.mrb[214].mxu0  ;;  %v9714_v25 = vld [vmem:[%s13111_s5 + $0x140] sm:$0xff]  }
 0x61b   :  { %v5481_v62 = vadd.f32 %v5417_v6, %v12467_v9  ;;  %v9278_v31 = vpop.f32.mrb[215].mxu0 }
 0x61c   :  { %9392 = vmatpush3.bf16.msra.mxu1 %v9694_v36  ;;  %9536 = vmatpush3.bf16.msra.mxu0 %v9695_v53  ;;  %v9712_v53 = vld [vmem:[%s13111_s5 + $0x138] sm:$0xff]  }
 0x61d   :  { %9393 = vmatprep.subr.bf16.mxu1 %v13126_v45  ;;  %9537 = vmatprep.subr.bf16.mxu0 %v13126_v45  ;;  %v5513_v46 = vadd.f32 %v12510_v57, %v5481_v62  ;;  %v6234_v62 = vpack.c.bf16 %v5526_v29, %v5526_v29  ;;  %v5510_v29 = vadd.f32 %v12510_v57, %v12707_v37  ;;  %v9739_v37 = vld [vmem:[%s13111_s5 + $0x288] sm:$0xff]  }
 0x620   :  { %9394 = vmatpush3.bf16.msra.mxu1 %v9696_v10  ;;  %9538 = vmatpush3.bf16.msra.mxu0 %v9697_v47  ;;  %v5422_v9 = vpop.f32.mrb[216].mxu0 }
 0x621   :  { %v12772_v0 = vadd.f32 %v5422_v9, %v12473_v38  ;;  %v9281_v14 = vpop.f32.mrb[217].mxu0  ;;  %9399 = vmatprep.subr.bf16.mxu1 %v13126_v45  ;;  %9555 = vmatprep.subr.bf16.mxu0 %v13126_v45  ;;  %v9700_v38 = vld [vmem:[%s13111_s5 + $0x108] sm:$0xff]   ;;  %v9716_v9 = vld [vmem:[%s13111_s5 + $0x150] sm:$0xff]  }
 0x622   :  { %v5425_v41 = vpop.f32.mrb[218].mxu0 }
 0x623   :  { %v5483_v3 = vadd.f32 %v5425_v41, %v12476_v60  ;;  %9396 = vmatmul.mubr.msk.bf16.vlgmr.msra.gmra.mrb[176].mxu1 %vm5584_vm2, %v6080_v48  ;;  %9540 = vmatmul.mubr.msk.bf16.vlgmr.msra.gmra.mrb[252].mxu0 %vm5584_vm2, %v7004_v34  ;;  %v9282_v55 = vpop.f32.mrb[219].mxu0  ;;  %v9717_v41 = vld [vmem:[%s13111_s5 + $0x158] sm:$0xff]  }
 0x624   :  { %9400 = vmatpush3.bf16.msra.mxu1 %v9698_v2  ;;  %9556 = vmatpush3.bf16.msra.mxu0 %v9699_v27  ;;  %v5502_v27 = vadd.f32 %v12510_v57, %v12599_v51  ;;  %v9718_v55 = vld [vmem:[%s13111_s5 + $0x160] sm:$0xff]   ;;  %v9719_v51 = vld [vmem:[%s13111_s5 + $0x168] sm:$0xff]  }
 0x625   :  { %9401 = vmatprep.subr.bf16.mxu1 %v13126_v45  ;;  %9557 = vmatprep.subr.bf16.mxu0 %v13126_v45  ;;  %v5515_v22 = vadd.f32 %v12510_v57, %v5483_v3 }
 0x626   :  { %9407 = vmatprep.mubr.msk.bf16.mxu1 %vm9790_vm1, %v13126_v45  ;;  %9563 = vmatprep.mubr.msk.bf16.mxu0 %vm9790_vm1, %v13126_v45  ;;  %v5527_v3 = vmax.f32 %v5502_v27, 0.0 }
 0x627   :  { %v5540_v40 = vmax.f32 %v5515_v22, 0.0 }
 0x628   :  { %9402 = vmatpush3.bf16.msra.mxu1 %v9700_v38  ;;  %9558 = vmatpush3.bf16.msra.mxu0 %v9701_v63  ;;  %v5430_v60 = vpop.f32.mrb[220].mxu0  ;;  %v6311_v38 = vpack.c.bf16 %v5527_v3, %v5527_v3  ;;  %v9720_v63 = vld [vmem:[%s13111_s5 + $0x170] sm:$0xff]  }
 0x629   :  { %v12801_v56 = vadd.f32 %v5430_v60, %v12481_v13  ;;  %9403 = vmatprep.subr.bf16.mxu1 %v13126_v45  ;;  %9559 = vmatprep.subr.bf16.mxu0 %v13126_v45  ;;  %v9285_v35 = vpop.f32.mrb[221].mxu0  ;;  %v5538_v13 = vmax.f32 %v5513_v46, 0.0  ;;  %v7312_v31 = vpack.c.bf16 %v5540_v40, %v5540_v40  ;;  %v5503_v60 = vadd.f32 %v12510_v57, %v12603_v61  ;;  %v9723_v61 = vld [vmem:[%s13111_s5 + $0x188] sm:$0xff]  }
 0x62a   :  { %v5433_v30 = vpop.f32.mrb[222].mxu0  ;;  %v9724_v35 = vld [vmem:[%s13111_s5 + $0x190] sm:$0xff]  }
 0x62b   :  { %v9286_v5 = vpop.f32.mrb[223].mxu0  ;;  %v7158_v32 = vpack.c.bf16 %v5538_v13, %v5538_v13  ;;  %v5504_v30 = vadd.f32 %v12510_v57, %v12618_v24  ;;  %v9727_v24 = vld [vmem:[%s13111_s5 + $0x1c8] sm:$0xff]   ;;  %v9728_v13 = vld [vmem:[%s13111_s5 + $0x1d0] sm:$0xff]  }
 0x62c   :  { %9404 = vmatpush3.bf16.msra.mxu1 %v9702_v23  ;;  %9560 = vmatpush3.bf16.msra.mxu0 %v9703_v4  ;;  %v9721_v23 = vld [vmem:[%s13111_s5 + $0x178] sm:$0xff]   ;;  %v5528_v4 = vmax.f32 %v5503_v60, 0.0 }
 0x62d   :  { %9405 = vmatprep.subr.bf16.mxu1 %v13126_v45  ;;  %9561 = vmatprep.subr.bf16.mxu0 %v13126_v45  ;;  %v9725_v5 = vld [vmem:[%s13111_s5 + $0x198] sm:$0xff]  }
 0x62e   :  { %v6388_v46 = vpack.c.bf16 %v5528_v4, %v5528_v4  ;;  %v9745_v4 = vld [vmem:[%s13111_s5 + $0x2d8] sm:$0xff]  }
 0x630   :  { %9406 = vmatpush3.bf16.msra.mxu1 %v9704_v16  ;;  %9562 = vmatpush3.bf16.msra.mxu0 %v9705_v15  ;;  %v5437_v54 = vpop.f32.mrb[224].mxu0  ;;  %v5529_v16 = vmax.f32 %v5504_v30, 0.0  ;;  %v9726_v15 = vld [vmem:[%s13111_s5 + $0x1c0] sm:$0xff]  }
 0x631   :  { %9411 = vmatprep.subr.bf16.mxu1 %v13126_v45  ;;  %9579 = vmatprep.subr.bf16.mxu0 %v13126_v45  ;;  %v9289_v43 = vpop.f32.mrb[225].mxu0 }
 0x632   :  { %v5439_v11 = vpop.f32.mrb[226].mxu0  ;;  %v6465_v52 = vpack.c.bf16 %v5529_v16, %v5529_v16 }
 0x633   :  { %9408 = vmatmul.mubr.msk.bf16.vlgmr.msra.gmra.mrb[180].mxu1 %vm5584_vm2, %v6157_v1  ;;  %9564 = vmatmul.mubr.msk.bf16.vlgmr.msra.gmra.mrb[0].mxu0 %vm5584_vm2, %v7158_v32  ;;  %v9290_v44 = vpop.f32.mrb[227].mxu0  ;;  %v9730_v1 = vld [vmem:[%s13111_s5 + $0x200] sm:$0xff]  }
 0x634   :  { %9412 = vmatpush3.bf16.msra.mxu1 %v9706_v49  ;;  %9580 = vmatpush3.bf16.msra.mxu0 %v9707_v21  ;;  %v5506_v49 = vadd.f32 %v12510_v57, %v12634_v18  ;;  %v9729_v21 = vld [vmem:[%s13111_s5 + $0x1d8] sm:$0xff]   ;;  %v9731_v18 = vld [vmem:[%s13111_s5 + $0x208] sm:$0xff]  }
 0x635   :  { %9413 = vmatprep.subr.bf16.mxu1 %v13126_v45  ;;  %9581 = vmatprep.subr.bf16.mxu0 %v13126_v45 }
 0x636   :  { %9419 = vmatprep.mubr.msk.bf16.mxu1 %vm9790_vm1, %v13126_v45  ;;  %9587 = vmatprep.mubr.msk.bf16.mxu0 %vm9790_vm1, %v13126_v45  ;;  %v5531_v54 = vmax.f32 %v5506_v49, 0.0 }
 0x638   :  { %9414 = vmatpush3.bf16.msra.mxu1 %v9708_v33  ;;  %9582 = vmatpush3.bf16.msra.mxu0 %v9709_v20  ;;  %v5443_v17 = vpop.f32.mrb[228].mxu0  ;;  %v6619_v32 = vpack.c.bf16 %v5531_v54, %v5531_v54  ;;  %v9732_v33 = vld [vmem:[%s13111_s5 + $0x210] sm:$0xff]   ;;  %v5508_v20 = vadd.f32 %v12510_v57, %v12678_v8  ;;  %v9735_v8 = vld [vmem:[%s13111_s5 + $0x248] sm:$0xff]  }
 0x639   :  { %9415 = vmatprep.subr.bf16.mxu1 %v13126_v45  ;;  %9583 = vmatprep.subr.bf16.mxu0 %v13126_v45  ;;  %v9293_v26 = vpop.f32.mrb[229].mxu0 }
 0x63a   :  { %v5445_v7 = vpop.f32.mrb[230].mxu0  ;;  %v5533_v17 = vmax.f32 %v5508_v20, 0.0 }
 0x63b   :  { %v9294_v36 = vpop.f32.mrb[231].mxu0 }
 0x63c   :  { %9416 = vmatpush3.bf16.msra.mxu1 %v9710_v19  ;;  %9584 = vmatpush3.bf16.msra.mxu0 %v9711_v58  ;;  %v9733_v58 = vld [vmem:[%s13111_s5 + $0x218] sm:$0xff]   ;;  %v6773_v22 = vpack.c.bf16 %v5533_v17, %v5533_v17 }
 0x63d   :  { %9417 = vmatprep.subr.bf16.mxu1 %v13126_v45  ;;  %9585 = vmatprep.subr.bf16.mxu0 %v13126_v45 }
 0x640   :  { %9418 = vmatpush3.bf16.msra.mxu1 %v9712_v53  ;;  %9586 = vmatpush3.bf16.msra.mxu0 %v9713_v12  ;;  %v5449_v6 = vpop.f32.mrb[232].mxu0  ;;  %v9736_v12 = vld [vmem:[%s13111_s5 + $0x250] sm:$0xff]  }
 0x641   :  { %9423 = vmatprep.subr.bf16.mxu1 %v13126_v45  ;;  %v9297_v10 = vpop.f32.mrb[233].mxu0  ;;  %9603 = vmatprep.subr.bf16.mxu0 %v13126_v45  ;;  %v5535_v6 = vmax.f32 %v5510_v29, 0.0 }
 0x642   :  { %v5451_v47 = vpop.f32.mrb[234].mxu0 }
 0x643   :  { %9420 = vmatmul.mubr.msk.bf16.vlgmr.msra.gmra.mrb[184].mxu1 %vm5584_vm2, %v6234_v62  ;;  %9588 = vmatmul.mubr.msk.bf16.vlgmr.msra.gmra.mrb[4].mxu0 %vm5584_vm2, %v7312_v31  ;;  %v9298_v39 = vpop.f32.mrb[235].mxu0  ;;  %v9738_v62 = vld [vmem:[%s13111_s5 + $0x280] sm:$0xff]   ;;  %v6927_v31 = vpack.c.bf16 %v5535_v6, %v5535_v6 }
 0x644   :  { %9424 = vmatpush3.bf16.msra.mxu1 %v9714_v25  ;;  %9431 = vmatprep.mubr.msk.bf16.mxu1 %vm9790_vm1, %v13126_v45  ;;  %v9737_v25 = vld [vmem:[%s13111_s5 + $0x258] sm:$0xff]  }
 0x645   :  { %9425 = vmatprep.subr.bf16.mxu1 %v13126_v45  ;;  %9619 = vmatprep.mubr.msk.bf16.mxu0 %vm9790_vm1, %v13126_v45 }
 0x648   :  { %9426 = vmatpush3.bf16.msra.mxu1 %v9715_v28  ;;  %v5455_v2 = vpop.f32.mrb[236].mxu0 }
 0x649   :  { %9427 = vmatprep.subr.bf16.mxu1 %v13126_v45  ;;  %v9301_v48 = vpop.f32.mrb[237].mxu0  ;;  %v5512_v2 = vadd.f32 %v12510_v57, %v12752_v59  ;;  %v9743_v57 = vld [vmem:[%s13111_s5 + $0x2c8] sm:$0xff]  }
 0x64a   :  { %v5457_v34 = vpop.f32.mrb[238].mxu0  ;;  %v9741_v48 = vld [vmem:[%s13111_s5 + $0x298] sm:$0xff]  }
 0x64b   :  { %v9302_v14 = vpop.f32.mrb[239].mxu0  ;;  %v5537_v34 = vmax.f32 %v5512_v2, 0.0 }
 0x64c   :  { %9428 = vmatpush3.bf16.msra.mxu1 %v9716_v9  ;;  %v9740_v9 = vld [vmem:[%s13111_s5 + $0x290] sm:$0xff]   ;;  %v9742_v14 = vld [vmem:[%s13111_s5 + $0x2c0] sm:$0xff]  }
 0x64d   :  { %9429 = vmatprep.subr.bf16.mxu1 %v13126_v45 }
 0x650   :  { %9430 = vmatpush3.bf16.msra.mxu1 %v9717_v41  ;;  %v7081_v41 = vpack.c.bf16 %v5537_v34, %v5537_v34 }
 0x651   :  { %9435 = vmatprep.subr.bf16.mxu1 %v13126_v45 }
 0x653   :  { %9432 = vmatmul.mubr.msk.bf16.vlgmr.msra.gmra.mrb[188].mxu1 %vm5584_vm2, %v6311_v38 }
 0x654   :  { %9436 = vmatpush3.bf16.msra.mxu1 %v9718_v55  ;;  %9443 = vmatprep.mubr.msk.bf16.mxu1 %vm9790_vm1, %v13126_v45 }
 0x655   :  { %9437 = vmatprep.subr.bf16.mxu1 %v13126_v45 }
 0x658   :  { %9438 = vmatpush3.bf16.msra.mxu1 %v9719_v51  ;;  %v9744_v51 = vld [vmem:[%s13111_s5 + $0x2d0] sm:$0xff]  }
 0x659   :  { %9439 = vmatprep.subr.bf16.mxu1 %v13126_v45 }
 0x65c   :  { %9440 = vmatpush3.bf16.msra.mxu1 %v9720_v63  ;;  %v9787_v63 = vld [vmem:[%s13112_s4] ss:$0 sm:$0xff] }
 0x65d   :  { %9441 = vmatprep.subr.bf16.mxu1 %v13126_v45  ;;  %v5514_v60 = vadd.f32 %v9787_v63, %v12772_v0  ;;  %v9747_v0 = vld [vmem:[%s13111_s5 + $0x308] sm:$0xff]   ;;  %v5516_v49 = vadd.f32 %v9787_v63, %v12801_v56 }
 0x660   :  { %9442 = vmatpush3.bf16.msra.mxu1 %v9721_v23 }
 0x661   :  { %9447 = vmatprep.subr.bf16.mxu1 %v13126_v45 }
 0x663   :  { %9444 = vmatmul.mubr.msk.bf16.vlgmr.msra.gmra.mrb[192].mxu1 %vm5584_vm2, %v6388_v46  ;;  %v9746_v46 = vld [vmem:[%s13111_s5 + $0x300] sm:$0xff]  }
 0x664   :  { %9448 = vmatpush3.bf16.msra.mxu1 %v9722_v42  ;;  %9455 = vmatprep.mubr.msk.bf16.mxu1 %vm9790_vm1, %v13126_v45  ;;  %v5539_v42 = vmax.f32 %v5514_v60, 0.0 }
 0x665   :  { %9449 = vmatprep.subr.bf16.mxu1 %v13126_v45 }
 0x668   :  { %9450 = vmatpush3.bf16.msra.mxu1 %v9723_v61  ;;  %v7235_v61 = vpack.c.bf16 %v5539_v42, %v5539_v42 }
 0x669   :  { %9451 = vmatprep.subr.bf16.mxu1 %v13126_v45 }
 0x66c   :  { %9452 = vmatpush3.bf16.msra.mxu1 %v9724_v35 }
 0x66d   :  { %9453 = vmatprep.subr.bf16.mxu1 %v13126_v45 }
 0x670   :  { %9454 = vmatpush3.bf16.msra.mxu1 %v9725_v5 }
 0x671   :  { %9471 = vmatprep.subr.bf16.mxu1 %v13126_v45 }
 0x673   :  { %9456 = vmatmul.mubr.msk.bf16.vlgmr.msra.gmra.mrb[196].mxu1 %vm5584_vm2, %v6465_v52 }
 0x674   :  { %9472 = vmatpush3.bf16.msra.mxu1 %v9726_v15  ;;  %9479 = vmatprep.mubr.msk.bf16.mxu1 %vm9790_vm1, %v13126_v45 }
 0x675   :  { %9473 = vmatprep.subr.bf16.mxu1 %v13126_v45 }
 0x678   :  { %9474 = vmatpush3.bf16.msra.mxu1 %v9727_v24 }
 0x679   :  { %9475 = vmatprep.subr.bf16.mxu1 %v13126_v45 }
 0x67c   :  { %9476 = vmatpush3.bf16.msra.mxu1 %v9728_v13  ;;  %v9748_v13 = vld [vmem:[%s13111_s5 + $0x310] sm:$0xff]  }
 0x67d   :  { %9477 = vmatprep.subr.bf16.mxu1 %v13126_v45 }
 0x680   :  { %9478 = vmatpush3.bf16.msra.mxu1 %v9729_v21 }
 0x681   :  { %9495 = vmatprep.subr.bf16.mxu1 %v13126_v45 }
 0x683   :  { %9480 = vmatmul.mubr.msk.bf16.vlgmr.msra.gmra.mrb[200].mxu1 %vm5584_vm2, %v6619_v32  ;;  %v5541_v32 = vmax.f32 %v5516_v49, 0.0 }
 0x684   :  { %9496 = vmatpush3.bf16.msra.mxu1 %v9730_v1  ;;  %9503 = vmatprep.mubr.msk.bf16.mxu1 %vm9790_vm1, %v13126_v45  ;;  %v9749_v1 = vld [vmem:[%s13111_s5 + $0x318] sm:$0xff]  }
 0x685   :  { %9497 = vmatprep.subr.bf16.mxu1 %v13126_v45 }
 0x686   :  { %v5622_v43 = vpop.f32.mrb[148].mxu1 }
 0x687   :  { %v9313_v11 = vpop.f32.mrb[149].mxu1 }
 0x688   :  { %9498 = vmatpush3.bf16.msra.mxu1 %v9731_v18  ;;  %v5625_v44 = vpop.f32.mrb[150].mxu1  ;;  %v7389_v18 = vpack.c.bf16 %v5541_v32, %v5541_v32 }
 0x689   :  { %v9314_v19 = vpop.f32.mrb[151].mxu1  ;;  %9499 = vmatprep.subr.bf16.mxu1 %v13126_v45 }
 0x68c   :  { %9500 = vmatpush3.bf16.msra.mxu1 %v9732_v33 }
 0x68d   :  { %9501 = vmatprep.subr.bf16.mxu1 %v13126_v45 }
 0x690   :  { %9502 = vmatpush3.bf16.msra.mxu1 %v9733_v58 }
 0x691   :  { %9519 = vmatprep.subr.bf16.mxu1 %v13126_v45 }
 0x693   :  { %9504 = vmatmul.mubr.msk.bf16.vlgmr.msra.gmra.mrb[204].mxu1 %vm5584_vm2, %v6773_v22 }
 0x694   :  { %9520 = vmatpush3.bf16.msra.mxu1 %v9734_v50  ;;  %9527 = vmatprep.mubr.msk.bf16.mxu1 %vm9790_vm1, %v13126_v45 }
 0x695   :  { %9521 = vmatprep.subr.bf16.mxu1 %v13126_v45 }
 0x696   :  { %v5689_v26 = vpop.f32.mrb[152].mxu1 }
 0x697   :  { %v5690_v7 = vadd.f32 %v5689_v26, %v5622_v43  ;;  %v9325_v36 = vpop.f32.mrb[153].mxu1 }
 0x698   :  { %v5692_v53 = vpop.f32.mrb[154].mxu1  ;;  %9522 = vmatpush3.bf16.msra.mxu1 %v9735_v8 }
 0x699   :  { %v9326_v40 = vpop.f32.mrb[155].mxu1  ;;  %9523 = vmatprep.subr.bf16.mxu1 %v13126_v45 }
 0x69c   :  { %9524 = vmatpush3.bf16.msra.mxu1 %v9736_v12 }
 0x69d   :  { %9525 = vmatprep.subr.bf16.mxu1 %v13126_v45 }
 0x6a0   :  { %9526 = vmatpush3.bf16.msra.mxu1 %v9737_v25 }
 0x6a1   :  { %9543 = vmatprep.subr.bf16.mxu1 %v13126_v45 }
 0x6a3   :  { %9528 = vmatmul.mubr.msk.bf16.vlgmr.msra.gmra.mrb[208].mxu1 %vm5584_vm2, %v6927_v31 }
 0x6a4   :  { %9544 = vmatpush3.bf16.msra.mxu1 %v9738_v62  ;;  %9551 = vmatprep.mubr.msk.bf16.mxu1 %vm9790_vm1, %v13126_v45 }
 0x6a5   :  { %9545 = vmatprep.subr.bf16.mxu1 %v13126_v45 }
 0x6a6   :  { %v5765_v10 = vpop.f32.mrb[156].mxu1 }
 0x6a7   :  { %v5771_v47 = vadd.f32 %v5765_v10, %v5690_v7  ;;  %v9337_v39 = vpop.f32.mrb[157].mxu1 }
 0x6a8   :  { %v5768_v28 = vpop.f32.mrb[158].mxu1  ;;  %9546 = vmatpush3.bf16.msra.mxu1 %v9739_v37 }
 0x6a9   :  { %v9338_v27 = vpop.f32.mrb[159].mxu1  ;;  %9547 = vmatprep.subr.bf16.mxu1 %v13126_v45 }
 0x6ac   :  { %9548 = vmatpush3.bf16.msra.mxu1 %v9740_v9 }
 0x6ad   :  { %9549 = vmatprep.subr.bf16.mxu1 %v13126_v45 }
 0x6b0   :  { %9550 = vmatpush3.bf16.msra.mxu1 %v9741_v48 }
 0x6b1   :  { %9567 = vmatprep.subr.bf16.mxu1 %v13126_v45 }
 0x6b3   :  { %9552 = vmatmul.mubr.msk.bf16.vlgmr.msra.gmra.mrb[212].mxu1 %vm5584_vm2, %v7081_v41 }
 0x6b4   :  { %9568 = vmatpush3.bf16.msra.mxu1 %v9742_v14  ;;  %9575 = vmatprep.mubr.msk.bf16.mxu1 %vm9790_vm1, %v13126_v45 }
 0x6b5   :  { %9569 = vmatprep.subr.bf16.mxu1 %v13126_v45 }
 0x6b6   :  { %v5842_v59 = vpop.f32.mrb[160].mxu1 }
 0x6b7   :  { %v5848_v3 = vadd.f32 %v5842_v59, %v5771_v47  ;;  %v9349_v55 = vpop.f32.mrb[161].mxu1  ;;  %v9750_v59 = vld [vmem:[%s13113_s7] sm:$0xff]  }
 0x6b8   :  { %v5845_v38 = vpop.f32.mrb[162].mxu1  ;;  %9570 = vmatpush3.bf16.msra.mxu1 %v9743_v57  ;;  %9604 = vmatpush3.bf16.msra.mxu0 %v9750_v59 }
 0x6b9   :  { %v9350_v23 = vpop.f32.mrb[163].mxu1  ;;  %9571 = vmatprep.subr.bf16.mxu1 %v13126_v45  ;;  %9605 = vmatprep.subr.bf16.mxu0 %v13126_v45 }
 0x6ba   :  { %v9752_v23 = vld [vmem:[%s13113_s7 + $0x10] sm:$0xff]  }
 0x6bc   :  { %9572 = vmatpush3.bf16.msra.mxu1 %v9744_v51 }
 0x6bd   :  { %9573 = vmatprep.subr.bf16.mxu1 %v13126_v45 }
 0x6c0   :  { %9574 = vmatpush3.bf16.msra.mxu1 %v9745_v4 }
 0x6c1   :  { %9591 = vmatprep.subr.bf16.mxu1 %v13126_v45 }
 0x6c3   :  { %9576 = vmatmul.mubr.msk.bf16.vlgmr.msra.gmra.mrb[216].mxu1 %vm5584_vm2, %v7235_v61 }
 0x6c4   :  { %9592 = vmatpush3.bf16.msra.mxu1 %v9746_v46  ;;  %9599 = vmatprep.mubr.msk.bf16.mxu1 %vm9790_vm1, %v13126_v45 }
 0x6c5   :  { %9593 = vmatprep.subr.bf16.mxu1 %v13126_v45 }
 0x6c6   :  { %v5919_v35 = vpop.f32.mrb[164].mxu1  ;;  %v13039_v30 = vpop.f32.mrb[240].mxu0 }
 0x6c7   :  { %v5925_v5 = vadd.f32 %v5919_v35, %v5848_v3  ;;  %v9361_v16 = vpop.f32.mrb[165].mxu1  ;;  %v9469_v15 = vpop.f32.mrb[241].mxu0  ;;  %v9751_v3 = vld [vmem:[%s13113_s7 + $0x8] sm:$0xff]   ;;  %v9754_v35 = vld [vmem:[%s13113_s7 + $0x20] sm:$0xff]  }
 0x6c8   :  { %v5922_v52 = vpop.f32.mrb[166].mxu1  ;;  %9594 = vmatpush3.bf16.msra.mxu1 %v9747_v0  ;;  %v6615_v24 = vpop.f32.mrb[242].mxu0  ;;  %9606 = vmatpush3.bf16.msra.mxu0 %v9751_v3  ;;  %v9753_v0 = vld [vmem:[%s13113_s7 + $0x18] sm:$0xff]  }
 0x6c9   :  { %v9362_v21 = vpop.f32.mrb[167].mxu1  ;;  %v9470_v54 = vpop.f32.mrb[243].mxu0  ;;  %9595 = vmatprep.subr.bf16.mxu1 %v13126_v45  ;;  %9607 = vmatprep.subr.bf16.mxu0 %v13126_v45  ;;  %v9756_v24 = vld [vmem:[%s13113_s7 + $0x30] sm:$0xff]  }
 0x6ca   :  { %v9757_v21 = vld [vmem:[%s13113_s7 + $0x38] sm:$0xff]  }
 0x6cc   :  { %9596 = vmatpush3.bf16.msra.mxu1 %v9748_v13  ;;  %9608 = vmatpush3.bf16.msra.mxu0 %v9752_v23 }
 0x6cd   :  { %9597 = vmatprep.subr.bf16.mxu1 %v13126_v45  ;;  %9609 = vmatprep.subr.bf16.mxu0 %v13126_v45 }
 0x6d0   :  { %9598 = vmatpush3.bf16.msra.mxu1 %v9749_v1  ;;  %9610 = vmatpush3.bf16.msra.mxu0 %v9753_v0 }
 0x6d1   :  { %9611 = vmatprep.subr.bf16.mxu0 %v13126_v45 }
 0x6d3   :  { %9600 = vmatmul.mubr.msk.bf16.vlgmr.msra.gmra.mrb[220].mxu1 %vm5584_vm2, %v7389_v18 }
 0x6d4   :  { %9612 = vmatpush3.bf16.msra.mxu0 %v9754_v35 }
 0x6d5   :  { %9613 = vmatprep.subr.bf16.mxu0 %v13126_v45 }
 0x6d6   :  { %v5996_v43 = vpop.f32.mrb[168].mxu1  ;;  %v13051_v11 = vpop.f32.mrb[244].mxu0 }
 0x6d7   :  { %v6002_v56 = vadd.f32 %v5996_v43, %v5925_v5  ;;  %v9373_v44 = vpop.f32.mrb[169].mxu1  ;;  %v9493_v33 = vpop.f32.mrb[245].mxu0  ;;  %v9755_v5 = vld [vmem:[%s13113_s7 + $0x28] sm:$0xff]  }
 0x6d8   :  { %v5999_v20 = vpop.f32.mrb[170].mxu1  ;;  %v6769_v19 = vpop.f32.mrb[246].mxu0  ;;  %9614 = vmatpush3.bf16.msra.mxu0 %v9755_v5 }
 0x6d9   :  { %v9374_v58 = vpop.f32.mrb[171].mxu1  ;;  %v9494_v17 = vpop.f32.mrb[247].mxu0  ;;  %9615 = vmatprep.subr.bf16.mxu0 %v13126_v45 }
 0x6dc   :  { %9616 = vmatpush3.bf16.msra.mxu0 %v9756_v24 }
 0x6dd   :  { %9617 = vmatprep.subr.bf16.mxu0 %v13126_v45 }
 0x6e0   :  { %9618 = vmatpush3.bf16.msra.mxu0 %v9757_v21 }
 0x6e6   :  { %v6073_v50 = vpop.f32.mrb[172].mxu1  ;;  %v13053_v22 = vpop.f32.mrb[248].mxu0 }
 0x6e7   :  { %v6079_v8 = vadd.f32 %v6073_v50, %v6002_v56  ;;  %v9385_v26 = vpop.f32.mrb[173].mxu1  ;;  %v9517_v7 = vpop.f32.mrb[249].mxu0 }
 0x6e8   :  { %v6076_v36 = vpop.f32.mrb[174].mxu1  ;;  %v6923_v53 = vpop.f32.mrb[250].mxu0 }
 0x6e9   :  { %v9386_v12 = vpop.f32.mrb[175].mxu1  ;;  %v9518_v29 = vpop.f32.mrb[251].mxu0 }
 0x6f6   :  { %v6150_v40 = vpop.f32.mrb[176].mxu1  ;;  %v13055_v25 = vpop.f32.mrb[252].mxu0 }
 0x6f7   :  { %v6156_v6 = vadd.f32 %v6150_v40, %v6079_v8  ;;  %v9397_v62 = vpop.f32.mrb[177].mxu1  ;;  %v9541_v31 = vpop.f32.mrb[253].mxu0 }
 0x6f8   :  { %v6153_v37 = vpop.f32.mrb[178].mxu1  ;;  %v7077_v10 = vpop.f32.mrb[254].mxu0 }
 0x6f9   :  { %v9398_v47 = vpop.f32.mrb[179].mxu1  ;;  %v9542_v39 = vpop.f32.mrb[255].mxu0 }
 0x706   :  { %v6227_v28 = vpop.f32.mrb[180].mxu1  ;;  %v13057_v9 = vpop.f32.mrb[0].mxu0 }
 0x707   :  { %v6233_v2 = vadd.f32 %v6227_v28, %v6156_v6  ;;  %v9409_v27 = vpop.f32.mrb[181].mxu1  ;;  %v9565_v48 = vpop.f32.mrb[1].mxu0 }
 0x708   :  { %v6230_v34 = vpop.f32.mrb[182].mxu1  ;;  %v7231_v14 = vpop.f32.mrb[2].mxu0 }
 0x709   :  { %v9410_v41 = vpop.f32.mrb[183].mxu1  ;;  %v9566_v57 = vpop.f32.mrb[3].mxu0 }
 0x716   :  { %v6304_v55 = vpop.f32.mrb[184].mxu1  ;;  %v13067_v38 = vpop.f32.mrb[4].mxu0 }
 0x717   :  { %v6310_v51 = vadd.f32 %v6304_v55, %v6233_v2  ;;  %v9421_v63 = vpop.f32.mrb[185].mxu1  ;;  %v9589_v60 = vpop.f32.mrb[5].mxu0  ;;  %v7980_v55 = vld [vmem:[%s13114_s6] ss:$0 sm:$0xff] }
 0x718   :  { %v6307_v4 = vpop.f32.mrb[186].mxu1  ;;  %v7385_v42 = vpop.f32.mrb[6].mxu0 }
 0x719   :  { %v9422_v46 = vpop.f32.mrb[187].mxu1  ;;  %v9590_v61 = vpop.f32.mrb[7].mxu0 }
 0x726   :  { %v6381_v16 = vpop.f32.mrb[188].mxu1 }
 0x727   :  { %v6387_v15 = vadd.f32 %v6381_v16, %v6310_v51  ;;  %v9433_v52 = vpop.f32.mrb[189].mxu1 }
 0x728   :  { %v6384_v13 = vpop.f32.mrb[190].mxu1 }
 0x729   :  { %v9434_v49 = vpop.f32.mrb[191].mxu1 }
 0x736   :  { %v6458_v54 = vpop.f32.mrb[192].mxu1 }
 0x737   :  { %v6464_v1 = vadd.f32 %v6458_v54, %v6387_v15  ;;  %v9445_v32 = vpop.f32.mrb[193].mxu1 }
 0x738   :  { %v6461_v18 = vpop.f32.mrb[194].mxu1 }
 0x739   :  { %v9446_v43 = vpop.f32.mrb[195].mxu1 }
 0x746   :  { %v6535_v56 = vpop.f32.mrb[196].mxu1 }
 0x747   :  { %v6541_v44 = vadd.f32 %v6535_v56, %v6464_v1  ;;  %v9457_v33 = vpop.f32.mrb[197].mxu1 }
 0x748   :  { %v6538_v20 = vpop.f32.mrb[198].mxu1 }
 0x749   :  { %v9458_v19 = vpop.f32.mrb[199].mxu1  ;;  %v6618_v58 = vadd.f32 %v13039_v30, %v6541_v44 }
 0x756   :  { %v6689_v17 = vpop.f32.mrb[200].mxu1 }
 0x757   :  { %v6695_v50 = vadd.f32 %v6689_v17, %v6618_v58  ;;  %v9481_v45 = vpop.f32.mrb[201].mxu1 }
 0x758   :  { %v6692_v8 = vpop.f32.mrb[202].mxu1 }
 0x759   :  { %v9482_v26 = vpop.f32.mrb[203].mxu1  ;;  %v6772_v7 = vadd.f32 %v13051_v11, %v6695_v50 }
 0x766   :  { %v6843_v36 = vpop.f32.mrb[204].mxu1 }
 0x767   :  { %v6849_v53 = vadd.f32 %v6843_v36, %v6772_v7  ;;  %v9505_v12 = vpop.f32.mrb[205].mxu1 }
 0x768   :  { %v6846_v29 = vpop.f32.mrb[206].mxu1 }
 0x769   :  { %v9506_v40 = vpop.f32.mrb[207].mxu1  ;;  %v6926_v6 = vadd.f32 %v13053_v22, %v6849_v53 }
 0x776   :  { %v6997_v62 = vpop.f32.mrb[208].mxu1 }
 0x777   :  { %v7003_v31 = vadd.f32 %v6997_v62, %v6926_v6  ;;  %v9529_v37 = vpop.f32.mrb[209].mxu1 }
 0x778   :  { %v7000_v10 = vpop.f32.mrb[210].mxu1 }
 0x779   :  { %v9530_v47 = vpop.f32.mrb[211].mxu1  ;;  %v7080_v30 = vadd.f32 %v13055_v25, %v7003_v31 }
 0x786   :  { %v7151_v39 = vpop.f32.mrb[212].mxu1 }
 0x787   :  { %v7157_v28 = vadd.f32 %v7151_v39, %v7080_v30  ;;  %v9553_v2 = vpop.f32.mrb[213].mxu1 }
 0x788   :  { %v7154_v27 = vpop.f32.mrb[214].mxu1 }
 0x789   :  { %v9554_v48 = vpop.f32.mrb[215].mxu1  ;;  %v7234_v11 = vadd.f32 %v13057_v9, %v7157_v28  ;;  %v7981_v9 = vld [vmem:[%s13115_s8] ss:$0 sm:$0xff] }
 0x796   :  { %v7305_v34 = vpop.f32.mrb[216].mxu1 }
 0x797   :  { %v7311_v14 = vadd.f32 %v7305_v34, %v7234_v11  ;;  %v9577_v41 = vpop.f32.mrb[217].mxu1 }
 0x798   :  { %v7308_v57 = vpop.f32.mrb[218].mxu1 }
 0x799   :  { %v9578_v59 = vpop.f32.mrb[219].mxu1  ;;  %v7388_v22 = vadd.f32 %v13067_v38, %v7311_v14 }
 0x7a6   :  { %v7459_v3 = vpop.f32.mrb[220].mxu1 }
 0x7a7   :  { %v7465_v25 = vadd.f32 %v7459_v3, %v7388_v22  ;;  %v9601_v51 = vpop.f32.mrb[221].mxu1 }
 0x7a8   :  { %v7462_v63 = vpop.f32.mrb[222].mxu1 }
 0x7a9   :  { %v7473_v60 = vadd.f32 %v7980_v55, %v7465_v25  ;;  %v9602_v23 = vpop.f32.mrb[223].mxu1 }
 0x7ab   :  { %v7474_v4 = vmax.f32 %v7473_v60, 0.0 }
 0x7ad   :  { %v7475_v42 = vpack.c.bf16 %v7474_v4, %v7474_v4 }
 0x7af   :  { %9620 = vmatmul.mubr.bf16.vlgmr.msra.gmra.mrb[8].mxu0 %v7475_v42 }
 0x882   :  { %v7581_v46 = vpop.f32.mrb[8].mxu0 }
 0x883   :  { %v7582_v61 = vadd.f32 %v7981_v9, %v7581_v46  ;;  %v9621_v38 = vpop.f32.mrb[9].mxu0 }
 0x884   :  { %v7584_v0 = vpop.f32.mrb[10].mxu0 }
 0x885   :  { %7587 = vmax.xlane.f32.xlu1 %v7582_v61  ;;  %v9622_v35 = vpop.f32.mrb[11].mxu0 }
 0x912   :  { %v7588_v5 = vpop.xlane.xlu1 %7587 }
 0x913   :  { %v7589_v16 = vsub.f32 %v7582_v61, %v7588_v5 }
 0x915   :  { %v7590_v15 = vmul.f32 1.442695, %v7589_v16 }
 0x917   :  { %9758 = vpow2.f32 %v7590_v15 }
 0x921   :  { %v9759_v52 = vpop.eup %9758 }
 0x922   :  { %7592 = vadd.xlane.f32.xlu0 %v9759_v52 }
 0x9af   :  { %v7593_v24 = vpop.xlane.xlu0 %7592 }
 0x9b0   :  { %9760 = vrcp.f32 %v7593_v24 }
 0x9ba   :  { %v9761_v13 = vpop.eup %9760 }
 0x9bb   :  { %v7595_v49 = vmul.f32 %v9761_v13, %v9759_v52 }
 0x9bd   :  { %7596 = vst [vmem:[%s13116_s9] sm:$0xff] %v7595_v49 }

</bundles_post_ra>
